<compile_context>
chip_gen: v5e
topology: v5e:2x2
jax: 0.10.0
libtpu: 0.0.40
codegen_flags: <defaults>
</compile_context>

<pallas_src>
import functools

import jax
import jax.numpy as jnp
from jax import lax
from jax.experimental import pallas as pl
from jax.experimental.pallas import tpu as pltpu


# ----------------------------------------------------------------------------
# In-kernel building blocks (operate on jnp values resident in VMEM / vregs)
# ----------------------------------------------------------------------------
def _edge_masks(H, W):
    """Lane masks marking columns whose left / right neighbor is inside the row."""
    hw = H * W
    xx = lax.broadcasted_iota(jnp.int32, (1, hw), 1) % W
    mask_l = (xx >= 1).astype(jnp.float32)        # valid source for ox = -1
    mask_r = (xx <= W - 2).astype(jnp.float32)    # valid source for ox = +1
    return mask_l, mask_r


def _conv3x3_relu(a, w_mat, b_col, H, W, mask_l, mask_r):
    """a: (Cin, H*W); w_mat: (Cout, 9*Cin); b_col: (Cout, 1) -> (Cout, H*W)."""
    cin, hw = a.shape
    pad = W + 1                                    # covers |oy*W + ox| <= W+1
    zeros = jnp.zeros((cin, pad), jnp.float32)
    apad = jnp.concatenate([zeros, a, zeros], axis=-1)   # zero halo (top/bottom rows)
    patches = []
    for oy in (-1, 0, 1):
        for ox in (-1, 0, 1):
            s = oy * W + ox
            sh = apad[:, pad + s: pad + s + hw]    # value at flat index i + s, 0-filled
            if ox == -1:
                sh = sh * mask_l                   # kill row-wrap at left edge
            elif ox == 1:
                sh = sh * mask_r                   # kill row-wrap at right edge
            patches.append(sh)
    p = jnp.concatenate(patches, axis=0)           # im2col: (9*Cin, H*W)
    y = jnp.dot(w_mat, p, preferred_element_type=jnp.float32) + b_col
    return jnp.maximum(y, 0.0)


def _maxpool2x2(a, sel, W):
    """a: (C, H*W) -> (C, (H//2)*(W//2)); sel: 0/1 downsample-selection matrix."""
    cc, hw = a.shape
    right = jnp.concatenate([a[:, 1:], jnp.zeros((cc, 1), jnp.float32)], axis=-1)
    h = jnp.maximum(a, right)                      # max(a[i], a[i+1])
    down = jnp.concatenate([h[:, W:], jnp.zeros((cc, W), jnp.float32)], axis=-1)
    v = jnp.maximum(h, down)                       # full 2x2 max at even (y, x)
    return jnp.dot(v, sel, preferred_element_type=jnp.float32)


# ----------------------------------------------------------------------------
# Fused forward kernel (whole model, one grid step = `bt` images)
# ----------------------------------------------------------------------------
def _fused_forward_kernel(x_ref, w1_ref, b1_ref, w2_ref, b2_ref,
                          w3_ref, b3_ref, w4_ref, b4_ref,
                          s1_ref, s2_ref, wfc_ref, bfc_ref, o_ref, *, H, W, bt):
    H2, W2 = H // 2, W // 2
    ch = w1_ref.shape[0]

    w1, b1 = w1_ref[...], b1_ref[...]
    w2, b2 = w2_ref[...], b2_ref[...]
    w3, b3 = w3_ref[...], b3_ref[...]
    w4, b4 = w4_ref[...], b4_ref[...]
    s1, s2 = s1_ref[...], s2_ref[...]
    bfc = bfc_ref[...]

    m1l, m1r = _edge_masks(H, W)                   # hoisted: shared by both convs of block 1
    m2l, m2r = _edge_masks(H2, W2)

    logits_all = []
    for i in range(bt):                            # unrolled over the per-step image block
        a = x_ref[0, i]                            # (Cin, H*W), lane-dense flat spatial
        # conv_block_1
        a = _conv3x3_relu(a, w1, b1, H, W, m1l, m1r)
        a = _conv3x3_relu(a, w2, b2, H, W, m1l, m1r)
        a = _maxpool2x2(a, s1, W)                  # (ch, H2*W2)
        # conv_block_2
        a = _conv3x3_relu(a, w3, b3, H2, W2, m2l, m2r)
        a = _conv3x3_relu(a, w4, b4, H2, W2, m2l, m2r)
        a = _maxpool2x2(a, s2, W2)                 # (ch, (H//4)*(W//4))
        # classifier: (C, 7*7) layout == PyTorch NCHW flatten order -> no transpose
        logits = bfc                               # (1, O)
        for c in range(ch):
            logits = logits + jnp.dot(a[c:c + 1, :], wfc_ref[c],
                                      preferred_element_type=jnp.float32)
        logits_all.append(logits)
    o_ref[...] = jnp.concatenate(logits_all, axis=0)[None]   # (1, bt, O)


# ----------------------------------------------------------------------------
# Host-side glue: weight re-layouts, pool selection matrices, pallas_call wrapper
# ----------------------------------------------------------------------------
def _pool_select_matrix(H, W):
    """(H*W, (H//2)*(W//2)) 0/1 matrix selecting the (2*yo, 2*xo) positions."""
    H2, W2 = H // 2, W // 2
    r = jnp.arange(H * W)
    c = jnp.arange(H2 * W2)
    y, x = r // W, r % W
    yo, xo = c // W2, c % W2
    sel = (y[:, None] == 2 * yo[None, :]) & (x[:, None] == 2 * xo[None, :])
    return sel.astype(jnp.float32)


def _conv_w_to_mat(w_hwio):
    """HWIO (3,3,Cin,Cout) -> (Cout, 9*Cin), columns ordered tap-major, channel-minor."""
    kh, kw, cin, cout = w_hwio.shape
    return jnp.transpose(w_hwio, (3, 0, 1, 2)).reshape(cout, kh * kw * cin)


def fashion_mnist_model_v1(params, x_nchw, *, batch_block=2):
    N, Cin, H, W = x_nchw.shape
    HW = H * W
    H2, W2, H4, W4 = H // 2, W // 2, H // 4, W // 4
    ch = params["w1b"].shape[-1]
    O = params["wfc"].shape[-1]

    bt = max(1, min(batch_block, N))
    n_blk = pl.cdiv(N, bt)
    n_pad = n_blk * bt

    x = x_nchw.astype(jnp.float32).reshape(N, Cin, HW)
    if n_pad != N:
        x = jnp.concatenate([x, jnp.zeros((n_pad - N, Cin, HW), jnp.float32)], axis=0)
    x = x.reshape(n_blk, bt, Cin, HW)

    w1 = _conv_w_to_mat(params["w1a"]); b1 = params["b1a"].reshape(ch, 1)
    w2 = _conv_w_to_mat(params["w1b"]); b2 = params["b1b"].reshape(ch, 1)
    w3 = _conv_w_to_mat(params["w2a"]); b3 = params["b2a"].reshape(ch, 1)
    w4 = _conv_w_to_mat(params["w2b"]); b4 = params["b2b"].reshape(ch, 1)
    s1 = _pool_select_matrix(H, W)                 # (HW, H2*W2)
    s2 = _pool_select_matrix(H2, W2)               # (H2*W2, H4*W4)
    wfc = params["wfc"].reshape(ch, H4 * W4, O)    # rows already in (C,H,W) flatten order
    bfc = params["bfc"].reshape(1, O)

    flops_per_img = 2 * (ch * 9 * Cin * HW + ch * 9 * ch * HW + ch * HW * H2 * W2
                         + 2 * ch * 9 * ch * H2 * W2 + ch * H2 * W2 * H4 * W4
                         + ch * H4 * W4 * O)
    bytes_accessed = int((x.size + n_pad * O) * 4 + sum(
        int(a.size) * 4 for a in (w1, b1, w2, b2, w3, b3, w4, b4, s1, s2, wfc, bfc)))

    const2 = lambda n: (0, 0)
    kernel = functools.partial(_fused_forward_kernel, H=H, W=W, bt=bt)
    out = pl.pallas_call(
        kernel,
        out_shape=jax.ShapeDtypeStruct((n_blk, bt, O), jnp.float32),
        grid=(n_blk,),
        in_specs=[
            pl.BlockSpec((1, bt, Cin, HW), lambda n: (n, 0, 0, 0)),
            pl.BlockSpec((ch, 9 * Cin), const2),
            pl.BlockSpec((ch, 1), const2),
            pl.BlockSpec((ch, 9 * ch), const2),
            pl.BlockSpec((ch, 1), const2),
            pl.BlockSpec((ch, 9 * ch), const2),
            pl.BlockSpec((ch, 1), const2),
            pl.BlockSpec((ch, 9 * ch), const2),
            pl.BlockSpec((ch, 1), const2),
            pl.BlockSpec((HW, H2 * W2), const2),
            pl.BlockSpec((H2 * W2, H4 * W4), const2),
            pl.BlockSpec((ch, H4 * W4, O), lambda n: (0, 0, 0)),
            pl.BlockSpec((1, O), const2),
        ],
        out_specs=pl.BlockSpec((1, bt, O), lambda n: (n, 0, 0)),
        compiler_params=pltpu.CompilerParams(dimension_semantics=("parallel",)),
        cost_estimate=pl.CostEstimate(flops=int(flops_per_img * n_pad),
                                      transcendentals=0,
                                      bytes_accessed=bytes_accessed),
    )(x, w1, b1, w2, b2, w3, b3, w4, b4, s1, s2, wfc, bfc)
    return out.reshape(n_pad, O)[:N]


# ----------------------------------------------------------------------------
# Parameters (canonical HWIO conv weights, (in, out) fc weight)
# ----------------------------------------------------------------------------
def init_params(key, input_shape, hidden_units, output_shape):
    ks = jax.random.split(key, 10)
    s = 0.1
    nrm = lambda k, shp: (jax.random.normal(k, shp, jnp.float32) * s)
    return {
        "w1a": nrm(ks[0], (3, 3, input_shape, hidden_units)),
        "b1a": nrm(ks[1], (hidden_units,)),
        "w1b": nrm(ks[2], (3, 3, hidden_units, hidden_units)),
        "b1b": nrm(ks[3], (hidden_units,)),
        "w2a": nrm(ks[4], (3, 3, hidden_units, hidden_units)),
        "b2a": nrm(ks[5], (hidden_units,)),
        "w2b": nrm(ks[6], (3, 3, hidden_units, hidden_units)),
        "b2b": nrm(ks[7], (hidden_units,)),
        "wfc": nrm(ks[8], (hidden_units * 7 * 7, output_shape)),
        "bfc": nrm(ks[9], (output_shape,)),
    }


# ----------------------------------------------------------------------------
# Pure-JAX reference (correctness check of the Pallas kernel)
# ----------------------------------------------------------------------------
def _ref_forward(params, x_nchw):
    x = jnp.transpose(x_nchw, (0, 2, 3, 1))

    def conv(x, w, b):
        y = lax.conv_general_dilated(
            x, w, window_strides=(1, 1), padding=((1, 1), (1, 1)),
            dimension_numbers=("NHWC", "HWIO", "NHWC"),
            precision=lax.Precision.HIGHEST)
        return jax.nn.relu(y + b)

    def pool(x):
        N, H, W, C = x.shape
        return jnp.max(x.reshape(N, H // 2, 2, W // 2, 2, C), axis=(2, 4))

    x = conv(x, params["w1a"], params["b1a"])
    x = conv(x, params["w1b"], params["b1b"])
    x = pool(x)
    x = conv(x, params["w2a"], params["b2a"])
    x = conv(x, params["w2b"], params["b2b"])
    x = pool(x)
    N = x.shape[0]
    x = jnp.transpose(x, (0, 3, 1, 2)).reshape(N, -1)   # NCHW flatten, like nn.Flatten
    return jnp.dot(x, params["wfc"],
                   precision=lax.Precision.HIGHEST) + params["bfc"]


if __name__ == "__main__":
    key = jax.random.PRNGKey(0)
    k_x, k_p = jax.random.split(key)

    # 28x28 spatial is implied by the classifier's hidden_units * 7 * 7 (two 2x2 pools).
    N, Cin, H, W = 4, 1, 28, 28
    hidden_units, output_shape = 8, 10

    x = jax.random.normal(k_x, (N, Cin, H, W), jnp.float32)
    params = init_params(k_p, Cin, hidden_units, output_shape)

    fwd = jax.jit(functools.partial(fashion_mnist_model_v1, batch_block=2))
    y = jax.block_until_ready(fwd(params, x))
    assert y.shape == (N, output_shape), y.shape

    y_ref = _ref_forward(params, x)
    max_err = float(jnp.max(jnp.abs(y - y_ref)))
    if not bool(jnp.allclose(y, y_ref, rtol=1e-2, atol=1e-2)):
        raise AssertionError(
            f"Pallas output mismatch vs reference: max abs diff {max_err}")

    print("KERNEL_OK")
</pallas_src>

<mosaic_0001>
module attributes {stable_mosaic.version = 11 : i64} {
  func.func @_fused_forward_kernel(%arg0: i32, %arg1: memref<1x2x1x784xf32, #tpu.memory_space<vmem>>, %arg2: memref<8x9xf32, #tpu.memory_space<vmem>>, %arg3: memref<8x1xf32, #tpu.memory_space<vmem>>, %arg4: memref<8x72xf32, #tpu.memory_space<vmem>>, %arg5: memref<8x1xf32, #tpu.memory_space<vmem>>, %arg6: memref<8x72xf32, #tpu.memory_space<vmem>>, %arg7: memref<8x1xf32, #tpu.memory_space<vmem>>, %arg8: memref<8x72xf32, #tpu.memory_space<vmem>>, %arg9: memref<8x1xf32, #tpu.memory_space<vmem>>, %arg10: memref<784x196xf32, #tpu.memory_space<vmem>>, %arg11: memref<196x49xf32, #tpu.memory_space<vmem>>, %arg12: memref<8x49x10xf32, #tpu.memory_space<vmem>>, %arg13: memref<1x10xf32, #tpu.memory_space<vmem>>, %arg14: memref<1x2x10xf32, #tpu.memory_space<vmem>>) attributes {dimension_semantics = [#tpu.dimension_semantics<parallel>], iteration_bounds = array<i64: 2>, scalar_prefetch = 0 : i64, scratch_operands = 0 : i64, tpu.core_type = #tpu.core_type<tc>, window_params = [{transform_indices = @transform_0, window_bounds = array<i64: 1, 2, 1, 784>}, {pipeline_mode = #tpu.pipeline_mode<synchronous>, transform_indices = @transform_1, window_bounds = array<i64: 8, 9>}, {pipeline_mode = #tpu.pipeline_mode<synchronous>, transform_indices = @transform_2, window_bounds = array<i64: 8, 1>}, {pipeline_mode = #tpu.pipeline_mode<synchronous>, transform_indices = @transform_3, window_bounds = array<i64: 8, 72>}, {pipeline_mode = #tpu.pipeline_mode<synchronous>, transform_indices = @transform_4, window_bounds = array<i64: 8, 1>}, {pipeline_mode = #tpu.pipeline_mode<synchronous>, transform_indices = @transform_5, window_bounds = array<i64: 8, 72>}, {pipeline_mode = #tpu.pipeline_mode<synchronous>, transform_indices = @transform_6, window_bounds = array<i64: 8, 1>}, {pipeline_mode = #tpu.pipeline_mode<synchronous>, transform_indices = @transform_7, window_bounds = array<i64: 8, 72>}, {pipeline_mode = #tpu.pipeline_mode<synchronous>, transform_indices = @transform_8, window_bounds = array<i64: 8, 1>}, {pipeline_mode = #tpu.pipeline_mode<synchronous>, transform_indices = @transform_9, window_bounds = array<i64: 784, 196>}, {pipeline_mode = #tpu.pipeline_mode<synchronous>, transform_indices = @transform_10, window_bounds = array<i64: 196, 49>}, {pipeline_mode = #tpu.pipeline_mode<synchronous>, transform_indices = @transform_11, window_bounds = array<i64: 8, 49, 10>}, {pipeline_mode = #tpu.pipeline_mode<synchronous>, transform_indices = @transform_12, window_bounds = array<i64: 1, 10>}, {transform_indices = @transform_13, window_bounds = array<i64: 1, 2, 10>}]} {
    %c0 = arith.constant 0 : index
    %c0_0 = arith.constant 0 : index
    %0 = vector.load %arg2[%c0, %c0_0] : memref<8x9xf32, #tpu.memory_space<vmem>>, vector<8x9xf32>
    %c0_1 = arith.constant 0 : index
    %c0_2 = arith.constant 0 : index
    %1 = vector.load %arg3[%c0_1, %c0_2] : memref<8x1xf32, #tpu.memory_space<vmem>>, vector<8x1xf32>
    %c0_3 = arith.constant 0 : index
    %c0_4 = arith.constant 0 : index
    %2 = vector.load %arg4[%c0_3, %c0_4] : memref<8x72xf32, #tpu.memory_space<vmem>>, vector<8x72xf32>
    %c0_5 = arith.constant 0 : index
    %c0_6 = arith.constant 0 : index
    %3 = vector.load %arg5[%c0_5, %c0_6] : memref<8x1xf32, #tpu.memory_space<vmem>>, vector<8x1xf32>
    %c0_7 = arith.constant 0 : index
    %c0_8 = arith.constant 0 : index
    %4 = vector.load %arg6[%c0_7, %c0_8] : memref<8x72xf32, #tpu.memory_space<vmem>>, vector<8x72xf32>
    %c0_9 = arith.constant 0 : index
    %c0_10 = arith.constant 0 : index
    %5 = vector.load %arg7[%c0_9, %c0_10] : memref<8x1xf32, #tpu.memory_space<vmem>>, vector<8x1xf32>
    %c0_11 = arith.constant 0 : index
    %c0_12 = arith.constant 0 : index
    %6 = vector.load %arg8[%c0_11, %c0_12] : memref<8x72xf32, #tpu.memory_space<vmem>>, vector<8x72xf32>
    %c0_13 = arith.constant 0 : index
    %c0_14 = arith.constant 0 : index
    %7 = vector.load %arg9[%c0_13, %c0_14] : memref<8x1xf32, #tpu.memory_space<vmem>>, vector<8x1xf32>
    %c0_15 = arith.constant 0 : index
    %c0_16 = arith.constant 0 : index
    %8 = vector.load %arg10[%c0_15, %c0_16] : memref<784x196xf32, #tpu.memory_space<vmem>>, vector<784x196xf32>
    %c0_17 = arith.constant 0 : index
    %c0_18 = arith.constant 0 : index
    %9 = vector.load %arg11[%c0_17, %c0_18] : memref<196x49xf32, #tpu.memory_space<vmem>>, vector<196x49xf32>
    %c0_19 = arith.constant 0 : index
    %c0_20 = arith.constant 0 : index
    %10 = vector.load %arg13[%c0_19, %c0_20] : memref<1x10xf32, #tpu.memory_space<vmem>>, vector<1x10xf32>
    %11 = tpu.iota {dimensions = array<i32: 1>} : vector<1x784xi32>
    %c28_i32 = arith.constant 28 : i32
    %c0_i32 = arith.constant 0 : i32
    %12 = arith.cmpi eq, %c28_i32, %c0_i32 : i32
    %c1_i32 = arith.constant 1 : i32
    %13 = arith.select %12, %c1_i32, %c28_i32 : i32
    %14 = vector.broadcast %13 : i32 to vector<1x784xi32>
    %15 = arith.remsi %11, %14 : vector<1x784xi32>
    %c0_i32_21 = arith.constant 0 : i32
    %16 = vector.broadcast %c0_i32_21 : i32 to vector<1x784xi32>
    %17 = arith.cmpi ne, %15, %16 : vector<1x784xi32>
    %c0_i32_22 = arith.constant 0 : i32
    %18 = vector.broadcast %c0_i32_22 : i32 to vector<1x784xi32>
    %19 = arith.cmpi slt, %15, %18 : vector<1x784xi32>
    %c0_i32_23 = arith.constant 0 : i32
    %20 = arith.cmpi slt, %13, %c0_i32_23 : i32
    %21 = vector.broadcast %20 : i1 to vector<1x784xi1>
    %22 = vector.broadcast %21 : vector<1x784xi1> to vector<1x784xi1>
    %23 = arith.xori %19, %22 : vector<1x784xi1>
    %24 = arith.andi %23, %17 : vector<1x784xi1>
    %25 = vector.broadcast %13 : i32 to vector<1x784xi32>
    %26 = arith.addi %15, %25 : vector<1x784xi32>
    %27 = arith.select %24, %26, %15 : vector<1x784xi1>, vector<1x784xi32>
    %c1_i32_24 = arith.constant 1 : i32
    %28 = vector.broadcast %c1_i32_24 : i32 to vector<1x784xi32>
    %29 = arith.cmpi sge, %27, %28 : vector<1x784xi32>
    %30 = arith.extui %29 : vector<1x784xi1> to vector<1x784xi32>
    %31 = arith.sitofp %30 : vector<1x784xi32> to vector<1x784xf32>
    %c26_i32 = arith.constant 26 : i32
    %32 = vector.broadcast %c26_i32 : i32 to vector<1x784xi32>
    %33 = arith.cmpi sle, %27, %32 : vector<1x784xi32>
    %34 = arith.extui %33 : vector<1x784xi1> to vector<1x784xi32>
    %35 = arith.sitofp %34 : vector<1x784xi32> to vector<1x784xf32>
    %36 = tpu.iota {dimensions = array<i32: 1>} : vector<1x196xi32>
    %c14_i32 = arith.constant 14 : i32
    %c0_i32_25 = arith.constant 0 : i32
    %37 = arith.cmpi eq, %c14_i32, %c0_i32_25 : i32
    %c1_i32_26 = arith.constant 1 : i32
    %38 = arith.select %37, %c1_i32_26, %c14_i32 : i32
    %39 = vector.broadcast %38 : i32 to vector<1x196xi32>
    %40 = arith.remsi %36, %39 : vector<1x196xi32>
    %c0_i32_27 = arith.constant 0 : i32
    %41 = vector.broadcast %c0_i32_27 : i32 to vector<1x196xi32>
    %42 = arith.cmpi ne, %40, %41 : vector<1x196xi32>
    %c0_i32_28 = arith.constant 0 : i32
    %43 = vector.broadcast %c0_i32_28 : i32 to vector<1x196xi32>
    %44 = arith.cmpi slt, %40, %43 : vector<1x196xi32>
    %c0_i32_29 = arith.constant 0 : i32
    %45 = arith.cmpi slt, %38, %c0_i32_29 : i32
    %46 = vector.broadcast %45 : i1 to vector<1x196xi1>
    %47 = vector.broadcast %46 : vector<1x196xi1> to vector<1x196xi1>
    %48 = arith.xori %44, %47 : vector<1x196xi1>
    %49 = arith.andi %48, %42 : vector<1x196xi1>
    %50 = vector.broadcast %38 : i32 to vector<1x196xi32>
    %51 = arith.addi %40, %50 : vector<1x196xi32>
    %52 = arith.select %49, %51, %40 : vector<1x196xi1>, vector<1x196xi32>
    %c1_i32_30 = arith.constant 1 : i32
    %53 = vector.broadcast %c1_i32_30 : i32 to vector<1x196xi32>
    %54 = arith.cmpi sge, %52, %53 : vector<1x196xi32>
    %55 = arith.extui %54 : vector<1x196xi1> to vector<1x196xi32>
    %56 = arith.sitofp %55 : vector<1x196xi32> to vector<1x196xf32>
    %c12_i32 = arith.constant 12 : i32
    %57 = vector.broadcast %c12_i32 : i32 to vector<1x196xi32>
    %58 = arith.cmpi sle, %52, %57 : vector<1x196xi32>
    %59 = arith.extui %58 : vector<1x196xi1> to vector<1x196xi32>
    %60 = arith.sitofp %59 : vector<1x196xi32> to vector<1x196xf32>
    %c0_31 = arith.constant 0 : index
    %c0_32 = arith.constant 0 : index
    %c0_33 = arith.constant 0 : index
    %c0_34 = arith.constant 0 : index
    %61 = vector.load %arg1[%c0_31, %c0_32, %c0_33, %c0_34] : memref<1x2x1x784xf32, #tpu.memory_space<vmem>>, vector<1x1x1x784xf32>
    %62 = vector.shape_cast %61 : vector<1x1x1x784xf32> to vector<1x784xf32>
    %cst = arith.constant 0.000000e+00 : f32
    %63 = vector.broadcast %cst : f32 to vector<1x29xf32>
    %64 = tpu.concatenate %63, %62, %63 in 1 : vector<1x29xf32>, vector<1x784xf32>, vector<1x29xf32> -> vector<1x842xf32>
    %65 = vector.extract_strided_slice %64 {offsets = [0, 0], sizes = [1, 784], strides = [1, 1]} : vector<1x842xf32> to vector<1x784xf32>
    %66 = arith.mulf %65, %31 : vector<1x784xf32>
    %67 = vector.extract_strided_slice %64 {offsets = [0, 1], sizes = [1, 784], strides = [1, 1]} : vector<1x842xf32> to vector<1x784xf32>
    %68 = vector.extract_strided_slice %64 {offsets = [0, 2], sizes = [1, 784], strides = [1, 1]} : vector<1x842xf32> to vector<1x784xf32>
    %69 = arith.mulf %68, %35 : vector<1x784xf32>
    %70 = vector.extract_strided_slice %64 {offsets = [0, 28], sizes = [1, 784], strides = [1, 1]} : vector<1x842xf32> to vector<1x784xf32>
    %71 = arith.mulf %70, %31 : vector<1x784xf32>
    %72 = vector.extract_strided_slice %64 {offsets = [0, 29], sizes = [1, 784], strides = [1, 1]} : vector<1x842xf32> to vector<1x784xf32>
    %73 = vector.extract_strided_slice %64 {offsets = [0, 30], sizes = [1, 784], strides = [1, 1]} : vector<1x842xf32> to vector<1x784xf32>
    %74 = arith.mulf %73, %35 : vector<1x784xf32>
    %75 = vector.extract_strided_slice %64 {offsets = [0, 56], sizes = [1, 784], strides = [1, 1]} : vector<1x842xf32> to vector<1x784xf32>
    %76 = arith.mulf %75, %31 : vector<1x784xf32>
    %77 = vector.extract_strided_slice %64 {offsets = [0, 57], sizes = [1, 784], strides = [1, 1]} : vector<1x842xf32> to vector<1x784xf32>
    %78 = vector.extract_strided_slice %64 {offsets = [0, 58], sizes = [1, 784], strides = [1, 1]} : vector<1x842xf32> to vector<1x784xf32>
    %79 = arith.mulf %78, %35 : vector<1x784xf32>
    %80 = tpu.concatenate %66, %67, %69, %71, %72, %74, %76, %77, %79 in 0 : vector<1x784xf32>, vector<1x784xf32>, vector<1x784xf32>, vector<1x784xf32>, vector<1x784xf32>, vector<1x784xf32>, vector<1x784xf32>, vector<1x784xf32>, vector<1x784xf32> -> vector<9x784xf32>
    %cst_35 = arith.constant dense<0.000000e+00> : vector<8x784xf32>
    %81 = tpu.matmul %0, %80, %cst_35 {dimension_numbers = #tpu.dot_dimension_numbers<[1], [0], [0], [1], [0, 0, 1, 1], [], []>} : vector<8x9xf32>, vector<9x784xf32>, vector<8x784xf32> -> vector<8x784xf32>
    %82 = vector.broadcast %1 : vector<8x1xf32> to vector<8x784xf32>
    %83 = arith.addf %81, %82 : vector<8x784xf32>
    %cst_36 = arith.constant 0.000000e+00 : f32
    %84 = vector.broadcast %cst_36 : f32 to vector<8x784xf32>
    %85 = arith.maximumf %83, %84 : vector<8x784xf32>
    %cst_37 = arith.constant 0.000000e+00 : f32
    %86 = vector.broadcast %cst_37 : f32 to vector<8x29xf32>
    %87 = tpu.concatenate %86, %85, %86 in 1 : vector<8x29xf32>, vector<8x784xf32>, vector<8x29xf32> -> vector<8x842xf32>
    %88 = vector.extract_strided_slice %87 {offsets = [0, 0], sizes = [8, 784], strides = [1, 1]} : vector<8x842xf32> to vector<8x784xf32>
    %89 = vector.broadcast %31 : vector<1x784xf32> to vector<8x784xf32>
    %90 = arith.mulf %88, %89 : vector<8x784xf32>
    %91 = vector.extract_strided_slice %87 {offsets = [0, 1], sizes = [8, 784], strides = [1, 1]} : vector<8x842xf32> to vector<8x784xf32>
    %92 = vector.extract_strided_slice %87 {offsets = [0, 2], sizes = [8, 784], strides = [1, 1]} : vector<8x842xf32> to vector<8x784xf32>
    %93 = vector.broadcast %35 : vector<1x784xf32> to vector<8x784xf32>
    %94 = arith.mulf %92, %93 : vector<8x784xf32>
    %95 = vector.extract_strided_slice %87 {offsets = [0, 28], sizes = [8, 784], strides = [1, 1]} : vector<8x842xf32> to vector<8x784xf32>
    %96 = vector.broadcast %31 : vector<1x784xf32> to vector<8x784xf32>
    %97 = arith.mulf %95, %96 : vector<8x784xf32>
    %98 = vector.extract_strided_slice %87 {offsets = [0, 29], sizes = [8, 784], strides = [1, 1]} : vector<8x842xf32> to vector<8x784xf32>
    %99 = vector.extract_strided_slice %87 {offsets = [0, 30], sizes = [8, 784], strides = [1, 1]} : vector<8x842xf32> to vector<8x784xf32>
    %100 = vector.broadcast %35 : vector<1x784xf32> to vector<8x784xf32>
    %101 = arith.mulf %99, %100 : vector<8x784xf32>
    %102 = vector.extract_strided_slice %87 {offsets = [0, 56], sizes = [8, 784], strides = [1, 1]} : vector<8x842xf32> to vector<8x784xf32>
    %103 = vector.broadcast %31 : vector<1x784xf32> to vector<8x784xf32>
    %104 = arith.mulf %102, %103 : vector<8x784xf32>
    %105 = vector.extract_strided_slice %87 {offsets = [0, 57], sizes = [8, 784], strides = [1, 1]} : vector<8x842xf32> to vector<8x784xf32>
    %106 = vector.extract_strided_slice %87 {offsets = [0, 58], sizes = [8, 784], strides = [1, 1]} : vector<8x842xf32> to vector<8x784xf32>
    %107 = vector.broadcast %35 : vector<1x784xf32> to vector<8x784xf32>
    %108 = arith.mulf %106, %107 : vector<8x784xf32>
    %109 = tpu.concatenate %90, %91, %94, %97, %98, %101, %104, %105, %108 in 0 : vector<8x784xf32>, vector<8x784xf32>, vector<8x784xf32>, vector<8x784xf32>, vector<8x784xf32>, vector<8x784xf32>, vector<8x784xf32>, vector<8x784xf32>, vector<8x784xf32> -> vector<72x784xf32>
    %cst_38 = arith.constant dense<0.000000e+00> : vector<8x784xf32>
    %110 = tpu.matmul %2, %109, %cst_38 {dimension_numbers = #tpu.dot_dimension_numbers<[1], [0], [0], [1], [0, 0, 1, 1], [], []>} : vector<8x72xf32>, vector<72x784xf32>, vector<8x784xf32> -> vector<8x784xf32>
    %111 = vector.broadcast %3 : vector<8x1xf32> to vector<8x784xf32>
    %112 = arith.addf %110, %111 : vector<8x784xf32>
    %cst_39 = arith.constant 0.000000e+00 : f32
    %113 = vector.broadcast %cst_39 : f32 to vector<8x784xf32>
    %114 = arith.maximumf %112, %113 : vector<8x784xf32>
    %115 = vector.extract_strided_slice %114 {offsets = [0, 1], sizes = [8, 783], strides = [1, 1]} : vector<8x784xf32> to vector<8x783xf32>
    %cst_40 = arith.constant 0.000000e+00 : f32
    %116 = vector.broadcast %cst_40 : f32 to vector<8x1xf32>
    %117 = tpu.concatenate %115, %116 in 1 : vector<8x783xf32>, vector<8x1xf32> -> vector<8x784xf32>
    %118 = arith.maximumf %114, %117 : vector<8x784xf32>
    %119 = vector.extract_strided_slice %118 {offsets = [0, 28], sizes = [8, 756], strides = [1, 1]} : vector<8x784xf32> to vector<8x756xf32>
    %cst_41 = arith.constant 0.000000e+00 : f32
    %120 = vector.broadcast %cst_41 : f32 to vector<8x28xf32>
    %121 = tpu.concatenate %119, %120 in 1 : vector<8x756xf32>, vector<8x28xf32> -> vector<8x784xf32>
    %122 = arith.maximumf %118, %121 : vector<8x784xf32>
    %cst_42 = arith.constant dense<0.000000e+00> : vector<8x196xf32>
    %123 = tpu.matmul %122, %8, %cst_42 {dimension_numbers = #tpu.dot_dimension_numbers<[1], [0], [0], [1], [0, 0, 1, 1], [], []>} : vector<8x784xf32>, vector<784x196xf32>, vector<8x196xf32> -> vector<8x196xf32>
    %cst_43 = arith.constant 0.000000e+00 : f32
    %124 = vector.broadcast %cst_43 : f32 to vector<8x15xf32>
    %125 = tpu.concatenate %124, %123, %124 in 1 : vector<8x15xf32>, vector<8x196xf32>, vector<8x15xf32> -> vector<8x226xf32>
    %126 = vector.extract_strided_slice %125 {offsets = [0, 0], sizes = [8, 196], strides = [1, 1]} : vector<8x226xf32> to vector<8x196xf32>
    %127 = vector.broadcast %56 : vector<1x196xf32> to vector<8x196xf32>
    %128 = arith.mulf %126, %127 : vector<8x196xf32>
    %129 = vector.extract_strided_slice %125 {offsets = [0, 1], sizes = [8, 196], strides = [1, 1]} : vector<8x226xf32> to vector<8x196xf32>
    %130 = vector.extract_strided_slice %125 {offsets = [0, 2], sizes = [8, 196], strides = [1, 1]} : vector<8x226xf32> to vector<8x196xf32>
    %131 = vector.broadcast %60 : vector<1x196xf32> to vector<8x196xf32>
    %132 = arith.mulf %130, %131 : vector<8x196xf32>
    %133 = vector.extract_strided_slice %125 {offsets = [0, 14], sizes = [8, 196], strides = [1, 1]} : vector<8x226xf32> to vector<8x196xf32>
    %134 = vector.broadcast %56 : vector<1x196xf32> to vector<8x196xf32>
    %135 = arith.mulf %133, %134 : vector<8x196xf32>
    %136 = vector.extract_strided_slice %125 {offsets = [0, 15], sizes = [8, 196], strides = [1, 1]} : vector<8x226xf32> to vector<8x196xf32>
    %137 = vector.extract_strided_slice %125 {offsets = [0, 16], sizes = [8, 196], strides = [1, 1]} : vector<8x226xf32> to vector<8x196xf32>
    %138 = vector.broadcast %60 : vector<1x196xf32> to vector<8x196xf32>
    %139 = arith.mulf %137, %138 : vector<8x196xf32>
    %140 = vector.extract_strided_slice %125 {offsets = [0, 28], sizes = [8, 196], strides = [1, 1]} : vector<8x226xf32> to vector<8x196xf32>
    %141 = vector.broadcast %56 : vector<1x196xf32> to vector<8x196xf32>
    %142 = arith.mulf %140, %141 : vector<8x196xf32>
    %143 = vector.extract_strided_slice %125 {offsets = [0, 29], sizes = [8, 196], strides = [1, 1]} : vector<8x226xf32> to vector<8x196xf32>
    %144 = vector.extract_strided_slice %125 {offsets = [0, 30], sizes = [8, 196], strides = [1, 1]} : vector<8x226xf32> to vector<8x196xf32>
    %145 = vector.broadcast %60 : vector<1x196xf32> to vector<8x196xf32>
    %146 = arith.mulf %144, %145 : vector<8x196xf32>
    %147 = tpu.concatenate %128, %129, %132, %135, %136, %139, %142, %143, %146 in 0 : vector<8x196xf32>, vector<8x196xf32>, vector<8x196xf32>, vector<8x196xf32>, vector<8x196xf32>, vector<8x196xf32>, vector<8x196xf32>, vector<8x196xf32>, vector<8x196xf32> -> vector<72x196xf32>
    %cst_44 = arith.constant dense<0.000000e+00> : vector<8x196xf32>
    %148 = tpu.matmul %4, %147, %cst_44 {dimension_numbers = #tpu.dot_dimension_numbers<[1], [0], [0], [1], [0, 0, 1, 1], [], []>} : vector<8x72xf32>, vector<72x196xf32>, vector<8x196xf32> -> vector<8x196xf32>
    %149 = vector.broadcast %5 : vector<8x1xf32> to vector<8x196xf32>
    %150 = arith.addf %148, %149 : vector<8x196xf32>
    %cst_45 = arith.constant 0.000000e+00 : f32
    %151 = vector.broadcast %cst_45 : f32 to vector<8x196xf32>
    %152 = arith.maximumf %150, %151 : vector<8x196xf32>
    %cst_46 = arith.constant 0.000000e+00 : f32
    %153 = vector.broadcast %cst_46 : f32 to vector<8x15xf32>
    %154 = tpu.concatenate %153, %152, %153 in 1 : vector<8x15xf32>, vector<8x196xf32>, vector<8x15xf32> -> vector<8x226xf32>
    %155 = vector.extract_strided_slice %154 {offsets = [0, 0], sizes = [8, 196], strides = [1, 1]} : vector<8x226xf32> to vector<8x196xf32>
    %156 = vector.broadcast %56 : vector<1x196xf32> to vector<8x196xf32>
    %157 = arith.mulf %155, %156 : vector<8x196xf32>
    %158 = vector.extract_strided_slice %154 {offsets = [0, 1], sizes = [8, 196], strides = [1, 1]} : vector<8x226xf32> to vector<8x196xf32>
    %159 = vector.extract_strided_slice %154 {offsets = [0, 2], sizes = [8, 196], strides = [1, 1]} : vector<8x226xf32> to vector<8x196xf32>
    %160 = vector.broadcast %60 : vector<1x196xf32> to vector<8x196xf32>
    %161 = arith.mulf %159, %160 : vector<8x196xf32>
    %162 = vector.extract_strided_slice %154 {offsets = [0, 14], sizes = [8, 196], strides = [1, 1]} : vector<8x226xf32> to vector<8x196xf32>
    %163 = vector.broadcast %56 : vector<1x196xf32> to vector<8x196xf32>
    %164 = arith.mulf %162, %163 : vector<8x196xf32>
    %165 = vector.extract_strided_slice %154 {offsets = [0, 15], sizes = [8, 196], strides = [1, 1]} : vector<8x226xf32> to vector<8x196xf32>
    %166 = vector.extract_strided_slice %154 {offsets = [0, 16], sizes = [8, 196], strides = [1, 1]} : vector<8x226xf32> to vector<8x196xf32>
    %167 = vector.broadcast %60 : vector<1x196xf32> to vector<8x196xf32>
    %168 = arith.mulf %166, %167 : vector<8x196xf32>
    %169 = vector.extract_strided_slice %154 {offsets = [0, 28], sizes = [8, 196], strides = [1, 1]} : vector<8x226xf32> to vector<8x196xf32>
    %170 = vector.broadcast %56 : vector<1x196xf32> to vector<8x196xf32>
    %171 = arith.mulf %169, %170 : vector<8x196xf32>
    %172 = vector.extract_strided_slice %154 {offsets = [0, 29], sizes = [8, 196], strides = [1, 1]} : vector<8x226xf32> to vector<8x196xf32>
    %173 = vector.extract_strided_slice %154 {offsets = [0, 30], sizes = [8, 196], strides = [1, 1]} : vector<8x226xf32> to vector<8x196xf32>
    %174 = vector.broadcast %60 : vector<1x196xf32> to vector<8x196xf32>
    %175 = arith.mulf %173, %174 : vector<8x196xf32>
    %176 = tpu.concatenate %157, %158, %161, %164, %165, %168, %171, %172, %175 in 0 : vector<8x196xf32>, vector<8x196xf32>, vector<8x196xf32>, vector<8x196xf32>, vector<8x196xf32>, vector<8x196xf32>, vector<8x196xf32>, vector<8x196xf32>, vector<8x196xf32> -> vector<72x196xf32>
    %cst_47 = arith.constant dense<0.000000e+00> : vector<8x196xf32>
    %177 = tpu.matmul %6, %176, %cst_47 {dimension_numbers = #tpu.dot_dimension_numbers<[1], [0], [0], [1], [0, 0, 1, 1], [], []>} : vector<8x72xf32>, vector<72x196xf32>, vector<8x196xf32> -> vector<8x196xf32>
    %178 = vector.broadcast %7 : vector<8x1xf32> to vector<8x196xf32>
    %179 = arith.addf %177, %178 : vector<8x196xf32>
    %cst_48 = arith.constant 0.000000e+00 : f32
    %180 = vector.broadcast %cst_48 : f32 to vector<8x196xf32>
    %181 = arith.maximumf %179, %180 : vector<8x196xf32>
    %182 = vector.extract_strided_slice %181 {offsets = [0, 1], sizes = [8, 195], strides = [1, 1]} : vector<8x196xf32> to vector<8x195xf32>
    %cst_49 = arith.constant 0.000000e+00 : f32
    %183 = vector.broadcast %cst_49 : f32 to vector<8x1xf32>
    %184 = tpu.concatenate %182, %183 in 1 : vector<8x195xf32>, vector<8x1xf32> -> vector<8x196xf32>
    %185 = arith.maximumf %181, %184 : vector<8x196xf32>
    %186 = vector.extract_strided_slice %185 {offsets = [0, 14], sizes = [8, 182], strides = [1, 1]} : vector<8x196xf32> to vector<8x182xf32>
    %cst_50 = arith.constant 0.000000e+00 : f32
    %187 = vector.broadcast %cst_50 : f32 to vector<8x14xf32>
    %188 = tpu.concatenate %186, %187 in 1 : vector<8x182xf32>, vector<8x14xf32> -> vector<8x196xf32>
    %189 = arith.maximumf %185, %188 : vector<8x196xf32>
    %cst_51 = arith.constant dense<0.000000e+00> : vector<8x49xf32>
    %190 = tpu.matmul %189, %9, %cst_51 {dimension_numbers = #tpu.dot_dimension_numbers<[1], [0], [0], [1], [0, 0, 1, 1], [], []>} : vector<8x196xf32>, vector<196x49xf32>, vector<8x49xf32> -> vector<8x49xf32>
    %191 = vector.extract_strided_slice %190 {offsets = [0, 0], sizes = [1, 49], strides = [1, 1]} : vector<8x49xf32> to vector<1x49xf32>
    %c0_52 = arith.constant 0 : index
    %c0_53 = arith.constant 0 : index
    %c0_54 = arith.constant 0 : index
    %192 = vector.load %arg12[%c0_52, %c0_53, %c0_54] : memref<8x49x10xf32, #tpu.memory_space<vmem>>, vector<1x49x10xf32>
    %193 = vector.shape_cast %192 : vector<1x49x10xf32> to vector<49x10xf32>
    %cst_55 = arith.constant dense<0.000000e+00> : vector<1x10xf32>
    %194 = tpu.matmul %191, %193, %cst_55 {dimension_numbers = #tpu.dot_dimension_numbers<[1], [0], [0], [1], [0, 0, 1, 1], [], []>} : vector<1x49xf32>, vector<49x10xf32>, vector<1x10xf32> -> vector<1x10xf32>
    %195 = arith.addf %10, %194 : vector<1x10xf32>
    %196 = vector.extract_strided_slice %190 {offsets = [1, 0], sizes = [1, 49], strides = [1, 1]} : vector<8x49xf32> to vector<1x49xf32>
    %c1 = arith.constant 1 : index
    %c0_56 = arith.constant 0 : index
    %c0_57 = arith.constant 0 : index
    %197 = vector.load %arg12[%c1, %c0_56, %c0_57] : memref<8x49x10xf32, #tpu.memory_space<vmem>>, vector<1x49x10xf32>
    %198 = vector.shape_cast %197 : vector<1x49x10xf32> to vector<49x10xf32>
    %cst_58 = arith.constant dense<0.000000e+00> : vector<1x10xf32>
    %199 = tpu.matmul %196, %198, %cst_58 {dimension_numbers = #tpu.dot_dimension_numbers<[1], [0], [0], [1], [0, 0, 1, 1], [], []>} : vector<1x49xf32>, vector<49x10xf32>, vector<1x10xf32> -> vector<1x10xf32>
    %200 = arith.addf %195, %199 : vector<1x10xf32>
    %201 = vector.extract_strided_slice %190 {offsets = [2, 0], sizes = [1, 49], strides = [1, 1]} : vector<8x49xf32> to vector<1x49xf32>
    %c2 = arith.constant 2 : index
    %c0_59 = arith.constant 0 : index
    %c0_60 = arith.constant 0 : index
    %202 = vector.load %arg12[%c2, %c0_59, %c0_60] : memref<8x49x10xf32, #tpu.memory_space<vmem>>, vector<1x49x10xf32>
    %203 = vector.shape_cast %202 : vector<1x49x10xf32> to vector<49x10xf32>
    %cst_61 = arith.constant dense<0.000000e+00> : vector<1x10xf32>
    %204 = tpu.matmul %201, %203, %cst_61 {dimension_numbers = #tpu.dot_dimension_numbers<[1], [0], [0], [1], [0, 0, 1, 1], [], []>} : vector<1x49xf32>, vector<49x10xf32>, vector<1x10xf32> -> vector<1x10xf32>
    %205 = arith.addf %200, %204 : vector<1x10xf32>
    %206 = vector.extract_strided_slice %190 {offsets = [3, 0], sizes = [1, 49], strides = [1, 1]} : vector<8x49xf32> to vector<1x49xf32>
    %c3 = arith.constant 3 : index
    %c0_62 = arith.constant 0 : index
    %c0_63 = arith.constant 0 : index
    %207 = vector.load %arg12[%c3, %c0_62, %c0_63] : memref<8x49x10xf32, #tpu.memory_space<vmem>>, vector<1x49x10xf32>
    %208 = vector.shape_cast %207 : vector<1x49x10xf32> to vector<49x10xf32>
    %cst_64 = arith.constant dense<0.000000e+00> : vector<1x10xf32>
    %209 = tpu.matmul %206, %208, %cst_64 {dimension_numbers = #tpu.dot_dimension_numbers<[1], [0], [0], [1], [0, 0, 1, 1], [], []>} : vector<1x49xf32>, vector<49x10xf32>, vector<1x10xf32> -> vector<1x10xf32>
    %210 = arith.addf %205, %209 : vector<1x10xf32>
    %211 = vector.extract_strided_slice %190 {offsets = [4, 0], sizes = [1, 49], strides = [1, 1]} : vector<8x49xf32> to vector<1x49xf32>
    %c4 = arith.constant 4 : index
    %c0_65 = arith.constant 0 : index
    %c0_66 = arith.constant 0 : index
    %212 = vector.load %arg12[%c4, %c0_65, %c0_66] : memref<8x49x10xf32, #tpu.memory_space<vmem>>, vector<1x49x10xf32>
    %213 = vector.shape_cast %212 : vector<1x49x10xf32> to vector<49x10xf32>
    %cst_67 = arith.constant dense<0.000000e+00> : vector<1x10xf32>
    %214 = tpu.matmul %211, %213, %cst_67 {dimension_numbers = #tpu.dot_dimension_numbers<[1], [0], [0], [1], [0, 0, 1, 1], [], []>} : vector<1x49xf32>, vector<49x10xf32>, vector<1x10xf32> -> vector<1x10xf32>
    %215 = arith.addf %210, %214 : vector<1x10xf32>
    %216 = vector.extract_strided_slice %190 {offsets = [5, 0], sizes = [1, 49], strides = [1, 1]} : vector<8x49xf32> to vector<1x49xf32>
    %c5 = arith.constant 5 : index
    %c0_68 = arith.constant 0 : index
    %c0_69 = arith.constant 0 : index
    %217 = vector.load %arg12[%c5, %c0_68, %c0_69] : memref<8x49x10xf32, #tpu.memory_space<vmem>>, vector<1x49x10xf32>
    %218 = vector.shape_cast %217 : vector<1x49x10xf32> to vector<49x10xf32>
    %cst_70 = arith.constant dense<0.000000e+00> : vector<1x10xf32>
    %219 = tpu.matmul %216, %218, %cst_70 {dimension_numbers = #tpu.dot_dimension_numbers<[1], [0], [0], [1], [0, 0, 1, 1], [], []>} : vector<1x49xf32>, vector<49x10xf32>, vector<1x10xf32> -> vector<1x10xf32>
    %220 = arith.addf %215, %219 : vector<1x10xf32>
    %221 = vector.extract_strided_slice %190 {offsets = [6, 0], sizes = [1, 49], strides = [1, 1]} : vector<8x49xf32> to vector<1x49xf32>
    %c6 = arith.constant 6 : index
    %c0_71 = arith.constant 0 : index
    %c0_72 = arith.constant 0 : index
    %222 = vector.load %arg12[%c6, %c0_71, %c0_72] : memref<8x49x10xf32, #tpu.memory_space<vmem>>, vector<1x49x10xf32>
    %223 = vector.shape_cast %222 : vector<1x49x10xf32> to vector<49x10xf32>
    %cst_73 = arith.constant dense<0.000000e+00> : vector<1x10xf32>
    %224 = tpu.matmul %221, %223, %cst_73 {dimension_numbers = #tpu.dot_dimension_numbers<[1], [0], [0], [1], [0, 0, 1, 1], [], []>} : vector<1x49xf32>, vector<49x10xf32>, vector<1x10xf32> -> vector<1x10xf32>
    %225 = arith.addf %220, %224 : vector<1x10xf32>
    %226 = vector.extract_strided_slice %190 {offsets = [7, 0], sizes = [1, 49], strides = [1, 1]} : vector<8x49xf32> to vector<1x49xf32>
    %c7 = arith.constant 7 : index
    %c0_74 = arith.constant 0 : index
    %c0_75 = arith.constant 0 : index
    %227 = vector.load %arg12[%c7, %c0_74, %c0_75] : memref<8x49x10xf32, #tpu.memory_space<vmem>>, vector<1x49x10xf32>
    %228 = vector.shape_cast %227 : vector<1x49x10xf32> to vector<49x10xf32>
    %cst_76 = arith.constant dense<0.000000e+00> : vector<1x10xf32>
    %229 = tpu.matmul %226, %228, %cst_76 {dimension_numbers = #tpu.dot_dimension_numbers<[1], [0], [0], [1], [0, 0, 1, 1], [], []>} : vector<1x49xf32>, vector<49x10xf32>, vector<1x10xf32> -> vector<1x10xf32>
    %230 = arith.addf %225, %229 : vector<1x10xf32>
    %c0_77 = arith.constant 0 : index
    %c1_78 = arith.constant 1 : index
    %c0_79 = arith.constant 0 : index
    %c0_80 = arith.constant 0 : index
    %231 = vector.load %arg1[%c0_77, %c1_78, %c0_79, %c0_80] : memref<1x2x1x784xf32, #tpu.memory_space<vmem>>, vector<1x1x1x784xf32>
    %232 = vector.shape_cast %231 : vector<1x1x1x784xf32> to vector<1x784xf32>
    %cst_81 = arith.constant 0.000000e+00 : f32
    %233 = vector.broadcast %cst_81 : f32 to vector<1x29xf32>
    %234 = tpu.concatenate %233, %232, %233 in 1 : vector<1x29xf32>, vector<1x784xf32>, vector<1x29xf32> -> vector<1x842xf32>
    %235 = vector.extract_strided_slice %234 {offsets = [0, 0], sizes = [1, 784], strides = [1, 1]} : vector<1x842xf32> to vector<1x784xf32>
    %236 = arith.mulf %235, %31 : vector<1x784xf32>
    %237 = vector.extract_strided_slice %234 {offsets = [0, 1], sizes = [1, 784], strides = [1, 1]} : vector<1x842xf32> to vector<1x784xf32>
    %238 = vector.extract_strided_slice %234 {offsets = [0, 2], sizes = [1, 784], strides = [1, 1]} : vector<1x842xf32> to vector<1x784xf32>
    %239 = arith.mulf %238, %35 : vector<1x784xf32>
    %240 = vector.extract_strided_slice %234 {offsets = [0, 28], sizes = [1, 784], strides = [1, 1]} : vector<1x842xf32> to vector<1x784xf32>
    %241 = arith.mulf %240, %31 : vector<1x784xf32>
    %242 = vector.extract_strided_slice %234 {offsets = [0, 29], sizes = [1, 784], strides = [1, 1]} : vector<1x842xf32> to vector<1x784xf32>
    %243 = vector.extract_strided_slice %234 {offsets = [0, 30], sizes = [1, 784], strides = [1, 1]} : vector<1x842xf32> to vector<1x784xf32>
    %244 = arith.mulf %243, %35 : vector<1x784xf32>
    %245 = vector.extract_strided_slice %234 {offsets = [0, 56], sizes = [1, 784], strides = [1, 1]} : vector<1x842xf32> to vector<1x784xf32>
    %246 = arith.mulf %245, %31 : vector<1x784xf32>
    %247 = vector.extract_strided_slice %234 {offsets = [0, 57], sizes = [1, 784], strides = [1, 1]} : vector<1x842xf32> to vector<1x784xf32>
    %248 = vector.extract_strided_slice %234 {offsets = [0, 58], sizes = [1, 784], strides = [1, 1]} : vector<1x842xf32> to vector<1x784xf32>
    %249 = arith.mulf %248, %35 : vector<1x784xf32>
    %250 = tpu.concatenate %236, %237, %239, %241, %242, %244, %246, %247, %249 in 0 : vector<1x784xf32>, vector<1x784xf32>, vector<1x784xf32>, vector<1x784xf32>, vector<1x784xf32>, vector<1x784xf32>, vector<1x784xf32>, vector<1x784xf32>, vector<1x784xf32> -> vector<9x784xf32>
    %cst_82 = arith.constant dense<0.000000e+00> : vector<8x784xf32>
    %251 = tpu.matmul %0, %250, %cst_82 {dimension_numbers = #tpu.dot_dimension_numbers<[1], [0], [0], [1], [0, 0, 1, 1], [], []>} : vector<8x9xf32>, vector<9x784xf32>, vector<8x784xf32> -> vector<8x784xf32>
    %252 = vector.broadcast %1 : vector<8x1xf32> to vector<8x784xf32>
    %253 = arith.addf %251, %252 : vector<8x784xf32>
    %cst_83 = arith.constant 0.000000e+00 : f32
    %254 = vector.broadcast %cst_83 : f32 to vector<8x784xf32>
    %255 = arith.maximumf %253, %254 : vector<8x784xf32>
    %cst_84 = arith.constant 0.000000e+00 : f32
    %256 = vector.broadcast %cst_84 : f32 to vector<8x29xf32>
    %257 = tpu.concatenate %256, %255, %256 in 1 : vector<8x29xf32>, vector<8x784xf32>, vector<8x29xf32> -> vector<8x842xf32>
    %258 = vector.extract_strided_slice %257 {offsets = [0, 0], sizes = [8, 784], strides = [1, 1]} : vector<8x842xf32> to vector<8x784xf32>
    %259 = vector.broadcast %31 : vector<1x784xf32> to vector<8x784xf32>
    %260 = arith.mulf %258, %259 : vector<8x784xf32>
    %261 = vector.extract_strided_slice %257 {offsets = [0, 1], sizes = [8, 784], strides = [1, 1]} : vector<8x842xf32> to vector<8x784xf32>
    %262 = vector.extract_strided_slice %257 {offsets = [0, 2], sizes = [8, 784], strides = [1, 1]} : vector<8x842xf32> to vector<8x784xf32>
    %263 = vector.broadcast %35 : vector<1x784xf32> to vector<8x784xf32>
    %264 = arith.mulf %262, %263 : vector<8x784xf32>
    %265 = vector.extract_strided_slice %257 {offsets = [0, 28], sizes = [8, 784], strides = [1, 1]} : vector<8x842xf32> to vector<8x784xf32>
    %266 = vector.broadcast %31 : vector<1x784xf32> to vector<8x784xf32>
    %267 = arith.mulf %265, %266 : vector<8x784xf32>
    %268 = vector.extract_strided_slice %257 {offsets = [0, 29], sizes = [8, 784], strides = [1, 1]} : vector<8x842xf32> to vector<8x784xf32>
    %269 = vector.extract_strided_slice %257 {offsets = [0, 30], sizes = [8, 784], strides = [1, 1]} : vector<8x842xf32> to vector<8x784xf32>
    %270 = vector.broadcast %35 : vector<1x784xf32> to vector<8x784xf32>
    %271 = arith.mulf %269, %270 : vector<8x784xf32>
    %272 = vector.extract_strided_slice %257 {offsets = [0, 56], sizes = [8, 784], strides = [1, 1]} : vector<8x842xf32> to vector<8x784xf32>
    %273 = vector.broadcast %31 : vector<1x784xf32> to vector<8x784xf32>
    %274 = arith.mulf %272, %273 : vector<8x784xf32>
    %275 = vector.extract_strided_slice %257 {offsets = [0, 57], sizes = [8, 784], strides = [1, 1]} : vector<8x842xf32> to vector<8x784xf32>
    %276 = vector.extract_strided_slice %257 {offsets = [0, 58], sizes = [8, 784], strides = [1, 1]} : vector<8x842xf32> to vector<8x784xf32>
    %277 = vector.broadcast %35 : vector<1x784xf32> to vector<8x784xf32>
    %278 = arith.mulf %276, %277 : vector<8x784xf32>
    %279 = tpu.concatenate %260, %261, %264, %267, %268, %271, %274, %275, %278 in 0 : vector<8x784xf32>, vector<8x784xf32>, vector<8x784xf32>, vector<8x784xf32>, vector<8x784xf32>, vector<8x784xf32>, vector<8x784xf32>, vector<8x784xf32>, vector<8x784xf32> -> vector<72x784xf32>
    %cst_85 = arith.constant dense<0.000000e+00> : vector<8x784xf32>
    %280 = tpu.matmul %2, %279, %cst_85 {dimension_numbers = #tpu.dot_dimension_numbers<[1], [0], [0], [1], [0, 0, 1, 1], [], []>} : vector<8x72xf32>, vector<72x784xf32>, vector<8x784xf32> -> vector<8x784xf32>
    %281 = vector.broadcast %3 : vector<8x1xf32> to vector<8x784xf32>
    %282 = arith.addf %280, %281 : vector<8x784xf32>
    %cst_86 = arith.constant 0.000000e+00 : f32
    %283 = vector.broadcast %cst_86 : f32 to vector<8x784xf32>
    %284 = arith.maximumf %282, %283 : vector<8x784xf32>
    %285 = vector.extract_strided_slice %284 {offsets = [0, 1], sizes = [8, 783], strides = [1, 1]} : vector<8x784xf32> to vector<8x783xf32>
    %cst_87 = arith.constant 0.000000e+00 : f32
    %286 = vector.broadcast %cst_87 : f32 to vector<8x1xf32>
    %287 = tpu.concatenate %285, %286 in 1 : vector<8x783xf32>, vector<8x1xf32> -> vector<8x784xf32>
    %288 = arith.maximumf %284, %287 : vector<8x784xf32>
    %289 = vector.extract_strided_slice %288 {offsets = [0, 28], sizes = [8, 756], strides = [1, 1]} : vector<8x784xf32> to vector<8x756xf32>
    %cst_88 = arith.constant 0.000000e+00 : f32
    %290 = vector.broadcast %cst_88 : f32 to vector<8x28xf32>
    %291 = tpu.concatenate %289, %290 in 1 : vector<8x756xf32>, vector<8x28xf32> -> vector<8x784xf32>
    %292 = arith.maximumf %288, %291 : vector<8x784xf32>
    %cst_89 = arith.constant dense<0.000000e+00> : vector<8x196xf32>
    %293 = tpu.matmul %292, %8, %cst_89 {dimension_numbers = #tpu.dot_dimension_numbers<[1], [0], [0], [1], [0, 0, 1, 1], [], []>} : vector<8x784xf32>, vector<784x196xf32>, vector<8x196xf32> -> vector<8x196xf32>
    %cst_90 = arith.constant 0.000000e+00 : f32
    %294 = vector.broadcast %cst_90 : f32 to vector<8x15xf32>
    %295 = tpu.concatenate %294, %293, %294 in 1 : vector<8x15xf32>, vector<8x196xf32>, vector<8x15xf32> -> vector<8x226xf32>
    %296 = vector.extract_strided_slice %295 {offsets = [0, 0], sizes = [8, 196], strides = [1, 1]} : vector<8x226xf32> to vector<8x196xf32>
    %297 = vector.broadcast %56 : vector<1x196xf32> to vector<8x196xf32>
    %298 = arith.mulf %296, %297 : vector<8x196xf32>
    %299 = vector.extract_strided_slice %295 {offsets = [0, 1], sizes = [8, 196], strides = [1, 1]} : vector<8x226xf32> to vector<8x196xf32>
    %300 = vector.extract_strided_slice %295 {offsets = [0, 2], sizes = [8, 196], strides = [1, 1]} : vector<8x226xf32> to vector<8x196xf32>
    %301 = vector.broadcast %60 : vector<1x196xf32> to vector<8x196xf32>
    %302 = arith.mulf %300, %301 : vector<8x196xf32>
    %303 = vector.extract_strided_slice %295 {offsets = [0, 14], sizes = [8, 196], strides = [1, 1]} : vector<8x226xf32> to vector<8x196xf32>
    %304 = vector.broadcast %56 : vector<1x196xf32> to vector<8x196xf32>
    %305 = arith.mulf %303, %304 : vector<8x196xf32>
    %306 = vector.extract_strided_slice %295 {offsets = [0, 15], sizes = [8, 196], strides = [1, 1]} : vector<8x226xf32> to vector<8x196xf32>
    %307 = vector.extract_strided_slice %295 {offsets = [0, 16], sizes = [8, 196], strides = [1, 1]} : vector<8x226xf32> to vector<8x196xf32>
    %308 = vector.broadcast %60 : vector<1x196xf32> to vector<8x196xf32>
    %309 = arith.mulf %307, %308 : vector<8x196xf32>
    %310 = vector.extract_strided_slice %295 {offsets = [0, 28], sizes = [8, 196], strides = [1, 1]} : vector<8x226xf32> to vector<8x196xf32>
    %311 = vector.broadcast %56 : vector<1x196xf32> to vector<8x196xf32>
    %312 = arith.mulf %310, %311 : vector<8x196xf32>
    %313 = vector.extract_strided_slice %295 {offsets = [0, 29], sizes = [8, 196], strides = [1, 1]} : vector<8x226xf32> to vector<8x196xf32>
    %314 = vector.extract_strided_slice %295 {offsets = [0, 30], sizes = [8, 196], strides = [1, 1]} : vector<8x226xf32> to vector<8x196xf32>
    %315 = vector.broadcast %60 : vector<1x196xf32> to vector<8x196xf32>
    %316 = arith.mulf %314, %315 : vector<8x196xf32>
    %317 = tpu.concatenate %298, %299, %302, %305, %306, %309, %312, %313, %316 in 0 : vector<8x196xf32>, vector<8x196xf32>, vector<8x196xf32>, vector<8x196xf32>, vector<8x196xf32>, vector<8x196xf32>, vector<8x196xf32>, vector<8x196xf32>, vector<8x196xf32> -> vector<72x196xf32>
    %cst_91 = arith.constant dense<0.000000e+00> : vector<8x196xf32>
    %318 = tpu.matmul %4, %317, %cst_91 {dimension_numbers = #tpu.dot_dimension_numbers<[1], [0], [0], [1], [0, 0, 1, 1], [], []>} : vector<8x72xf32>, vector<72x196xf32>, vector<8x196xf32> -> vector<8x196xf32>
    %319 = vector.broadcast %5 : vector<8x1xf32> to vector<8x196xf32>
    %320 = arith.addf %318, %319 : vector<8x196xf32>
    %cst_92 = arith.constant 0.000000e+00 : f32
    %321 = vector.broadcast %cst_92 : f32 to vector<8x196xf32>
    %322 = arith.maximumf %320, %321 : vector<8x196xf32>
    %cst_93 = arith.constant 0.000000e+00 : f32
    %323 = vector.broadcast %cst_93 : f32 to vector<8x15xf32>
    %324 = tpu.concatenate %323, %322, %323 in 1 : vector<8x15xf32>, vector<8x196xf32>, vector<8x15xf32> -> vector<8x226xf32>
    %325 = vector.extract_strided_slice %324 {offsets = [0, 0], sizes = [8, 196], strides = [1, 1]} : vector<8x226xf32> to vector<8x196xf32>
    %326 = vector.broadcast %56 : vector<1x196xf32> to vector<8x196xf32>
    %327 = arith.mulf %325, %326 : vector<8x196xf32>
    %328 = vector.extract_strided_slice %324 {offsets = [0, 1], sizes = [8, 196], strides = [1, 1]} : vector<8x226xf32> to vector<8x196xf32>
    %329 = vector.extract_strided_slice %324 {offsets = [0, 2], sizes = [8, 196], strides = [1, 1]} : vector<8x226xf32> to vector<8x196xf32>
    %330 = vector.broadcast %60 : vector<1x196xf32> to vector<8x196xf32>
    %331 = arith.mulf %329, %330 : vector<8x196xf32>
    %332 = vector.extract_strided_slice %324 {offsets = [0, 14], sizes = [8, 196], strides = [1, 1]} : vector<8x226xf32> to vector<8x196xf32>
    %333 = vector.broadcast %56 : vector<1x196xf32> to vector<8x196xf32>
    %334 = arith.mulf %332, %333 : vector<8x196xf32>
    %335 = vector.extract_strided_slice %324 {offsets = [0, 15], sizes = [8, 196], strides = [1, 1]} : vector<8x226xf32> to vector<8x196xf32>
    %336 = vector.extract_strided_slice %324 {offsets = [0, 16], sizes = [8, 196], strides = [1, 1]} : vector<8x226xf32> to vector<8x196xf32>
    %337 = vector.broadcast %60 : vector<1x196xf32> to vector<8x196xf32>
    %338 = arith.mulf %336, %337 : vector<8x196xf32>
    %339 = vector.extract_strided_slice %324 {offsets = [0, 28], sizes = [8, 196], strides = [1, 1]} : vector<8x226xf32> to vector<8x196xf32>
    %340 = vector.broadcast %56 : vector<1x196xf32> to vector<8x196xf32>
    %341 = arith.mulf %339, %340 : vector<8x196xf32>
    %342 = vector.extract_strided_slice %324 {offsets = [0, 29], sizes = [8, 196], strides = [1, 1]} : vector<8x226xf32> to vector<8x196xf32>
    %343 = vector.extract_strided_slice %324 {offsets = [0, 30], sizes = [8, 196], strides = [1, 1]} : vector<8x226xf32> to vector<8x196xf32>
    %344 = vector.broadcast %60 : vector<1x196xf32> to vector<8x196xf32>
    %345 = arith.mulf %343, %344 : vector<8x196xf32>
    %346 = tpu.concatenate %327, %328, %331, %334, %335, %338, %341, %342, %345 in 0 : vector<8x196xf32>, vector<8x196xf32>, vector<8x196xf32>, vector<8x196xf32>, vector<8x196xf32>, vector<8x196xf32>, vector<8x196xf32>, vector<8x196xf32>, vector<8x196xf32> -> vector<72x196xf32>
    %cst_94 = arith.constant dense<0.000000e+00> : vector<8x196xf32>
    %347 = tpu.matmul %6, %346, %cst_94 {dimension_numbers = #tpu.dot_dimension_numbers<[1], [0], [0], [1], [0, 0, 1, 1], [], []>} : vector<8x72xf32>, vector<72x196xf32>, vector<8x196xf32> -> vector<8x196xf32>
    %348 = vector.broadcast %7 : vector<8x1xf32> to vector<8x196xf32>
    %349 = arith.addf %347, %348 : vector<8x196xf32>
    %cst_95 = arith.constant 0.000000e+00 : f32
    %350 = vector.broadcast %cst_95 : f32 to vector<8x196xf32>
    %351 = arith.maximumf %349, %350 : vector<8x196xf32>
    %352 = vector.extract_strided_slice %351 {offsets = [0, 1], sizes = [8, 195], strides = [1, 1]} : vector<8x196xf32> to vector<8x195xf32>
    %cst_96 = arith.constant 0.000000e+00 : f32
    %353 = vector.broadcast %cst_96 : f32 to vector<8x1xf32>
    %354 = tpu.concatenate %352, %353 in 1 : vector<8x195xf32>, vector<8x1xf32> -> vector<8x196xf32>
    %355 = arith.maximumf %351, %354 : vector<8x196xf32>
    %356 = vector.extract_strided_slice %355 {offsets = [0, 14], sizes = [8, 182], strides = [1, 1]} : vector<8x196xf32> to vector<8x182xf32>
    %cst_97 = arith.constant 0.000000e+00 : f32
    %357 = vector.broadcast %cst_97 : f32 to vector<8x14xf32>
    %358 = tpu.concatenate %356, %357 in 1 : vector<8x182xf32>, vector<8x14xf32> -> vector<8x196xf32>
    %359 = arith.maximumf %355, %358 : vector<8x196xf32>
    %cst_98 = arith.constant dense<0.000000e+00> : vector<8x49xf32>
    %360 = tpu.matmul %359, %9, %cst_98 {dimension_numbers = #tpu.dot_dimension_numbers<[1], [0], [0], [1], [0, 0, 1, 1], [], []>} : vector<8x196xf32>, vector<196x49xf32>, vector<8x49xf32> -> vector<8x49xf32>
    %361 = vector.extract_strided_slice %360 {offsets = [0, 0], sizes = [1, 49], strides = [1, 1]} : vector<8x49xf32> to vector<1x49xf32>
    %c0_99 = arith.constant 0 : index
    %c0_100 = arith.constant 0 : index
    %c0_101 = arith.constant 0 : index
    %362 = vector.load %arg12[%c0_99, %c0_100, %c0_101] : memref<8x49x10xf32, #tpu.memory_space<vmem>>, vector<1x49x10xf32>
    %363 = vector.shape_cast %362 : vector<1x49x10xf32> to vector<49x10xf32>
    %cst_102 = arith.constant dense<0.000000e+00> : vector<1x10xf32>
    %364 = tpu.matmul %361, %363, %cst_102 {dimension_numbers = #tpu.dot_dimension_numbers<[1], [0], [0], [1], [0, 0, 1, 1], [], []>} : vector<1x49xf32>, vector<49x10xf32>, vector<1x10xf32> -> vector<1x10xf32>
    %365 = arith.addf %10, %364 : vector<1x10xf32>
    %366 = vector.extract_strided_slice %360 {offsets = [1, 0], sizes = [1, 49], strides = [1, 1]} : vector<8x49xf32> to vector<1x49xf32>
    %c1_103 = arith.constant 1 : index
    %c0_104 = arith.constant 0 : index
    %c0_105 = arith.constant 0 : index
    %367 = vector.load %arg12[%c1_103, %c0_104, %c0_105] : memref<8x49x10xf32, #tpu.memory_space<vmem>>, vector<1x49x10xf32>
    %368 = vector.shape_cast %367 : vector<1x49x10xf32> to vector<49x10xf32>
    %cst_106 = arith.constant dense<0.000000e+00> : vector<1x10xf32>
    %369 = tpu.matmul %366, %368, %cst_106 {dimension_numbers = #tpu.dot_dimension_numbers<[1], [0], [0], [1], [0, 0, 1, 1], [], []>} : vector<1x49xf32>, vector<49x10xf32>, vector<1x10xf32> -> vector<1x10xf32>
    %370 = arith.addf %365, %369 : vector<1x10xf32>
    %371 = vector.extract_strided_slice %360 {offsets = [2, 0], sizes = [1, 49], strides = [1, 1]} : vector<8x49xf32> to vector<1x49xf32>
    %c2_107 = arith.constant 2 : index
    %c0_108 = arith.constant 0 : index
    %c0_109 = arith.constant 0 : index
    %372 = vector.load %arg12[%c2_107, %c0_108, %c0_109] : memref<8x49x10xf32, #tpu.memory_space<vmem>>, vector<1x49x10xf32>
    %373 = vector.shape_cast %372 : vector<1x49x10xf32> to vector<49x10xf32>
    %cst_110 = arith.constant dense<0.000000e+00> : vector<1x10xf32>
    %374 = tpu.matmul %371, %373, %cst_110 {dimension_numbers = #tpu.dot_dimension_numbers<[1], [0], [0], [1], [0, 0, 1, 1], [], []>} : vector<1x49xf32>, vector<49x10xf32>, vector<1x10xf32> -> vector<1x10xf32>
    %375 = arith.addf %370, %374 : vector<1x10xf32>
    %376 = vector.extract_strided_slice %360 {offsets = [3, 0], sizes = [1, 49], strides = [1, 1]} : vector<8x49xf32> to vector<1x49xf32>
    %c3_111 = arith.constant 3 : index
    %c0_112 = arith.constant 0 : index
    %c0_113 = arith.constant 0 : index
    %377 = vector.load %arg12[%c3_111, %c0_112, %c0_113] : memref<8x49x10xf32, #tpu.memory_space<vmem>>, vector<1x49x10xf32>
    %378 = vector.shape_cast %377 : vector<1x49x10xf32> to vector<49x10xf32>
    %cst_114 = arith.constant dense<0.000000e+00> : vector<1x10xf32>
    %379 = tpu.matmul %376, %378, %cst_114 {dimension_numbers = #tpu.dot_dimension_numbers<[1], [0], [0], [1], [0, 0, 1, 1], [], []>} : vector<1x49xf32>, vector<49x10xf32>, vector<1x10xf32> -> vector<1x10xf32>
    %380 = arith.addf %375, %379 : vector<1x10xf32>
    %381 = vector.extract_strided_slice %360 {offsets = [4, 0], sizes = [1, 49], strides = [1, 1]} : vector<8x49xf32> to vector<1x49xf32>
    %c4_115 = arith.constant 4 : index
    %c0_116 = arith.constant 0 : index
    %c0_117 = arith.constant 0 : index
    %382 = vector.load %arg12[%c4_115, %c0_116, %c0_117] : memref<8x49x10xf32, #tpu.memory_space<vmem>>, vector<1x49x10xf32>
    %383 = vector.shape_cast %382 : vector<1x49x10xf32> to vector<49x10xf32>
    %cst_118 = arith.constant dense<0.000000e+00> : vector<1x10xf32>
    %384 = tpu.matmul %381, %383, %cst_118 {dimension_numbers = #tpu.dot_dimension_numbers<[1], [0], [0], [1], [0, 0, 1, 1], [], []>} : vector<1x49xf32>, vector<49x10xf32>, vector<1x10xf32> -> vector<1x10xf32>
    %385 = arith.addf %380, %384 : vector<1x10xf32>
    %386 = vector.extract_strided_slice %360 {offsets = [5, 0], sizes = [1, 49], strides = [1, 1]} : vector<8x49xf32> to vector<1x49xf32>
    %c5_119 = arith.constant 5 : index
    %c0_120 = arith.constant 0 : index
    %c0_121 = arith.constant 0 : index
    %387 = vector.load %arg12[%c5_119, %c0_120, %c0_121] : memref<8x49x10xf32, #tpu.memory_space<vmem>>, vector<1x49x10xf32>
    %388 = vector.shape_cast %387 : vector<1x49x10xf32> to vector<49x10xf32>
    %cst_122 = arith.constant dense<0.000000e+00> : vector<1x10xf32>
    %389 = tpu.matmul %386, %388, %cst_122 {dimension_numbers = #tpu.dot_dimension_numbers<[1], [0], [0], [1], [0, 0, 1, 1], [], []>} : vector<1x49xf32>, vector<49x10xf32>, vector<1x10xf32> -> vector<1x10xf32>
    %390 = arith.addf %385, %389 : vector<1x10xf32>
    %391 = vector.extract_strided_slice %360 {offsets = [6, 0], sizes = [1, 49], strides = [1, 1]} : vector<8x49xf32> to vector<1x49xf32>
    %c6_123 = arith.constant 6 : index
    %c0_124 = arith.constant 0 : index
    %c0_125 = arith.constant 0 : index
    %392 = vector.load %arg12[%c6_123, %c0_124, %c0_125] : memref<8x49x10xf32, #tpu.memory_space<vmem>>, vector<1x49x10xf32>
    %393 = vector.shape_cast %392 : vector<1x49x10xf32> to vector<49x10xf32>
    %cst_126 = arith.constant dense<0.000000e+00> : vector<1x10xf32>
    %394 = tpu.matmul %391, %393, %cst_126 {dimension_numbers = #tpu.dot_dimension_numbers<[1], [0], [0], [1], [0, 0, 1, 1], [], []>} : vector<1x49xf32>, vector<49x10xf32>, vector<1x10xf32> -> vector<1x10xf32>
    %395 = arith.addf %390, %394 : vector<1x10xf32>
    %396 = vector.extract_strided_slice %360 {offsets = [7, 0], sizes = [1, 49], strides = [1, 1]} : vector<8x49xf32> to vector<1x49xf32>
    %c7_127 = arith.constant 7 : index
    %c0_128 = arith.constant 0 : index
    %c0_129 = arith.constant 0 : index
    %397 = vector.load %arg12[%c7_127, %c0_128, %c0_129] : memref<8x49x10xf32, #tpu.memory_space<vmem>>, vector<1x49x10xf32>
    %398 = vector.shape_cast %397 : vector<1x49x10xf32> to vector<49x10xf32>
    %cst_130 = arith.constant dense<0.000000e+00> : vector<1x10xf32>
    %399 = tpu.matmul %396, %398, %cst_130 {dimension_numbers = #tpu.dot_dimension_numbers<[1], [0], [0], [1], [0, 0, 1, 1], [], []>} : vector<1x49xf32>, vector<49x10xf32>, vector<1x10xf32> -> vector<1x10xf32>
    %400 = arith.addf %395, %399 : vector<1x10xf32>
    %401 = tpu.concatenate %230, %400 in 0 : vector<1x10xf32>, vector<1x10xf32> -> vector<2x10xf32>
    %402 = vector.shape_cast %401 : vector<2x10xf32> to vector<1x2x10xf32>
    %c0_131 = arith.constant 0 : index
    %c0_132 = arith.constant 0 : index
    %c0_133 = arith.constant 0 : index
    %403 = vector.load %arg14[%c0_131, %c0_132, %c0_133] : memref<1x2x10xf32, #tpu.memory_space<vmem>>, vector<1x2x10xf32>
    tpu.vector_store %arg14[%c0_131, %c0_132, %c0_133], %402 {strides = array<i32>} : memref<1x2x10xf32, #tpu.memory_space<vmem>>, vector<1x2x10xf32>,
    return
  }
  func.func @transform_0(%arg0: i32) -> (i32, i32, i32, i32) {
    %c0_i32 = arith.constant 0 : i32
    %c0_i32_0 = arith.constant 0 : i32
    %c0_i32_1 = arith.constant 0 : i32
    %c0_i32_2 = arith.constant 0 : i32
    return %arg0, %c0_i32, %c0_i32_0, %c0_i32_1 : i32, i32, i32, i32
  }
  func.func @transform_1(%arg0: i32) -> (i32, i32) {
    %c0_i32 = arith.constant 0 : i32
    %c0_i32_0 = arith.constant 0 : i32
    %c0_i32_1 = arith.constant 0 : i32
    return %c0_i32, %c0_i32_0 : i32, i32
  }
  func.func @transform_2(%arg0: i32) -> (i32, i32) {
    %c0_i32 = arith.constant 0 : i32
    %c0_i32_0 = arith.constant 0 : i32
    %c0_i32_1 = arith.constant 0 : i32
    return %c0_i32, %c0_i32_0 : i32, i32
  }
  func.func @transform_3(%arg0: i32) -> (i32, i32) {
    %c0_i32 = arith.constant 0 : i32
    %c0_i32_0 = arith.constant 0 : i32
    %c0_i32_1 = arith.constant 0 : i32
    return %c0_i32, %c0_i32_0 : i32, i32
  }
  func.func @transform_4(%arg0: i32) -> (i32, i32) {
    %c0_i32 = arith.constant 0 : i32
    %c0_i32_0 = arith.constant 0 : i32
    %c0_i32_1 = arith.constant 0 : i32
    return %c0_i32, %c0_i32_0 : i32, i32
  }
  func.func @transform_5(%arg0: i32) -> (i32, i32) {
    %c0_i32 = arith.constant 0 : i32
    %c0_i32_0 = arith.constant 0 : i32
    %c0_i32_1 = arith.constant 0 : i32
    return %c0_i32, %c0_i32_0 : i32, i32
  }
  func.func @transform_6(%arg0: i32) -> (i32, i32) {
    %c0_i32 = arith.constant 0 : i32
    %c0_i32_0 = arith.constant 0 : i32
    %c0_i32_1 = arith.constant 0 : i32
    return %c0_i32, %c0_i32_0 : i32, i32
  }
  func.func @transform_7(%arg0: i32) -> (i32, i32) {
    %c0_i32 = arith.constant 0 : i32
    %c0_i32_0 = arith.constant 0 : i32
    %c0_i32_1 = arith.constant 0 : i32
    return %c0_i32, %c0_i32_0 : i32, i32
  }
  func.func @transform_8(%arg0: i32) -> (i32, i32) {
    %c0_i32 = arith.constant 0 : i32
    %c0_i32_0 = arith.constant 0 : i32
    %c0_i32_1 = arith.constant 0 : i32
    return %c0_i32, %c0_i32_0 : i32, i32
  }
  func.func @transform_9(%arg0: i32) -> (i32, i32) {
    %c0_i32 = arith.constant 0 : i32
    %c0_i32_0 = arith.constant 0 : i32
    %c0_i32_1 = arith.constant 0 : i32
    return %c0_i32, %c0_i32_0 : i32, i32
  }
  func.func @transform_10(%arg0: i32) -> (i32, i32) {
    %c0_i32 = arith.constant 0 : i32
    %c0_i32_0 = arith.constant 0 : i32
    %c0_i32_1 = arith.constant 0 : i32
    return %c0_i32, %c0_i32_0 : i32, i32
  }
  func.func @transform_11(%arg0: i32) -> (i32, i32, i32) {
    %c0_i32 = arith.constant 0 : i32
    %c0_i32_0 = arith.constant 0 : i32
    %c0_i32_1 = arith.constant 0 : i32
    %c0_i32_2 = arith.constant 0 : i32
    return %c0_i32, %c0_i32_0, %c0_i32_1 : i32, i32, i32
  }
  func.func @transform_12(%arg0: i32) -> (i32, i32) {
    %c0_i32 = arith.constant 0 : i32
    %c0_i32_0 = arith.constant 0 : i32
    %c0_i32_1 = arith.constant 0 : i32
    return %c0_i32, %c0_i32_0 : i32, i32
  }
  func.func @transform_13(%arg0: i32) -> (i32, i32, i32) {
    %c0_i32 = arith.constant 0 : i32
    %c0_i32_0 = arith.constant 0 : i32
    %c0_i32_1 = arith.constant 0 : i32
    return %arg0, %c0_i32, %c0_i32_0 : i32, i32, i32
  }
}

</mosaic_0001>

<bundles_post_ra>
// kernel: fashion_mnist_model_v1.1
= control target key start
LH: loop header
LB: loop body
LE: loop exit
PB: predicated region body
PF: predicated region fallthrough
CT: control target
= control target key end

     0   :  { %s11024_s0 = inlined_call_operand.vmem [shape: f32[2,2,1,784], index: 0, kind: input, shape index: {}]   ;;  %s11025_s1 = inlined_call_operand.vmem [shape: f32[8,9], index: 1, kind: input, shape index: {}]   ;;  %s11026_s2 = inlined_call_operand.vmem [shape: f32[8,1], index: 2, kind: input, shape index: {}]   ;;  %s11027_s3 = inlined_call_operand.vmem [shape: f32[8,72], index: 3, kind: input, shape index: {}]   ;;  %s11028_s4 = inlined_call_operand.vmem [shape: f32[8,1], index: 4, kind: input, shape index: {}]   ;;  %s11029_s5 = inlined_call_operand.vmem [shape: f32[8,72], index: 5, kind: input, shape index: {}]   ;;  %s11030_s6 = inlined_call_operand.vmem [shape: f32[8,1], index: 6, kind: input, shape index: {}]   ;;  %s11031_s7 = inlined_call_operand.vmem [shape: f32[8,72], index: 7, kind: input, shape index: {}]   ;;  %s11032_s8 = inlined_call_operand.vmem [shape: f32[8,1], index: 8, kind: input, shape index: {}]   ;;  %s11033_s9 = inlined_call_operand.vmem [shape: f32[784,196], index: 9, kind: input, shape index: {}]   ;;  %s11034_s10 = inlined_call_operand.vmem [shape: f32[196,49], index: 10, kind: input, shape index: {}]   ;;  %s11035_s11 = inlined_call_operand.vmem [shape: f32[8,49,10], index: 11, kind: input, shape index: {}]   ;;  %s11036_s12 = inlined_call_operand.vmem [shape: f32[1,10], index: 12, kind: input, shape index: {}]   ;;  %s11037_s13 = inlined_call_operand.hbm [shape: f32[2,2,10], index: 13, kind: output, shape index: {}]  }
   0x1   :  { %11208 = sst [smem:[#allocation47_spill]] %s11024_s0 }
   0x2   :  { %11209 = sst [smem:[#allocation48_spill]] %s11026_s2 }
   0x3   :  { %11210 = sst [smem:[#allocation49_spill]] %s11028_s4 }
   0x4   :  { %11211 = sst [smem:[#allocation50_spill]] %s11030_s6 }
   0x5   :  { %11212 = sst [smem:[#allocation51_spill]] %s11032_s8 }
   0x6   :  { %18 = vsyncpa [#allocation3], 0 }
   0x7   :  { %20 = vsyncpa [#allocation3 + $0x1], 0  ;;  %s6826_s25 = smov 0   ;;  %s6828_s26 = smov 0  }
   0x8   :  { %s6830_s27 = smov 0   ;;  %s6832_s28 = smov 0  }
   0x9 LB: > { %11213 = sst [smem:[#allocation5_spill]] %s6720_s25  ;;  %s6847_s29 = sadd.s32 4294967295, %s6732_s28   ;;  %s6732_s28 = sphi %s6832_s28, %s11604_s28   ;;  %s6728_s27 = sphi %s6830_s27, %s11609_s27   ;;  %s6724_s26 = sphi %s6828_s26, %s11608_s26   ;;  %s6720_s25 = sphi %s6826_s25, %s11607_s25  }
   0xa   : > { %11214 = sst [smem:[#allocation6_spill]] %s6728_s27  ;;  %s5396_s30 = sadd.s32 4294967294, %s6732_s28  }
   0xb   : > { %11215 = sst [smem:[#allocation7_spill]] %s6732_s28  ;;  %s6851_s14 = sadd.s32 1, %s6732_s28  }
   0xc   : > { %11216 = sst [smem:[#allocation8_spill]] %s6851_s14  ;;  %s311_s15 = sadd.s32 1, %s6728_s27 }
   0xd   : > { %s308_s16 = ssub.s32 %s6732_s28, %s6851_s14  ;;  %p321_p0 = scmp.ne.s32.totalorder %s6728_s27, %s6724_s26 }
   0xe   : > { %p309_p1 = scmp.eq.s32.totalorder %s308_s16, 0  ;;  %p322_p2 = scmp.eq.s32.totalorder %s6847_s29, 1 }
   0xf   : > { %p327_p3 = scmp.ne.s32.totalorder %s6724_s26, %s6720_s25  ;;  %p328_p4 = scmp.eq.s32.totalorder %s5396_s30, 1 }
  0x10   : > { %s6862_s17 = scalar_select %p309_p1, %s6728_s27, %s311_s15  }
  0x11   : > { %p6864_p5 = por %p322_p2, %p321_p0  ;;  %p6868_p6 = por %p328_p4, %p327_p3 }
  0x12   : > { %11217 = sst [smem:[#allocation9_spill]] %s6862_s17  ;;  %p5399_p7 = scmp.ge.s32.totalorder %s6732_s28, 1 }
  0x13   : > { %s11218_s18 = scalar_select %p6864_p5, 1, 0 }
  0x14   : > { %s11220_s19 = scalar_select %p6868_p6, 1, 0 }
  0x15   : > { %11219 = sst [smem:[#allocation10_spill]] %s11218_s18  ;;  %p389_p8 = scmp.lt.s32.totalorder %s6732_s28, 3 }
  0x16   : > { %11221 = sst [smem:[#allocation11_spill]] %s11220_s19 }
  0x17   : > { %p390_p9 = pnand %p5399_p7, %p389_p8 }
  0x19   : > { %393 = sbr.rel (%p390_p9) target bundleno = 4910 (0x132e), region = 72 }
  0x1e   : > { %p432_p10 = scmp.lt.s32.totalorder %s6847_s29, 1  ;;  %v666_v0 = vlaneseq  ;;  %v6734_v1 = vmov 0   ;;  %s11224_s0 = sld [smem:[#allocation47_spill]] }
  0x1f   : > { %5805 = vset.pattern.permute.xlu2 %v6734_v1  ;;  %5926 = vset.pattern.permute.xlu0 %v6734_v1  ;;  %s11110_s30 = smov 29   ;;  %s11038_s15 = smov 2  }
  0x20   : > { %s433_s20 = scalar_select %p432_p10, %s6847_s29, 1  ;;  %v6878_v2 = vand.u32 127, %v666_v0  ;;  %6057 = vset.pattern.permute.xlu1 %v6734_v1 }
  0x21   : > { %s11039_s16 = smov 28   ;;  %s6741_s22 = smov 56  }
  0x22   : > { %11222 = vst [vmem:[#allocation12_spill] sm:$0xff] %v6878_v2  ;;  %s5563_s21 = smul.u32 14, %s433_s20  ;;  %v6882_v3 = vadd.s32 128, %v6878_v2  ;;  %v677_v4 = vand.u32 65535, %v6878_v2  ;;  %v678_v5 = vshrl.u32 %v6878_v2, 16  ;;  %v6892_v8 = vadd.s32 512, %v6878_v2 }
  0x23   : > { %v6900_v13 = vadd.s32 640, %v6878_v2  ;;  %s11040_s20 = smov 30   ;;  %s11041_s23 = smov 127  }
  0x24   : > { %11223 = vst [vmem:[#allocation13_spill] sm:$0xff] %v6882_v3  ;;  %s6889_s24 = scalar_lea.vmem %s11224_s0, %s5563_s21  ;;  %v681_v6 = vmul.u32 37449, %v677_v4  ;;  %v682_v7 = vmul.u32 9362, %v678_v5  ;;  %v680_v10 = vmul.u32 9362, %v677_v4  ;;  %v709_v11 = vand.u32 65535, %v6882_v3  ;;  %s6740_s21 = smov 58  }
  0x25   : > { %v6895_v9 = vld [vmem:[%s6889_s24] sm:$0x7f]  ;;  %v710_v12 = vshrl.u32 %v6882_v3, 16  ;;  %v683_v17 = vmul.u32 37449, %v678_v5  ;;  %v805_v32 = vand.u32 65535, %v6892_v8  ;;  %v806_v38 = vshrl.u32 %v6892_v8, 16 }
  0x26   : > { %v1063_v14 = vperm.slane %v6895_v9, 0  ;;  %v1064_v15 = vperm.slane %v6895_v9, 1  ;;  %v1065_v16 = vperm.slane %v6895_v9, 2  ;;  %v1066_v18 = vperm.slane %v6895_v9, 3  ;;  %s11265_s2 = sld [smem:[#allocation48_spill]]  ;;  %s11303_s0 = smov 71  }
  0x27   : > { %v1067_v19 = vperm.slane %v6895_v9, 4  ;;  %v684_v20 = vshll.u32 %v681_v6, 16  ;;  %v686_v21 = vshll.u32 %v682_v7, 16  ;;  %v685_v22 = vshrl.u32 %v681_v6, 16  ;;  %s11311_s4 = sld [smem:[#allocation49_spill]]  ;;  %s11331_s17 = smov 28  }
  0x28   : > { %1070 = vrot.lane.b32.xlu0 %v1063_v14, %s11110_s30  ;;  %1074 = vrot.lane.b32.xlu2 %v1065_v16, %s11110_s30  ;;  %v712_v23 = vmul.u32 9362, %v709_v11  ;;  %v713_v24 = vmul.u32 37449, %v709_v11  ;;  %v714_v25 = vmul.u32 9362, %v710_v12  ;;  %v687_v26 = vshrl.u32 %v682_v7, 16  ;;  %s11332_s27 = smov 2   ;;  %s6752_s14 = smov 16  }
  0x29   : > { %vm688_vm0 = vc.u32 %v680_v10, %v684_v20  ;;  %v690_v27 = vadd.s32 %v684_v20, %v680_v10  ;;  %v715_v28 = vmul.u32 37449, %v710_v12  ;;  %v808_v44 = vmul.u32 9362, %v805_v32  ;;  %s11341_s25 = smov 98   ;;  %s11153_s19 = smov 113  }
  0x2a   : > { %v689_v29 = vsel %vm688_vm0, 1, %v6734_v1  ;;  %v716_v30 = vshll.u32 %v713_v24, 16  ;;  %v718_v31 = vshll.u32 %v714_v25, 16  ;;  %v717_v35 = vshrl.u32 %v713_v24, 16  ;;  %s11347_s6 = sld [smem:[#allocation50_spill]]  ;;  %s11557_s18 = smov 112  }
  0x2b   : > { %v691_v33 = vadd.s32 %v689_v29, %v683_v17  ;;  %vm692_vm1 = vc.u32 %v690_v27, %v686_v21  ;;  %v694_v34 = vadd.s32 %v690_v27, %v686_v21  ;;  %v719_v40 = vshrl.u32 %v714_v25, 16  ;;  %s11352_s8 = sld [smem:[#allocation51_spill]] }
  0x2c   : > { %v693_v36 = vsel %vm692_vm1, 1, %v6734_v1  ;;  %vm720_vm2 = vc.u32 %v712_v23, %v716_v30  ;;  %v722_v37 = vadd.s32 %v716_v30, %v712_v23  ;;  %v809_v47 = vmul.u32 37449, %v805_v32 }
  0x2d   : > { %v695_v39 = vadd.s32 %v693_v36, %v691_v33  ;;  %vm698_vm3 = vc.u32 %v694_v34, 2454267026  ;;  %v721_v41 = vsel %vm720_vm2, 1, %v6734_v1  ;;  %v810_v48 = vmul.u32 9362, %v806_v38 }
  0x2e   : > { %v723_v42 = vadd.s32 %v721_v41, %v715_v28  ;;  %vm724_vm4 = vc.u32 %v722_v37, %v718_v31  ;;  %v726_v43 = vadd.s32 %v722_v37, %v718_v31  ;;  %v699_v49 = vsel %vm698_vm3, 1, %v6734_v1 }
  0x2f   : > { %v696_v45 = vadd.s32 %v695_v39, %v685_v22  ;;  %v725_v46 = vsel %vm724_vm4, 1, %v6734_v1  ;;  %v837_v51 = vand.u32 65535, %v6900_v13  ;;  %v811_v54 = vmul.u32 37449, %v806_v38 }
  0x30   : > { %1072 = vrot.lane.b32.xlu0 %v1064_v15, %s11110_s30  ;;  %1076 = vrot.lane.b32.xlu2 %v1066_v18, %s11110_s30  ;;  %v727_v50 = vadd.s32 %v725_v46, %v723_v42  ;;  %vm730_vm5 = vc.u32 %v726_v43, 2454267026  ;;  %v812_v55 = vshll.u32 %v809_v47, 16  ;;  %v813_v57 = vshrl.u32 %v809_v47, 16 }
  0x31   : > { %v697_v52 = vadd.s32 %v696_v45, %v687_v26  ;;  %v731_v53 = vsel %vm730_vm5, 1, %v6734_v1  ;;  %v814_v58 = vshll.u32 %v810_v48, 16  ;;  %v838_v59 = vshrl.u32 %v6900_v13, 16 }
  0x32   : > { %v728_v56 = vadd.s32 %v727_v50, %v717_v35  ;;  %vm816_vm6 = vc.u32 %v808_v44, %v812_v55  ;;  %v818_v61 = vadd.s32 %v812_v55, %v808_v44  ;;  %v840_v62 = vmul.u32 9362, %v837_v51 }
  0x33   : > { %v6921_v60 = vadd.s32 %v699_v49, %v697_v52  ;;  %v817_v0 = vsel %vm816_vm6, 1, %v6734_v1  ;;  %v841_v4 = vmul.u32 37449, %v837_v51  ;;  %v6924_v5 = vmul.u32 9362, %v838_v59 }
  0x34   : > { %v729_v63 = vadd.s32 %v728_v56, %v719_v40  ;;  %v819_v7 = vadd.s32 %v817_v0, %v811_v54  ;;  %vm820_vm7 = vc.u32 %v818_v61, %v814_v58  ;;  %v822_v10 = vadd.s32 %v818_v61, %v814_v58 }
  0x35   : > { %11225 = vst [vmem:[#allocation14_spill] sm:$0xff] %v6921_v60  ;;  %v701_v6 = vshrl.u32 %v6921_v60, 4  ;;  %v821_v12 = vsel %vm820_vm7, 1, %v6734_v1  ;;  %v844_v14 = vshll.u32 %v841_v4, 16  ;;  %v6931_v15 = vadd.s32 256, %v6878_v2 }
  0x36   : > { %v6927_v11 = vadd.s32 %v731_v53, %v729_v63  ;;  %v815_v17 = vshrl.u32 %v810_v48, 16  ;;  %v823_v18 = vadd.s32 %v821_v12, %v819_v7  ;;  %vm826_vm8 = vc.u32 %v822_v10, 2454267026 }
  0x37   : > { %v702_v16 = vmul.u32 28, %v701_v6  ;;  %v843_v21 = vmul.u32 37449, %v838_v59  ;;  %v846_v22 = vshll.u32 %v6924_v5, 16  ;;  %vm848_vm9 = vc.u32 %v840_v62, %v844_v14 }
  0x38   : > { %11226 = vst [vmem:[#allocation15_spill] sm:$0xff] %v6927_v11  ;;  %1078 = vrot.lane.b32.xlu0 %v1067_v19, %s11110_s30  ;;  %v733_v20 = vshrl.u32 %v6927_v11, 4  ;;  %v824_v24 = vadd.s32 %v823_v18, %v813_v57  ;;  %v850_v25 = vadd.s32 %v844_v14, %v840_v62  ;;  %v827_v27 = vsel %vm826_vm8, 1, %v6734_v1 }
  0x39   : > { %v703_v23 = vsub.s32 %v6878_v2, %v702_v16  ;;  %v849_v28 = vsel %vm848_vm9, 1, %v6734_v1  ;;  %v741_v29 = vand.u32 65535, %v6931_v15  ;;  %v845_v36 = vshrl.u32 %v841_v4, 16 }
  0x3a   : > { %v734_v26 = vmul.u32 28, %v733_v20  ;;  %v825_v30 = vadd.s32 %v824_v24, %v815_v17  ;;  %v851_v32 = vadd.s32 %v849_v28, %v843_v21  ;;  %vm852_vm13 = vc.u32 %v850_v25, %v846_v22 }
  0x3b   : > { %vm898_vm10 = vcmp.ne.s32.totalorder %v703_v23, 0  ;;  %vm905_vm11 = vcmp.lt.s32.totalorder %v703_v23, 0  ;;  %v919_v19 = vadd.s32 28, %v703_v23  ;;  %v854_v33 = vadd.s32 %v850_v25, %v846_v22 }
  0x3c   : > { %v735_v31 = vsub.s32 %v6882_v3, %v734_v26  ;;  %vm912_vm12 = vmand %vm905_vm11, %vm898_vm10  ;;  %v828_v35 = vadd.s32 %v827_v27, %v825_v30  ;;  %v853_v37 = vsel %vm852_vm13, 1, %v6734_v1  ;;  %v742_v39 = vshrl.u32 %v6931_v15, 16 }
  0x3d   : > { %v926_v34 = vsel %vm912_vm12, %v919_v19, %v703_v23  ;;  %v847_v41 = vshrl.u32 %v6924_v5, 16  ;;  %v855_v42 = vadd.s32 %v853_v37, %v851_v32  ;;  %v11043_v44 = vmov 0.0  }
  0x3e   : > { %vm899_vm14 = vcmp.ne.s32.totalorder %v735_v31, 0  ;;  %vm906_vm15 = vcmp.lt.s32.totalorder %v735_v31, 0  ;;  %v920_v38 = vadd.s32 28, %v735_v31  ;;  %vm954_vm1 = vcmp.le.s32.totalorder %v926_v34, 26 }
  0x3f   : > { %vm913_vm0 = vmand %vm906_vm15, %vm899_vm14  ;;  %v829_v40 = vshrl.u32 %v828_v35, 4  ;;  %v5408_v45 = vsel %vm954_vm1, 1.0, %v11043_v44  ;;  %vm858_vm2 = vc.u32 %v854_v33, 2454267026  ;;  %v745_v46 = vmul.u32 37449, %v741_v29 }
  0x40   : > { %v927_v43 = vsel %vm913_vm0, %v920_v38, %v735_v31  ;;  %v856_v48 = vadd.s32 %v855_v42, %v845_v36  ;;  %v6948_v49 = vadd.s32 384, %v6878_v2  ;;  %v859_v51 = vsel %vm858_vm2, 1, %v6734_v1 }
  0x41   : > { %vm955_vm3 = vcmp.le.s32.totalorder %v927_v43, 26  ;;  %v830_v47 = vmul.u32 28, %v829_v40  ;;  %v744_v52 = vmul.u32 9362, %v741_v29  ;;  %v746_v53 = vmul.u32 9362, %v742_v39 }
  0x42   : > { %v5409_v50 = vsel %vm955_vm3, 1.0, %v11043_v44  ;;  %vm933_vm4 = vcmp.ge.s32.totalorder %v926_v34, 1  ;;  %v857_v56 = vadd.s32 %v856_v48, %v847_v41  ;;  %vm934_vm5 = vcmp.ge.s32.totalorder %v927_v43, 1 }
  0x43   : > { %v6952_v54 = vpack.i.bf16 %v5409_v50, %v5408_v45  ;;  %v831_v55 = vsub.s32 %v6892_v8, %v830_v47  ;;  %v747_v57 = vmul.u32 37449, %v742_v39  ;;  %v748_v58 = vshll.u32 %v745_v46, 16 }
  0x44   : > { %v750_v59 = vshll.u32 %v746_v53, 16  ;;  %v860_v61 = vadd.s32 %v859_v51, %v857_v56  ;;  %v6958_v63 = vsel %vm933_vm4, 1.0, %v11043_v44  ;;  %v773_v8 = vand.u32 65535, %v6948_v49 }
  0x45   : > { %5626 = vrot.lane.b32.xlu1 %v6952_v54, %s11038_s15  ;;  %vm902_vm6 = vcmp.ne.s32.totalorder %v831_v55, 0  ;;  %vm909_vm7 = vcmp.lt.s32.totalorder %v831_v55, 0  ;;  %v923_v62 = vadd.s32 28, %v831_v55  ;;  %11227 = vst [vmem:[#allocation16_spill] sm:$0xff] %v6958_v63  ;;  %vm752_vm9 = vc.u32 %v744_v52, %v748_v58 }
  0x46   : > { %vm916_vm8 = vmand %vm909_vm7, %vm902_vm6  ;;  %v754_v0 = vadd.s32 %v748_v58, %v744_v52  ;;  %v6962_v4 = vsel %vm934_vm5, 1.0, %v11043_v44  ;;  %v861_v5 = vshrl.u32 %v860_v61, 4  ;;  %v753_v6 = vsel %vm752_vm9, 1, %v6734_v1 }
  0x47   : > { %11228 = vst [vmem:[#allocation17_spill] sm:$0xff] %v6962_v4  ;;  %v774_v7 = vshrl.u32 %v6948_v49, 16  ;;  %v6966_v10 = vsel %vm916_vm8, %v923_v62, %v831_v55  ;;  %v749_v12 = vshrl.u32 %v745_v46, 16  ;;  %v755_v14 = vadd.s32 %v753_v6, %v747_v57 }
  0x48   : > { %vm756_vm10 = vc.u32 %v754_v0, %v750_v59  ;;  %v862_v16 = vmul.u32 28, %v861_v5  ;;  %v751_v17 = vshrl.u32 %v746_v53, 16  ;;  %v758_v20 = vadd.s32 %v754_v0, %v750_v59 }
  0x49   : > { %v757_v18 = vsel %vm756_vm10, 1, %v6734_v1  ;;  %v776_v22 = vmul.u32 9362, %v773_v8  ;;  %v777_v23 = vmul.u32 37449, %v773_v8  ;;  %vm958_vm11 = vcmp.le.s32.totalorder %v6966_v10, 26 }
  0x4a   : > { %v759_v21 = vadd.s32 %v757_v18, %v755_v14  ;;  %v863_v24 = vsub.s32 %v6900_v13, %v862_v16  ;;  %v778_v25 = vmul.u32 9362, %v774_v7  ;;  %v6973_v26 = vpack.i.bf16 %v6962_v4, %v6958_v63 }
  0x4b   : > { %vm762_vm12 = vc.u32 %v758_v20, 2454267026  ;;  %v779_v28 = vmul.u32 37449, %v774_v7  ;;  %v780_v29 = vshll.u32 %v777_v23, 16  ;;  %v5412_v33 = vsel %vm958_vm11, 1.0, %v11043_v44 }
  0x4c   : > { %v760_v27 = vadd.s32 %v759_v21, %v749_v12  ;;  %vm903_vm13 = vcmp.ne.s32.totalorder %v863_v24, 0  ;;  %vm910_vm14 = vcmp.lt.s32.totalorder %v863_v24, 0  ;;  %v924_v19 = vadd.s32 28, %v863_v24 }
  0x4d   : > { %v763_v30 = vsel %vm762_vm12, 1, %v6734_v1  ;;  %5631 = vrot.lane.b32.xlu1 %v6973_v26, %s11039_s16  ;;  %vm917_vm15 = vmand %vm910_vm14, %vm903_vm13  ;;  %v782_v31 = vshll.u32 %v778_v25, 16  ;;  %vm784_vm0 = vc.u32 %v776_v22, %v780_v29  ;;  %v786_v35 = vadd.s32 %v780_v29, %v776_v22 }
  0x4e   : > { %v761_v13 = vadd.s32 %v760_v27, %v751_v17  ;;  %v6978_v32 = vsel %vm917_vm15, %v924_v19, %v863_v24  ;;  %v785_v34 = vsel %vm784_vm0, 1, %v6734_v1  ;;  %v781_v39 = vshrl.u32 %v777_v23, 16 }
  0x4f   : > { %vm959_vm1 = vcmp.le.s32.totalorder %v6978_v32, 26  ;;  %v787_v37 = vadd.s32 %v785_v34, %v779_v28  ;;  %vm788_vm2 = vc.u32 %v786_v35, %v782_v31  ;;  %v790_v40 = vadd.s32 %v786_v35, %v782_v31 }
  0x50   : > { %v764_v36 = vadd.s32 %v763_v30, %v761_v13  ;;  %v5413_v38 = vsel %vm959_vm1, 1.0, %v11043_v44  ;;  %v789_v43 = vsel %vm788_vm2, 1, %v6734_v1  ;;  %v783_v45 = vshrl.u32 %v778_v25, 16 }
  0x51   : > { %v6986_v41 = vpack.i.bf16 %v5413_v38, %v5412_v33  ;;  %v791_v46 = vadd.s32 %v789_v43, %v787_v37  ;;  %vm794_vm3 = vc.u32 %v790_v40, 2454267026  ;;  %v6990_v47 = vadd.s32 768, %v6878_v2 }
  0x52   : > { %v765_v42 = vshrl.u32 %v764_v36, 4  ;;  %v795_v53 = vsel %vm794_vm3, 1, %v6734_v1  ;;  %vm938_vm1 = vcmp.ge.s32.totalorder %v6978_v32, 1  ;;  %vm937_vm2 = vcmp.ge.s32.totalorder %v6966_v10, 1 }
  0x53   : > { %5641 = vrot.lane.b32.xlu2 %v6986_v41, %s11038_s15  ;;  %v792_v50 = vadd.s32 %v791_v46, %v781_v39  ;;  %v869_v51 = vand.u32 65535, %v6990_v47  ;;  %v870_v55 = vshrl.u32 %v6990_v47, 16  ;;  %v7024_v35 = vsel %vm937_vm2, 1.0, %v11043_v44 }
  0x54   : > { %v766_v48 = vmul.u32 28, %v765_v42  ;;  %v1068_v40 = vperm.slane %v6895_v9, 5  ;;  %vm1362_vm2 = vcmask 1031168  }
  0x55   : > { %v793_v56 = vadd.s32 %v792_v50, %v783_v45  ;;  %v873_v57 = vmul.u32 37449, %v869_v51  ;;  %v872_v61 = vmul.u32 9362, %v869_v51  ;;  %v874_v62 = vmul.u32 9362, %v870_v55 }
  0x56   : > { %v767_v52 = vsub.s32 %v6931_v15, %v766_v48  ;;  %v875_v0 = vmul.u32 37449, %v870_v55 }
  0x57   : > { %v796_v59 = vadd.s32 %v795_v53, %v793_v56  ;;  %v876_v8 = vshll.u32 %v873_v57, 16  ;;  %v878_v15 = vshll.u32 %v874_v62, 16  ;;  %v877_v18 = vshrl.u32 %v873_v57, 16 }
  0x58   : > { %vm900_vm4 = vcmp.ne.s32.totalorder %v767_v52, 0  ;;  %vm907_vm5 = vcmp.lt.s32.totalorder %v767_v52, 0  ;;  %v921_v58 = vadd.s32 28, %v767_v52  ;;  %v879_v20 = vshrl.u32 %v874_v62, 16 }
  0x59   : > { %vm914_vm6 = vmand %vm907_vm5, %vm900_vm4  ;;  %v797_v5 = vshrl.u32 %v796_v59, 4  ;;  %vm880_vm7 = vc.u32 %v872_v61, %v876_v8  ;;  %v882_v14 = vadd.s32 %v876_v8, %v872_v61 }
  0x5a   : > { %v928_v6 = vsel %vm914_vm6, %v921_v58, %v767_v52  ;;  %v881_v12 = vsel %vm880_vm7, 1, %v6734_v1 }
  0x5b   : > { %5656 = vrot.lane.b32.xlu2 %v6952_v54, %s11040_s20  ;;  %v798_v7 = vmul.u32 28, %v797_v5  ;;  %v883_v16 = vadd.s32 %v881_v12, %v875_v0  ;;  %vm935_vm8 = vcmp.ge.s32.totalorder %v928_v6, 1  ;;  %vm884_vm9 = vc.u32 %v882_v14, %v878_v15 }
  0x5c   : > { %vm956_vm10 = vcmp.le.s32.totalorder %v928_v6, 26  ;;  %v885_v21 = vsel %vm884_vm9, 1, %v6734_v1  ;;  %v886_v22 = vadd.s32 %v882_v14, %v878_v15  ;;  %v7004_v27 = vsel %vm935_vm8, 1.0, %v11043_v44 }
  0x5d   : > { %v799_v17 = vsub.s32 %v6948_v49, %v798_v7  ;;  %v887_v24 = vadd.s32 %v885_v21, %v883_v16  ;;  %11229 = vst [vmem:[#allocation18_spill] sm:$0xff] %v7004_v27  ;;  %v5410_v49 = vsel %vm956_vm10, 1.0, %v11043_v44  ;;  %vm11098_vm8 = vcmask 236544  }
  0x5e   : > { %vm890_vm14 = vc.u32 %v886_v22, 2454267026  ;;  %vm11089_vm9 = vcmask 15360   ;;  %vm11093_vm10 = vcmask 367616  }
  0x5f   : > { %vm901_vm11 = vcmp.ne.s32.totalorder %v799_v17, 0  ;;  %vm908_vm12 = vcmp.lt.s32.totalorder %v799_v17, 0  ;;  %v922_v23 = vadd.s32 28, %v799_v17  ;;  %v888_v28 = vadd.s32 %v887_v24, %v877_v18 }
  0x60   : > { %vm915_vm13 = vmand %vm908_vm12, %vm901_vm11  ;;  %v891_v29 = vsel %vm890_vm14, 1, %v6734_v1  ;;  %v7021_v1 = vsel %vm938_vm1, 1.0, %v11043_v44  ;;  %vm1276_vm11 = vcmask 474112   ;;  %vm11090_vm12 = vcmask 228352  }
  0x61   : > { %v929_v25 = vsel %vm915_vm13, %v922_v23, %v799_v17  ;;  %v889_v13 = vadd.s32 %v888_v28, %v879_v20  ;;  %v5650_v10 = vpack.i.bf16 %v7021_v1, %v7024_v35  ;;  %vm11091_vm13 = vcmask 244736  }
  0x62   : > { %vm936_vm15 = vcmp.ge.s32.totalorder %v929_v25, 1  ;;  %vm957_vm0 = vcmp.le.s32.totalorder %v929_v25, 26  ;;  %vm1241_vm14 = vcmask 457728   ;;  %vm11150_vm1 = vcmask 1039360  }
  0x63   : > { %5671 = vrot.lane.b32.xlu2 %v6986_v41, %s11040_s20  ;;  %v7011_v19 = vsel %vm936_vm15, 1.0, %v11043_v44  ;;  %v5411_v30 = vsel %vm957_vm0, 1.0, %v11043_v44  ;;  %v892_v34 = vadd.s32 %v891_v29, %v889_v13  ;;  %vm11142_vm15 = vcmask 572416  }
  0x64   : > { %v5645_v31 = vpack.i.bf16 %v7011_v19, %v7004_v27  ;;  %v5635_v33 = vpack.i.bf16 %v5411_v30, %v5410_v49  ;;  %vm11147_vm0 = vcmask 1040384  }
  0x65   : > { %v893_v36 = vshrl.u32 %v892_v34, 4 }
  0x66   : > { %5646 = vrot.lane.b32.xlu0 %v5645_v31, %s11039_s16  ;;  %5636 = vrot.lane.b32.xlu1 %v5635_v33, %s11038_s15 }
  0x67   : > { %v894_v37 = vmul.u32 28, %v893_v36 }
  0x69   : > { %v895_v32 = vsub.s32 %v6990_v47, %v894_v37 }
  0x6b   : > { %5686 = vrot.lane.b32.xlu2 %v6952_v54, %s6740_s21  ;;  %vm904_vm3 = vcmp.ne.s32.totalorder %v895_v32, 0  ;;  %vm911_vm4 = vcmp.lt.s32.totalorder %v895_v32, 0  ;;  %v925_v38 = vadd.s32 28, %v895_v32 }
  0x6c   : > { %vm918_vm5 = vmand %vm911_vm4, %vm904_vm3  ;;  %vm1404_vm3 = vcmask 818176   ;;  %vm1439_vm4 = vcmask 809984  }
  0x6d   : > { %v932_v39 = vsel %vm918_vm5, %v925_v38, %v895_v32  ;;  %vm11146_vm5 = vcmask 1041408  }
  0x6e   : > { %5661 = vrot.lane.b32.xlu0 %v6973_v26, %s6741_s22  ;;  %5651 = vrot.lane.b32.xlu1 %v5650_v10, %s11039_s16  ;;  %vm939_vm6 = vcmp.ge.s32.totalorder %v932_v39, 1  ;;  %vm960_vm7 = vcmp.le.s32.totalorder %v932_v39, 26 }
  0x6f   : > { %v7035_v54 = vsel %vm939_vm6, 1.0, %v11043_v44  ;;  %v5414_v26 = vsel %vm960_vm7, 1.0, %v11043_v44  ;;  %vm11145_vm6 = vcmask 1042432   ;;  %vm1481_vm7 = vcmask 801792  }
  0x73   : > { %5696 = vrot.lane.b32.xlu2 %v6986_v41, %s6740_s21  ;;  %v1069_v41 = vperm.slane %v6895_v9, 6 }
  0x76   : > { %5676 = vrot.lane.b32.xlu0 %v5645_v31, %s6741_s22  ;;  %5666 = vrot.lane.b32.xlu1 %v5635_v33, %s11040_s20 }
  0x7b   : > { %1169 = vrot.lane.b32.xlu2 %v7035_v54, %s11039_s16  ;;  %s11094_s16 = smov 126  }
  0x7e   : > { %1080 = vrot.lane.b32.xlu0 %v1068_v40, %s11110_s30  ;;  %5681 = vrot.lane.b32.xlu1 %v5650_v10, %s6741_s22 }
  0x82   : > { %v1075_v42 = vpop.permute.xlu2 %1074 }
  0x83   : > { %1274 = vrot.lane.b32.xlu2 %v5414_v26, %s6740_s21 }
  0x86   : > { %1082 = vrot.lane.b32.xlu0 %v1069_v41, %s11110_s30  ;;  %5691 = vrot.lane.b32.xlu1 %v5635_v33, %s6740_s21  ;;  %s11049_s21 = smov 99  }
  0x8a   : > { %v1077_v45 = vpop.permute.xlu2 %1076 }
  0x8b   : > { %v7048_v46 = vsel %vm11098_vm8, %v1075_v42, %v1077_v45 }
  0x8c   : > { %v1302_v48 = vrot.slane %v7048_v46, 7  ;;  %v1421_v0 = vrot.slane %v7048_v46, 4 }
  0x8e   : > { %1204 = vrot.lane.b32.xlu0 %v5414_v26, %s11040_s20  ;;  %1127 = vrot.lane.b32.xlu1 %v5414_v26, %s11038_s15  ;;  %s11123_s15 = smov 70   ;;  %s11096_s20 = smov 100  }
  0x96   : > { %1239 = vrot.lane.b32.xlu1 %v7035_v54, %s6741_s22  ;;  %s11112_s22 = smov 71  }
  0x9a   : > { %v1071_v43 = vpop.permute.xlu0 %1070 }
  0x9b   : > { %v7051_v47 = vsel %vm11098_vm8, 0.0, %v1071_v43 }
  0x9c   : > { %v1418_v50 = vrot.slane %v7051_v47, 4  ;;  %v1299_v51 = vrot.slane %v7051_v47, 7 }
  0xa2   : > { %v1073_v9 = vpop.permute.xlu0 %1072 }
  0xa3   : > { %v7057_v52 = vsel %vm11098_vm8, %v1071_v43, %v1073_v9  ;;  %v7060_v53 = vsel %vm11098_vm8, %v1073_v9, %v1075_v42 }
  0xa4   : > { %v1301_v55 = vrot.slane %v7060_v53, 7  ;;  %v1419_v56 = vrot.slane %v7057_v52, 4  ;;  %v1300_v57 = vrot.slane %v7057_v52, 7  ;;  %v1420_v62 = vrot.slane %v7060_v53, 4 }
  0xa6   : > { %v5705_v58 = vpack.i.bf16 %v1302_v48, %v1301_v55  ;;  %v5715_v59 = vpack.i.bf16 %v1419_v56, %v1418_v50  ;;  %v5700_v61 = vpack.i.bf16 %v1300_v57, %v1299_v51  ;;  %v5720_v8 = vpack.i.bf16 %v1421_v0, %v1420_v62 }
  0xa7   : > { %v1537_v57 = vrot.slane %v7051_v47, 1 }
  0xa8   : > { %5706 = vrot.lane.b32.xlu2 %v5705_v58, %s11041_s23  ;;  %5716 = vrot.lane.b32.xlu1 %v5715_v59, %s11049_s21  ;;  %v1538_v58 = vrot.slane %v7057_v52, 1 }
  0xa9   : > { %5701 = vrot.lane.b32.xlu0 %v5700_v61, %s11041_s23 }
  0xaa   : > { %v1079_v6 = vpop.permute.xlu0 %1078 }
  0xab   : > { %v7092_v22 = vsel %vm11098_vm8, %v1077_v45, %v1079_v6 }
  0xac   : > { %v1541_v49 = vrot.slane %v7092_v22, 1  ;;  %v1303_v29 = vrot.slane %v7092_v22, 7  ;;  %v1422_v42 = vrot.slane %v7092_v22, 4 }
  0xad   : > { %v7083_v17 = vpop.permute.xlu2 %5641 }
  0xb0   : > { %5721 = vrot.lane.b32.xlu2 %v5720_v8, %s11049_s21 }
  0xb5   : > { %v7089_v21 = vpop.permute.xlu2 %5656 }
  0xb6   : > { %v5659_v8 = vunpack.i.h.bf16 %v7089_v21 }
  0xb7   : > { %v7071_v5 = vpop.permute.xlu1 %5626 }
  0xb8   : > { %v5629_v33 = vunpack.i.h.bf16 %v7071_v5  ;;  %v7105_v34 = vunpack.i.l.bf16 %v7071_v5 }
  0xba   : > { %v7116_v32 = vsel %vm11089_vm9, %v7105_v34, %v5629_v33  ;;  %v1143_v50 = vmul.f32 %v7105_v34, %v7051_v47 }
  0xbb   : > { %v1144_v51 = vmul.f32 %v7116_v32, %v7057_v52 }
  0xbc   : > { %v1341_v59 = vrot.slane %v1143_v50, 6 }
  0xbd   : > { %v7121_v26 = vpop.permute.xlu2 %5671  ;;  %v1342_v61 = vrot.slane %v1144_v51, 6 }
  0xbf   : > { %v7073_v15 = vpop.permute.xlu1 %5631 }
  0xc0   : > { %v5634_v55 = vunpack.i.h.bf16 %v7073_v15  ;;  %v7143_v56 = vunpack.i.l.bf16 %v7073_v15 }
  0xc2   : > { %v7154_v62 = vsel %vm11090_vm12, %v7143_v56, %v5634_v55 }
  0xd8   : > { %v7075_v7 = vpop.permute.xlu0 %5646  ;;  %v7077_v12 = vpop.permute.xlu1 %5636 }
  0xd9   : > { %v11045_v50 = vunpack.i.h.bf16 %v7077_v12  ;;  %v5638_v51 = vunpack.i.l.bf16 %v7077_v12  ;;  %v11047_v5 = vunpack.i.h.bf16 %v7075_v7 }
  0xe0   : > { %v7079_v14 = vpop.permute.xlu0 %5661  ;;  %v7081_v16 = vpop.permute.xlu1 %5651 }
  0xe8   : > { %v7085_v18 = vpop.permute.xlu0 %5676  ;;  %v7087_v20 = vpop.permute.xlu1 %5666 }
  0xf0   : > { %v1081_v23 = vpop.permute.xlu0 %1080  ;;  %v7094_v24 = vpop.permute.xlu1 %5681 }
  0xf1   : > { %v7097_v25 = vsel %vm11098_vm8, %v1079_v6, %v1081_v23  ;;  %v7159_v6 = vunpack.i.l.bf16 %v7089_v21 }
  0xf2   : > { %v1542_v28 = vrot.slane %v7097_v25, 1  ;;  %v1304_v30 = vrot.slane %v7097_v25, 7  ;;  %v1423_v37 = vrot.slane %v7097_v25, 4 }
  0xf3   : > { %v7172_v21 = vsel %vm11091_vm13, %v7159_v6, %v5659_v8 }
  0xf4   : > { %v5740_v13 = vpack.i.bf16 %v1542_v28, %v1541_v49  ;;  %v5710_v31 = vpack.i.bf16 %v1304_v30, %v1303_v29  ;;  %v5725_v9 = vpack.i.bf16 %v1423_v37, %v1422_v42  ;;  %v5730_v49 = vpack.i.bf16 %v1538_v58, %v1537_v57 }
  0xf5   : > { %v5745_v28 = vpack.i.bf16 %v1342_v61, %v1341_v59  ;;  %v1185_v29 = vmul.f32 %v7143_v56, %v7051_v47  ;;  %v1186_v30 = vmul.f32 %v7154_v62, %v7057_v52  ;;  %v1220_v42 = vmul.f32 %v7159_v6, %v7051_v47 }
  0xf6   : > { %5741 = vrot.lane.b32.xlu1 %v5740_v13, %s11112_s22  ;;  %5711 = vrot.lane.b32.xlu0 %v5710_v31, %s11041_s23  ;;  %v1539_v31 = vrot.slane %v7060_v53, 1  ;;  %v11046_v59 = vunpack.i.h.bf16 %v7079_v14  ;;  %v7190_v61 = vunpack.i.l.bf16 %v7079_v14 }
  0xf7   : > { %v1383_v37 = vrot.slane %v1185_v29, 5 }
  0xf8   : > { %v1083_v36 = vpop.permute.xlu0 %1082  ;;  %v7110_v10 = vpop.permute.xlu1 %5691 }
  0xf9   : > { %v1090_v38 = vsel %vm11098_vm8, %v1081_v23, %v1083_v36  ;;  %v5694_v39 = vunpack.i.h.bf16 %v7110_v10  ;;  %v5693_v40 = vunpack.i.l.bf16 %v7110_v10  ;;  %v7161_v23 = vpop.permute.xlu2 %5686  ;;  %v1540_v36 = vrot.slane %v7048_v46, 1 }
  0xfa   : > { %v7124_v41 = vsel %vm11093_vm10, %v1090_v38, 0.0  ;;  %v7175_v13 = vunpack.i.l.bf16 %v7161_v23  ;;  %v1384_v38 = vrot.slane %v1186_v30, 5  ;;  %v7205_v30 = vsel %vm11089_vm9, %v5629_v33, %v5638_v51 }
  0xfb   : > { %v1305_v43 = vrot.slane %v7124_v41, 7  ;;  %v7133_v45 = vsel %vm1276_vm11, %v5693_v40, %v5694_v39  ;;  %v1424_v0 = vrot.slane %v7124_v41, 4  ;;  %v5735_v57 = vpack.i.bf16 %v1540_v36, %v1539_v31  ;;  %11230 = vst [vmem:[#allocation19_spill] sm:$0xff] %v7205_v30 }
  0xfc   : > { %v1293_v48 = vmul.f32 %v7133_v45, %v7048_v46  ;;  %v5750_v58 = vpack.i.bf16 %v1384_v38, %v1383_v37  ;;  %v7210_v31 = vsel %vm11089_vm9, %v5638_v51, %v11045_v50  ;;  %v7221_v37 = vsel %vm1241_vm14, %v7190_v61, %v11046_v59 }
  0xfd   : > { %1318 = vrot.lane.b32.xlu2 %v1305_v43, %s11041_s23  ;;  %v1221_v43 = vmul.f32 %v7172_v21, %v7057_v52  ;;  %11231 = vst [vmem:[#allocation20_spill] sm:$0xff] %v7210_v31  ;;  %v5669_v51 = vunpack.i.h.bf16 %v7087_v20  ;;  %s11133_s23 = smov 98   ;;  %v5678_v10 = vunpack.i.l.bf16 %v7085_v18  ;;  %vm11140_vm10 = vcmask 580608  }
  0xfe   : > { %5726 = vrot.lane.b32.xlu0 %v5725_v9, %s11049_s21  ;;  %1585 = vrot.lane.b32.xlu1 %v1293_v48, %s11123_s15  ;;  %v5689_v9 = vunpack.i.h.bf16 %v7161_v23  ;;  %v1290_v48 = vmul.f32 %v7175_v13, %v7051_v47  ;;  %vm11108_vm8 = vcmask 72704  }
 0x100   : > { %v7200_v29 = vsel %vm1276_vm11, %v7175_v13, %v5689_v9 }
 0x101   : > { %v1291_v33 = vmul.f32 %v7200_v29, %v7057_v52 }
 0x105   : > { %1437 = vrot.lane.b32.xlu2 %v1424_v0, %s11049_s21  ;;  %v7192_v0 = vpop.permute.xlu2 %5696  ;;  %s11125_s21 = smov 72  }
 0x106   : > { %5731 = vrot.lane.b32.xlu0 %v5730_v49, %s11112_s22  ;;  %5746 = vrot.lane.b32.xlu1 %v5745_v28, %s11094_s16  ;;  %v5698_v23 = vunpack.i.l.bf16 %v7192_v0  ;;  %v1460_v49 = vrot.slane %v1220_v42, 3  ;;  %v1461_v28 = vrot.slane %v1221_v43, 3  ;;  %v5648_v42 = vunpack.i.l.bf16 %v7075_v7 }
 0x108   : > { %v7215_v36 = vsel %vm1276_vm11, %v5694_v39, %v5698_v23  ;;  %v5775_v38 = vpack.i.bf16 %v1461_v28, %v1460_v49  ;;  %v1145_v39 = vmul.f32 %v7205_v30, %v7060_v53  ;;  %v1256_v49 = vmul.f32 %v7221_v37, %v7057_v52 }
 0x109   : > { %11232 = vst [vmem:[#allocation21_spill] sm:$0xff] %v7215_v36  ;;  %v1294_v43 = vmul.f32 %v7215_v36, %v7092_v22  ;;  %v7245_v28 = vsel %vm11090_vm12, %v5648_v42, %v11047_v5  ;;  %v7261_v5 = vsel %vm1276_vm11, %v5689_v9, %v5693_v40  ;;  %v11249_v30 = vunpack.i.h.bf16 %v7075_v7 }
 0x10a   : > { %11233 = vst [vmem:[#allocation22_spill] sm:$0xff] %v7245_v28  ;;  %v1343_v44 = vrot.slane %v1145_v39, 6  ;;  %v1292_v40 = vmul.f32 %v7261_v5, %v7060_v53 }
 0x10d   : > { %1579 = vrot.lane.b32.xlu2 %v1290_v48, %s11123_s15  ;;  %v1146_v48 = vmul.f32 %v7210_v31, %v7048_v46 }
 0x10e   : > { %5736 = vrot.lane.b32.xlu0 %v5735_v57, %s11112_s22  ;;  %5751 = vrot.lane.b32.xlu1 %v5750_v58, %s11096_s20  ;;  %v5668_v57 = vunpack.i.l.bf16 %v7087_v20  ;;  %v1255_v58 = vmul.f32 %v7190_v61, %v7051_v47  ;;  %v7250_v20 = vsel %vm11090_vm12, %v5634_v55, %v5648_v42  ;;  %v1188_v55 = vmul.f32 %v7245_v28, %v7048_v46 }
 0x10f   : > { %11234 = vst [vmem:[#allocation23_spill] sm:$0xff] %v7250_v20  ;;  %v1344_v50 = vrot.slane %v1146_v48, 6  ;;  %v1187_v15 = vmul.f32 %v7250_v20, %v7060_v53  ;;  %v5679_v48 = vunpack.i.h.bf16 %v7085_v18 }
 0x110   : > { %v7253_v59 = vsel %vm11091_vm13, %v5659_v8, %v5668_v57  ;;  %v1386_v18 = vrot.slane %v1188_v55, 5 }
 0x111   : > { %11235 = vst [vmem:[#allocation24_spill] sm:$0xff] %v7253_v59  ;;  %v5755_v42 = vpack.i.bf16 %v1344_v50, %v1343_v44  ;;  %v1222_v8 = vmul.f32 %v7253_v59, %v7060_v53  ;;  %v11052_v44 = vunpack.i.h.bf16 %v7192_v0  ;;  %v1385_v3 = vrot.slane %v1187_v15, 5 }
 0x113   : > { %v7302_v55 = vsel %vm1276_vm11, %v5698_v23, %v11052_v44  ;;  %v5684_v44 = vunpack.i.h.bf16 %v7094_v24 }
 0x114   : > { %11242 = vst [vmem:[#allocation29_spill] sm:$0xff] %v7302_v55 }
 0x115   : > { %1587 = vrot.lane.b32.xlu2 %v1294_v43, %s11123_s15  ;;  %v1502_v43 = vrot.slane %v1255_v58, 2  ;;  %v5643_v58 = vunpack.i.l.bf16 %v7083_v17 }
 0x116   : > { %1581 = vrot.lane.b32.xlu0 %v1291_v33, %s11123_s15  ;;  %5776 = vrot.lane.b32.xlu1 %v5775_v38, %s11133_s23  ;;  %v7256_v33 = vsel %vm11091_vm13, %v5668_v57, %v5669_v51  ;;  %v1503_v38 = vrot.slane %v1256_v49, 2  ;;  %v5673_v49 = vunpack.i.l.bf16 %v7121_v26  ;;  %v11237_v57 = vunpack.i.h.bf16 %v7079_v14 }
 0x117   : > { %11236 = vst [vmem:[#allocation25_spill] sm:$0xff] %v7256_v33  ;;  %v1223_v39 = vmul.f32 %v7256_v33, %v7048_v46  ;;  %v11243_v14 = vunpack.i.h.bf16 %v7121_v26 }
 0x118   : > { %v5780_v9 = vpack.i.bf16 %v1503_v38, %v1502_v43  ;;  %v1462_v43 = vrot.slane %v1222_v8, 3  ;;  %v7286_v2 = vsel %vm1241_vm14, %v11237_v57, %v5678_v10  ;;  %v7292_v50 = vsel %vm11091_vm13, %v5669_v51, %v5673_v49 }
 0x119   : > { %v1463_v38 = vrot.slane %v1223_v39, 3  ;;  %11239 = vst [vmem:[#allocation27_spill] sm:$0xff] %v7292_v50  ;;  %v7307_v8 = vsel %vm11091_vm13, %v5673_v49, %v11243_v14  ;;  %v11245_v39 = vunpack.i.h.bf16 %v7077_v12  ;;  %v5683_v49 = vunpack.i.l.bf16 %v7094_v24 }
 0x11a   : > { %11244 = vst [vmem:[#allocation30_spill] sm:$0xff] %v7307_v8  ;;  %v1295_v12 = vmul.f32 %v7302_v55, %v7097_v25 }
 0x11b   : > { %v7312_v51 = vsel %vm11089_vm9, %v11245_v39, %v5643_v58  ;;  %v5785_v57 = vpack.i.bf16 %v1463_v38, %v1462_v43  ;;  %v1225_v43 = vmul.f32 %v7307_v8, %v7097_v25  ;;  %v1128_v38 = vpop.permute.xlu1 %1127  ;;  %v7336_v11 = vsel %vm1241_vm14, %v5679_v48, %v5683_v49 }
 0x11c   : > { %11246 = vst [vmem:[#allocation31_spill] sm:$0xff] %v7312_v51  ;;  %v1147_v24 = vmul.f32 %v7312_v51, %v7092_v22 }
 0x11d   : > { %5756 = vrot.lane.b32.xlu2 %v5755_v42, %s11094_s16  ;;  %v7289_v42 = vsel %vm1241_vm14, %v5678_v10, %v5679_v48  ;;  %v5765_v10 = vpack.i.bf16 %v1386_v18, %v1385_v3  ;;  %v5653_v18 = vunpack.i.l.bf16 %v7081_v16  ;;  %11247 = vst [vmem:[#allocation32_spill] sm:$0xff] %v7336_v11  ;;  %v1259_v48 = vmul.f32 %v7336_v11, %v7092_v22 }
 0x11e   : > { %1583 = vrot.lane.b32.xlu0 %v1292_v40, %s11123_s15  ;;  %5781 = vrot.lane.b32.xlu1 %v5780_v9, %s11125_s21  ;;  %11238 = vst [vmem:[#allocation26_spill] sm:$0xff] %v7289_v42  ;;  %v11240_v40 = vunpack.i.h.bf16 %v7083_v17  ;;  %v1224_v9 = vmul.f32 %v7292_v50, %v7092_v22  ;;  %v1258_v23 = vmul.f32 %v7289_v42, %v7048_v46  ;;  %v1205_v50 = vpop.permute.xlu0 %1204 }
 0x120   : > { %v7297_v15 = vsel %vm11089_vm9, %v5643_v58, %v11240_v40  ;;  %v1257_v40 = vmul.f32 %v7286_v2, %v7060_v53  ;;  %v5654_v58 = vunpack.i.h.bf16 %v7081_v16  ;;  %v1464_v14 = vrot.slane %v1224_v9, 3 }
 0x121   : > { %11241 = vst [vmem:[#allocation28_spill] sm:$0xff] %v7297_v15  ;;  %v1148_v3 = vmul.f32 %v7297_v15, %v7097_v25  ;;  %v7339_v16 = vsel %vm1241_vm14, %v5683_v49, %v5684_v44  ;;  %v1505_v60 = vrot.slane %v1258_v23, 2  ;;  %v1345_v15 = vrot.slane %v1147_v24, 6  ;;  %v1170_v49 = vpop.permute.xlu2 %1169 }
 0x122   : > { %v1504_v39 = vrot.slane %v1257_v40, 2  ;;  %11248 = vst [vmem:[#allocation33_spill] sm:$0xff] %v7339_v16  ;;  %v7347_v33 = vsel %vm11090_vm12, %v5653_v18, %v5654_v58  ;;  %v1260_v40 = vmul.f32 %v7339_v16, %v7097_v25 }
 0x123   : > { %11251 = vst [vmem:[#allocation35_spill] sm:$0xff] %v7347_v33 }
 0x124   : > { %v5795_v23 = vpack.i.bf16 %v1505_v60, %v1504_v39  ;;  %v1507_v24 = vrot.slane %v1260_v40, 2 }
 0x125   : > { %5766 = vrot.lane.b32.xlu2 %v5765_v10, %s11096_s20  ;;  %v1346_v10 = vrot.slane %v1148_v3, 6 }
 0x126   : > { %1589 = vrot.lane.b32.xlu0 %v1295_v12, %s11123_s15  ;;  %5786 = vrot.lane.b32.xlu1 %v5785_v57, %s11133_s23  ;;  %v7344_v12 = vsel %vm11090_vm12, %v11249_v30, %v5653_v18  ;;  %v1465_v57 = vrot.slane %v1225_v43, 3  ;;  %v1190_v30 = vmul.f32 %v7347_v33, %v7097_v25  ;;  %v7361_v18 = vsel %vm11090_vm12, %v5654_v58, %v1170_v49 }
 0x127   : > { %11250 = vst [vmem:[#allocation34_spill] sm:$0xff] %v7344_v12  ;;  %v5760_v3 = vpack.i.bf16 %v1346_v10, %v1345_v15  ;;  %v1189_v7 = vmul.f32 %v7344_v12, %v7092_v22  ;;  %v1506_v43 = vrot.slane %v1259_v48, 2  ;;  %v1191_v10 = vmul.f32 %v7361_v18, %v7124_v41 }
 0x128   : > { %v5790_v9 = vpack.i.bf16 %v1465_v57, %v1464_v14  ;;  %11252 = vst [vmem:[#allocation36_spill] sm:$0xff] %v7361_v18  ;;  %v1388_v15 = vrot.slane %v1190_v30, 5  ;;  %v1240_v57 = vpop.permute.xlu1 %1239  ;;  %v11256_v48 = vunpack.i.h.bf16 %v7083_v17  ;;  %v1101_v18 = vmul.f32 %v6958_v63, %v7051_v47 }
 0x129   : > { %v1387_v14 = vrot.slane %v1189_v7, 5  ;;  %v5800_v31 = vpack.i.bf16 %v1507_v24, %v1506_v43  ;;  %v7366_v60 = vsel %vm1241_vm14, %v5684_v44, %v1240_v57  ;;  %v1543_v43 = vrot.slane %v7124_v41, 1  ;;  %v7410_v57 = vpop.permute.xlu0 %5701 }
 0x12a   : > { %11253 = vst [vmem:[#allocation37_spill] sm:$0xff] %v7366_v60  ;;  %v7376_v40 = vsel %vm11089_vm9, %v11256_v48, %v1128_v38  ;;  %v1261_v44 = vmul.f32 %v7366_v60, %v7124_v41  ;;  %v1275_v38 = vpop.permute.xlu2 %1274  ;;  %v11260_v51 = vunpack.i.h.bf16 %v7410_v57  ;;  %vm11144_vm14 = vcmask 1044480  }
 0x12b   : > { %v5770_v39 = vpack.i.bf16 %v1388_v15, %v1387_v14  ;;  %11257 = vst [vmem:[#allocation39_spill] sm:$0xff] %v7376_v40  ;;  %vm11143_vm9 = vcmask 1045504   ;;  %vm11149_vm12 = vcmask 588800  }
 0x12c   : > { %v1508_v49 = vrot.slane %v1261_v44, 2 }
 0x12d   : > { %5791 = vrot.lane.b32.xlu2 %v5790_v9, %s11133_s23  ;;  %v1389_v9 = vrot.slane %v1191_v10, 5 }
 0x12e   : > { %5761 = vrot.lane.b32.xlu0 %v5760_v3, %s11094_s16  ;;  %5796 = vrot.lane.b32.xlu1 %v5795_v23, %s11125_s21  ;;  %v11254_v3 = vunpack.i.h.bf16 %v7121_v26  ;;  %v1149_v26 = vmul.f32 %v7376_v40, %v7124_v41 }
 0x130   : > { %v7371_v58 = vsel %vm11091_vm13, %v11254_v3, %v1205_v50  ;;  %v1347_v17 = vrot.slane %v1149_v26, 6  ;;  %vm11109_vm13 = vcmask 1046528  }
 0x131   : > { %11255 = vst [vmem:[#allocation38_spill] sm:$0xff] %v7371_v58  ;;  %v1226_v50 = vmul.f32 %v7371_v58, %v7124_v41 }
 0x132   : > { %v7400_v24 = vpop.permute.xlu2 %5706 }
 0x133   : > { %v1466_v7 = vrot.slane %v1226_v50, 3 }
 0x135   : > { %5801 = vrot.lane.b32.xlu2 %v5800_v31, %s11125_s21  ;;  %v11258_v31 = vunpack.i.h.bf16 %v7192_v0  ;;  %v7408_v0 = vpop.permute.xlu1 %5716 }
 0x136   : > { %5771 = vrot.lane.b32.xlu0 %v5770_v39, %s11096_s20  ;;  %1402 = vrot.lane.b32.xlu1 %v1389_v9, %s11096_s20  ;;  %v11092_v33 = vunpack.i.h.bf16 %v7408_v0  ;;  %s11284_s20 = smov 127  }
 0x137   : > { %v7393_v30 = vsel %vm1276_vm11, %v11258_v31, %v1275_v38  ;;  %v5718_v31 = vunpack.i.l.bf16 %v7408_v0  ;;  %vm11148_vm11 = vcmask 1043456  }
 0x138   : > { %11259 = vst [vmem:[#allocation40_spill] sm:$0xff] %v7393_v30  ;;  %v1296_v23 = vmul.f32 %v7393_v30, %v7124_v41 }
 0x139   : > { %v1440_v47 = vsel %vm1439_vm4, %v5718_v31, %v11092_v33 }
 0x13a   : > { %v7402_v14 = vpop.permute.xlu2 %5721 }
 0x13d   : > { %1521 = vrot.lane.b32.xlu2 %v1508_v49, %s11125_s21 }
 0x13e   : > { %1360 = vrot.lane.b32.xlu0 %v1347_v17, %s11094_s16  ;;  %1479 = vrot.lane.b32.xlu1 %v1466_v7, %s11133_s23  ;;  %s11282_s16 = smov 99  }
 0x146   : > { %1591 = vrot.lane.b32.xlu0 %v1296_v23, %s11123_s15  ;;  %1556 = vrot.lane.b32.xlu1 %v1543_v43, %s11112_s22  ;;  %v5703_v23 = vunpack.i.l.bf16 %v7410_v57 }
 0x148   : > { %v1321_v43 = vsel %vm11150_vm1, %v5703_v23, %v11260_v51 }
 0x157   : > { %v7404_v15 = vpop.permute.xlu2 %1318 }
 0x15f   : > { %v7406_v10 = vpop.permute.xlu2 %1437 }
 0x167   : > { %v1580_v39 = vpop.permute.xlu2 %1579 }
 0x168   : > { %v7412_v9 = vpop.permute.xlu1 %5741  ;;  %v7414_v3 = vpop.permute.xlu0 %5711 }
 0x16f   : > { %v7416_v48 = vpop.permute.xlu2 %1587 }
 0x170   : > { %v7418_v44 = vpop.permute.xlu0 %5726  ;;  %v1586_v26 = vpop.permute.xlu1 %1585 }
 0x171   : > { %v1597_v50 = vsel %vm11142_vm15, %v1586_v26, %v7416_v48 }
 0x172   : > { %5425 = vmatpush.msk.msra.mxu3 %vm11147_vm0, %v1597_v50 }
 0x177   : > { %v7439_v30 = vpop.permute.xlu2 %5756 }
 0x178   : > { %v7423_v49 = vpop.permute.xlu0 %5731  ;;  %v7425_v17 = vpop.permute.xlu1 %5746 }
 0x179   : > { %v5748_v40 = vunpack.i.l.bf16 %v7425_v17  ;;  %v11261_v11 = vunpack.i.h.bf16 %v7425_v17 }
 0x17b   : > { %v1363_v20 = vsel %vm1362_vm2, %v5748_v40, %v11261_v11  ;;  %v11100_v40 = vunpack.i.h.bf16 %v7423_v49 }
 0x17f   : > { %v7478_v33 = vpop.permute.xlu2 %5766 }
 0x180   : > { %v7427_v7 = vpop.permute.xlu0 %5736  ;;  %v7429_v38 = vpop.permute.xlu1 %5751 }
 0x181   : > { %v5753_v50 = vunpack.i.l.bf16 %v7429_v38 }
 0x188   : > { %v1582_v58 = vpop.permute.xlu0 %1581  ;;  %v7437_v60 = vpop.permute.xlu1 %5776 }
 0x189   : > { %v1594_v42 = vsel %vm11142_vm15, %v1580_v39, %v1582_v58  ;;  %v11262_v39 = vunpack.i.h.bf16 %v7429_v38  ;;  %v5778_v51 = vunpack.i.l.bf16 %v7437_v60 }
 0x18a   : > { %5419 = vmatpush.msk.msra.mxu0 %vm11147_vm0, %v1594_v42  ;;  %v1601_v42 = vsel %vm11147_vm0, %v1101_v18, %v1321_v43  ;;  %v11263_v18 = vunpack.i.h.bf16 %v7437_v60 }
 0x18b   : > { %v1405_v59 = vsel %vm1404_vm3, %v5753_v50, %v11262_v39  ;;  %v1609_v11 = vsel %vm11146_vm5, %v1601_v42, %v1363_v20  ;;  %v5733_v50 = vunpack.i.l.bf16 %v7423_v49 }
 0x18c   : > { %v1617_v23 = vsel %vm11145_vm6, %v1609_v11, %v1405_v59  ;;  %v1482_v43 = vsel %vm1481_vm7, %v5778_v51, %v11263_v18  ;;  %v5709_v18 = vunpack.i.h.bf16 %v7400_v24 }
 0x18d   : > { %v1625_v11 = vsel %vm11148_vm11, %v1617_v23, %v1440_v47  ;;  %v1559_v51 = vsel %vm11140_vm10, %v5733_v50, %v11100_v40  ;;  %v7491_v47 = vld [vmem:[%s11025_s1] sm:$0xff]  ;;  %v5723_v50 = vunpack.i.l.bf16 %v7402_v14 }
 0x18e   : > { %v437_v40 = vld [vmem:[%s11265_s2] sm:$0xff]  ;;  %s11328_s2 = smov 30  }
 0x18f   : > { %1658 = vperm.xlu2 %5805, %v437_v40  }
 0x190   : > { %v1584_v39 = vpop.permute.xlu0 %1583  ;;  %v7466_v8 = vpop.permute.xlu1 %5781 }
 0x191   : > { %v1595_v20 = vsel %vm11142_vm15, %v1582_v58, %v1584_v39  ;;  %v1596_v31 = vsel %vm11142_vm15, %v1584_v39, %v1586_v26  ;;  %v11099_v42 = vunpack.i.h.bf16 %v7466_v8  ;;  %v5783_v59 = vunpack.i.l.bf16 %v7466_v8 }
 0x192   : > { %5421 = vmatpush.msk.msra.mxu1 %vm11147_vm0, %v1595_v20  ;;  %5423 = vmatpush.msk.msra.mxu2 %vm11147_vm0, %v1596_v31  ;;  %v1633_v26 = vsel %vm11144_vm14, %v1625_v11, %v1482_v43  ;;  %v5708_v20 = vunpack.i.l.bf16 %v7400_v24  ;;  %v11107_v43 = vunpack.i.h.bf16 %v7439_v30  ;;  %v5758_v31 = vunpack.i.l.bf16 %v7439_v30 }
 0x193   : > { %v1524_v58 = vsel %vm11149_vm12, %v5783_v59, %v11099_v42  ;;  %v5768_v59 = vunpack.i.l.bf16 %v7478_v33 }
 0x194   : > { %v1641_v39 = vsel %vm11143_vm9, %v1633_v26, %v1524_v58  ;;  %v1103_v26 = vmul.f32 %v7004_v27, %v7060_v53  ;;  %v1365_v53 = vsel %vm1362_vm2, %v5758_v31, %v11107_v43 }
 0x195   : > { %v1649_v23 = vsel %vm11109_vm13, %v1641_v39, %v1559_v51  ;;  %v1323_v51 = vsel %vm11150_vm1, %v5708_v20, %v5709_v18  ;;  %v1102_v39 = vmul.f32 %v6962_v4, %v7057_v52  ;;  %v11266_v52 = vunpack.i.h.bf16 %v7425_v17  ;;  %v7539_v17 = vpop.permute.xlu2 %5791 }
 0x196   : > { %1694 = vmatpush.msra.mxu0 %v1649_v23  ;;  %v11264_v23 = vunpack.i.h.bf16 %v7410_v57  ;;  %v1603_v63 = vsel %vm11147_vm0, %v1103_v26, %v1323_v51 }
 0x197   : > { %5420 = vmatmul.msk.f32.vlgmr.msra.gmra.mxu0 %vm11108_vm8, %v7491_v47  ;;  %v1364_v57 = vsel %vm1362_vm2, %v11266_v52, %v5758_v31  ;;  %v1611_v40 = vsel %vm11146_vm5, %v1603_v63, %v1365_v53  ;;  %v5738_v52 = vunpack.i.l.bf16 %v7427_v7  ;;  %v11271_v53 = vunpack.i.h.bf16 %v7437_v60 }
 0x198   : > { %v7502_v11 = vpop.permute.xlu0 %1589  ;;  %v7504_v58 = vpop.permute.xlu1 %5786  ;;  %v1322_v42 = vsel %vm11150_vm1, %v11264_v23, %v5708_v20  ;;  %v11267_v20 = vunpack.i.h.bf16 %v7478_v33  ;;  %v11268_v23 = vunpack.i.h.bf16 %v7429_v38  ;;  %v11273_v60 = vunpack.i.h.bf16 %v7427_v7 }
 0x199   : > { %v1598_v24 = vsel %vm11142_vm15, %v7416_v48, %v7502_v11  ;;  %v5789_v48 = vunpack.i.h.bf16 %v7504_v58  ;;  %v5788_v4 = vunpack.i.l.bf16 %v7504_v58  ;;  %v1602_v43 = vsel %vm11147_vm0, %v1102_v39, %v1322_v42 }
 0x19a   : > { %5427 = vmatpush.msk.msrb.mxu0 %vm11147_vm0, %v1598_v24  ;;  %v1407_v24 = vsel %vm1404_vm3, %v5768_v59, %v11267_v20  ;;  %v1406_v27 = vsel %vm1404_vm3, %v11268_v23, %v5768_v59  ;;  %v1610_v38 = vsel %vm11146_vm5, %v1602_v43, %v1364_v57  ;;  %v11269_v23 = vunpack.i.h.bf16 %v7402_v14 }
 0x19b   : > { %v1618_v59 = vsel %vm11145_vm6, %v1610_v38, %v1406_v27  ;;  %v1619_v20 = vsel %vm11145_vm6, %v1611_v40, %v1407_v24  ;;  %v11270_v42 = vunpack.i.h.bf16 %v7408_v0  ;;  %v1483_v31 = vsel %vm1481_vm7, %v11271_v53, %v5788_v4 }
 0x19c   : > { %v1442_v26 = vsel %vm1439_vm4, %v5723_v50, %v11269_v23  ;;  %v1484_v27 = vsel %vm1481_vm7, %v5788_v4, %v5789_v48  ;;  %v5714_v43 = vunpack.i.h.bf16 %v7414_v3  ;;  %v5713_v57 = vunpack.i.l.bf16 %v7414_v3 }
 0x19d   : > { %v1441_v51 = vsel %vm1439_vm4, %v11270_v42, %v5723_v50  ;;  %v11272_v0 = vunpack.i.h.bf16 %v7423_v49  ;;  %v1561_v23 = vsel %vm11140_vm10, %v5738_v52, %v11273_v60  ;;  %v1627_v42 = vsel %vm11148_vm11, %v1619_v20, %v1442_v26 }
 0x19e   : > { %v1626_v38 = vsel %vm11148_vm11, %v1618_v59, %v1441_v51  ;;  %v11274_v4 = vunpack.i.h.bf16 %v7466_v8  ;;  %v1635_v49 = vsel %vm11144_vm14, %v1627_v42, %v1484_v27  ;;  %v1324_v20 = vsel %vm11150_vm1, %v5709_v18, %v5713_v57 }
 0x19f   : > { %v1560_v50 = vsel %vm11140_vm10, %v11272_v0, %v5738_v52  ;;  %v1634_v3 = vsel %vm11144_vm14, %v1626_v38, %v1483_v31  ;;  %v1104_v31 = vmul.f32 %v7011_v19, %v7048_v46  ;;  %v1105_v27 = vmul.f32 %v7024_v35, %v7092_v22  ;;  %v5802_v46 = vpop.permute.xlu2 %5801 }
 0x1a0   : > { %v7553_v39 = vpop.permute.xlu0 %5761  ;;  %v5797_v63 = vpop.permute.xlu1 %5796  ;;  %v1107_v18 = vmul.f32 %v7035_v54, %v7124_v41  ;;  %v5743_v38 = vunpack.i.l.bf16 %v7412_v9  ;;  %v1325_v60 = vsel %vm11150_vm1, %v5713_v57, %v5714_v43  ;;  %v5794_v57 = vunpack.i.h.bf16 %v7539_v17 }
 0x1a1   : > { %v5799_v24 = vunpack.i.h.bf16 %v5797_v63  ;;  %v5798_v40 = vunpack.i.l.bf16 %v5797_v63  ;;  %v5764_v0 = vunpack.i.h.bf16 %v7553_v39  ;;  %v5763_v59 = vunpack.i.l.bf16 %v7553_v39 }
 0x1a2   : > { %v1106_v39 = vmul.f32 %v7021_v1, %v7097_v25  ;;  %v1604_v22 = vsel %vm11147_vm0, %v1104_v31, %v1324_v20  ;;  %v5729_v25 = vunpack.i.h.bf16 %v7418_v44  ;;  %v5804_v20 = vunpack.i.h.bf16 %v5802_v46 }
 0x1a3   : > { %v1525_v53 = vsel %vm11149_vm12, %v11274_v4, %v5798_v40  ;;  %v1526_v63 = vsel %vm11149_vm12, %v5798_v40, %v5799_v24  ;;  %v5728_v40 = vunpack.i.l.bf16 %v7418_v44  ;;  %v1367_v42 = vsel %vm1362_vm2, %v5763_v59, %v5764_v0 }
 0x1a4   : > { %v1642_v51 = vsel %vm11143_vm9, %v1634_v3, %v1525_v53  ;;  %v1643_v52 = vsel %vm11143_vm9, %v1635_v49, %v1526_v63  ;;  %v5793_v3 = vunpack.i.l.bf16 %v7539_v17  ;;  %v11278_v58 = vunpack.i.h.bf16 %v7427_v7 }
 0x1a5   : > { %v1650_v8 = vsel %vm11109_vm13, %v1642_v51, %v1560_v50  ;;  %v1651_v26 = vsel %vm11109_vm13, %v1643_v52, %v1561_v23  ;;  %v5744_v50 = vunpack.i.h.bf16 %v7412_v9  ;;  %v11275_v23 = vunpack.i.h.bf16 %v7439_v30 }
 0x1a6   : > { %1714 = vmatpush.msra.mxu1 %v1650_v8  ;;  %1734 = vmatpush.msra.mxu2 %v1651_v26  ;;  %v1605_v51 = vsel %vm11147_vm0, %v1105_v27, %v1325_v60  ;;  %v11276_v52 = vunpack.i.h.bf16 %v7402_v14  ;;  %v5803_v30 = vunpack.i.l.bf16 %v5802_v46  ;;  %v11277_v26 = vunpack.i.h.bf16 %v7478_v33 }
 0x1a7   : > { %5422 = vmatmul.msk.f32.vlgmr.msra.gmra.mxu1 %vm11108_vm8, %v7491_v47  ;;  %5424 = vmatmul.msk.f32.vlgmr.msra.gmra.mxu2 %vm11108_vm8, %v7491_v47  ;;  %v1366_v41 = vsel %vm1362_vm2, %v11275_v23, %v5763_v59  ;;  %v1613_v59 = vsel %vm11146_vm5, %v1605_v51, %v1367_v42  ;;  %v1444_v23 = vsel %vm1439_vm4, %v5728_v40, %v5729_v25 }
 0x1a8   : > { %v5772_v4 = vpop.permute.xlu0 %5771  ;;  %v1403_v53 = vpop.permute.xlu1 %1402  ;;  %v1443_v44 = vsel %vm1439_vm4, %v11276_v52, %v5728_v40  ;;  %v1612_v8 = vsel %vm11146_vm5, %v1604_v22, %v1366_v41  ;;  %v1527_v14 = vsel %vm11149_vm12, %v5799_v24, %v5803_v30  ;;  %v1486_v46 = vsel %vm1481_vm7, %v5793_v3, %v5794_v57 }
 0x1a9   : > { %v5774_v63 = vunpack.i.h.bf16 %v5772_v4  ;;  %v5773_v49 = vunpack.i.l.bf16 %v5772_v4  ;;  %v1485_v33 = vsel %vm1481_vm7, %v5789_v48, %v5793_v3  ;;  %v1326_v42 = vsel %vm11150_vm1, %v5714_v43, %v7404_v15 }
 0x1aa   : > { %v1528_v40 = vsel %vm11149_vm12, %v5803_v30, %v5804_v20  ;;  %v1562_v48 = vsel %vm11140_vm10, %v11278_v58, %v5743_v38  ;;  %v1607_v43 = vsel %vm11147_vm0, %v1107_v18, %v7404_v15 }
 0x1ab   : > { %v1408_v31 = vsel %vm1404_vm3, %v11277_v26, %v5773_v49  ;;  %v1409_v17 = vsel %vm1404_vm3, %v5773_v49, %v5774_v63  ;;  %v1563_v49 = vsel %vm11140_vm10, %v5743_v38, %v5744_v50  ;;  %v1606_v26 = vsel %vm11147_vm0, %v1106_v39, %v1326_v42 }
 0x1ac   : > { %v1621_v27 = vsel %vm11145_vm6, %v1613_v59, %v1409_v17  ;;  %v1620_v60 = vsel %vm11145_vm6, %v1612_v8, %v1408_v31  ;;  %v1410_v8 = vsel %vm1404_vm3, %v5774_v63, %v1403_v53  ;;  %v1522_v17 = vpop.permute.xlu2 %1521 }
 0x1ad   : > { %v1629_v22 = vsel %vm11148_vm11, %v1621_v27, %v1444_v23  ;;  %v1628_v41 = vsel %vm11148_vm11, %v1620_v60, %v1443_v44  ;;  %v1529_v60 = vsel %vm11149_vm12, %v5804_v20, %v1522_v17 }
 0x1ae   : > { %v1637_v4 = vsel %vm11144_vm14, %v1629_v22, %v1486_v46  ;;  %v1636_v24 = vsel %vm11144_vm14, %v1628_v41, %v1485_v33 }
 0x1af   : > { %v1645_v51 = vsel %vm11143_vm9, %v1637_v4, %v1528_v40  ;;  %v1644_v3 = vsel %vm11143_vm9, %v1636_v24, %v1527_v14 }
 0x1b0   : > { %v1361_v52 = vpop.permute.xlu0 %1360  ;;  %v1653_v44 = vsel %vm11109_vm13, %v1645_v51, %v1563_v49  ;;  %v1652_v30 = vsel %vm11109_vm13, %v1644_v3, %v1562_v48  ;;  %v1480_v59 = vpop.permute.xlu1 %1479 }
 0x1b1   : > { %v1368_v31 = vsel %vm1362_vm2, %v5764_v0, %v1361_v52  ;;  %v1615_v7 = vsel %vm11146_vm5, %v1607_v43, %v1361_v52  ;;  %1774 = vmatpush.msrb.mxu0 %v1653_v44  ;;  %1754 = vmatpush.msra.mxu3 %v1652_v30  ;;  %v1487_v39 = vsel %vm1481_vm7, %v5794_v57, %v1480_v59 }
 0x1b2   : > { %v1614_v38 = vsel %vm11146_vm5, %v1606_v26, %v1368_v31  ;;  %5426 = vmatmul.msk.f32.vlgmr.msra.gmra.mxu3 %vm11108_vm8, %v7491_v47  ;;  %5428 = vmatmul.msk.f32.vlgmr.msrb.gmra.mxu0 %vm11108_vm8, %v7491_v47  ;;  %v1623_v15 = vsel %vm11145_vm6, %v1615_v7, %v1403_v53  ;;  %v1445_v0 = vsel %vm1439_vm4, %v5729_v25, %v7406_v10 }
 0x1b3   : > { %v1622_v18 = vsel %vm11145_vm6, %v1614_v38, %v1410_v8  ;;  %v1631_v63 = vsel %vm11148_vm11, %v1623_v15, %v7406_v10 }
 0x1b4   : > { %v1639_v23 = vsel %vm11144_vm14, %v1631_v63, %v1480_v59  ;;  %v1630_v27 = vsel %vm11148_vm11, %v1622_v18, %v1445_v0 }
 0x1b5   : > { %v1638_v14 = vsel %vm11144_vm14, %v1630_v27, %v1487_v39  ;;  %v1647_v22 = vsel %vm11143_vm9, %v1639_v23, %v1522_v17 }
 0x1b6   : > { %v1646_v33 = vsel %vm11143_vm9, %v1638_v14, %v1529_v60 }
 0x1b8   : > { %v1592_v53 = vpop.permute.xlu0 %1591  ;;  %v1557_v46 = vpop.permute.xlu1 %1556 }
 0x1b9   : > { %5431 = vmatpush.msk.msrb.mxu2 %vm11147_vm0, %v1592_v53  ;;  %v1599_v25 = vsel %vm11142_vm15, %v7502_v11, %v1592_v53  ;;  %v1655_v10 = vsel %vm11109_vm13, %v1647_v22, %v1557_v46  ;;  %v1564_v57 = vsel %vm11140_vm10, %v5744_v50, %v1557_v46 }
 0x1ba   : > { %5429 = vmatpush.msk.msrb.mxu1 %vm11147_vm0, %v1599_v25  ;;  %v1654_v20 = vsel %vm11109_vm13, %v1646_v33, %v1564_v57 }
 0x1bb   : > { %1814 = vmatpush.msrb.mxu2 %v1655_v10 }
 0x1bc   : > { %1794 = vmatpush.msrb.mxu1 %v1654_v20  ;;  %5432 = vmatmul.msk.f32.vlgmr.msrb.gmra.mxu2 %vm11108_vm8, %v7491_v47 }
 0x1bd   : > { %5430 = vmatmul.msk.f32.vlgmr.msrb.gmra.mxu1 %vm11108_vm8, %v7491_v47  ;;  %vm11280_vm8 = vcmask 236544  }
 0x1be   : > { %vm11281_vm13 = vmmov %vm11280_vm8 }
 0x1e9   : > { %v7680_v11 = vpop.permute.xlu2 %1658 }
 0x1ea   : > { %11279 = vst [vmem:[#allocation41_spill] sm:$0xff] %v7680_v11 }
 0x214   : > { %v1696_v41 = vpop.f32.mrf.mxu0 }
 0x215   : > { %v1697_v9 = vadd.f32 %v1696_v41, %v7680_v11 }
 0x217   : > { %v1819_v50 = vmax.f32 %v1697_v9, 0.0 }
 0x219   : > { %1833 = vrot.lane.b32.xlu0 %v1819_v50, %s11110_s30 }
 0x224   : > { %v1716_v42 = vpop.f32.mrf.mxu1 }
 0x225   : > { %v1717_v40 = vadd.f32 %v1716_v42, %v7680_v11 }
 0x227   : > { %v1820_v4 = vmax.f32 %v1717_v40, 0.0 }
 0x229   : > { %1835 = vrot.lane.b32.xlu1 %v1820_v4, %s11110_s30 }
 0x22a   : > { %v1736_v24 = vpop.f32.mrf.mxu2 }
 0x22b   : > { %v1737_v49 = vadd.f32 %v1736_v24, %v7680_v11 }
 0x22d   : > { %v1821_v51 = vmax.f32 %v1737_v49, 0.0 }
 0x22f   : > { %v1776_v58 = vpop.f32.mrf.mxu0  ;;  %1837 = vrot.lane.b32.xlu2 %v1821_v51, %s11110_s30 }
 0x230   : > { %v1777_v47 = vadd.f32 %v1776_v58, %v7680_v11 }
 0x232   : > { %v1823_v48 = vmax.f32 %v1777_v47, 0.0 }
 0x234   : > { %1841 = vrot.lane.b32.xlu1 %v1823_v48, %s11110_s30 }
 0x235   : > { %v1756_v3 = vpop.f32.mrf.mxu3 }
 0x236   : > { %v1757_v43 = vadd.f32 %v1756_v3, %v7680_v11 }
 0x238   : > { %v1822_v52 = vmax.f32 %v1757_v43, 0.0 }
 0x23a   : > { %1839 = vrot.lane.b32.xlu0 %v1822_v52, %s11110_s30  ;;  %v1796_v44 = vpop.f32.mrf.mxu1 }
 0x23b   : > { %v1797_v30 = vadd.f32 %v1796_v44, %v7680_v11 }
 0x23d   : > { %v1824_v8 = vmax.f32 %v1797_v30, 0.0 }
 0x23f   : > { %v1816_v59 = vpop.f32.mrf.mxu2  ;;  %1843 = vrot.lane.b32.xlu2 %v1824_v8, %s11110_s30 }
 0x240   : > { %v1817_v26 = vadd.f32 %v1816_v59, %v7680_v11 }
 0x242   : > { %v1825_v31 = vmax.f32 %v1817_v26, 0.0 }
 0x244   : > { %1845 = vrot.lane.b32.xlu0 %v1825_v31, %s11110_s30  ;;  %s11286_s30 = smov 100  }
 0x289   : > { %v1838_v17 = vpop.permute.xlu2 %1837 }
 0x28b   : > { %v1834_v7 = vpop.permute.xlu0 %1833 }
 0x28c   : > { %v7697_v38 = vsel %vm11280_vm8, 0.0, %v1834_v7 }
 0x28d   : > { %v1897_v0 = vmul.f32 %v7175_v13, %v7697_v38  ;;  %v1883_v14 = vmul.f32 %v7159_v6, %v7697_v38  ;;  %v1890_v33 = vmul.f32 %v7190_v61, %v7697_v38  ;;  %v1876_v51 = vmul.f32 %v7143_v56, %v7697_v38 }
 0x28e   : > { %v1869_v52 = vmul.f32 %v7105_v34, %v7697_v38 }
 0x299   : > { %v1844_v60 = vpop.permute.xlu2 %1843 }
 0x29b   : > { %v1836_v15 = vpop.permute.xlu1 %1835 }
 0x29c   : > { %v7700_v18 = vsel %vm11281_vm13, %v1834_v7, %v1836_v15  ;;  %v7716_v46 = vsel %vm11280_vm8, %v1836_v15, %v1838_v17  ;;  %vm11283_vm13 = vmmov %vm11280_vm8  ;;  %v11288_v7 = vld [vmem:[#allocation30_spill] sm:$0xff] }
 0x29d   : > { %v5811_v39 = vpack.i.bf16 %v7700_v18, %v7697_v38  ;;  %v1898_v63 = vmul.f32 %v7700_v18, %v7200_v29  ;;  %v1884_v27 = vmul.f32 %v7700_v18, %v7172_v21  ;;  %v1891_v57 = vmul.f32 %v7700_v18, %v7221_v37 }
 0x29e   : > { %v1877_v49 = vmul.f32 %v7700_v18, %v7154_v62  ;;  %v1899_v48 = vmul.f32 %v7716_v46, %v7261_v5  ;;  %v1870_v43 = vmul.f32 %v7700_v18, %v7116_v32  ;;  %v1892_v8 = vmul.f32 %v7716_v46, %v7286_v2 }
 0x29f   : > { %5812 = vrot.lane.b32.xlu0 %v5811_v39, %s11282_s16  ;;  %5807 = vrot.lane.b32.xlu2 %v5811_v39, %s11112_s22  ;;  %v5821_v23 = vpack.i.bf16 %v1898_v63, %v1897_v0  ;;  %v5831_v25 = vpack.i.bf16 %v1884_v27, %v1883_v14  ;;  %v5826_v50 = vpack.i.bf16 %v1891_v57, %v1890_v33  ;;  %v11289_v0 = vld [vmem:[#allocation24_spill] sm:$0xff]  ;;  %v11291_v14 = vld [vmem:[#allocation23_spill] sm:$0xff] }
 0x2a0   : > { %v5836_v47 = vpack.i.bf16 %v1877_v49, %v1876_v51  ;;  %v5841_v30 = vpack.i.bf16 %v1870_v43, %v1869_v52  ;;  %v1885_v63 = vmul.f32 %v7716_v46, %v11289_v0  ;;  %v11298_v52 = vld [vmem:[#allocation28_spill] sm:$0xff] }
 0x2a1   : > { %5822 = vrot.lane.b32.xlu1 %v5821_v23, %s11123_s15  ;;  %v11290_v23 = vld [vmem:[#allocation35_spill] sm:$0xff] }
 0x2a6   : > { %v1842_v53 = vpop.permute.xlu1 %1841 }
 0x2a7   : > { %v7719_v22 = vsel %vm11283_vm13, %v1842_v53, %v1844_v60  ;;  %5817 = vrot.lane.b32.xlu0 %v5811_v39, %s11284_s20  ;;  %vm11285_vm13 = vmmov %vm11280_vm8 }
 0x2a8   : > { %v7724_v10 = vpack.i.bf16 %v7716_v46, %v7719_v22  ;;  %v1902_v58 = vmul.f32 %v7719_v22, %v7302_v55  ;;  %v1895_v44 = vmul.f32 %v7719_v22, %v7339_v16  ;;  %v1888_v15 = vmul.f32 %v7719_v22, %v11288_v7 }
 0x2a9   : > { %5832 = vrot.lane.b32.xlu1 %v5831_v25, %s11133_s23  ;;  %v1881_v27 = vmul.f32 %v7719_v22, %v11290_v23  ;;  %v11292_v25 = vld [vmem:[#allocation32_spill] sm:$0xff] }
 0x2aa   : > { %5852 = vrot.lane.b32.xlu2 %v7724_v10, %s11112_s22  ;;  %v5876_v3 = vpack.i.bf16 %v1899_v48, %v1902_v58  ;;  %v5896_v59 = vpack.i.bf16 %v1892_v8, %v1895_v44  ;;  %v1874_v44 = vmul.f32 %v7719_v22, %v11298_v52  ;;  %v11300_v8 = vld [vmem:[#allocation25_spill] sm:$0xff] }
 0x2ac   : > { %v1840_v20 = vpop.permute.xlu0 %1839 }
 0x2ad   : > { %v7734_v41 = vsel %vm11280_vm8, %v1838_v17, %v1840_v20  ;;  %v7737_v9 = vsel %vm11285_vm13, %v1840_v20, %v1842_v53  ;;  %v5901_v17 = vpack.i.bf16 %v1885_v63, %v1888_v15  ;;  %v1878_v53 = vmul.f32 %v7716_v46, %v11291_v14  ;;  %v11293_v20 = vld [vmem:[#allocation31_spill] sm:$0xff]  ;;  %v11302_v63 = vld [vmem:[#allocation37_spill] sm:$0xff] }
 0x2ae   : > { %v1900_v42 = vmul.f32 %v7734_v41, %v7133_v45  ;;  %v1901_v40 = vmul.f32 %v7737_v9, %v7215_v36  ;;  %v5846_v4 = vpack.i.bf16 %v7737_v9, %v7734_v41  ;;  %v1880_v26 = vmul.f32 %v7737_v9, %v7344_v12 }
 0x2af   : > { %5827 = vrot.lane.b32.xlu0 %v5826_v50, %s11125_s21  ;;  %v1879_v31 = vmul.f32 %v7734_v41, %v7245_v28  ;;  %v1894_v57 = vmul.f32 %v7737_v9, %v11292_v25  ;;  %v1873_v50 = vmul.f32 %v7737_v9, %v11293_v20  ;;  %vm11296_vm13 = vcmask 367616  }
 0x2b0   : > { %v5871_v24 = vpack.i.bf16 %v1901_v40, %v1900_v42  ;;  %v5916_v42 = vpack.i.bf16 %v1878_v53, %v1881_v27  ;;  %v11294_v40 = vld [vmem:[#allocation26_spill] sm:$0xff]  ;;  %v11304_v27 = vld [vmem:[#allocation36_spill] sm:$0xff] }
 0x2b1   : > { %5847 = vrot.lane.b32.xlu1 %v5846_v4, %s11112_s22  ;;  %s11287_s22 = smov 126   ;;  %v5906_v39 = vpack.i.bf16 %v1880_v26, %v1879_v31  ;;  %v11301_v26 = vld [vmem:[#allocation19_spill] sm:$0xff] }
 0x2b2   : > { %5872 = vrot.lane.b32.xlu2 %v5871_v24, %s11123_s15  ;;  %v1893_v24 = vmul.f32 %v7734_v41, %v11294_v40  ;;  %v1871_v31 = vmul.f32 %v7716_v46, %v11301_v26 }
 0x2b4   : > { %v5881_v58 = vpack.i.bf16 %v1894_v57, %v1893_v24  ;;  %v11305_v57 = vld [vmem:[#allocation38_spill] sm:$0xff] }
 0x2b6   : > { %v1846_v33 = vpop.permute.xlu0 %1845 }
 0x2b7   : > { %5837 = vrot.lane.b32.xlu0 %v5836_v47, %s11286_s30  ;;  %v1852_v51 = vsel %vm11280_vm8, %v1844_v60, %v1846_v33  ;;  %vm2346_vm8 = vcmask 121856  }
 0x2b8   : > { %v7798_v48 = vsel %vm11296_vm13, %v1852_v51, 0.0  ;;  %vm2397_vm13 = vcmask 130048  }
 0x2b9   : > { %5857 = vrot.lane.b32.xlu1 %v5846_v4, %s11282_s16  ;;  %v1882_v53 = vmul.f32 %v7798_v48, %v11304_v27  ;;  %v1889_v33 = vmul.f32 %v7798_v48, %v11305_v57 }
 0x2ba   : > { %5877 = vrot.lane.b32.xlu2 %v5876_v3, %s11123_s15  ;;  %v11297_v3 = vld [vmem:[#allocation27_spill] sm:$0xff] }
 0x2bb   : > { %v1887_v43 = vmul.f32 %v7737_v9, %v11297_v3 }
 0x2bf   : > { %5842 = vrot.lane.b32.xlu0 %v5841_v30, %s11287_s22  ;;  %v11299_v30 = vld [vmem:[#allocation40_spill] sm:$0xff] }
 0x2c0   : > { %v1903_v60 = vmul.f32 %v7798_v48, %v11299_v30 }
 0x2c1   : > { %5862 = vrot.lane.b32.xlu1 %v7724_v10, %s11282_s16 }
 0x2c2   : > { %5897 = vrot.lane.b32.xlu2 %v5896_v59, %s11125_s21  ;;  %v1886_v59 = vmul.f32 %v7734_v41, %v11300_v8 }
 0x2c4   : > { %v5886_v15 = vpack.i.bf16 %v1887_v43, %v1886_v59 }
 0x2c7   : > { %5907 = vrot.lane.b32.xlu0 %v5906_v39, %s11286_s30  ;;  %v5921_v39 = vpack.i.bf16 %v1871_v31, %v1874_v44 }
 0x2c9   : > { %5867 = vrot.lane.b32.xlu1 %v5846_v4, %s11284_s20  ;;  %v11295_v4 = vld [vmem:[#allocation20_spill] sm:$0xff] }
 0x2ca   : > { %5902 = vrot.lane.b32.xlu2 %v5901_v17, %s11133_s23  ;;  %v1872_v49 = vmul.f32 %v7734_v41, %v11295_v4  ;;  %v1896_v17 = vmul.f32 %v7798_v48, %v11302_v63 }
 0x2cc   : > { %v5911_v47 = vpack.i.bf16 %v1873_v50, %v1872_v49  ;;  %v11306_v50 = vld [vmem:[#allocation39_spill] sm:$0xff] }
 0x2cf   : > { %5917 = vrot.lane.b32.xlu0 %v5916_v42, %s11286_s30  ;;  %v1875_v42 = vmul.f32 %v7798_v48, %v11306_v50 }
 0x2d1   : > { %5882 = vrot.lane.b32.xlu1 %v5881_v58, %s11125_s21 }
 0x2d2   : > { %5912 = vrot.lane.b32.xlu2 %v5911_v47, %s11287_s22 }
 0x2d7   : > { %2142 = vrot.lane.b32.xlu0 %v1903_v60, %s11123_s15  ;;  %s11157_s15 = smov 114  }
 0x2d9   : > { %5887 = vrot.lane.b32.xlu1 %v5886_v15, %s11133_s23 }
 0x2da   : > { %5922 = vrot.lane.b32.xlu2 %v5921_v39, %s11287_s22 }
 0x2df   : > { %2081 = vrot.lane.b32.xlu0 %v1896_v17, %s11125_s21  ;;  %s11151_s21 = smov 112  }
 0x2e1   : > { %5892 = vrot.lane.b32.xlu1 %v7724_v10, %s11284_s20 }
 0x2e2   : > { %2108 = vrot.lane.b32.xlu2 %v7798_v48, %s11303_s0 }
 0x2e7   : > { %1986 = vrot.lane.b32.xlu0 %v1882_v53, %s11286_s30 }
 0x2e9   : > { %2047 = vrot.lane.b32.xlu1 %v1889_v33, %s11133_s23  ;;  %s6750_s23 = smov 14  }
 0x2ea   : > { %2013 = vrot.lane.b32.xlu2 %v7798_v48, %s11282_s16 }
 0x2f1   : > { %1952 = vrot.lane.b32.xlu1 %v1875_v42, %s11287_s22 }
 0x2f2   : > { %1918 = vrot.lane.b32.xlu2 %v7798_v48, %s11284_s20 }
 0x2f9   : > { %v5808_v10 = vpop.permute.xlu2 %5807 }
 0x2fa   : > { %v5810_v60 = vunpack.i.h.bf16 %v5808_v10  ;;  %v5809_v59 = vunpack.i.l.bf16 %v5808_v10 }
 0x304   : > { %v7834_v24 = vpop.permute.xlu2 %5852 }
 0x305   : > { %v5855_v17 = vunpack.i.h.bf16 %v7834_v24 }
 0x30c   : > { %v7836_v49 = vpop.permute.xlu2 %5872 }
 0x30d   : > { %v11114_v51 = vunpack.i.h.bf16 %v7836_v49  ;;  %v5874_v58 = vunpack.i.l.bf16 %v7836_v49 }
 0x30f   : > { %v2147_v47 = vsel %vm11142_vm15, %v5874_v58, %v11114_v51  ;;  %v2110_v51 = vsel %vm11140_vm10, %v5809_v59, %v5810_v60 }
 0x310   : > { %2232 = vmatpush.msra.mxu2 %v2147_v47 }
 0x311   : > { %v7843_v43 = vpop.permute.xlu0 %5812 }
 0x312   : > { %v5814_v59 = vunpack.i.l.bf16 %v7843_v43 }
 0x313   : > { %v5823_v44 = vpop.permute.xlu1 %5822 }
 0x314   : > { %v7845_v31 = vpop.permute.xlu2 %5877  ;;  %v5825_v15 = vunpack.i.h.bf16 %v5823_v44  ;;  %v5824_v39 = vunpack.i.l.bf16 %v5823_v44  ;;  %v2111_v44 = vsel %vm11140_vm10, %v5810_v60, %v5855_v17 }
 0x315   : > { %v5880_v53 = vunpack.i.h.bf16 %v7845_v31 }
 0x316   : > { %v2144_v33 = vsel %vm11142_vm15, %v5824_v39, %v5825_v15 }
 0x317   : > { %v2146_v42 = vsel %vm11142_vm15, %v5880_v53, %v5874_v58  ;;  %2172 = vmatpush.msrb.mxu3 %v2144_v33  ;;  %v2145_v47 = vsel %vm11142_vm15, %v5825_v15, %v5880_v53  ;;  %v5815_v53 = vunpack.i.h.bf16 %v7843_v43 }
 0x318   : > { %2212 = vmatpush.msra.mxu1 %v2146_v42  ;;  %2192 = vmatpush.msra.mxu0 %v2145_v47 }
 0x319   : > { %v7853_v10 = vpop.permute.xlu0 %5817  ;;  %2173 = vmatpush.msrb.mxu3 %v2110_v51 }
 0x31a   : > { %2193 = vmatpush.msra.mxu0 %v2111_v44 }
 0x31b   : > { %v5833_v11 = vpop.permute.xlu1 %5832 }
 0x31c   : > { %v7856_v30 = vpop.permute.xlu2 %5897  ;;  %v5835_v55 = vunpack.i.h.bf16 %v5833_v11  ;;  %v5834_v33 = vunpack.i.l.bf16 %v5833_v11 }
 0x31d   : > { %v11121_v58 = vunpack.i.h.bf16 %v7856_v30 }
 0x31e   : > { %v2049_v11 = vsel %vm1481_vm7, %v5834_v33, %v5835_v55 }
 0x321   : > { %v5828_v39 = vpop.permute.xlu0 %5827 }
 0x322   : > { %v5830_v57 = vunpack.i.h.bf16 %v5828_v39  ;;  %v5829_v15 = vunpack.i.l.bf16 %v5828_v39 }
 0x323   : > { %v5848_v42 = vpop.permute.xlu1 %5847 }
 0x324   : > { %v7861_v47 = vpop.permute.xlu2 %5902  ;;  %v5850_v51 = vunpack.i.h.bf16 %v5848_v42  ;;  %v5849_v60 = vunpack.i.l.bf16 %v5848_v42  ;;  %v2083_v44 = vsel %vm11149_vm12, %v5829_v15, %v5830_v57  ;;  %v2084_v36 = vsel %vm11149_vm12, %v5830_v57, %v11121_v58 }
 0x325   : > { %v11122_v63 = vunpack.i.h.bf16 %v7861_v47  ;;  %2174 = vmatpush.msrb.mxu3 %v2083_v44  ;;  %2194 = vmatpush.msra.mxu0 %v2084_v36  ;;  %v2015_v57 = vsel %vm1439_vm4, %v5814_v59, %v5815_v53 }
 0x326   : > { %v2112_v39 = vsel %vm11140_vm10, %v5855_v17, %v5849_v60  ;;  %v2113_v43 = vsel %vm11140_vm10, %v5849_v60, %v5850_v51  ;;  %v11129_v60 = vunpack.i.h.bf16 %v7853_v10 }
 0x327   : > { %2175 = vmatpush.msrb.mxu3 %v2049_v11  ;;  %v2050_v42 = vsel %vm1481_vm7, %v5835_v55, %v11122_v63  ;;  %2213 = vmatpush.msra.mxu1 %v2112_v39  ;;  %v5819_v11 = vunpack.i.l.bf16 %v7853_v10 }
 0x328   : > { %2195 = vmatpush.msra.mxu0 %v2050_v42  ;;  %2233 = vmatpush.msra.mxu2 %v2113_v43 }
 0x329   : > { %v5838_v15 = vpop.permute.xlu0 %5837  ;;  %2176 = vmatpush.msrb.mxu3 %v2015_v57  ;;  %v11130_v57 = vunpack.i.l.bf16 %v7834_v24 }
 0x32a   : > { %v5840_v44 = vunpack.i.h.bf16 %v5838_v15  ;;  %v5839_v36 = vunpack.i.l.bf16 %v5838_v15 }
 0x32b   : > { %v7875_v58 = vpop.permute.xlu1 %5857 }
 0x32c   : > { %v1988_v17 = vsel %vm1404_vm3, %v5839_v36, %v5840_v44  ;;  %v7885_v15 = vpop.permute.xlu2 %5912  ;;  %v1920_v36 = vsel %vm11150_vm1, %v5819_v11, %v11129_v60  ;;  %v11309_v11 = vunpack.i.h.bf16 %v7836_v49 }
 0x32d   : > { %2177 = vmatpush.msrb.mxu3 %v1988_v17 }
 0x331   : > { %v5843_v33 = vpop.permute.xlu0 %5842 }
 0x332   : > { %v5845_v55 = vunpack.i.h.bf16 %v5843_v33  ;;  %v5844_v39 = vunpack.i.l.bf16 %v5843_v33  ;;  %v11307_v33 = vld [vmem:[#allocation16_spill] sm:$0xff] }
 0x333   : > { %v7880_v42 = vpop.permute.xlu1 %5862  ;;  %v1862_v63 = vmul.f32 %v11307_v33, %v7697_v38  ;;  %v2114_v38 = vsel %vm11140_vm10, %v5850_v51, %v11130_v57 }
 0x334   : > { %v5865_v59 = vunpack.i.h.bf16 %v7880_v42  ;;  %v1954_v43 = vsel %vm1362_vm2, %v5844_v39, %v5845_v55  ;;  %v7896_v39 = vld [vmem:[%s11027_s3] sm:$0xff] }
 0x335   : > { %2178 = vmatpush.msrb.mxu3 %v1954_v43  ;;  %v11308_v43 = vunpack.i.l.bf16 %v7845_v31 }
 0x336   : > { %v2016_v17 = vsel %vm1439_vm4, %v5815_v53, %v5865_v59 }
 0x337   : > { %2179 = vmatpush.msrb.mxu3 %v1920_v36  ;;  %2196 = vmatpush.msra.mxu0 %v2016_v17  ;;  %v2148_v53 = vsel %vm11142_vm15, %v11309_v11, %v11308_v43  ;;  %v7913_v17 = vpop.permute.xlu2 %5922  ;;  %v11131_v11 = vunpack.i.l.bf16 %v7856_v30 }
 0x338   : > { %v5925_v60 = vunpack.i.h.bf16 %v7913_v17 }
 0x339   : > { %v7899_v16 = vpop.permute.xlu0 %5907  ;;  %2180 = vmatpush.msrb.mxu3 %v1862_v63 }
 0x33a   : > { %5433 = vmatmul.msk.f32.vlgmr.msrb.gmra.mxu3 %vm11149_vm12, %v7896_v39  ;;  %v1955_v51 = vsel %vm1362_vm2, %v5845_v55, %v5925_v60  ;;  %v5860_v55 = vunpack.i.h.bf16 %v7875_v58 }
 0x33b   : > { %2252 = vmatpush.msra.mxu3 %v2148_v53  ;;  %v7906_v36 = vpop.permute.xlu1 %5867 }
 0x33d   : > { %2253 = vmatpush.msra.mxu3 %v2114_v38  ;;  %v11310_v38 = vunpack.i.h.bf16 %v7856_v30 }
 0x341   : > { %v7915_v63 = vpop.permute.xlu0 %5917 }
 0x342   : > { %v5920_v49 = vunpack.i.h.bf16 %v7915_v63 }
 0x343   : > { %v5883_v43 = vpop.permute.xlu1 %5882 }
 0x344   : > { %v5885_v53 = vunpack.i.h.bf16 %v5883_v43  ;;  %v5884_v33 = vunpack.i.l.bf16 %v5883_v43  ;;  %v1989_v25 = vsel %vm1404_vm3, %v5840_v44, %v5920_v49  ;;  %v439_v43 = vld [vmem:[%s11311_s4] sm:$0xff]  ;;  %s11155_s4 = smov 15  }
 0x345   : > { %2197 = vmatpush.msra.mxu0 %v1989_v25  ;;  %2159 = vperm.xlu0 %5926, %v439_v43   ;;  %v11132_v25 = vunpack.i.l.bf16 %v7861_v47 }
 0x346   : > { %v2085_v57 = vsel %vm11149_vm12, %v11310_v38, %v5884_v33  ;;  %v2086_v7 = vsel %vm11149_vm12, %v5884_v33, %v5885_v53  ;;  %v2087_v3 = vsel %vm11149_vm12, %v5885_v53, %v11131_v11  ;;  %v5859_v33 = vunpack.i.l.bf16 %v7875_v58 }
 0x347   : > { %2198 = vmatpush.msra.mxu0 %v1955_v51  ;;  %2214 = vmatpush.msra.mxu1 %v2085_v57  ;;  %v5910_v57 = vunpack.i.h.bf16 %v7899_v16  ;;  %v5909_v51 = vunpack.i.l.bf16 %v7899_v16  ;;  %v11312_v11 = vunpack.i.h.bf16 %v7861_v47  ;;  %v5919_v58 = vunpack.i.l.bf16 %v7915_v63 }
 0x348   : > { %2234 = vmatpush.msra.mxu2 %v2086_v7  ;;  %2254 = vmatpush.msra.mxu3 %v2087_v3  ;;  %v5914_v53 = vunpack.i.l.bf16 %v7885_v15  ;;  %v2017_v16 = vsel %vm1439_vm4, %v5865_v59, %v5859_v33  ;;  %v1868_v63 = vmul.f32 %v7035_v54, %v7798_v48 }
 0x349   : > { %v2143_v50 = vpop.permute.xlu0 %2142 }
 0x34b   : > { %v5888_v44 = vpop.permute.xlu1 %5887 }
 0x34c   : > { %v5890_v38 = vunpack.i.h.bf16 %v5888_v44  ;;  %v5889_v27 = vunpack.i.l.bf16 %v5888_v44  ;;  %v5915_v44 = vunpack.i.h.bf16 %v7885_v15  ;;  %v5870_v15 = vunpack.i.h.bf16 %v7906_v36 }
 0x34e   : > { %v2051_v7 = vsel %vm1481_vm7, %v11312_v11, %v5889_v27  ;;  %v2052_v3 = vsel %vm1481_vm7, %v5889_v27, %v5890_v38  ;;  %v2053_v43 = vsel %vm1481_vm7, %v5890_v38, %v11132_v25  ;;  %v2018_v11 = vsel %vm1439_vm4, %v5859_v33, %v5860_v55 }
 0x34f   : > { %2215 = vmatpush.msra.mxu1 %v2051_v7  ;;  %2235 = vmatpush.msra.mxu2 %v2052_v3  ;;  %v5924_v27 = vunpack.i.l.bf16 %v7913_v17  ;;  %v11313_v38 = vunpack.i.l.bf16 %v7880_v42  ;;  %v1990_v7 = vsel %vm1404_vm3, %v5920_v49, %v5909_v51  ;;  %v1991_v3 = vsel %vm1404_vm3, %v5909_v51, %v5910_v57  ;;  %v2109_v51 = vpop.permute.xlu2 %2108 }
 0x350   : > { %2255 = vmatpush.msra.mxu3 %v2053_v43  ;;  %v5869_v43 = vunpack.i.l.bf16 %v7906_v36  ;;  %v1992_v33 = vsel %vm1404_vm3, %v5910_v57, %v5919_v58  ;;  %v1956_v49 = vsel %vm1362_vm2, %v5925_v60, %v5914_v53 }
 0x351   : > { %2216 = vmatpush.msra.mxu1 %v2017_v16  ;;  %2236 = vmatpush.msra.mxu2 %v2018_v11  ;;  %v2019_v25 = vsel %vm1439_vm4, %v5860_v55, %v11313_v38  ;;  %v1957_v55 = vsel %vm1362_vm2, %v5914_v53, %v5915_v44  ;;  %v1958_v36 = vsel %vm1362_vm2, %v5915_v44, %v5924_v27  ;;  %v11314_v11 = vunpack.i.h.bf16 %v7853_v10  ;;  %v11315_v53 = vld [vmem:[#allocation17_spill] sm:$0xff] }
 0x352   : > { %2256 = vmatpush.msra.mxu3 %v2019_v25  ;;  %v1923_v60 = vsel %vm11150_vm1, %v5869_v43, %v5870_v15  ;;  %v1865_v10 = vmul.f32 %v7011_v19, %v7734_v41  ;;  %v1866_v44 = vmul.f32 %v7024_v35, %v7737_v9  ;;  %v11318_v9 = vunpack.i.l.bf16 %v7834_v24 }
 0x353   : > { %v7958_v59 = vpop.permute.xlu1 %5892  ;;  %2217 = vmatpush.msra.mxu1 %v1990_v7  ;;  %2237 = vmatpush.msra.mxu2 %v1991_v3  ;;  %v1863_v3 = vmul.f32 %v11315_v53, %v7700_v18  ;;  %v11321_v24 = vunpack.i.l.bf16 %v7880_v42  ;;  %v1867_v42 = vmul.f32 %v7021_v1, %v7719_v22 }
 0x354   : > { %v5895_v16 = vunpack.i.h.bf16 %v7958_v59  ;;  %v5894_v25 = vunpack.i.l.bf16 %v7958_v59  ;;  %2257 = vmatpush.msra.mxu3 %v1992_v33  ;;  %v11316_v59 = vld [vmem:[#allocation18_spill] sm:$0xff] }
 0x355   : > { %2218 = vmatpush.msra.mxu1 %v1956_v49  ;;  %2238 = vmatpush.msra.mxu2 %v1957_v55  ;;  %v1864_v33 = vmul.f32 %v11316_v59, %v7716_v46  ;;  %v11317_v46 = vunpack.i.l.bf16 %v7845_v31  ;;  %v11319_v49 = vunpack.i.l.bf16 %v7856_v30 }
 0x356   : > { %2258 = vmatpush.msra.mxu3 %v1958_v36  ;;  %v1921_v57 = vsel %vm11150_vm1, %v11314_v11, %v5895_v16  ;;  %v1922_v38 = vsel %vm11150_vm1, %v5895_v16, %v5869_v43  ;;  %v1924_v7 = vsel %vm11150_vm1, %v5870_v15, %v5894_v25  ;;  %v2082_v16 = vpop.permute.xlu0 %2081  ;;  %v2115_v15 = vsel %vm11140_vm10, %v11318_v9, %v2109_v51 }
 0x357   : > { %2199 = vmatpush.msra.mxu0 %v1921_v57  ;;  %2219 = vmatpush.msra.mxu1 %v1922_v38  ;;  %v2149_v41 = vsel %vm11142_vm15, %v11317_v46, %v2143_v50  ;;  %v2014_v43 = vpop.permute.xlu2 %2013  ;;  %v2088_v55 = vsel %vm11149_vm12, %v11319_v49, %v2082_v16  ;;  %v11320_v36 = vunpack.i.l.bf16 %v7861_v47  ;;  %vm11141_vm10 = vcmask 949248  }
 0x358   : > { %2239 = vmatpush.msra.mxu2 %v1923_v60  ;;  %2259 = vmatpush.msra.mxu3 %v1924_v7  ;;  %v2020_v57 = vsel %vm1439_vm4, %v11321_v24, %v2014_v43  ;;  %v472_v24 = vld [vmem:[%s11033_s9 + $0xe0] sm:$0xff] }
 0x359   : > { %2200 = vmatpush.msra.mxu0 %v1863_v3  ;;  %2220 = vmatpush.msra.mxu1 %v1864_v33 }
 0x35a   : > { %2240 = vmatpush.msra.mxu2 %v1865_v10  ;;  %2260 = vmatpush.msra.mxu3 %v1866_v44 }
 0x35b   : > { %5434 = vmatmul.msk.f32.vlgmr.msra.gmra.mxu0 %vm11149_vm12, %v7896_v39  ;;  %5435 = vmatmul.msk.f32.vlgmr.msra.gmra.mxu1 %vm11149_vm12, %v7896_v39  ;;  %v2048_v18 = vpop.permute.xlu1 %2047 }
 0x35c   : > { %5436 = vmatmul.msk.f32.vlgmr.msra.gmra.mxu2 %vm11149_vm12, %v7896_v39  ;;  %5437 = vmatmul.msk.f32.vlgmr.msra.gmra.mxu3 %vm11149_vm12, %v7896_v39  ;;  %v2054_v31 = vsel %vm1481_vm7, %v11320_v36, %v2048_v18 }
 0x35d   : > { %2272 = vmatpush.msrb.mxu0 %v2149_v41  ;;  %2292 = vmatpush.msrb.mxu1 %v2143_v50 }
 0x35e   : > { %v1987_v11 = vpop.permute.xlu0 %1986 }
 0x35f   : > { %2273 = vmatpush.msrb.mxu0 %v2115_v15  ;;  %2293 = vmatpush.msrb.mxu1 %v2109_v51  ;;  %v1993_v30 = vsel %vm1404_vm3, %v5919_v58, %v1987_v11  ;;  %v1919_v51 = vpop.permute.xlu2 %1918 }
 0x360   : > { %v1925_v38 = vsel %vm11150_vm1, %v5894_v25, %v1919_v51 }
 0x361   : > { %2274 = vmatpush.msrb.mxu0 %v2088_v55  ;;  %2294 = vmatpush.msrb.mxu1 %v2082_v16 }
 0x363   : > { %2275 = vmatpush.msrb.mxu0 %v2054_v31  ;;  %2295 = vmatpush.msrb.mxu1 %v2048_v18  ;;  %v1953_v50 = vpop.permute.xlu1 %1952 }
 0x364   : > { %v1959_v47 = vsel %vm1362_vm2, %v5924_v27, %v1953_v50 }
 0x365   : > { %2276 = vmatpush.msrb.mxu0 %v2020_v57  ;;  %2296 = vmatpush.msrb.mxu1 %v2014_v43  ;;  %v504_v57 = vld [vmem:[%s11033_s9 + $0x1e0] sm:$0xff] }
 0x367   : > { %2277 = vmatpush.msrb.mxu0 %v1993_v30  ;;  %2297 = vmatpush.msrb.mxu1 %v1987_v11  ;;  %v474_v11 = vld [vmem:[%s11033_s9 + $0xf0] sm:$0xff] }
 0x368   : > { %2401 = vmatpush.msrb.mxu2 %v474_v11  ;;  %v570_v30 = vld [vmem:[%s11033_s9 + $0x3f0] sm:$0xff]  ;;  %v496_v11 = vld [vmem:[%s11033_s9 + $0x1a0] sm:$0xff] }
 0x369   : > { %2278 = vmatpush.msrb.mxu0 %v1959_v47  ;;  %2298 = vmatpush.msrb.mxu1 %v1953_v50  ;;  %v506_v50 = vld [vmem:[%s11033_s9 + $0x1f0] sm:$0xff] }
 0x36a   : > { %2421 = vmatpush.msrb.mxu3 %v506_v50  ;;  %v470_v47 = vld [vmem:[%s11033_s9 + $0xd0] sm:$0xff]  ;;  %2402 = vmatpush.msrb.mxu2 %v472_v24 }
 0x36b   : > { %2279 = vmatpush.msrb.mxu0 %v1925_v38  ;;  %2299 = vmatpush.msrb.mxu1 %v1919_v51  ;;  %v502_v51 = vld [vmem:[%s11033_s9 + $0x1d0] sm:$0xff]  ;;  %v568_v38 = vld [vmem:[%s11033_s9 + $0x3e0] sm:$0xff] }
 0x36c   : > { %2422 = vmatpush.msrb.mxu3 %v504_v57  ;;  %2403 = vmatpush.msrb.mxu2 %v470_v47  ;;  %v534_v50 = vld [vmem:[%s11033_s9 + $0x2d0] sm:$0xff]  ;;  %v560_v57 = vld [vmem:[%s11033_s9 + $0x3a0] sm:$0xff] }
 0x36d   : > { %2280 = vmatpush.msrb.mxu0 %v1867_v42  ;;  %2300 = vmatpush.msrb.mxu1 %v1868_v63  ;;  %v566_v42 = vld [vmem:[%s11033_s9 + $0x3d0] sm:$0xff]  ;;  %v468_v63 = vld [vmem:[%s11033_s9 + $0xc0] sm:$0xff] }
 0x36e   : > { %5438 = vmatmul.msk.f32.vlgmr.msrb.gmra.mxu0 %vm11149_vm12, %v7896_v39  ;;  %5439 = vmatmul.msk.f32.vlgmr.msrb.gmra.mxu1 %vm11149_vm12, %v7896_v39 }
 0x36f   : > { %2461 = vmatpush.msra.mxu1 %v570_v30  ;;  %2423 = vmatpush.msrb.mxu3 %v502_v51  ;;  %v532_v30 = vld [vmem:[%s11033_s9 + $0x2c0] sm:$0xff] }
 0x370   : > { %2404 = vmatpush.msrb.mxu2 %v468_v63  ;;  %v494_v63 = vld [vmem:[%s11033_s9 + $0x190] sm:$0xff] }
 0x371   : > { %2462 = vmatpush.msra.mxu1 %v568_v38 }
 0x373   : > { %2463 = vmatpush.msra.mxu1 %v566_v42  ;;  %v462_v42 = vld [vmem:[%s11033_s9 + $0x90] sm:$0xff] }
 0x3b7   : > { %v8022_v17 = vpop.permute.xlu0 %2159 }
 0x3b8   : > { %11322 = vst [vmem:[#allocation24_spill] sm:$0xff] %v8022_v17 }
 0x3bd   : > { %v2182_v58 = vpop.f32.mrf.mxu3 }
 0x3be   : > { %v8025_v27 = vadd.f32 %v2182_v58, %v8022_v17  ;;  %v500_v58 = vld [vmem:[%s11033_s9 + $0x1c0] sm:$0xff] }
 0x3bf   : > { %2424 = vmatpush.msrb.mxu3 %v500_v58  ;;  %v558_v58 = vld [vmem:[%s11033_s9 + $0x390] sm:$0xff] }
 0x3c0   : > { %v2305_v48 = vmax.f32 %v8025_v27, 0.0  ;;  %v458_v27 = vld [vmem:[%s11033_s9 + $0x70] sm:$0xff] }
 0x3d8   : > { %v2202_v25 = vpop.f32.mrf.mxu0  ;;  %v2222_v60 = vpop.f32.mrf.mxu1 }
 0x3d9   : > { %v8028_v22 = vadd.f32 %v2202_v25, %v8022_v17  ;;  %v8037_v3 = vadd.f32 %v2222_v60, %v8022_v17  ;;  %v564_v25 = vld [vmem:[%s11033_s9 + $0x3c0] sm:$0xff]  ;;  %v538_v60 = vld [vmem:[%s11033_s9 + $0x2f0] sm:$0xff] }
 0x3da   : > { %2441 = vmatpush.msra.mxu0 %v538_v60  ;;  %2464 = vmatpush.msra.mxu1 %v564_v25  ;;  %v530_v25 = vld [vmem:[%s11033_s9 + $0x2b0] sm:$0xff] }
 0x3db   : > { %v2306_v7 = vmax.f32 %v8028_v22, 0.0  ;;  %v2307_v18 = vmax.f32 %v8037_v3, 0.0 }
 0x3dd   : > { %v5927_v39 = vpack.i.bf16 %v2306_v7, %v2305_v48 }
 0x3df   : > { %v2242_v33 = vpop.f32.mrf.mxu2  ;;  %v2262_v10 = vpop.f32.mrf.mxu3  ;;  %5928 = vrot.lane.b32.xlu1 %v5927_v39, %s11284_s20  ;;  %v466_v39 = vld [vmem:[%s11033_s9 + $0xb0] sm:$0xff] }
 0x3e0   : > { %v8041_v44 = vadd.f32 %v2242_v33, %v8022_v17  ;;  %v8044_v16 = vadd.f32 %v2262_v10, %v8022_v17  ;;  %v498_v33 = vld [vmem:[%s11033_s9 + $0x1b0] sm:$0xff]  ;;  %v536_v10 = vld [vmem:[%s11033_s9 + $0x2e0] sm:$0xff]  ;;  %2405 = vmatpush.msrb.mxu2 %v466_v39 }
 0x3e1   : > { %2442 = vmatpush.msra.mxu0 %v536_v10  ;;  %2425 = vmatpush.msrb.mxu3 %v498_v33  ;;  %v460_v10 = vld [vmem:[%s11033_s9 + $0x80] sm:$0xff] }
 0x3e2   : > { %v2308_v46 = vmax.f32 %v8041_v44, 0.0  ;;  %v2309_v9 = vmax.f32 %v8044_v16, 0.0  ;;  %v550_v44 = vld [vmem:[%s11033_s9 + $0x350] sm:$0xff]  ;;  %v452_v16 = vld [vmem:[%s11033_s9 + $0x40] sm:$0xff] }
 0x3e3   : > { %2443 = vmatpush.msra.mxu0 %v534_v50  ;;  %2426 = vmatpush.msrb.mxu3 %v496_v11  ;;  %v556_v11 = vld [vmem:[%s11033_s9 + $0x380] sm:$0xff] }
 0x3e4   : > { %v5932_v41 = vpack.i.bf16 %v2308_v46, %v2307_v18  ;;  %v528_v50 = vld [vmem:[%s11033_s9 + $0x2a0] sm:$0xff] }
 0x3e5   : > { %2444 = vmatpush.msra.mxu0 %v532_v30  ;;  %2427 = vmatpush.msrb.mxu3 %v494_v63  ;;  %v526_v30 = vld [vmem:[%s11033_s9 + $0x290] sm:$0xff] }
 0x3e6   : > { %5933 = vrot.lane.b32.xlu2 %v5932_v41, %s11284_s20 }
 0x3e7   : > { %2327 = vrot.lane.b32.xlu1 %v2309_v9, %s11284_s20  ;;  %2445 = vmatpush.msra.mxu0 %v530_v25  ;;  %v454_v25 = vld [vmem:[%s11033_s9 + $0x50] sm:$0xff] }
 0x3e9   : > { %2446 = vmatpush.msra.mxu0 %v528_v50  ;;  %v522_v50 = vld [vmem:[%s11033_s9 + $0x270] sm:$0xff] }
 0x3eb   : > { %v2282_v15 = vpop.f32.mrf.mxu0  ;;  %v2302_v43 = vpop.f32.mrf.mxu1  ;;  %2447 = vmatpush.msra.mxu0 %v526_v30  ;;  %v544_v30 = vld [vmem:[%s11033_s9 + $0x320] sm:$0xff] }
 0x3ec   : > { %v8058_v49 = vadd.f32 %v2282_v15, %v8022_v17  ;;  %v8061_v55 = vadd.f32 %v2302_v43, %v8022_v17  ;;  %v562_v15 = vld [vmem:[%s11033_s9 + $0x3b0] sm:$0xff]  ;;  %v464_v43 = vld [vmem:[%s11033_s9 + $0xa0] sm:$0xff] }
 0x3ed   : > { %2465 = vmatpush.msra.mxu1 %v562_v15  ;;  %2406 = vmatpush.msrb.mxu2 %v464_v43  ;;  %v492_v15 = vld [vmem:[%s11033_s9 + $0x180] sm:$0xff]  ;;  %v5509_v17 = vld [vmem:[%s11035_s11 + $0x1b0] sm:$0xff] }
 0x3ee   : > { %v2310_v36 = vmax.f32 %v8058_v49, 0.0  ;;  %v2311_v31 = vmax.f32 %v8061_v55, 0.0  ;;  %2428 = vmatpush.msrb.mxu3 %v492_v15  ;;  %v548_v15 = vld [vmem:[%s11033_s9 + $0x340] sm:$0xff] }
 0x3ef   : > { %2466 = vmatpush.msra.mxu1 %v560_v57  ;;  %2407 = vmatpush.msrb.mxu2 %v462_v42  ;;  %v456_v57 = vld [vmem:[%s11033_s9 + $0x60] sm:$0xff] }
 0x3f0   : > { %2331 = vrot.lane.b32.xlu0 %v2311_v31, %s11284_s20  ;;  %2329 = vrot.lane.b32.xlu2 %v2310_v36, %s11284_s20  ;;  %v488_v42 = vld [vmem:[%s11033_s9 + $0x160] sm:$0xff] }
 0x3f1   : > { %2467 = vmatpush.msra.mxu1 %v558_v58  ;;  %2408 = vmatpush.msrb.mxu2 %v460_v10  ;;  %v476_v49 = vld [vmem:[%s11033_s9 + $0x100] sm:$0xff] }
 0x3f3   : > { %2468 = vmatpush.msra.mxu1 %v556_v11  ;;  %2409 = vmatpush.msrb.mxu2 %v458_v27  ;;  %v482_v11 = vld [vmem:[%s11033_s9 + $0x130] sm:$0xff]  ;;  %v448_v27 = vld [vmem:[%s11033_s9 + $0x20] sm:$0xff] }
 0x3f5   : > { %2410 = vmatpush.msrb.mxu2 %v456_v57  ;;  %v446_v57 = vld [vmem:[%s11033_s9 + $0x10] sm:$0xff] }
 0x3f7   : > { %2411 = vmatpush.msrb.mxu2 %v454_v25 }
 0x3f9   : > { %2412 = vmatpush.msrb.mxu2 %v452_v16  ;;  %v540_v16 = vld [vmem:[%s11033_s9 + $0x300] sm:$0xff] }
 0x440   : > { %v5934_v41 = vpop.permute.xlu2 %5933 }
 0x441   : > { %v5935_v47 = vunpack.i.l.bf16 %v5934_v41  ;;  %v5936_v60 = vunpack.i.h.bf16 %v5934_v41 }
 0x451   : > { %v5929_v24 = vpop.permute.xlu1 %5928 }
 0x452   : > { %v5931_v51 = vunpack.i.h.bf16 %v5929_v24  ;;  %v5930_v38 = vunpack.i.l.bf16 %v5929_v24  ;;  %v2335_v24 = vsel %vm11150_vm1, %v5935_v47, %v5936_v60 }
 0x453   : > { %v8211_v10 = vmax.f32 %v2307_v18, %v2335_v24  ;;  %v484_v18 = vld [vmem:[%s11033_s9 + $0x140] sm:$0xff] }
 0x454   : > { %v2333_v39 = vsel %vm11150_vm1, %v5930_v38, %v5931_v51  ;;  %v2334_v33 = vsel %vm11150_vm1, %v5931_v51, %v5935_v47  ;;  %v2330_v51 = vpop.permute.xlu2 %2329  ;;  %v552_v47 = vld [vmem:[%s11033_s9 + $0x360] sm:$0xff] }
 0x455   : > { %v8159_v43 = vmax.f32 %v2305_v48, %v2333_v39  ;;  %v8163_v41 = vmax.f32 %v2306_v7, %v2334_v33  ;;  %v490_v48 = vld [vmem:[%s11033_s9 + $0x170] sm:$0xff] }
 0x456   : > { %v554_v7 = vld [vmem:[%s11033_s9 + $0x370] sm:$0xff]  ;;  %2429 = vmatpush.msrb.mxu3 %v490_v48  ;;  %v480_v48 = vld [vmem:[%s11033_s9 + $0x120] sm:$0xff] }
 0x457   : > { %v5937_v22 = vpack.i.bf16 %v8163_v41, %v8159_v43  ;;  %2469 = vmatpush.msra.mxu1 %v554_v7  ;;  %v520_v7 = vld [vmem:[%s11033_s9 + $0x260] sm:$0xff] }
 0x458   : > { %2430 = vmatpush.msrb.mxu3 %v488_v42 }
 0x459   : > { %v2328_v38 = vpop.permute.xlu1 %2327  ;;  %5938 = vrot.lane.b32.xlu1 %v5937_v22, %s11286_s30  ;;  %2470 = vmatpush.msra.mxu1 %v552_v47  ;;  %v546_v22 = vld [vmem:[%s11033_s9 + $0x330] sm:$0xff] }
 0x45a   : > { %v2336_v63 = vsel %vm11150_vm1, %v5936_v60, %v2328_v38  ;;  %v2337_v58 = vsel %vm11150_vm1, %v2328_v38, %v2330_v51  ;;  %v486_v60 = vld [vmem:[%s11033_s9 + $0x150] sm:$0xff] }
 0x45b   : > { %v8203_v39 = vmax.f32 %v2308_v46, %v2336_v63  ;;  %v8207_v33 = vmax.f32 %v2309_v9, %v2337_v58  ;;  %v524_v46 = vld [vmem:[%s11033_s9 + $0x280] sm:$0xff]  ;;  %2431 = vmatpush.msrb.mxu3 %v486_v60  ;;  %2471 = vmatpush.msra.mxu1 %v550_v44  ;;  %v450_v9 = vld [vmem:[%s11033_s9 + $0x30] sm:$0xff] }
 0x45c   : > { %2448 = vmatpush.msra.mxu0 %v524_v46  ;;  %2413 = vmatpush.msrb.mxu2 %v450_v9  ;;  %v478_v47 = vld [vmem:[%s11033_s9 + $0x110] sm:$0xff]  ;;  %v516_v44 = vld [vmem:[%s11033_s9 + $0x240] sm:$0xff]  ;;  %v475_v46 = vld [vmem:[%s11033_s9 + $0xf8] sm:$0xff] }
 0x45d   : > { %2370 = vrot.lane.b32.xlu0 %v8207_v33, %s11286_s30  ;;  %v5942_v3 = vpack.i.bf16 %v8203_v39, %v8211_v10  ;;  %2432 = vmatpush.msrb.mxu3 %v484_v18  ;;  %v518_v63 = vld [vmem:[%s11033_s9 + $0x250] sm:$0xff]  ;;  %v632_v18 = vld [vmem:[%s11033_s9 + $0x5e0] sm:$0xff] }
 0x45e   : > { %2472 = vmatpush.msra.mxu1 %v548_v15  ;;  %2449 = vmatpush.msra.mxu0 %v522_v50  ;;  %v542_v60 = vld [vmem:[%s11033_s9 + $0x310] sm:$0xff]  ;;  %v473_v50 = vld [vmem:[%s11033_s9 + $0xe8] sm:$0xff] }
 0x45f   : > { %5943 = vrot.lane.b32.xlu2 %v5942_v3, %s11286_s30  ;;  %2433 = vmatpush.msrb.mxu3 %v482_v11  ;;  %v600_v3 = vld [vmem:[%s11033_s9 + $0x4e0] sm:$0xff]  ;;  %v514_v9 = vld [vmem:[%s11033_s9 + $0x230] sm:$0xff] }
 0x460   : > { %2414 = vmatpush.msrb.mxu2 %v448_v27  ;;  %2473 = vmatpush.msra.mxu1 %v546_v22  ;;  %v598_v15 = vld [vmem:[%s11033_s9 + $0x4d0] sm:$0xff]  ;;  %v512_v27 = vld [vmem:[%s11033_s9 + $0x220] sm:$0xff] }
 0x461   : > { %2434 = vmatpush.msrb.mxu3 %v480_v48  ;;  %2450 = vmatpush.msra.mxu0 %v520_v7  ;;  %v630_v11 = vld [vmem:[%s11033_s9 + $0x5d0] sm:$0xff]  ;;  %v596_v22 = vld [vmem:[%s11033_s9 + $0x4c0] sm:$0xff]  ;;  %v471_v7 = vld [vmem:[%s11033_s9 + $0xd8] sm:$0xff] }
 0x462   : > { %v2332_v24 = vpop.permute.xlu0 %2331  ;;  %2415 = vmatpush.msrb.mxu2 %v446_v57  ;;  %2474 = vmatpush.msra.mxu1 %v544_v30  ;;  %v628_v48 = vld [vmem:[%s11033_s9 + $0x5c0] sm:$0xff]  ;;  %v594_v57 = vld [vmem:[%s11033_s9 + $0x4b0] sm:$0xff] }
 0x463   : > { %v2338_v38 = vsel %vm11150_vm1, %v2330_v51, %v2332_v24  ;;  %v2347_v42 = vsel %vm2346_vm8, %v2332_v24, 0.0  ;;  %v444_v51 = vld [vmem:[%s11033_s9] sm:$0xff]  ;;  %2435 = vmatpush.msrb.mxu3 %v478_v47  ;;  %2451 = vmatpush.msra.mxu0 %v518_v63  ;;  %v510_v24 = vld [vmem:[%s11033_s9 + $0x210] sm:$0xff] }
 0x464   : > { %v8273_v58 = vmax.f32 %v2310_v36, %v2338_v38  ;;  %v8277_v25 = vmax.f32 %v2311_v31, %v2347_v42  ;;  %v602_v36 = vld [vmem:[%s11033_s9 + $0x4f0] sm:$0xff]  ;;  %2416 = vmatpush.msrb.mxu2 %v444_v51  ;;  %2475 = vmatpush.msra.mxu1 %v542_v60  ;;  %v469_v38 = vld [vmem:[%s11033_s9 + $0xc8] sm:$0xff]  ;;  %v508_v42 = vld [vmem:[%s11033_s9 + $0x200] sm:$0xff] }
 0x465   : > { %v634_v31 = vld [vmem:[%s11033_s9 + $0x5f0] sm:$0xff]  ;;  %2436 = vmatpush.msrb.mxu3 %v476_v49  ;;  %2452 = vmatpush.msra.mxu0 %v516_v44  ;;  %v592_v47 = vld [vmem:[%s11033_s9 + $0x4a0] sm:$0xff]  ;;  %v467_v60 = vld [vmem:[%s11033_s9 + $0xb8] sm:$0xff] }
 0x466   : > { %v5947_v55 = vpack.i.bf16 %v8277_v25, %v8273_v58  ;;  %2481 = vmatpush.msra.mxu2 %v602_v36  ;;  %2476 = vmatpush.msra.mxu1 %v540_v16  ;;  %v626_v30 = vld [vmem:[%s11033_s9 + $0x5b0] sm:$0xff]  ;;  %v624_v63 = vld [vmem:[%s11033_s9 + $0x5a0] sm:$0xff] }
 0x467   : > { %2501 = vmatpush.msra.mxu3 %v634_v31  ;;  %2453 = vmatpush.msra.mxu0 %v514_v9  ;;  %v638_v51 = vld [vmem:[%s11033_s9 + $0x610] sm:$0xff]  ;;  %v636_v36 = vld [vmem:[%s11033_s9 + $0x600] sm:$0xff]  ;;  %v465_v31 = vld [vmem:[%s11033_s9 + $0xa8] sm:$0xff] }
 0x468   : > { %5948 = vrot.lane.b32.xlu1 %v5947_v55, %s11286_s30  ;;  %2482 = vmatpush.msra.mxu2 %v600_v3  ;;  %v590_v49 = vld [vmem:[%s11033_s9 + $0x490] sm:$0xff]  ;;  %v588_v44 = vld [vmem:[%s11033_s9 + $0x480] sm:$0xff]  ;;  %v463_v3 = vld [vmem:[%s11033_s9 + $0x98] sm:$0xff] }
 0x469   : > { %2502 = vmatpush.msra.mxu3 %v632_v18  ;;  %2541 = vmatpush.msrb.mxu1 %v475_v46  ;;  %v622_v55 = vld [vmem:[%s11033_s9 + $0x590] sm:$0xff]  ;;  %v620_v16 = vld [vmem:[%s11033_s9 + $0x580] sm:$0xff]  ;;  %v461_v9 = vld [vmem:[%s11033_s9 + $0x88] sm:$0xff] }
 0x46a   : > { %2483 = vmatpush.msra.mxu2 %v598_v15  ;;  %2454 = vmatpush.msra.mxu0 %v512_v27  ;;  %v586_v18 = vld [vmem:[%s11033_s9 + $0x470] sm:$0xff]  ;;  %v584_v15 = vld [vmem:[%s11033_s9 + $0x460] sm:$0xff] }
 0x46b   : > { %2503 = vmatpush.msra.mxu3 %v630_v11  ;;  %2542 = vmatpush.msrb.mxu1 %v473_v50  ;;  %v618_v46 = vld [vmem:[%s11033_s9 + $0x570] sm:$0xff]  ;;  %v616_v11 = vld [vmem:[%s11033_s9 + $0x560] sm:$0xff]  ;;  %v459_v50 = vld [vmem:[%s11033_s9 + $0x78] sm:$0xff] }
 0x46c   : > { %2484 = vmatpush.msra.mxu2 %v596_v22  ;;  %2455 = vmatpush.msra.mxu0 %v510_v24  ;;  %v582_v27 = vld [vmem:[%s11033_s9 + $0x450] sm:$0xff]  ;;  %v612_v24 = vld [vmem:[%s11033_s9 + $0x540] sm:$0xff] }
 0x46d   : > { %2504 = vmatpush.msra.mxu3 %v628_v48  ;;  %2543 = vmatpush.msrb.mxu1 %v471_v7  ;;  %v614_v22 = vld [vmem:[%s11033_s9 + $0x550] sm:$0xff]  ;;  %v457_v48 = vld [vmem:[%s11033_s9 + $0x68] sm:$0xff]  ;;  %v580_v7 = vld [vmem:[%s11033_s9 + $0x440] sm:$0xff] }
 0x46e   : > { %2485 = vmatpush.msra.mxu2 %v594_v57  ;;  %2456 = vmatpush.msra.mxu0 %v508_v42  ;;  %v455_v57 = vld [vmem:[%s11033_s9 + $0x58] sm:$0xff]  ;;  %v453_v42 = vld [vmem:[%s11033_s9 + $0x48] sm:$0xff] }
 0x46f   : > { %2505 = vmatpush.msra.mxu3 %v626_v30  ;;  %2544 = vmatpush.msrb.mxu1 %v469_v38  ;;  %v578_v30 = vld [vmem:[%s11033_s9 + $0x430] sm:$0xff] }
 0x470   : > { %2486 = vmatpush.msra.mxu2 %v592_v47  ;;  %2535 = vmatpush.msrb.mxu0 %v638_v51  ;;  %v610_v38 = vld [vmem:[%s11033_s9 + $0x530] sm:$0xff]  ;;  %v576_v47 = vld [vmem:[%s11033_s9 + $0x420] sm:$0xff]  ;;  %v451_v51 = vld [vmem:[%s11033_s9 + $0x38] sm:$0xff] }
 0x471   : > { %2506 = vmatpush.msra.mxu3 %v624_v63  ;;  %2545 = vmatpush.msrb.mxu1 %v467_v60  ;;  %v608_v63 = vld [vmem:[%s11033_s9 + $0x520] sm:$0xff]  ;;  %v574_v60 = vld [vmem:[%s11033_s9 + $0x410] sm:$0xff] }
 0x472   : > { %2487 = vmatpush.msra.mxu2 %v590_v49  ;;  %2536 = vmatpush.msrb.mxu0 %v636_v36  ;;  %v606_v49 = vld [vmem:[%s11033_s9 + $0x510] sm:$0xff]  ;;  %v572_v36 = vld [vmem:[%s11033_s9 + $0x400] sm:$0xff] }
 0x473   : > { %2507 = vmatpush.msra.mxu3 %v622_v55  ;;  %2546 = vmatpush.msrb.mxu1 %v465_v31  ;;  %v449_v55 = vld [vmem:[%s11033_s9 + $0x28] sm:$0xff]  ;;  %v604_v31 = vld [vmem:[%s11033_s9 + $0x500] sm:$0xff] }
 0x474   : > { %2488 = vmatpush.msra.mxu2 %v588_v44  ;;  %v447_v44 = vld [vmem:[%s11033_s9 + $0x18] sm:$0xff] }
 0x475   : > { %2508 = vmatpush.msra.mxu3 %v620_v16  ;;  %2547 = vmatpush.msrb.mxu1 %v463_v3  ;;  %v445_v16 = vld [vmem:[%s11033_s9 + $0x8] sm:$0xff] }
 0x476   : > { %2489 = vmatpush.msra.mxu2 %v586_v18 }
 0x477   : > { %2509 = vmatpush.msra.mxu3 %v618_v46  ;;  %2548 = vmatpush.msrb.mxu1 %v461_v9 }
 0x478   : > { %2490 = vmatpush.msra.mxu2 %v584_v15 }
 0x479   : > { %2510 = vmatpush.msra.mxu3 %v616_v11  ;;  %2549 = vmatpush.msrb.mxu1 %v459_v50  ;;  %v507_v11 = vld [vmem:[%s11033_s9 + $0x1f8] sm:$0xff]  ;;  %v505_v50 = vld [vmem:[%s11033_s9 + $0x1e8] sm:$0xff] }
 0x47a   : > { %2491 = vmatpush.msra.mxu2 %v582_v27  ;;  %v503_v27 = vld [vmem:[%s11033_s9 + $0x1d8] sm:$0xff] }
 0x47b   : > { %2511 = vmatpush.msra.mxu3 %v614_v22  ;;  %2550 = vmatpush.msrb.mxu1 %v457_v48  ;;  %v2396_v22 = vmax.f32 %v8277_v25, 0.0  ;;  %v499_v48 = vld [vmem:[%s11033_s9 + $0x1b8] sm:$0xff] }
 0x47c   : > { %2492 = vmatpush.msra.mxu2 %v580_v7  ;;  %v497_v7 = vld [vmem:[%s11033_s9 + $0x1a8] sm:$0xff] }
 0x47d   : > { %2512 = vmatpush.msra.mxu3 %v612_v24  ;;  %2551 = vmatpush.msrb.mxu1 %v455_v57  ;;  %v495_v24 = vld [vmem:[%s11033_s9 + $0x198] sm:$0xff] }
 0x47e   : > { %2493 = vmatpush.msra.mxu2 %v578_v30  ;;  %v493_v30 = vld [vmem:[%s11033_s9 + $0x188] sm:$0xff] }
 0x47f   : > { %2513 = vmatpush.msra.mxu3 %v610_v38  ;;  %2552 = vmatpush.msrb.mxu1 %v453_v42 }
 0x480   : > { %2494 = vmatpush.msra.mxu2 %v576_v47  ;;  %v491_v47 = vld [vmem:[%s11033_s9 + $0x178] sm:$0xff] }
 0x481   : > { %2514 = vmatpush.msra.mxu3 %v608_v63  ;;  %2553 = vmatpush.msrb.mxu1 %v451_v51 }
 0x482   : > { %2495 = vmatpush.msra.mxu2 %v574_v60 }
 0x483   : > { %2515 = vmatpush.msra.mxu3 %v606_v49  ;;  %2554 = vmatpush.msrb.mxu1 %v449_v55 }
 0x484   : > { %2496 = vmatpush.msra.mxu2 %v572_v36  ;;  %v489_v36 = vld [vmem:[%s11033_s9 + $0x168] sm:$0xff] }
 0x485   : > { %2516 = vmatpush.msra.mxu3 %v604_v31  ;;  %2555 = vmatpush.msrb.mxu1 %v447_v44  ;;  %v539_v31 = vld [vmem:[%s11033_s9 + $0x2f8] sm:$0xff] }
 0x487   : > { %2556 = vmatpush.msrb.mxu1 %v445_v16  ;;  %v571_v16 = vld [vmem:[%s11033_s9 + $0x3f8] sm:$0xff] }
 0x4b9   : > { %v5944_v3 = vpop.permute.xlu2 %5943 }
 0x4ba   : > { %v5946_v18 = vunpack.i.h.bf16 %v5944_v3  ;;  %v5945_v46 = vunpack.i.l.bf16 %v5944_v3  ;;  %v537_v3 = vld [vmem:[%s11033_s9 + $0x2e8] sm:$0xff] }
 0x4bc   : > { %v2378_v9 = vsel %vm1404_vm3, %v5945_v46, %v5946_v18 }
 0x4bd   : > { %v8461_v15 = vmax.f32 %v8211_v10, %v2378_v9  ;;  %v501_v10 = vld [vmem:[%s11033_s9 + $0x1c8] sm:$0xff]  ;;  %v535_v9 = vld [vmem:[%s11033_s9 + $0x2d8] sm:$0xff] }
 0x4bf   : > { %2457 = vmatmul.f32.vlgmr.msra.gmra.mxu0 %v8461_v15 }
 0x4c0   : > { %2561 = vmatpush.msra.mxu0 %v507_v11  ;;  %v567_v11 = vld [vmem:[%s11033_s9 + $0x3d8] sm:$0xff] }
 0x4c2   : > { %2562 = vmatpush.msra.mxu0 %v505_v50  ;;  %v601_v50 = vld [vmem:[%s11033_s9 + $0x4e8] sm:$0xff] }
 0x4c4   : > { %2563 = vmatpush.msra.mxu0 %v503_v27  ;;  %v483_v27 = vld [vmem:[%s11033_s9 + $0x138] sm:$0xff] }
 0x4c6   : > { %2564 = vmatpush.msra.mxu0 %v501_v10  ;;  %v533_v10 = vld [vmem:[%s11033_s9 + $0x2c8] sm:$0xff] }
 0x4c7   : > { %5440 = vmatmul.msk.f32.vlgmr.msrb.gmra.mxu0 %vm2397_vm13, %v2396_v22 }
 0x4c8   : > { %2565 = vmatpush.msra.mxu0 %v499_v48  ;;  %v565_v48 = vld [vmem:[%s11033_s9 + $0x3c8] sm:$0xff] }
 0x4ca   : > { %2566 = vmatpush.msra.mxu0 %v497_v7  ;;  %v599_v7 = vld [vmem:[%s11033_s9 + $0x4d8] sm:$0xff] }
 0x4cb   : > { %v5939_v57 = vpop.permute.xlu1 %5938 }
 0x4cc   : > { %2567 = vmatpush.msra.mxu0 %v495_v24  ;;  %v5941_v38 = vunpack.i.h.bf16 %v5939_v57  ;;  %v5940_v42 = vunpack.i.l.bf16 %v5939_v57  ;;  %v481_v24 = vld [vmem:[%s11033_s9 + $0x128] sm:$0xff]  ;;  %v531_v57 = vld [vmem:[%s11033_s9 + $0x2b8] sm:$0xff] }
 0x4ce   : > { %v2377_v63 = vsel %vm1404_vm3, %v5941_v38, %v5945_v46  ;;  %v2376_v51 = vsel %vm1404_vm3, %v5940_v42, %v5941_v38  ;;  %2568 = vmatpush.msra.mxu0 %v493_v30  ;;  %v485_v46 = vld [vmem:[%s11033_s9 + $0x148] sm:$0xff]  ;;  %v563_v30 = vld [vmem:[%s11033_s9 + $0x3b8] sm:$0xff] }
 0x4cf   : > { %v2371_v60 = vpop.permute.xlu0 %2370  ;;  %v2390_v49 = vmax.f32 %v8159_v43, %v2376_v51  ;;  %v8499_v55 = vmax.f32 %v8163_v41, %v2377_v63  ;;  %v487_v41 = vld [vmem:[%s11033_s9 + $0x158] sm:$0xff]  ;;  %v597_v38 = vld [vmem:[%s11033_s9 + $0x4c8] sm:$0xff] }
 0x4d0   : > { %v2379_v44 = vsel %vm1404_vm3, %v5946_v18, %v2371_v60  ;;  %2569 = vmatpush.msra.mxu0 %v491_v47  ;;  %v569_v18 = vld [vmem:[%s11033_s9 + $0x3e8] sm:$0xff]  ;;  %v479_v42 = vld [vmem:[%s11033_s9 + $0x118] sm:$0xff] }
 0x4d1   : > { %v8512_v43 = vmax.f32 %v8203_v39, %v2379_v44  ;;  %2417 = vmatmul.f32.vlgmr.msrb.gmra.mxu2 %v2390_v49  ;;  %2437 = vmatmul.f32.vlgmr.msrb.gmra.mxu3 %v8499_v55  ;;  %v603_v39 = vld [vmem:[%s11033_s9 + $0x4f8] sm:$0xff]  ;;  %v529_v63 = vld [vmem:[%s11033_s9 + $0x2a8] sm:$0xff] }
 0x4d2   : > { %2570 = vmatpush.msra.mxu0 %v489_v36  ;;  %2581 = vmatpush.msrb.mxu2 %v539_v31  ;;  %v561_v51 = vld [vmem:[%s11033_s9 + $0x3a8] sm:$0xff]  ;;  %v595_v44 = vld [vmem:[%s11033_s9 + $0x4b8] sm:$0xff] }
 0x4d3   : > { %2601 = vmatpush.msrb.mxu3 %v571_v16  ;;  %2477 = vmatmul.f32.vlgmr.msra.gmra.mxu1 %v8512_v43  ;;  %v477_v16 = vld [vmem:[%s11033_s9 + $0x108] sm:$0xff] }
 0x4d4   : > { %2571 = vmatpush.msra.mxu0 %v487_v41  ;;  %2582 = vmatpush.msrb.mxu2 %v537_v3  ;;  %v527_v41 = vld [vmem:[%s11033_s9 + $0x298] sm:$0xff] }
 0x4d5   : > { %2602 = vmatpush.msrb.mxu3 %v569_v18  ;;  %2621 = vmatpush.msra.mxu1 %v603_v39  ;;  %v559_v3 = vld [vmem:[%s11033_s9 + $0x398] sm:$0xff] }
 0x4d6   : > { %2572 = vmatpush.msra.mxu0 %v485_v46  ;;  %2583 = vmatpush.msrb.mxu2 %v535_v9  ;;  %v593_v46 = vld [vmem:[%s11033_s9 + $0x4a8] sm:$0xff] }
 0x4d7   : > { %2603 = vmatpush.msrb.mxu3 %v567_v11  ;;  %2622 = vmatpush.msra.mxu1 %v601_v50  ;;  %v525_v50 = vld [vmem:[%s11033_s9 + $0x288] sm:$0xff] }
 0x4d8   : > { %2573 = vmatpush.msra.mxu0 %v483_v27  ;;  %2584 = vmatpush.msrb.mxu2 %v533_v10  ;;  %v591_v27 = vld [vmem:[%s11033_s9 + $0x498] sm:$0xff] }
 0x4d9   : > { %2604 = vmatpush.msrb.mxu3 %v565_v48  ;;  %2623 = vmatpush.msra.mxu1 %v599_v7  ;;  %v523_v10 = vld [vmem:[%s11033_s9 + $0x278] sm:$0xff] }
 0x4da   : > { %v5949_v47 = vpop.permute.xlu1 %5948  ;;  %2574 = vmatpush.msra.mxu0 %v481_v24  ;;  %2585 = vmatpush.msrb.mxu2 %v531_v57  ;;  %v555_v48 = vld [vmem:[%s11033_s9 + $0x378] sm:$0xff]  ;;  %v521_v24 = vld [vmem:[%s11033_s9 + $0x268] sm:$0xff] }
 0x4db   : > { %v5951_v36 = vunpack.i.h.bf16 %v5949_v47  ;;  %v5950_v31 = vunpack.i.l.bf16 %v5949_v47  ;;  %2605 = vmatpush.msrb.mxu3 %v563_v30  ;;  %2624 = vmatpush.msra.mxu1 %v597_v38  ;;  %v631_v7 = vld [vmem:[%s11033_s9 + $0x5d8] sm:$0xff]  ;;  %v553_v57 = vld [vmem:[%s11033_s9 + $0x368] sm:$0xff] }
 0x4dc   : > { %2557 = vmatmul.f32.vlgmr.msrb.gmra.mxu1 %v2390_v49  ;;  %2575 = vmatpush.msra.mxu0 %v479_v42  ;;  %v587_v30 = vld [vmem:[%s11033_s9 + $0x478] sm:$0xff]  ;;  %v629_v38 = vld [vmem:[%s11033_s9 + $0x5c8] sm:$0xff] }
 0x4dd   : > { %v2380_v18 = vsel %vm1404_vm3, %v2371_v60, %v5950_v31  ;;  %v2381_v39 = vsel %vm1404_vm3, %v5950_v31, %v5951_v36  ;;  %2586 = vmatpush.msrb.mxu2 %v529_v63  ;;  %2606 = vmatpush.msrb.mxu3 %v561_v51  ;;  %v635_v60 = vld [vmem:[%s11033_s9 + $0x5f8] sm:$0xff]  ;;  %v585_v63 = vld [vmem:[%s11033_s9 + $0x468] sm:$0xff] }
 0x4de   : > { %v2389_v49 = vsel %vm11141_vm10, %v2381_v39, 0.0  ;;  %v8592_v9 = vmax.f32 %v8207_v33, %v2380_v18  ;;  %2625 = vmatpush.msra.mxu1 %v595_v44  ;;  %2576 = vmatpush.msra.mxu0 %v477_v16  ;;  %v557_v33 = vld [vmem:[%s11033_s9 + $0x388] sm:$0xff]  ;;  %v519_v42 = vld [vmem:[%s11033_s9 + $0x258] sm:$0xff] }
 0x4df   : > { %2587 = vmatpush.msrb.mxu2 %v527_v41  ;;  %2607 = vmatpush.msrb.mxu3 %v559_v3  ;;  %v8598_v11 = vmax.f32 %v8273_v58, %v2389_v49  ;;  %v633_v58 = vld [vmem:[%s11033_s9 + $0x5e8] sm:$0xff]  ;;  %v551_v47 = vld [vmem:[%s11033_s9 + $0x358] sm:$0xff] }
 0x4e0   : > { %2626 = vmatpush.msra.mxu1 %v593_v46  ;;  %2497 = vmatmul.f32.vlgmr.msra.gmra.mxu2 %v8592_v9  ;;  %v627_v51 = vld [vmem:[%s11033_s9 + $0x5b8] sm:$0xff]  ;;  %v517_v36 = vld [vmem:[%s11033_s9 + $0x248] sm:$0xff] }
 0x4e1   : > { %2577 = vmatmul.f32.vlgmr.msra.gmra.mxu0 %v8499_v55  ;;  %2517 = vmatmul.f32.vlgmr.msra.gmra.mxu3 %v8598_v11  ;;  %v589_v55 = vld [vmem:[%s11033_s9 + $0x488] sm:$0xff]  ;;  %v583_v44 = vld [vmem:[%s11033_s9 + $0x458] sm:$0xff] }
 0x4e2   : > { %2641 = vmatpush.msrb.mxu0 %v635_v60  ;;  %2588 = vmatpush.msrb.mxu2 %v525_v50  ;;  %v549_v31 = vld [vmem:[%s11033_s9 + $0x348] sm:$0xff]  ;;  %v515_v41 = vld [vmem:[%s11033_s9 + $0x238] sm:$0xff] }
 0x4e3   : > { %2608 = vmatpush.msrb.mxu3 %v557_v33  ;;  %2627 = vmatpush.msra.mxu1 %v591_v27  ;;  %v625_v16 = vld [vmem:[%s11033_s9 + $0x5a8] sm:$0xff]  ;;  %v547_v3 = vld [vmem:[%s11033_s9 + $0x338] sm:$0xff] }
 0x4e4   : > { %2642 = vmatpush.msrb.mxu0 %v633_v58  ;;  %2589 = vmatpush.msrb.mxu2 %v523_v10  ;;  %v581_v18 = vld [vmem:[%s11033_s9 + $0x448] sm:$0xff]  ;;  %v623_v39 = vld [vmem:[%s11033_s9 + $0x598] sm:$0xff] }
 0x4e5   : > { %2609 = vmatpush.msrb.mxu3 %v555_v48  ;;  %2628 = vmatpush.msra.mxu1 %v589_v55  ;;  %v513_v46 = vld [vmem:[%s11033_s9 + $0x228] sm:$0xff]  ;;  %v579_v60 = vld [vmem:[%s11033_s9 + $0x438] sm:$0xff] }
 0x4e6   : > { %2643 = vmatpush.msrb.mxu0 %v631_v7  ;;  %2590 = vmatpush.msrb.mxu2 %v521_v24  ;;  %v545_v49 = vld [vmem:[%s11033_s9 + $0x328] sm:$0xff]  ;;  %v511_v33 = vld [vmem:[%s11033_s9 + $0x218] sm:$0xff] }
 0x4e7   : > { %2610 = vmatpush.msrb.mxu3 %v553_v57  ;;  %2629 = vmatpush.msra.mxu1 %v587_v30  ;;  %v621_v50 = vld [vmem:[%s11033_s9 + $0x588] sm:$0xff]  ;;  %v543_v27 = vld [vmem:[%s11033_s9 + $0x318] sm:$0xff] }
 0x4e8   : > { %2644 = vmatpush.msrb.mxu0 %v629_v38  ;;  %2591 = vmatpush.msrb.mxu2 %v519_v42  ;;  %v577_v58 = vld [vmem:[%s11033_s9 + $0x428] sm:$0xff]  ;;  %v619_v10 = vld [vmem:[%s11033_s9 + $0x578] sm:$0xff] }
 0x4e9   : > { %2611 = vmatpush.msrb.mxu3 %v551_v47  ;;  %2630 = vmatpush.msra.mxu1 %v585_v63  ;;  %v509_v48 = vld [vmem:[%s11033_s9 + $0x208] sm:$0xff]  ;;  %v575_v7 = vld [vmem:[%s11033_s9 + $0x418] sm:$0xff] }
 0x4ea   : > { %2645 = vmatpush.msrb.mxu0 %v627_v51  ;;  %2592 = vmatpush.msrb.mxu2 %v517_v36  ;;  %v541_v55 = vld [vmem:[%s11033_s9 + $0x308] sm:$0xff]  ;;  %v639_v30 = vld [vmem:[%s11033_s9 + $0x618] sm:$0xff] }
 0x4eb   : > { %2612 = vmatpush.msrb.mxu3 %v549_v31  ;;  %2631 = vmatpush.msra.mxu1 %v583_v44  ;;  %v617_v24 = vld [vmem:[%s11033_s9 + $0x568] sm:$0xff]  ;;  %v615_v38 = vld [vmem:[%s11033_s9 + $0x558] sm:$0xff] }
 0x4ec   : > { %2646 = vmatpush.msrb.mxu0 %v625_v16  ;;  %2593 = vmatpush.msrb.mxu2 %v515_v41  ;;  %v573_v57 = vld [vmem:[%s11033_s9 + $0x408] sm:$0xff]  ;;  %v11323_v51 = vld [vmem:[#allocation14_spill] sm:$0xff]  ;;  %v11324_v31 = vld [vmem:[#allocation15_spill] sm:$0xff] }
 0x4ed   : > { %2613 = vmatpush.msrb.mxu3 %v547_v3  ;;  %2632 = vmatpush.msra.mxu1 %v581_v18  ;;  %v637_v42 = vld [vmem:[%s11033_s9 + $0x608] sm:$0xff]  ;;  %v1002_v36 = vshrl.u32 %v11323_v51, 3  ;;  %v1034_v44 = vshrl.u32 %v11324_v31, 3 }
 0x4ee   : > { %2647 = vmatpush.msrb.mxu0 %v623_v39  ;;  %2594 = vmatpush.msrb.mxu2 %v513_v46  ;;  %v613_v47 = vld [vmem:[%s11033_s9 + $0x548] sm:$0xff] }
 0x4ef   : > { %2614 = vmatpush.msrb.mxu3 %v545_v49  ;;  %2633 = vmatpush.msra.mxu1 %v579_v60  ;;  %v605_v63 = vld [vmem:[%s11033_s9 + $0x508] sm:$0xff]  ;;  %v1003_v25 = vmul.u32 14, %v1002_v36  ;;  %v1035_v16 = vmul.u32 14, %v1034_v44  ;;  %v11327_v60 = vmov 0.0  }
 0x4f0   : > { %2648 = vmatpush.msrb.mxu0 %v621_v50  ;;  %2595 = vmatpush.msrb.mxu2 %v511_v33  ;;  %v11326_v3 = vld [vmem:[#allocation13_spill] sm:$0xff] }
 0x4f1   : > { %2615 = vmatpush.msrb.mxu3 %v543_v27  ;;  %2634 = vmatpush.msra.mxu1 %v577_v58  ;;  %v1036_v18 = vsub.s32 %v11326_v3, %v1035_v16 }
 0x4f2   : > { %2649 = vmatpush.msrb.mxu0 %v619_v10  ;;  %2596 = vmatpush.msrb.mxu2 %v509_v48 }
 0x4f3   : > { %2616 = vmatpush.msrb.mxu3 %v541_v55  ;;  %2635 = vmatpush.msra.mxu1 %v575_v7  ;;  %vm1040_vm15 = vcmp.ne.s32.totalorder %v1036_v18, 0  ;;  %vm1042_vm14 = vcmp.lt.s32.totalorder %v1036_v18, 0  ;;  %v1046_v46 = vadd.s32 14, %v1036_v18 }
 0x4f4   : > { %2597 = vmatmul.f32.vlgmr.msrb.gmra.mxu2 %v8461_v15  ;;  %2617 = vmatmul.f32.vlgmr.msrb.gmra.mxu3 %v8512_v43  ;;  %v611_v15 = vld [vmem:[%s11033_s9 + $0x538] sm:$0xff]  ;;  %v609_v43 = vld [vmem:[%s11033_s9 + $0x528] sm:$0xff]  ;;  %vm1044_vm5 = vmand %vm1042_vm14, %vm1040_vm15  ;;  %vm2712_vm15 = vcmask 113664   ;;  %vm11349_vm14 = vcmask 588800  }
 0x4f5   : > { %2650 = vmatpush.msrb.mxu0 %v617_v24  ;;  %2636 = vmatpush.msra.mxu1 %v573_v57 }
 0x4f6   : > { %2637 = vmatmul.f32.vlgmr.msra.gmra.mxu1 %v8592_v9  ;;  %2675 = vmatpush.msra.mxu2 %v639_v30  ;;  %v607_v9 = vld [vmem:[%s11033_s9 + $0x518] sm:$0xff] }
 0x4f7   : > { %2651 = vmatpush.msrb.mxu0 %v615_v38 }
 0x4f8   : > { %2676 = vmatpush.msra.mxu2 %v637_v42 }
 0x4f9   : > { %2652 = vmatpush.msrb.mxu0 %v613_v47 }
 0x4fb   : > { %2653 = vmatpush.msrb.mxu0 %v611_v15 }
 0x4fc   : > { %5441 = vmatmul.msk.f32.vlgmr.msra.gmra.mxu2 %vm2397_vm13, %v2396_v22  ;;  %v11325_v22 = vld [vmem:[#allocation12_spill] sm:$0xff] }
 0x4fd   : > { %2654 = vmatpush.msrb.mxu0 %v609_v43  ;;  %v1004_v41 = vsub.s32 %v11325_v22, %v1003_v25 }
 0x4ff   : > { %2655 = vmatpush.msrb.mxu0 %v607_v9  ;;  %vm1039_vm10 = vcmp.ne.s32.totalorder %v1004_v41, 0  ;;  %vm1041_vm9 = vcmp.lt.s32.totalorder %v1004_v41, 0  ;;  %v1045_v39 = vadd.s32 14, %v1004_v41 }
 0x500   : > { %vm1043_vm6 = vmand %vm1041_vm9, %vm1039_vm10  ;;  %vm11207_vm9 = vcmask 678912   ;;  %vm11335_vm10 = vcmask 244736  }
 0x501   : > { %2656 = vmatpush.msrb.mxu0 %v605_v63  ;;  %v1047_v49 = vsel %vm1043_vm6, %v1045_v39, %v1004_v41  ;;  %vm11204_vm6 = vcmask 932864  }
 0x502   : > { %2657 = vmatmul.f32.vlgmr.msrb.gmra.mxu0 %v8598_v11  ;;  %v1048_v11 = vsel %vm1044_vm5, %v1046_v46, %v1036_v18  ;;  %vm1055_vm0 = vcmp.le.s32.totalorder %v1047_v49, 12  ;;  %vm1049_vm12 = vcmp.ge.s32.totalorder %v1047_v49, 1  ;;  %vm11205_vm5 = vcmask 924672  }
 0x503   : > { %vm1056_vm11 = vcmp.le.s32.totalorder %v1048_v11, 12  ;;  %v5417_v50 = vsel %vm1055_vm0, 1.0, %v11327_v60  ;;  %vm1050_vm1 = vcmp.ge.s32.totalorder %v1048_v11, 1  ;;  %v8753_v58 = vsel %vm1049_vm12, 1.0, %v11327_v60 }
 0x504   : > { %v5418_v33 = vsel %vm1056_vm11, 1.0, %v11327_v60  ;;  %11329 = vst [vmem:[#allocation26_spill] sm:$0xff] %v8753_v58  ;;  %v8756_v10 = vsel %vm1050_vm1, 1.0, %v11327_v60  ;;  %vm11337_vm12 = vcmask 228352   ;;  %vm11345_vm0 = vcmask 15360  }
 0x505   : > { %v5952_v27 = vpack.i.bf16 %v5418_v33, %v5417_v50  ;;  %11330 = vst [vmem:[#allocation20_spill] sm:$0xff] %v8756_v10  ;;  %v5967_v48 = vpack.i.bf16 %v8756_v10, %v8753_v58  ;;  %vm11206_vm1 = vcmask 916480   ;;  %vm11348_vm11 = vcmask 1039360  }
 0x507   : > { %5953 = vrot.lane.b32.xlu1 %v5952_v27, %s11328_s2  ;;  %s11364_s2 = smov 72  }
 0x50f   : > { %5968 = vrot.lane.b32.xlu1 %v5967_v48, %s6750_s23  ;;  %s11365_s23 = smov 70  }
 0x53c   : > { %v2458_v57 = vpop.f32.mrf.mxu0 }
 0x544   : > { %v2538_v63 = vpop.f32.mrf.mxu0 }
 0x550   : > { %v2478_v38 = vpop.f32.mrf.mxu1 }
 0x554   : > { %v2418_v55 = vpop.f32.mrf.mxu2  ;;  %v2438_v7 = vpop.f32.mrf.mxu3 }
 0x555   : > { %v2439_v24 = vadd.f32 %v2438_v7, %v2418_v55 }
 0x557   : > { %v2459_v30 = vadd.f32 %v2458_v57, %v2439_v24 }
 0x559   : > { %v2479_v42 = vadd.f32 %v2478_v38, %v2459_v30  ;;  %v2558_v36 = vpop.f32.mrf.mxu1 }
 0x55e   : > { %v2578_v31 = vpop.f32.mrf.mxu0 }
 0x55f   : > { %v2579_v44 = vadd.f32 %v2578_v31, %v2558_v36 }
 0x563   : > { %v2498_v47 = vpop.f32.mrf.mxu2 }
 0x564   : > { %v2499_v15 = vadd.f32 %v2498_v47, %v2479_v42  ;;  %v2518_v43 = vpop.f32.mrf.mxu3 }
 0x566   : > { %v2519_v9 = vadd.f32 %v2518_v43, %v2499_v15 }
 0x568   : > { %v2539_v51 = vadd.f32 %v2538_v63, %v2519_v9 }
 0x56a   : > { %2683 = vrot.lane.b32.xlu2 %v2539_v51, %s11155_s4 }
 0x572   : > { %5958 = vrot.lane.b32.xlu2 %v5967_v48, %s11331_s17 }
 0x573   : > { %v2638_v3 = vpop.f32.mrf.mxu1 }
 0x577   : > { %v2598_v25 = vpop.f32.mrf.mxu2  ;;  %v2618_v22 = vpop.f32.mrf.mxu3 }
 0x578   : > { %v2599_v16 = vadd.f32 %v2598_v25, %v2579_v44 }
 0x579   : > { %v5954_v50 = vpop.permute.xlu1 %5953 }
 0x57a   : > { %v2619_v41 = vadd.f32 %v2618_v22, %v2599_v16  ;;  %5973 = vrot.lane.b32.xlu2 %v5952_v27, %s11332_s27  ;;  %v5956_v48 = vunpack.i.h.bf16 %v5954_v50  ;;  %v8764_v7 = vunpack.i.l.bf16 %v5954_v50  ;;  %s11357_s27 = smov 29  }
 0x57c   : > { %v2639_v18 = vadd.f32 %v2638_v3, %v2619_v41  ;;  %11333 = vst [vmem:[#allocation25_spill] sm:$0xff] %v8764_v7  ;;  %v8773_v30 = vsel %vm11335_vm10, %v8764_v7, %v5956_v48  ;;  %vm11350_vm10 = vmmov %vm11349_vm14 }
 0x57d   : > { %11336 = vst [vmem:[#allocation18_spill] sm:$0xff] %v8773_v30 }
 0x57f   : > { %v2658_v39 = vpop.f32.mrf.mxu0  ;;  %v2678_v46 = vpop.f32.mrf.mxu2 }
 0x580   : > { %v2659_v49 = vadd.f32 %v2658_v39, %v2639_v18 }
 0x581   : > { %v5969_v42 = vpop.permute.xlu1 %5968 }
 0x582   : > { %v2679_v11 = vadd.f32 %v2678_v46, %v2659_v49  ;;  %v5971_v15 = vunpack.i.h.bf16 %v5969_v42  ;;  %v8793_v44 = vunpack.i.l.bf16 %v5969_v42 }
 0x584   : > { %2685 = vrot.lane.b32.xlu0 %v2679_v11, %s11155_s4  ;;  %11339 = vst [vmem:[#allocation15_spill] sm:$0xff] %v8793_v44  ;;  %v8797_v22 = vsel %vm2712_vm15, %v8793_v44, %v5971_v15  ;;  %v441_v15 = vld [vmem:[%s11347_s6] sm:$0xff]  ;;  %vm11354_vm15 = vmmov %vm11350_vm10 }
 0x585   : > { %11340 = vst [vmem:[#allocation12_spill] sm:$0xff] %v8797_v22 }
 0x58c   : > { %5963 = vrot.lane.b32.xlu0 %v5952_v27, %s6752_s14 }
 0x5c4   : > { %v2684_v60 = vpop.permute.xlu2 %2683 }
 0x5c5   : > { %v8769_v57 = vsel %vm2346_vm8, 0.0, %v2684_v60 }
 0x5c6   : > { %v2743_v9 = vmul.f32 %v8764_v7, %v8769_v57  ;;  %v2716_v49 = vmul.f32 %v8793_v44, %v8769_v57 }
 0x5cc   : > { %v5959_v33 = vpop.permute.xlu2 %5958 }
 0x5cd   : > { %v5961_v55 = vunpack.i.h.bf16 %v5959_v33  ;;  %v8766_v24 = vunpack.i.l.bf16 %v5959_v33 }
 0x5cf   : > { %11334 = vst [vmem:[#allocation19_spill] sm:$0xff] %v8766_v24  ;;  %v8777_v27 = vsel %vm11337_vm12, %v8766_v24, %v5961_v55  ;;  %v2734_v36 = vmul.f32 %v8766_v24, %v8769_v57  ;;  %vm11353_vm12 = vmmov %vm11348_vm11 }
 0x5d0   : > { %11338 = vst [vmem:[#allocation14_spill] sm:$0xff] %v8777_v27 }
 0x5d4   : > { %v5974_v46 = vpop.permute.xlu2 %5973 }
 0x5d5   : > { %v5976_v11 = vunpack.i.h.bf16 %v5974_v46  ;;  %v8815_v48 = vunpack.i.l.bf16 %v5974_v46 }
 0x5d7   : > { %11344 = vst [vmem:[#allocation43_spill] sm:$0xff] %v8815_v48  ;;  %v8820_v42 = vsel %vm11345_vm0, %v8815_v48, %v5976_v11  ;;  %vm11355_vm0 = vmmov %vm11350_vm10 }
 0x5d8   : > { %11346 = vst [vmem:[#allocation44_spill] sm:$0xff] %v8820_v42 }
 0x5f6   : > { %v2686_v38 = vpop.permute.xlu0 %2685 }
 0x5f7   : > { %v2687_v47 = vsel %vm2346_vm8, %v2684_v60, %v2686_v38 }
 0x5f8   : > { %v8781_v43 = vsel %vm11207_vm9, %v2687_v47, 0.0 }
 0x5f9   : > { %v5977_v63 = vpack.i.bf16 %v8781_v43, %v8769_v57  ;;  %v2744_v51 = vmul.f32 %v8773_v30, %v8781_v43  ;;  %v2735_v31 = vmul.f32 %v8777_v27, %v8781_v43  ;;  %v2717_v39 = vmul.f32 %v8797_v22, %v8781_v43 }
 0x5fa   : > { %v2705_v47 = vmul.f32 %v8820_v42, %v8781_v43 }
 0x5fb   : > { %5978 = vrot.lane.b32.xlu1 %v5977_v63, %s11282_s16  ;;  %v5987_v25 = vpack.i.bf16 %v2744_v51, %v2743_v9  ;;  %v5992_v16 = vpack.i.bf16 %v2735_v31, %v2734_v36  ;;  %v6002_v55 = vpack.i.bf16 %v2717_v39, %v2716_v49  ;;  %v2704_v9 = vmul.f32 %v8815_v48, %v8769_v57 }
 0x5fd   : > { %5988 = vrot.lane.b32.xlu0 %v5987_v25, %s11341_s25  ;;  %5993 = vrot.lane.b32.xlu2 %v5992_v16, %s11286_s30  ;;  %v6007_v51 = vpack.i.bf16 %v2705_v47, %v2704_v9 }
 0x5fe   : > { %v5964_v41 = vpop.permute.xlu0 %5963 }
 0x5ff   : > { %v5966_v3 = vunpack.i.h.bf16 %v5964_v41  ;;  %v8801_v18 = vunpack.i.l.bf16 %v5964_v41 }
 0x601   : > { %11342 = vst [vmem:[#allocation13_spill] sm:$0xff] %v8801_v18  ;;  %v8809_v60 = vsel %vm2397_vm13, %v8801_v18, %v5966_v3  ;;  %v2725_v50 = vmul.f32 %v8801_v18, %v8769_v57 }
 0x602   : > { %11343 = vst [vmem:[#allocation42_spill] sm:$0xff] %v8809_v60  ;;  %v2726_v33 = vmul.f32 %v8809_v60, %v8781_v43 }
 0x603   : > { %5983 = vrot.lane.b32.xlu1 %v5977_v63, %s11153_s19 }
 0x604   : > { %v5997_v38 = vpack.i.bf16 %v2726_v33, %v2725_v50 }
 0x605   : > { %6003 = vrot.lane.b32.xlu2 %v6002_v55, %s11157_s15 }
 0x606   : > { %5998 = vrot.lane.b32.xlu0 %v5997_v38, %s11151_s21 }
 0x60b   : > { %6013 = vrot.lane.b32.xlu1 %v5977_v63, %s11284_s20 }
 0x60d   : > { %2818 = vperm.xlu2 %5805, %v441_v15  }
 0x60e   : > { %6008 = vrot.lane.b32.xlu0 %v6007_v51, %s11287_s22 }
 0x657   : > { %v5994_v31 = vpop.permute.xlu2 %5993 }
 0x658   : > { %v5996_v46 = vunpack.i.h.bf16 %v5994_v31  ;;  %v5995_v49 = vunpack.i.l.bf16 %v5994_v31 }
 0x65a   : > { %v2797_v33 = vsel %vm1404_vm3, %v5995_v49, %v5996_v46 }
 0x65f   : > { %v6004_v55 = vpop.permute.xlu2 %6003 }
 0x660   : > { %v6005_v31 = vunpack.i.l.bf16 %v6004_v55 }
 0x66d   : > { %v5979_v36 = vpop.permute.xlu1 %5978 }
 0x66e   : > { %v5981_v16 = vunpack.i.h.bf16 %v5979_v36  ;;  %v5980_v41 = vunpack.i.l.bf16 %v5979_v36  ;;  %v6006_v36 = vunpack.i.h.bf16 %v6004_v55  ;;  %v2694_v55 = vmul.f32 %v8756_v10, %v8781_v43 }
 0x66f   : > { %v5989_v25 = vpop.permute.xlu0 %5988 }
 0x670   : > { %v5991_v3 = vunpack.i.h.bf16 %v5989_v25  ;;  %v5990_v39 = vunpack.i.l.bf16 %v5989_v25  ;;  %v2804_v63 = vsel %vm1439_vm4, %v5980_v41, %v5981_v16 }
 0x672   : > { %2851 = vmatpush.msra.mxu3 %v5991_v3  ;;  %v2813_v11 = vsel %vm1481_vm7, %v5990_v39, %v5991_v3  ;;  %v2770_v3 = vsel %vm11204_vm6, %v6005_v31, %v6006_v36 }
 0x673   : > { %2831 = vmatpush.msrb.mxu2 %v2813_v11 }
 0x674   : > { %2852 = vmatpush.msra.mxu3 %v5981_v16 }
 0x675   : > { %v5984_v50 = vpop.permute.xlu1 %5983  ;;  %2832 = vmatpush.msrb.mxu2 %v2804_v63 }
 0x676   : > { %2853 = vmatpush.msra.mxu3 %v5996_v46  ;;  %v5986_v47 = vunpack.i.h.bf16 %v5984_v50  ;;  %v5985_v15 = vunpack.i.l.bf16 %v5984_v50 }
 0x677   : > { %2833 = vmatpush.msrb.mxu2 %v2797_v33 }
 0x678   : > { %v5999_v38 = vpop.permute.xlu0 %5998  ;;  %v2778_v16 = vsel %vm11205_vm5, %v5985_v15, %v5986_v47  ;;  %v8850_v15 = vpop.permute.xlu2 %2818 }
 0x679   : > { %v6001_v9 = vunpack.i.h.bf16 %v5999_v38  ;;  %v6000_v51 = vunpack.i.l.bf16 %v5999_v38  ;;  %v440_v38 = vld [vmem:[%s11029_s5] sm:$0xff]  ;;  %11351 = vst [vmem:[#allocation45_spill] sm:$0xff] %v8850_v15 }
 0x67b   : > { %2854 = vmatpush.msra.mxu3 %v6001_v9  ;;  %v2788_v25 = vsel %vm11206_vm1, %v6000_v51, %v6001_v9 }
 0x67c   : > { %2834 = vmatpush.msrb.mxu2 %v2788_v25 }
 0x67d   : > { %2855 = vmatpush.msra.mxu3 %v5986_v47  ;;  %v6014_v41 = vpop.permute.xlu1 %6013  ;;  %v2693_v47 = vmul.f32 %v8753_v58, %v8769_v57 }
 0x67e   : > { %2835 = vmatpush.msrb.mxu2 %v2778_v16  ;;  %v6016_v46 = vunpack.i.h.bf16 %v6014_v41  ;;  %v6015_v49 = vunpack.i.l.bf16 %v6014_v41 }
 0x67f   : > { %2856 = vmatpush.msra.mxu3 %v6006_v36 }
 0x680   : > { %v6009_v39 = vpop.permute.xlu0 %6008  ;;  %2836 = vmatpush.msrb.mxu2 %v2770_v3  ;;  %v2751_v33 = vsel %vm11348_vm11, %v6015_v49, %v6016_v46  ;;  %vm11358_vm11 = vcmask 1043456  }
 0x681   : > { %v6011_v11 = vunpack.i.h.bf16 %v6009_v39  ;;  %v6010_v63 = vunpack.i.l.bf16 %v6009_v39 }
 0x683   : > { %2857 = vmatpush.msra.mxu3 %v6011_v11  ;;  %v2760_v50 = vsel %vm1362_vm2, %v6010_v63, %v6011_v11 }
 0x684   : > { %2837 = vmatpush.msrb.mxu2 %v2760_v50 }
 0x685   : > { %2858 = vmatpush.msra.mxu3 %v6016_v46 }
 0x686   : > { %2838 = vmatpush.msrb.mxu2 %v2751_v33 }
 0x687   : > { %2859 = vmatpush.msra.mxu3 %v2694_v55 }
 0x688   : > { %2839 = vmatpush.msrb.mxu2 %v2693_v47  ;;  %5443 = vmatmul.msk.f32.vlgmr.msra.gmra.mxu3 %vm11349_vm14, %v440_v38  ;;  %vm11203_vm14 = vcmask 547840  }
 0x689   : > { %5442 = vmatmul.msk.f32.vlgmr.msrb.gmra.mxu2 %vm11350_vm10, %v440_v38  ;;  %vm11359_vm10 = vmmov %vm11353_vm12 }
 0x70b   : > { %v2861_v9 = vpop.f32.mrf.mxu3 }
 0x70c   : > { %v2862_v51 = vadd.f32 %v2861_v9, %v8850_v15  ;;  %v2841_v43 = vpop.f32.mrf.mxu2 }
 0x70d   : > { %v2842_v36 = vadd.f32 %v2841_v43, %v8850_v15 }
 0x70e   : > { %v2865_v31 = vmax.f32 %v2862_v51, 0.0 }
 0x70f   : > { %v2864_v25 = vmax.f32 %v2842_v36, 0.0 }
 0x710   : > { %2870 = vrot.lane.b32.xlu1 %v2865_v31, %s11155_s4 }
 0x711   : > { %2868 = vrot.lane.b32.xlu0 %v2864_v25, %s11155_s4 }
 0x782   : > { %v2871_v57 = vpop.permute.xlu1 %2870 }
 0x783   : > { %v2869_v16 = vpop.permute.xlu0 %2868 }
 0x784   : > { %v2872_v41 = vsel %vm2346_vm8, %v2869_v16, %v2871_v57  ;;  %v8858_v3 = vsel %vm2346_vm8, 0.0, %v2869_v16 }
 0x785   : > { %v8861_v39 = vsel %vm11207_vm9, %v2872_v41, 0.0  ;;  %v2887_v46 = vmul.f32 %v8764_v7, %v8858_v3  ;;  %v2885_v49 = vmul.f32 %v8766_v24, %v8858_v3  ;;  %v2883_v38 = vmul.f32 %v8801_v18, %v8858_v3 }
 0x786   : > { %v6017_v11 = vpack.i.bf16 %v8861_v39, %v8858_v3  ;;  %v2888_v63 = vmul.f32 %v8861_v39, %v8773_v30  ;;  %v2886_v50 = vmul.f32 %v8861_v39, %v8777_v27  ;;  %v2884_v47 = vmul.f32 %v8861_v39, %v8809_v60 }
 0x787   : > { %v2881_v9 = vmul.f32 %v8793_v44, %v8858_v3  ;;  %v2882_v51 = vmul.f32 %v8861_v39, %v8797_v22  ;;  %v2879_v31 = vmul.f32 %v8815_v48, %v8858_v3  ;;  %v2880_v25 = vmul.f32 %v8861_v39, %v8820_v42  ;;  %v5500_v22 = vld [vmem:[%s11035_s11 + $0x178] sm:$0xff] }
 0x788   : > { %6018 = vrot.lane.b32.xlu0 %v6017_v11, %s11282_s16  ;;  %v6027_v33 = vpack.i.bf16 %v2888_v63, %v2887_v46  ;;  %v6032_v55 = vpack.i.bf16 %v2886_v50, %v2885_v49  ;;  %v6037_v43 = vpack.i.bf16 %v2884_v47, %v2883_v38  ;;  %v443_v63 = vld [vmem:[%s11352_s8] sm:$0xff] }
 0x789   : > { %v6042_v36 = vpack.i.bf16 %v2882_v51, %v2881_v9  ;;  %v6047_v57 = vpack.i.bf16 %v2880_v25, %v2879_v31 }
 0x78a   : > { %6028 = vrot.lane.b32.xlu2 %v6027_v33, %s11341_s25  ;;  %6033 = vrot.lane.b32.xlu1 %v6032_v55, %s11286_s30 }
 0x790   : > { %6023 = vrot.lane.b32.xlu0 %v6017_v11, %s11153_s19  ;;  %s429_s19 = sand.u32 1, %s6724_s26  }
 0x792   : > { %6038 = vrot.lane.b32.xlu2 %v6037_v43, %s11151_s21  ;;  %6043 = vrot.lane.b32.xlu1 %v6042_v36, %s11157_s15  ;;  %s11360_s15 = smov 114   ;;  %s6690_s21 = scalar_lea.hbm %s11037_s13, 4 }
 0x798   : > { %6053 = vrot.lane.b32.xlu0 %v6017_v11, %s11284_s20 }
 0x79a   : > { %6048 = vrot.lane.b32.xlu2 %v6047_v57, %s11287_s22  ;;  %2959 = vperm.xlu1 %6057, %v443_v63  }
 0x7e4   : > { %v6029_v16 = vpop.permute.xlu2 %6028 }
 0x7e5   : > { %v6031_v41 = vunpack.i.h.bf16 %v6029_v16  ;;  %v6030_v46 = vunpack.i.l.bf16 %v6029_v16 }
 0x7e7   : > { %2992 = vmatpush.msra.mxu0 %v6031_v41  ;;  %v2954_v49 = vsel %vm1481_vm7, %v6030_v46, %v6031_v41 }
 0x7e8   : > { %2972 = vmatpush.msrb.mxu1 %v2954_v49 }
 0x7ec   : > { %v6039_v50 = vpop.permute.xlu2 %6038 }
 0x7ed   : > { %v6041_v11 = vunpack.i.h.bf16 %v6039_v50  ;;  %v6040_v9 = vunpack.i.l.bf16 %v6039_v50 }
 0x7ef   : > { %v2929_v57 = vsel %vm11206_vm1, %v6040_v9, %v6041_v11  ;;  %vm11468_vm1 = vcmask 1046528  }
 0x7f4   : > { %v6049_v25 = vpop.permute.xlu2 %6048 }
 0x7f5   : > { %v6051_v49 = vunpack.i.h.bf16 %v6049_v25  ;;  %v6050_v50 = vunpack.i.l.bf16 %v6049_v25  ;;  %v442_v25 = vld [vmem:[%s11031_s7] sm:$0xff] }
 0x7fa   : > { %v6019_v33 = vpop.permute.xlu0 %6018 }
 0x7fb   : > { %v6021_v55 = vunpack.i.h.bf16 %v6019_v33  ;;  %v6020_v38 = vunpack.i.l.bf16 %v6019_v33 }
 0x7fc   : > { %v6034_v47 = vpop.permute.xlu1 %6033 }
 0x7fd   : > { %v6036_v51 = vunpack.i.h.bf16 %v6034_v47  ;;  %v6035_v43 = vunpack.i.l.bf16 %v6034_v47  ;;  %2993 = vmatpush.msra.mxu0 %v6021_v55  ;;  %v2945_v36 = vsel %vm1439_vm4, %v6020_v38, %v6021_v55 }
 0x7fe   : > { %2973 = vmatpush.msrb.mxu1 %v2945_v36 }
 0x7ff   : > { %2994 = vmatpush.msra.mxu0 %v6036_v51  ;;  %v2938_v31 = vsel %vm1404_vm3, %v6035_v43, %v6036_v51 }
 0x800   : > { %2974 = vmatpush.msrb.mxu1 %v2938_v31  ;;  %v2878_v31 = vmul.f32 %v8756_v10, %v8861_v39 }
 0x801   : > { %2995 = vmatpush.msra.mxu0 %v6041_v11  ;;  %v2904_v11 = vsel %vm1362_vm2, %v6050_v50, %v6051_v49 }
 0x802   : > { %v6024_v16 = vpop.permute.xlu0 %6023  ;;  %2975 = vmatpush.msrb.mxu1 %v2929_v57  ;;  %v2877_v57 = vmul.f32 %v8753_v58, %v8858_v3 }
 0x803   : > { %v6026_v41 = vunpack.i.h.bf16 %v6024_v16  ;;  %v6025_v46 = vunpack.i.l.bf16 %v6024_v16 }
 0x804   : > { %v6044_v63 = vpop.permute.xlu1 %6043 }
 0x805   : > { %v6046_v33 = vunpack.i.h.bf16 %v6044_v63  ;;  %v6045_v47 = vunpack.i.l.bf16 %v6044_v63  ;;  %2996 = vmatpush.msra.mxu0 %v6026_v41  ;;  %v2920_v55 = vsel %vm11205_vm5, %v6025_v46, %v6026_v41 }
 0x806   : > { %2976 = vmatpush.msrb.mxu1 %v2920_v55 }
 0x807   : > { %2997 = vmatpush.msra.mxu0 %v6046_v33  ;;  %v2913_v38 = vsel %vm11204_vm6, %v6045_v47, %v6046_v33  ;;  %v5513_v33 = vld [vmem:[%s6889_s24 + $0x7] sm:$0x7f] }
 0x808   : > { %2977 = vmatpush.msrb.mxu1 %v2913_v38  ;;  %v3363_v3 = vperm.slane %v5513_v33, 0  ;;  %v3366_v47 = vperm.slane %v5513_v33, 3  ;;  %v3369_v55 = vperm.slane %v5513_v33, 6  ;;  %v664_v38 = vld [vmem:[%s11034_s10 + $0xc0] sm:$0xf] }
 0x809   : > { %2998 = vmatpush.msra.mxu0 %v6051_v49  ;;  %5446 = vmatpush.msk.msrb.mxu3 %vm11358_vm11, %v664_v38  ;;  %v3364_v38 = vperm.slane %v5513_v33, 1 }
 0x80a   : > { %v6054_v9 = vpop.permute.xlu0 %6053  ;;  %2978 = vmatpush.msrb.mxu1 %v2904_v11  ;;  %v663_v11 = vld [vmem:[%s11034_s10 + $0xb8] sm:$0xff] }
 0x80b   : > { %v6056_v51 = vunpack.i.h.bf16 %v6054_v9  ;;  %v6055_v43 = vunpack.i.l.bf16 %v6054_v9  ;;  %v655_v9 = vld [vmem:[%s11034_s10 + $0x78] sm:$0xff]  ;;  %3068 = vmatpush.msrb.mxu3 %v663_v11  ;;  %v3368_v11 = vperm.slane %v5513_v33, 5 }
 0x80c   : > { %v8913_v16 = vpop.permute.xlu1 %2959  ;;  %3040 = vmatpush.msra.mxu2 %v655_v9  ;;  %v3367_v9 = vperm.slane %v5513_v33, 4 }
 0x80d   : > { %2999 = vmatpush.msra.mxu0 %v6056_v51  ;;  %v2895_v36 = vsel %vm11353_vm12, %v6055_v43, %v6056_v51  ;;  %11356 = vst [vmem:[#allocation46_spill] sm:$0xff] %v8913_v16  ;;  %v662_v51 = vld [vmem:[%s11034_s10 + $0xb0] sm:$0xff]  ;;  %vm11202_vm12 = vcmask 441344  }
 0x80e   : > { %2979 = vmatpush.msrb.mxu1 %v2895_v36  ;;  %v654_v43 = vld [vmem:[%s11034_s10 + $0x70] sm:$0xff]  ;;  %v661_v36 = vld [vmem:[%s11034_s10 + $0xa8] sm:$0xff]  ;;  %3069 = vmatpush.msrb.mxu3 %v662_v51  ;;  %v652_v51 = vld [vmem:[%s11034_s10 + $0x60] sm:$0xff] }
 0x80f   : > { %3000 = vmatpush.msra.mxu0 %v2878_v31  ;;  %3041 = vmatpush.msra.mxu2 %v654_v43  ;;  %v660_v31 = vld [vmem:[%s11034_s10 + $0xa0] sm:$0xff]  ;;  %v651_v43 = vld [vmem:[%s11034_s10 + $0x58] sm:$0xff] }
 0x810   : > { %2980 = vmatpush.msrb.mxu1 %v2877_v57  ;;  %5445 = vmatmul.msk.f32.vlgmr.msra.gmra.mxu0 %vm11354_vm15, %v442_v25  ;;  %v658_v57 = vld [vmem:[%s11034_s10 + $0x90] sm:$0xff]  ;;  %vm11197_vm15 = vcmask 556032  }
 0x811   : > { %5444 = vmatmul.msk.f32.vlgmr.msrb.gmra.mxu1 %vm11355_vm0, %v442_v25  ;;  %3070 = vmatpush.msrb.mxu3 %v661_v36  ;;  %v659_v25 = vld [vmem:[%s11034_s10 + $0x98] sm:$0xff]  ;;  %v650_v36 = vld [vmem:[%s11034_s10 + $0x50] sm:$0xff]  ;;  %vm11361_vm0 = vcmask 236544  }
 0x812   : > { %vm11362_vm11 = vmmov %vm11361_vm0 }
 0x813   : > { %3071 = vmatpush.msrb.mxu3 %v660_v31  ;;  %v649_v31 = vld [vmem:[%s11034_s10 + $0x48] sm:$0xff] }
 0x815   : > { %3072 = vmatpush.msrb.mxu3 %v659_v25  ;;  %v648_v25 = vld [vmem:[%s11034_s10 + $0x40] sm:$0xff] }
 0x817   : > { %3073 = vmatpush.msrb.mxu3 %v658_v57  ;;  %v647_v57 = vld [vmem:[%s11034_s10 + $0x38] sm:$0xff] }
 0x88d   : > { %v3002_v41 = vpop.f32.mrf.mxu0 }
 0x88e   : > { %v3003_v39 = vadd.f32 %v3002_v41, %v8913_v16  ;;  %v2982_v46 = vpop.f32.mrf.mxu1 }
 0x88f   : > { %v2983_v49 = vadd.f32 %v2982_v46, %v8913_v16 }
 0x890   : > { %v3006_v63 = vmax.f32 %v3003_v39, 0.0 }
 0x891   : > { %v3005_v50 = vmax.f32 %v2983_v49, 0.0 }
 0x892   : > { %3011 = vrot.lane.b32.xlu0 %v3006_v63, %s11284_s20 }
 0x893   : > { %3009 = vrot.lane.b32.xlu2 %v3005_v50, %s11284_s20 }
 0x89a   : > { %3370 = vrot.lane.b32.xlu0 %v3363_v3, %s11357_s27 }
 0x8a2   : > { %3376 = vrot.lane.b32.xlu0 %v3366_v47, %s11357_s27 }
 0x8aa   : > { %3382 = vrot.lane.b32.xlu0 %v3369_v55, %s11357_s27  ;;  %v3365_v55 = vperm.slane %v5513_v33, 2  ;;  %v656_v33 = vld [vmem:[%s11034_s10 + $0x80] sm:$0xff] }
 0x8ed   : > { %v3010_v41 = vpop.permute.xlu2 %3009 }
 0x904   : > { %v3012_v39 = vpop.permute.xlu0 %3011 }
 0x905   : > { %v3013_v46 = vsel %vm11359_vm10, %v3010_v41, %v3012_v39  ;;  %v3017_v49 = vsel %vm11203_vm14, %v3012_v39, 0.0  ;;  %v646_v41 = vld [vmem:[%s11034_s10 + $0x30] sm:$0xff]  ;;  %v645_v39 = vld [vmem:[%s11034_s10 + $0x28] sm:$0xff]  ;;  %vm11363_vm10 = vmmov %vm11361_vm0  ;;  %vm11409_vm14 = vcmask 1041408  }
 0x906   : > { %v3018_v3 = vmax.f32 %v3005_v50, %v3013_v46  ;;  %v3019_v47 = vmax.f32 %v3006_v63, %v3017_v49  ;;  %v653_v63 = vld [vmem:[%s11034_s10 + $0x68] sm:$0xff]  ;;  %v644_v46 = vld [vmem:[%s11034_s10 + $0x20] sm:$0xff]  ;;  %v643_v49 = vld [vmem:[%s11034_s10 + $0x18] sm:$0xff] }
 0x907   : > { %v657_v50 = vld [vmem:[%s11034_s10 + $0x88] sm:$0xff]  ;;  %3042 = vmatpush.msra.mxu2 %v653_v63 }
 0x908   : > { %3024 = vrot.lane.b32.xlu2 %v3019_v47, %s11360_s15  ;;  %3022 = vrot.lane.b32.xlu1 %v3018_v3, %s11360_s15 }
 0x909   : > { %3074 = vmatpush.msrb.mxu3 %v657_v50  ;;  %3043 = vmatpush.msra.mxu2 %v652_v51 }
 0x90b   : > { %3075 = vmatpush.msrb.mxu3 %v656_v33  ;;  %3044 = vmatpush.msra.mxu2 %v651_v43 }
 0x90d   : > { %3045 = vmatpush.msra.mxu2 %v650_v36 }
 0x90f   : > { %3046 = vmatpush.msra.mxu2 %v649_v31 }
 0x910   : > { %3374 = vrot.lane.b32.xlu2 %v3365_v55, %s11357_s27  ;;  %3372 = vrot.lane.b32.xlu1 %v3364_v38, %s11357_s27  ;;  %v642_v55 = vld [vmem:[%s11034_s10 + $0x10] sm:$0xff]  ;;  %v641_v38 = vld [vmem:[%s11034_s10 + $0x8] sm:$0xff] }
 0x911   : > { %3047 = vmatpush.msra.mxu2 %v648_v25 }
 0x913   : > { %3048 = vmatpush.msra.mxu2 %v647_v57 }
 0x915   : > { %3049 = vmatpush.msra.mxu2 %v646_v41 }
 0x917   : > { %3050 = vmatpush.msra.mxu2 %v645_v39 }
 0x918   : > { %3380 = vrot.lane.b32.xlu2 %v3368_v11, %s11357_s27  ;;  %3378 = vrot.lane.b32.xlu1 %v3367_v9, %s11357_s27  ;;  %v640_v11 = vld [vmem:[%s11034_s10] sm:$0xff]  ;;  %v3371_v9 = vpop.permute.xlu0 %3370 }
 0x919   : > { %3051 = vmatpush.msra.mxu2 %v644_v46  ;;  %v9012_v43 = vsel %vm11361_vm0, 0.0, %v3371_v9 }
 0x91a   : > { %v3443_v31 = vrot.slane %v9012_v43, 7 }
 0x91b   : > { %3052 = vmatpush.msra.mxu2 %v643_v49 }
 0x91d   : > { %3053 = vmatpush.msra.mxu2 %v642_v55 }
 0x91f   : > { %3054 = vmatpush.msra.mxu2 %v641_v38 }
 0x920   : > { %v9009_v33 = vpop.permute.xlu0 %3376 }
 0x921   : > { %3055 = vmatpush.msra.mxu2 %v640_v11 }
 0x962   : > { %v3025_v63 = vpop.permute.xlu2 %3024 }
 0x963   : > { %v3030_v50 = vsel %vm11202_vm12, %v3025_v63, 0.0  ;;  %vm11399_vm12 = vcmask 572416  }
 0x964   : > { %v3032_v51 = vmax.f32 %v3019_v47, %v3030_v50 }
 0x966   : > { %5447 = vmatmul.msk.f32.vlgmr.msrb.gmra.mxu3 %vm11197_vm15, %v3032_v51  ;;  %vm11392_vm15 = vcmask 1044480  }
 0x96a   : > { %v3375_v36 = vpop.permute.xlu2 %3374 }
 0x96b   : > { %v9017_v25 = vsel %vm11362_vm11, %v3375_v36, %v9009_v33  ;;  %vm11366_vm11 = vmmov %vm11361_vm0 }
 0x96c   : > { %v3446_v57 = vrot.slane %v9017_v25, 7  ;;  %v3416_v16 = vmul.f32 %v9017_v25, %v7245_v28 }
 0x96e   : > { %v6063_v41 = vpack.i.bf16 %v3443_v31, %v3446_v57 }
 0x970   : > { %6064 = vrot.lane.b32.xlu2 %v6063_v41, %s11284_s20  ;;  %v3409_v41 = vmul.f32 %v9017_v25, %v11295_v4 }
 0x97a   : > { %v3023_v47 = vpop.permute.xlu1 %3022 }
 0x97b   : > { %v3026_v39 = vsel %vm11204_vm6, %v3023_v47, %v3025_v63  ;;  %vm11410_vm6 = vmmov %vm11409_vm14 }
 0x97c   : > { %v3031_v46 = vmax.f32 %v3018_v3, %v3026_v39 }
 0x97e   : > { %3056 = vmatmul.f32.vlgmr.msra.gmra.mxu2 %v3031_v46 }
 0x982   : > { %v3373_v49 = vpop.permute.xlu1 %3372 }
 0x983   : > { %v9023_v55 = vsel %vm11363_vm10, %v3371_v9, %v3373_v49  ;;  %v9026_v38 = vsel %vm11361_vm0, %v3373_v49, %v3375_v36  ;;  %v3406_v49 = vmul.f32 %v7105_v34, %v9012_v43  ;;  %vm11367_vm10 = vmmov %vm11361_vm0 }
 0x984   : > { %v3444_v11 = vrot.slane %v9023_v55, 7  ;;  %v3445_v50 = vrot.slane %v9026_v38, 7  ;;  %v3407_v51 = vmul.f32 %v9023_v55, %v7116_v32  ;;  %v3408_v31 = vmul.f32 %v9026_v38, %v11301_v26 }
 0x985   : > { %v3414_v3 = vmul.f32 %v9023_v55, %v7154_v62  ;;  %v3415_v9 = vmul.f32 %v9026_v38, %v11291_v14 }
 0x986   : > { %v6058_v63 = vpack.i.bf16 %v3445_v50, %v3444_v11  ;;  %v3485_v57 = vrot.slane %v3407_v51, 6  ;;  %v3486_v36 = vrot.slane %v3408_v31, 6  ;;  %v3487_v11 = vrot.slane %v3409_v41, 6 }
 0x987   : > { %v3526_v47 = vrot.slane %v3414_v3, 5  ;;  %v3527_v39 = vrot.slane %v3415_v9, 5  ;;  %v3413_v50 = vmul.f32 %v7143_v56, %v9012_v43  ;;  %v3484_v51 = vrot.slane %v3406_v49, 6 }
 0x988   : > { %6059 = vrot.lane.b32.xlu1 %v6058_v63, %s11284_s20  ;;  %v6068_v46 = vpack.i.bf16 %v3486_v36, %v3485_v57  ;;  %v3528_v31 = vrot.slane %v3416_v16, 5  ;;  %v3559_v3 = vrot.slane %v9012_v43, 4  ;;  %v3562_v9 = vrot.slane %v9017_v25, 4 }
 0x989   : > { %v6078_v15 = vpack.i.bf16 %v3527_v39, %v3526_v47  ;;  %v6073_v63 = vpack.i.bf16 %v3484_v51, %v3487_v11  ;;  %v3525_v57 = vrot.slane %v3413_v50, 5  ;;  %v3421_v47 = vmul.f32 %v9023_v55, %v7172_v21 }
 0x98a   : > { %6069 = vrot.lane.b32.xlu0 %v6068_v46, %s11287_s22  ;;  %v3422_v41 = vmul.f32 %v9026_v38, %v11289_v0  ;;  %v6093_v39 = vpack.i.bf16 %v3559_v3, %v3562_v9  ;;  %v3429_v16 = vmul.f32 %v9026_v38, %v7286_v2  ;;  %v3560_v46 = vrot.slane %v9023_v55, 4 }
 0x98b   : > { %6079 = vrot.lane.b32.xlu2 %v6078_v15, %s11286_s30  ;;  %v6083_v36 = vpack.i.bf16 %v3525_v57, %v3528_v31  ;;  %v3428_v15 = vmul.f32 %v9023_v55, %v7221_v37  ;;  %v3561_v49 = vrot.slane %v9026_v38, 4  ;;  %v3601_v11 = vrot.slane %v3421_v47, 3 }
 0x98c   : > { %v3602_v50 = vrot.slane %v3422_v41, 3  ;;  %v3643_v31 = vrot.slane %v3429_v16, 2  ;;  %v3423_v3 = vmul.f32 %v9017_v25, %v11300_v8  ;;  %v3420_v57 = vmul.f32 %v7159_v6, %v9012_v43 }
 0x98d   : > { %v3642_v51 = vrot.slane %v3428_v15, 2  ;;  %v3427_v41 = vmul.f32 %v7190_v61, %v9012_v43 }
 0x98e   : > { %v6098_v9 = vpack.i.bf16 %v3602_v50, %v3601_v11  ;;  %v3603_v47 = vrot.slane %v3423_v3, 3  ;;  %v3436_v11 = vmul.f32 %v9026_v38, %v7261_v5  ;;  %v3379_v50 = vpop.permute.xlu1 %3378 }
 0x98f   : > { %v6108_v58 = vpack.i.bf16 %v3643_v31, %v3642_v51  ;;  %v3676_v51 = vrot.slane %v9023_v55, 1  ;;  %v3677_v31 = vrot.slane %v9026_v38, 1  ;;  %v9086_v3 = vsel %vm11366_vm11, %v9009_v33, %v3379_v50 }
 0x990   : > { %6074 = vrot.lane.b32.xlu1 %v6073_v63, %s11287_s22  ;;  %v6088_v63 = vpack.i.bf16 %v3561_v49, %v3560_v46  ;;  %v3641_v46 = vrot.slane %v3427_v41, 2  ;;  %v3675_v33 = vrot.slane %v9012_v43, 1  ;;  %vm11368_vm11 = vcmask 367616  }
 0x992   : > { %6084 = vrot.lane.b32.xlu0 %v6083_v36, %s11286_s30  ;;  %v3430_v36 = vmul.f32 %v9017_v25, %v11294_v40 }
 0x993   : > { %6094 = vrot.lane.b32.xlu2 %v6093_v39, %s11282_s16  ;;  %v3600_v39 = vrot.slane %v3420_v57, 3  ;;  %v3437_v57 = vmul.f32 %v9017_v25, %v7133_v45 }
 0x994   : > { %v3644_v15 = vrot.slane %v3430_v36, 2  ;;  %v6123_v36 = vpack.i.bf16 %v3677_v31, %v3676_v51  ;;  %v3434_v51 = vmul.f32 %v7175_v13, %v9012_v43 }
 0x995   : > { %v6103_v16 = vpack.i.bf16 %v3600_v39, %v3603_v47  ;;  %v3447_v47 = vrot.slane %v9086_v3, 7  ;;  %v3678_v39 = vrot.slane %v9017_v25, 1 }
 0x996   : > { %v6113_v49 = vpack.i.bf16 %v3641_v46, %v3644_v15 }
 0x998   : > { %6089 = vrot.lane.b32.xlu1 %v6088_v63, %s11282_s16  ;;  %v3435_v63 = vmul.f32 %v9023_v55, %v7200_v29 }
 0x99a   : > { %6099 = vrot.lane.b32.xlu0 %v6098_v9, %s11341_s25 }
 0x99b   : > { %6109 = vrot.lane.b32.xlu2 %v6108_v58, %s11364_s2  ;;  %v3381_v58 = vpop.permute.xlu2 %3380 }
 0x99c   : > { %v9089_v9 = vsel %vm11367_vm10, %v3379_v50, %v3381_v58  ;;  %vm11377_vm10 = vcmask 1040384  }
 0x99d   : > { %v3448_v41 = vrot.slane %v9089_v9, 7  ;;  %v3411_v46 = vmul.f32 %v9089_v9, %v11298_v52  ;;  %v3418_v50 = vmul.f32 %v9089_v9, %v11290_v23 }
 0x99f   : > { %v6118_v15 = vpack.i.bf16 %v3448_v41, %v3447_v47  ;;  %v3530_v47 = vrot.slane %v3418_v50, 5  ;;  %v3563_v41 = vrot.slane %v9086_v3, 4 }
 0x9a0   : > { %6104 = vrot.lane.b32.xlu1 %v6103_v16, %s11341_s25  ;;  %v3410_v16 = vmul.f32 %v9086_v3, %v11293_v20 }
 0x9a2   : > { %6114 = vrot.lane.b32.xlu0 %v6113_v49, %s11364_s2  ;;  %v6128_v49 = vpack.i.bf16 %v3675_v33, %v3678_v39  ;;  %v3488_v31 = vrot.slane %v3410_v16, 6  ;;  %v3564_v33 = vrot.slane %v9089_v9, 4 }
 0x9a3   : > { %3720 = vrot.lane.b32.xlu2 %v3436_v11, %s11365_s23  ;;  %v3417_v11 = vmul.f32 %v9086_v3, %v7344_v12 }
 0x9a4   : > { %v6143_v16 = vpack.i.bf16 %v3564_v33, %v3563_v41  ;;  %v11374_v41 = vld [vmem:[#allocation33_spill] sm:$0xff] }
 0x9a5   : > { %v3432_v33 = vmul.f32 %v9089_v9, %v11374_v41 }
 0x9a7   : > { %v3646_v44 = vrot.slane %v3432_v33, 2  ;;  %v5465_v33 = vld [vmem:[%s11035_s11 + $0xa0] sm:$0x1] }
 0x9a8   : > { %3718 = vrot.lane.b32.xlu1 %v3435_v63, %s11365_s23  ;;  %v3489_v63 = vrot.slane %v3411_v46, 6  ;;  %v11369_v46 = vld [vmem:[#allocation39_spill] sm:$0xff] }
 0x9aa   : > { %3722 = vrot.lane.b32.xlu0 %v3437_v57, %s11365_s23  ;;  %v3383_v57 = vpop.permute.xlu0 %3382 }
 0x9ab   : > { %6124 = vrot.lane.b32.xlu2 %v6123_v36, %s11303_s0  ;;  %v3529_v36 = vrot.slane %v3417_v11, 5  ;;  %v3389_v39 = vsel %vm11361_vm0, %v3381_v58, %v3383_v57  ;;  %v11370_v11 = vld [vmem:[#allocation36_spill] sm:$0xff]  ;;  %vm11378_vm0 = vmmov %vm11377_vm10 }
 0x9ac   : > { %v9118_v48 = vsel %vm11368_vm11, %v3389_v39, 0.0  ;;  %vm11379_vm11 = vmmov %vm11378_vm0 }
 0x9ad   : > { %v6138_v10 = vpack.i.bf16 %v3530_v47, %v3529_v36  ;;  %v3419_v50 = vmul.f32 %v9118_v48, %v11370_v11  ;;  %v3449_v58 = vrot.slane %v9118_v48, 7  ;;  %5466 = vmatpush.msk.msra.mxu3 %vm11379_vm11, %v5465_v33  ;;  %v5454_v33 = vld [vmem:[%s11035_s11 + $0x58] sm:$0xff]  ;;  %vm11384_vm11 = vmmov %vm11378_vm0 }
 0x9af   : > { %v3531_v39 = vrot.slane %v3419_v50, 5  ;;  %v3679_v50 = vrot.slane %v9086_v3, 1 }
 0x9b0   : > { %6119 = vrot.lane.b32.xlu1 %v6118_v15, %s11284_s20  ;;  %v6133_v15 = vpack.i.bf16 %v3489_v63, %v3488_v31  ;;  %v11372_v63 = vld [vmem:[#allocation30_spill] sm:$0xff] }
 0x9b1   : > { %v3425_v57 = vmul.f32 %v9089_v9, %v11372_v63 }
 0x9b2   : > { %6129 = vrot.lane.b32.xlu0 %v6128_v49, %s11303_s0  ;;  %v3412_v49 = vmul.f32 %v9118_v48, %v11369_v46  ;;  %v5508_v46 = vld [vmem:[%s11035_s11 + $0x1a8] sm:$0xff] }
 0x9b3   : > { %3716 = vrot.lane.b32.xlu2 %v3434_v51, %s11365_s23  ;;  %v11371_v51 = vld [vmem:[#allocation27_spill] sm:$0xff] }
 0x9b4   : > { %v3424_v31 = vmul.f32 %v9086_v3, %v11371_v51  ;;  %v3490_v36 = vrot.slane %v3412_v49, 6  ;;  %v3565_v49 = vrot.slane %v9118_v48, 4 }
 0x9b8   : > { %6134 = vrot.lane.b32.xlu1 %v6133_v15, %s11287_s22  ;;  %v3604_v15 = vrot.slane %v3424_v31, 3  ;;  %v11375_v31 = vld [vmem:[#allocation37_spill] sm:$0xff] }
 0x9ba   : > { %6139 = vrot.lane.b32.xlu0 %v6138_v10, %s11286_s30  ;;  %v11373_v10 = vld [vmem:[#allocation32_spill] sm:$0xff] }
 0x9bb   : > { %6144 = vrot.lane.b32.xlu2 %v6143_v16, %s11282_s16  ;;  %v3431_v47 = vmul.f32 %v9086_v3, %v11373_v10  ;;  %v3605_v16 = vrot.slane %v3425_v57, 3  ;;  %v3433_v57 = vmul.f32 %v9118_v48, %v11375_v31 }
 0x9bd   : > { %v3645_v42 = vrot.slane %v3431_v47, 2  ;;  %v6148_v18 = vpack.i.bf16 %v3605_v16, %v3604_v15  ;;  %v3084_v16 = vld [vmem:[%s11035_s11 + $0x20] sm:$0xff] }
 0x9c0   : > { %3462 = vrot.lane.b32.xlu1 %v3449_v58, %s11284_s20  ;;  %v6153_v58 = vpack.i.bf16 %v3646_v44, %v3645_v42  ;;  %v3086_v44 = vld [vmem:[%s11035_s11 + $0x30] sm:$0x1]  ;;  %v5456_v42 = vld [vmem:[%s11035_s11 + $0x68] sm:$0x1] }
 0x9c1   : > { %5448 = vmatpush.msk.msra.mxu1 %vm11377_vm10, %v3086_v44  ;;  %5457 = vmatpush.msk.msrb.mxu0 %vm11378_vm0, %v5456_v42  ;;  %v3081_v42 = vld [vmem:[%s11035_s11 + $0x8] sm:$0xff]  ;;  %vm11382_vm10 = vmmov %vm11378_vm0 }
 0x9c2   : > { %3503 = vrot.lane.b32.xlu0 %v3490_v36, %s11287_s22  ;;  %v3680_v36 = vrot.slane %v9089_v9, 1 }
 0x9c3   : > { %3544 = vrot.lane.b32.xlu2 %v3531_v39, %s11286_s30  ;;  %v11376_v39 = vld [vmem:[#allocation21_spill] sm:$0xff] }
 0x9c4   : > { %v3438_v47 = vmul.f32 %v9086_v3, %v11376_v39  ;;  %v6158_v15 = vpack.i.bf16 %v3680_v36, %v3679_v50  ;;  %v3082_v36 = vld [vmem:[%s11035_s11 + $0x10] sm:$0xff] }
 0x9c8   : > { %6149 = vrot.lane.b32.xlu1 %v6148_v18, %s11341_s25  ;;  %v3085_v18 = vld [vmem:[%s11035_s11 + $0x28] sm:$0xff] }
 0x9c9   : > { %3104 = vmatpush.msra.mxu1 %v3085_v18  ;;  %v5464_v18 = vld [vmem:[%s11035_s11 + $0x98] sm:$0xff] }
 0x9ca   : > { %6154 = vrot.lane.b32.xlu0 %v6153_v58, %s11364_s2  ;;  %v3647_v58 = vrot.slane %v3433_v57, 2  ;;  %v5455_v57 = vld [vmem:[%s11035_s11 + $0x60] sm:$0xff]  ;;  %3174 = vmatpush.msra.mxu3 %v5464_v18  ;;  %v5474_v18 = vld [vmem:[%s11035_s11 + $0xd8] sm:$0x1] }
 0x9cb   : > { %3578 = vrot.lane.b32.xlu2 %v3565_v49, %s11282_s16  ;;  %v11380_v49 = vld [vmem:[#allocation38_spill] sm:$0xff]  ;;  %3105 = vmatpush.msra.mxu1 %v3084_v16  ;;  %v11381_v16 = vld [vmem:[#allocation29_spill] sm:$0xff] }
 0x9cc   : > { %v3426_v44 = vmul.f32 %v9118_v48, %v11380_v49  ;;  %3139 = vmatpush.msrb.mxu0 %v5455_v57  ;;  %v5462_v57 = vld [vmem:[%s11035_s11 + $0x88] sm:$0xff] }
 0x9ce   : > { %v3606_v50 = vrot.slane %v3426_v44, 3  ;;  %v3080_v44 = vld [vmem:[%s11035_s11] sm:$0xff]  ;;  %3140 = vmatpush.msrb.mxu0 %v5454_v33 }
 0x9cf   : > { %v11383_v33 = vld [vmem:[#allocation40_spill] sm:$0xff] }
 0x9d0   : > { %3724 = vrot.lane.b32.xlu1 %v3438_v47, %s11365_s23  ;;  %v3083_v47 = vld [vmem:[%s11035_s11 + $0x18] sm:$0xff] }
 0x9d1   : > { %3106 = vmatpush.msra.mxu1 %v3083_v47  ;;  %v3681_v47 = vrot.slane %v9118_v48, 1 }
 0x9d2   : > { %6159 = vrot.lane.b32.xlu0 %v6158_v15, %s11303_s0  ;;  %v5463_v15 = vld [vmem:[%s11035_s11 + $0x90] sm:$0xff] }
 0x9d3   : > { %3660 = vrot.lane.b32.xlu2 %v3647_v58, %s11364_s2  ;;  %3107 = vmatpush.msra.mxu1 %v3082_v36  ;;  %v3439_v58 = vmul.f32 %v9089_v9, %v11381_v16  ;;  %v5492_v36 = vld [vmem:[%s11035_s11 + $0x148] sm:$0x1] }
 0x9d4   : > { %3175 = vmatpush.msra.mxu3 %v5463_v15  ;;  %5493 = vmatpush.msk.msrb.mxu2 %vm11382_vm10, %v5492_v36  ;;  %v3440_v15 = vmul.f32 %v9118_v48, %v11383_v33  ;;  %v5473_v36 = vld [vmem:[%s11035_s11 + $0xd0] sm:$0xff]  ;;  %vm11385_vm10 = vmmov %vm11378_vm0  ;;  %v5506_v33 = vld [vmem:[%s11035_s11 + $0x198] sm:$0xff] }
 0x9d5   : > { %3108 = vmatpush.msra.mxu1 %v3081_v42  ;;  %v9215_v42 = vpop.permute.xlu2 %6064 }
 0x9d6   : > { %3176 = vmatpush.msra.mxu3 %v5462_v57  ;;  %v5451_v57 = vld [vmem:[%s11035_s11 + $0x40] sm:$0xff] }
 0x9d7   : > { %3109 = vmatpush.msra.mxu1 %v3080_v44  ;;  %v5461_v44 = vld [vmem:[%s11035_s11 + $0x80] sm:$0xff] }
 0x9d8   : > { %3619 = vrot.lane.b32.xlu1 %v3606_v50, %s11341_s25  ;;  %v5453_v50 = vld [vmem:[%s11035_s11 + $0x50] sm:$0xff]  ;;  %3177 = vmatpush.msra.mxu3 %v5461_v44 }
 0x9d9   : > { %3141 = vmatpush.msrb.mxu0 %v5453_v50  ;;  %5475 = vmatpush.msk.msrb.mxu1 %vm11378_vm0, %v5474_v18  ;;  %v5490_v50 = vld [vmem:[%s11035_s11 + $0x138] sm:$0xff]  ;;  %v5459_v44 = vld [vmem:[%s11035_s11 + $0x70] sm:$0xff]  ;;  %vm11201_vm0 = vcmask 400384  }
 0x9da   : > { %3726 = vrot.lane.b32.xlu0 %v3439_v58, %s11365_s23  ;;  %v5491_v58 = vld [vmem:[%s11035_s11 + $0x140] sm:$0xff]  ;;  %v5460_v18 = vld [vmem:[%s11035_s11 + $0x78] sm:$0xff] }
 0x9db   : > { %3694 = vrot.lane.b32.xlu2 %v3681_v47, %s11303_s0  ;;  %v5452_v47 = vld [vmem:[%s11035_s11 + $0x48] sm:$0xff]  ;;  %3279 = vmatpush.msrb.mxu2 %v5491_v58  ;;  %v5489_v58 = vld [vmem:[%s11035_s11 + $0x130] sm:$0xff] }
 0x9dc   : > { %3142 = vmatpush.msrb.mxu0 %v5452_v47  ;;  %3209 = vmatpush.msrb.mxu1 %v5473_v36  ;;  %v5450_v47 = vld [vmem:[%s11035_s11 + $0x38] sm:$0xff]  ;;  %v5471_v36 = vld [vmem:[%s11035_s11 + $0xc0] sm:$0xff] }
 0x9dd   : > { %3280 = vmatpush.msrb.mxu2 %v5490_v50  ;;  %3178 = vmatpush.msra.mxu3 %v5460_v18  ;;  %v5483_v50 = vld [vmem:[%s11035_s11 + $0x110] sm:$0x1]  ;;  %v5501_v18 = vld [vmem:[%s11035_s11 + $0x180] sm:$0x1] }
 0x9de   : > { %3143 = vmatpush.msrb.mxu0 %v5451_v57  ;;  %v5488_v57 = vld [vmem:[%s11035_s11 + $0x128] sm:$0xff] }
 0x9df   : > { %3281 = vmatpush.msrb.mxu2 %v5489_v58  ;;  %3179 = vmatpush.msra.mxu3 %v5459_v44  ;;  %v5482_v58 = vld [vmem:[%s11035_s11 + $0x108] sm:$0xff]  ;;  %v5469_v44 = vld [vmem:[%s11035_s11 + $0xb0] sm:$0xff] }
 0x9e0   : > { %3728 = vrot.lane.b32.xlu1 %v3440_v15, %s11365_s23  ;;  %v5472_v15 = vld [vmem:[%s11035_s11 + $0xc8] sm:$0xff]  ;;  %3144 = vmatpush.msrb.mxu0 %v5450_v47  ;;  %v5487_v47 = vld [vmem:[%s11035_s11 + $0x120] sm:$0xff] }
 0x9e1   : > { %3210 = vmatpush.msrb.mxu1 %v5472_v15  ;;  %v5470_v15 = vld [vmem:[%s11035_s11 + $0xb8] sm:$0xff]  ;;  %3282 = vmatpush.msrb.mxu2 %v5488_v57 }
 0x9e2   : > { %5484 = vmatpush.msk.msra.mxu0 %vm11384_vm11, %v5483_v50  ;;  %5502 = vmatpush.msk.msrb.mxu3 %vm11385_vm10, %v5501_v18  ;;  %v5481_v50 = vld [vmem:[%s11035_s11 + $0x100] sm:$0xff]  ;;  %v5486_v57 = vld [vmem:[%s11035_s11 + $0x118] sm:$0xff]  ;;  %v5499_v18 = vld [vmem:[%s11035_s11 + $0x170] sm:$0xff] }
 0x9e3   : > { %3211 = vmatpush.msrb.mxu1 %v5471_v36  ;;  %3283 = vmatpush.msrb.mxu2 %v5487_v47  ;;  %v5498_v47 = vld [vmem:[%s11035_s11 + $0x168] sm:$0xff]  ;;  %vm11386_vm11 = vmmov %vm11385_vm10  ;;  %vm11387_vm10 = vcmask 1039360  }
 0x9e4   : > { %3244 = vmatpush.msra.mxu0 %v5482_v58  ;;  %3314 = vmatpush.msrb.mxu3 %v5500_v22  ;;  %v5480_v58 = vld [vmem:[%s11035_s11 + $0xf8] sm:$0xff]  ;;  %v5479_v22 = vld [vmem:[%s11035_s11 + $0xf0] sm:$0xff] }
 0x9e5   : > { %3212 = vmatpush.msrb.mxu1 %v5470_v15  ;;  %v9282_v36 = vpop.permute.xlu2 %6079  ;;  %v5468_v15 = vld [vmem:[%s11035_s11 + $0xa8] sm:$0xff]  ;;  %3284 = vmatpush.msrb.mxu2 %v5486_v57  ;;  %v5496_v57 = vld [vmem:[%s11035_s11 + $0x158] sm:$0xff] }
 0x9e6   : > { %3245 = vmatpush.msra.mxu0 %v5481_v50  ;;  %3315 = vmatpush.msrb.mxu3 %v5499_v18  ;;  %v5478_v50 = vld [vmem:[%s11035_s11 + $0xe8] sm:$0xff]  ;;  %v5477_v18 = vld [vmem:[%s11035_s11 + $0xe0] sm:$0xff] }
 0x9e7   : > { %3213 = vmatpush.msrb.mxu1 %v5469_v44  ;;  %v5497_v44 = vld [vmem:[%s11035_s11 + $0x160] sm:$0xff] }
 0x9e8   : > { %3246 = vmatpush.msra.mxu0 %v5480_v58  ;;  %3316 = vmatpush.msrb.mxu3 %v5498_v47 }
 0x9e9   : > { %3214 = vmatpush.msrb.mxu1 %v5468_v15  ;;  %v5495_v15 = vld [vmem:[%s11035_s11 + $0x150] sm:$0xff] }
 0x9ea   : > { %3247 = vmatpush.msra.mxu0 %v5479_v22  ;;  %3317 = vmatpush.msrb.mxu3 %v5497_v44  ;;  %v3077_v44 = vpop.f32.mrf.mxu3 }
 0x9ec   : > { %3248 = vmatpush.msra.mxu0 %v5478_v50  ;;  %3318 = vmatpush.msrb.mxu3 %v5496_v57  ;;  %v5510_v57 = vld [vmem:[%s11035_s11 + $0x1b8] sm:$0x1] }
 0x9ed   : > { %v9320_v58 = vpop.permute.xlu2 %6094 }
 0x9ee   : > { %3249 = vmatpush.msra.mxu0 %v5477_v18  ;;  %3319 = vmatpush.msrb.mxu3 %v5495_v15 }
 0x9f5   : > { %v9324_v22 = vpop.permute.xlu2 %6109 }
 0x9f6   : > { %v6112_v14 = vunpack.i.h.bf16 %v9324_v22 }
 0x9fa   : > { %v9322_v47 = vpop.permute.xlu1 %6059 }
 0x9fc   : > { %v9326_v60 = vpop.permute.xlu0 %6069 }
 0x9fd   : > { %v9342_v11 = vpop.permute.xlu2 %3720  ;;  %v6072_v49 = vunpack.i.h.bf16 %v9326_v60 }
 0xa01   : > { %v3057_v50 = vpop.f32.mrf.mxu2 }
 0xa02   : > { %v3078_v27 = vadd.f32 %v3077_v44, %v3057_v50  ;;  %v9328_v24 = vpop.permute.xlu1 %6074  ;;  %v6062_v44 = vunpack.i.h.bf16 %v9322_v47  ;;  %v6061_v50 = vunpack.i.l.bf16 %v9322_v47  ;;  %v6071_v47 = vunpack.i.l.bf16 %v9326_v60 }
 0xa04   : > { %5449 = vmatmul.msk.f32.vlgmr.msra.gmra.mxu1 %vm11201_vm0, %v3078_v27  ;;  %v9334_v18 = vpop.permute.xlu0 %6084  ;;  %v3123_v15 = vrot.slane %v3078_v27, 1  ;;  %v3158_v30 = vrot.slane %v3078_v27, 2  ;;  %v3263_v7 = vrot.slane %v3078_v27, 5  ;;  %v3228_v63 = vrot.slane %v3078_v27, 4 }
 0xa05   : > { %5511 = vmatpush.msk.msra.mxu1 %vm11386_vm11, %v5510_v57  ;;  %v5507_v57 = vld [vmem:[%s11035_s11 + $0x1a0] sm:$0xff]  ;;  %v3298_v60 = vrot.slane %v3078_v27, 6  ;;  %v3506_v52 = vsel %vm1362_vm2, %v6071_v47, %v6072_v49  ;;  %v6086_v39 = vunpack.i.l.bf16 %v9334_v18 }
 0xa06   : > { %5458 = vmatmul.msk.f32.vlgmr.msrb.gmra.mxu0 %vm11201_vm0, %v3123_v15  ;;  %5467 = vmatmul.msk.f32.vlgmr.msra.gmra.mxu3 %vm11201_vm0, %v3158_v30  ;;  %v3465_v15 = vsel %vm11387_vm10, %v6061_v50, %v6062_v44  ;;  %v3193_v30 = vrot.slane %v3078_v27, 3  ;;  %vm11388_vm10 = vcmask 1041408  }
 0xa07   : > { %5494 = vmatmul.msk.f32.vlgmr.msrb.gmra.mxu2 %vm11201_vm0, %v3263_v7  ;;  %3349 = vmatpush.msra.mxu1 %v5509_v17  ;;  %v3400_v17 = vmul.f32 %v11315_v53, %v9023_v55  ;;  %v6082_v55 = vunpack.i.h.bf16 %v9282_v36 }
 0xa09   : > { %3350 = vmatpush.msra.mxu1 %v5508_v46  ;;  %v5505_v46 = vld [vmem:[%s11035_s11 + $0x190] sm:$0xff]  ;;  %v3737_v51 = vsel %vm11386_vm11, %v3400_v17, %v3465_v15  ;;  %v9381_v17 = vpop.permute.xlu2 %6124  ;;  %vm11390_vm11 = vcmask 1042432  }
 0xa0a   : > { %v9356_v31 = vpop.permute.xlu1 %6089  ;;  %v3744_v15 = vsel %vm11388_vm10, %v3737_v51, %v3506_v52  ;;  %vm11391_vm10 = vcmask 1043456   ;;  %v6126_v28 = vunpack.i.l.bf16 %v9381_v17 }
 0xa0b   : > { %3351 = vmatpush.msra.mxu1 %v5507_v57  ;;  %v11196_v20 = vunpack.i.h.bf16 %v9356_v31  ;;  %v6081_v57 = vunpack.i.l.bf16 %v9282_v36  ;;  %v11389_v36 = vunpack.i.l.bf16 %v9356_v31 }
 0xa0c   : > { %5476 = vmatmul.msk.f32.vlgmr.msrb.gmra.mxu1 %vm11201_vm0, %v3193_v30  ;;  %v9364_v7 = vpop.permute.xlu0 %6099  ;;  %v5504_v30 = vld [vmem:[%s11035_s11 + $0x188] sm:$0xff] }
 0xa0d   : > { %3352 = vmatpush.msra.mxu1 %v5506_v33  ;;  %v6102_v41 = vunpack.i.h.bf16 %v9364_v7  ;;  %v6101_v33 = vunpack.i.l.bf16 %v9364_v7 }
 0xa0e   : > { %5485 = vmatmul.msk.f32.vlgmr.msra.gmra.mxu0 %vm11201_vm0, %v3228_v63  ;;  %5503 = vmatmul.msk.f32.vlgmr.msrb.gmra.mxu3 %vm11201_vm0, %v3298_v60  ;;  %v3581_v63 = vsel %vm1439_vm4, %v11389_v36, %v11196_v20  ;;  %v3547_v60 = vsel %vm1404_vm3, %v6081_v57, %v6082_v55  ;;  %v6111_v36 = vunpack.i.l.bf16 %v9324_v22  ;;  %v3401_v22 = vmul.f32 %v11316_v59, %v9026_v38 }
 0xa0f   : > { %3353 = vmatpush.msra.mxu1 %v5505_v46  ;;  %v3333_v46 = vrot.slane %v3078_v27, 7  ;;  %v3751_v52 = vsel %vm11390_vm11, %v3744_v15, %v3547_v60  ;;  %v3622_v51 = vsel %vm1481_vm7, %v6101_v33, %v6102_v41  ;;  %v6077_v15 = vunpack.i.h.bf16 %v9328_v24 }
 0xa10   : > { %v3758_v7 = vsel %vm11391_vm10, %v3751_v52, %v3581_v63  ;;  %v11393_v63 = vld [vmem:[#allocation16_spill] sm:$0xff]  ;;  %vm11394_vm11 = vcmask 588800   ;;  %vm11395_vm10 = vcmask 1039360  }
 0xa11   : > { %3354 = vmatpush.msra.mxu1 %v5504_v30  ;;  %v6067_v30 = vunpack.i.h.bf16 %v9215_v42  ;;  %v3765_v27 = vsel %vm11392_vm15, %v3758_v7, %v3622_v51  ;;  %v3399_v52 = vmul.f32 %v11393_v63, %v9012_v43  ;;  %v3663_v23 = vsel %vm11394_vm11, %v6111_v36, %v6112_v14  ;;  %vm11397_vm15 = vmmov %vm11395_vm10  ;;  %v3717_v12 = vpop.permute.xlu2 %3716 }
 0xa12   : > { %v9391_v53 = vpop.permute.xlu1 %6104  ;;  %v11396_v51 = vunpack.i.l.bf16 %v9215_v42  ;;  %vm11400_vm11 = vmmov %vm11399_vm12  ;;  %v3505_v38 = vsel %vm1362_vm2, %v6077_v15, %v6071_v47 }
 0xa13   : > { %v3464_v20 = vsel %vm11395_vm10, %v6067_v30, %v6061_v50  ;;  %v11401_v50 = vunpack.i.l.bf16 %v9328_v24  ;;  %vm11402_vm10 = vcmask 1040384  }
 0xa14   : > { %5512 = vmatmul.msk.f32.vlgmr.msra.gmra.mxu1 %vm11201_vm0, %v3333_v46  ;;  %v9396_v10 = vpop.permute.xlu0 %6114  ;;  %v6127_v46 = vunpack.i.h.bf16 %v9381_v17  ;;  %v3466_v7 = vsel %vm11397_vm15, %v6062_v44, %v11396_v51  ;;  %vm11398_vm0 = vcmask 1045504   ;;  %v6087_v17 = vunpack.i.h.bf16 %v9334_v18  ;;  %vm11403_vm15 = vmmov %vm11402_vm10 }
 0xa15   : > { %v3772_v16 = vsel %vm11398_vm0, %v3765_v27, %v3663_v23  ;;  %v3507_v30 = vsel %vm1362_vm2, %v6072_v49, %v11401_v50  ;;  %vm11404_vm0 = vcmask 580608   ;;  %v6107_v27 = vunpack.i.h.bf16 %v9391_v53 }
 0xa16   : > { %v3697_v44 = vsel %vm11404_vm0, %v6126_v28, %v6127_v46  ;;  %v6097_v49 = vunpack.i.h.bf16 %v9320_v58  ;;  %vm11408_vm0 = vmmov %vm11402_vm10  ;;  %v3404_v18 = vmul.f32 %v7021_v1, %v9089_v9 }
 0xa1a   : > { %v3719_v60 = vpop.permute.xlu1 %3718 }
 0xa1b   : > { %v3730_v43 = vsel %vm11399_vm12, %v3717_v12, %v3719_v60  ;;  %v3731_v63 = vsel %vm11400_vm11, %v3719_v60, %v9342_v11  ;;  %vm11405_vm12 = vmmov %vm11400_vm11  ;;  %vm11406_vm11 = vcmask 1046528   ;;  %v6096_v60 = vunpack.i.l.bf16 %v9320_v58 }
 0xa1c   : > { %5514 = vmatpush.msk.msrb.mxu0 %vm11402_vm10, %v3730_v43  ;;  %5516 = vmatpush.msk.msra.mxu2 %vm11403_vm15, %v3731_v63  ;;  %v9429_v23 = vpop.permute.xlu0 %3722  ;;  %v3779_v15 = vsel %vm11406_vm11, %v3772_v16, %v3697_v44  ;;  %v3736_v63 = vsel %vm11402_vm10, %v3399_v52, %v3464_v20  ;;  %vm11407_vm15 = vmmov %vm11402_vm10  ;;  %v3546_v12 = vsel %vm1404_vm3, %v6087_v17, %v6081_v57  ;;  %v9452_v16 = vld [vmem:[%s11025_s1] sm:$0xff]  ;;  %v11412_v20 = vunpack.i.h.bf16 %v9356_v31 }
 0xa1d   : > { %v3732_v47 = vsel %vm11405_vm12, %v9342_v11, %v9429_v23  ;;  %v3738_v51 = vsel %vm11407_vm15, %v3401_v22, %v3466_v7  ;;  %v3743_v43 = vsel %vm11409_vm14, %v3736_v63, %v3505_v38  ;;  %v3548_v11 = vsel %vm1404_vm3, %v6082_v55, %v6086_v39 }
 0xa1e   : > { %3834 = vmatpush.msra.mxu2 %v3779_v15  ;;  %5518 = vmatpush.msk.msra.mxu3 %vm11408_vm0, %v3732_v47  ;;  %v3745_v50 = vsel %vm11410_vm6, %v3738_v51, %v3507_v30  ;;  %vm11411_vm12 = vcmask 72704   ;;  %v3582_v52 = vsel %vm1439_vm4, %v11412_v20, %v6096_v60  ;;  %v11413_v57 = vunpack.i.l.bf16 %v9356_v31 }
 0xa1f   : > { %5517 = vmatmul.msk.f32.vlgmr.msra.gmra.mxu2 %vm11411_vm12, %v9452_v16  ;;  %v6117_v55 = vunpack.i.h.bf16 %v9396_v10  ;;  %v6116_v7 = vunpack.i.l.bf16 %v9396_v10  ;;  %v3621_v17 = vsel %vm1481_vm7, %v6107_v27, %v6101_v33  ;;  %v11414_v38 = vunpack.i.l.bf16 %v9391_v53 }
 0xa20   : > { %v3580_v22 = vsel %vm1439_vm4, %v6097_v49, %v11413_v57  ;;  %vm11415_vm6 = vcmask 1042432   ;;  %vm11417_vm11 = vcmask 1043456   ;;  %vm11419_vm15 = vcmask 588800  }
 0xa21   : > { %v3623_v30 = vsel %vm1481_vm7, %v6102_v41, %v11414_v38  ;;  %v3750_v44 = vsel %vm11415_vm6, %v3743_v43, %v3546_v12  ;;  %vm11416_vm14 = vmmov %vm11415_vm6  ;;  %v3662_v51 = vsel %vm11419_vm15, %v6117_v55, %v6111_v36  ;;  %vm11420_vm0 = vcmask 1044480  }
 0xa22   : > { %v3752_v47 = vsel %vm11416_vm14, %v3745_v50, %v3548_v11  ;;  %v6120_v15 = vpop.permute.xlu1 %6119  ;;  %v3757_v63 = vsel %vm11417_vm11, %v3750_v44, %v3580_v22  ;;  %vm11418_vm10 = vmmov %vm11417_vm11  ;;  %vm11423_vm6 = vcmask 580608   ;;  %vm11424_vm14 = vcmask 1045504  }
 0xa23   : > { %v3759_v31 = vsel %vm11418_vm10, %v3752_v47, %v3582_v52  ;;  %v3764_v20 = vsel %vm11420_vm0, %v3757_v63, %v3621_v17  ;;  %vm11421_vm12 = vmmov %vm11419_vm15  ;;  %vm11427_vm15 = vcmask 1046528   ;;  %v6121_v38 = vunpack.i.l.bf16 %v6120_v15 }
 0xa24   : > { %v9474_v49 = vpop.permute.xlu0 %6129  ;;  %v3664_v33 = vsel %vm11421_vm12, %v6112_v14, %v6116_v7  ;;  %vm11422_vm5 = vmmov %vm11420_vm0  ;;  %v3771_v50 = vsel %vm11424_vm14, %v3764_v20, %v3662_v51  ;;  %v11431_v44 = vunpack.i.l.bf16 %v9215_v42  ;;  %v11433_v51 = vunpack.i.l.bf16 %v9328_v24 }
 0xa25   : > { %v3766_v41 = vsel %vm11422_vm5, %v3759_v31, %v3623_v30  ;;  %v6132_v27 = vunpack.i.h.bf16 %v9474_v49  ;;  %v6131_v12 = vunpack.i.l.bf16 %v9474_v49  ;;  %vm11425_vm11 = vmmov %vm11423_vm6  ;;  %vm11429_vm5 = vcmask 72704  }
 0xa26   : > { %vm11426_vm10 = vmmov %vm11424_vm14  ;;  %v3402_v31 = vmul.f32 %v7011_v19, %v9017_v25  ;;  %vm11434_vm14 = vcmask 1040384  }
 0xa27   : > { %v3696_v43 = vsel %vm11423_vm6, %v6132_v27, %v6126_v28  ;;  %v3698_v36 = vsel %vm11425_vm11, %v6127_v46, %v6131_v12  ;;  %v3773_v11 = vsel %vm11426_vm10, %v3766_v41, %v3664_v33  ;;  %vm11428_vm0 = vmmov %vm11427_vm15  ;;  %v9496_v28 = vpop.permute.xlu2 %6144  ;;  %vm11432_vm6 = vcmask 1039360  }
 0xa28   : > { %v3778_v52 = vsel %vm11427_vm15, %v3771_v50, %v3696_v43  ;;  %v3780_v14 = vsel %vm11428_vm0, %v3773_v11, %v3698_v36  ;;  %vm11430_vm12 = vmmov %vm11429_vm5  ;;  %v3467_v47 = vsel %vm11432_vm6, %v11431_v44, %v6121_v38  ;;  %v6122_v41 = vunpack.i.h.bf16 %v6120_v15 }
 0xa29   : > { %3814 = vmatpush.msrb.mxu0 %v3778_v52  ;;  %3854 = vmatpush.msra.mxu3 %v3780_v14  ;;  %v3739_v27 = vsel %vm11434_vm14, %v3402_v31, %v3467_v47  ;;  %vm11435_vm11 = vcmask 1041408   ;;  %v6146_v25 = vunpack.i.l.bf16 %v9496_v28  ;;  %vm11436_vm10 = vmmov %vm11432_vm6  ;;  %v3403_v15 = vmul.f32 %v7024_v35, %v9086_v3 }
 0xa2a   : > { %v6135_v57 = vpop.permute.xlu1 %6134  ;;  %5515 = vmatmul.msk.f32.vlgmr.msrb.gmra.mxu0 %vm11429_vm5, %v9452_v16  ;;  %5519 = vmatmul.msk.f32.vlgmr.msra.gmra.mxu3 %vm11430_vm12, %v9452_v16  ;;  %v3468_v24 = vsel %vm11436_vm10, %v6121_v38, %v6122_v41  ;;  %vm11437_vm15 = vcmask 1042432   ;;  %vm11439_vm0 = vmmov %vm11434_vm14  ;;  %v3405_v3 = vmul.f32 %v7035_v54, %v9118_v48  ;;  %vm11443_vm14 = vcmask 1043456  }
 0xa2b   : > { %v6136_v30 = vunpack.i.l.bf16 %v6135_v57  ;;  %v6137_v43 = vunpack.i.h.bf16 %v6135_v57  ;;  %v3740_v38 = vsel %vm11439_vm0, %v3403_v15, %v3468_v24  ;;  %vm11440_vm5 = vmmov %vm11432_vm6  ;;  %vm11442_vm6 = vcmask 572416  }
 0xa2c   : > { %v6140_v22 = vpop.permute.xlu0 %6139  ;;  %vm11441_vm12 = vmmov %vm11435_vm11 }
 0xa2d   : > { %v6141_v63 = vunpack.i.l.bf16 %v6140_v22  ;;  %v3508_v20 = vsel %vm1362_vm2, %v11433_v51, %v6136_v30  ;;  %v6142_v14 = vunpack.i.h.bf16 %v6140_v22  ;;  %v3509_v57 = vsel %vm1362_vm2, %v6136_v30, %v6137_v43  ;;  %vm11445_vm10 = vmmov %vm11439_vm0 }
 0xa2e   : > { %v3746_v36 = vsel %vm11435_vm11, %v3739_v27, %v3508_v20  ;;  %v3583_v22 = vsel %vm1439_vm4, %v6096_v60, %v6146_v25  ;;  %v3747_v20 = vsel %vm11441_vm12, %v3740_v38, %v3509_v57  ;;  %vm11444_vm11 = vmmov %vm11439_vm0  ;;  %vm11447_vm0 = vcmask 1044480  }
 0xa2f   : > { %v3545_v17 = vpop.permute.xlu2 %3544  ;;  %v3549_v42 = vsel %vm1404_vm3, %v6086_v39, %v6141_v63  ;;  %v11438_v39 = vunpack.i.l.bf16 %v9391_v53  ;;  %v3550_v9 = vsel %vm1404_vm3, %v6141_v63, %v6142_v14  ;;  %vm11449_vm12 = vcmask 1042432  }
 0xa30   : > { %v3753_v44 = vsel %vm11437_vm15, %v3746_v36, %v3549_v42  ;;  %vm11446_vm15 = vcmask 588800   ;;  %v6147_v42 = vunpack.i.h.bf16 %v9496_v28  ;;  %v3754_v15 = vsel %vm11449_vm12, %v3747_v20, %v3550_v9 }
 0xa31   : > { %v3760_v27 = vsel %vm11443_vm14, %v3753_v44, %v3583_v22  ;;  %vm11451_vm14 = vcmask 580608  }
 0xa32   : > { %v3463_v55 = vpop.permute.xlu1 %3462 }
 0xa33   : > { %v3469_v30 = vsel %vm11440_vm5, %v6122_v41, %v3463_v55  ;;  %v3742_v58 = vsel %vm11444_vm11, %v3405_v3, %v3463_v55  ;;  %vm11448_vm5 = vmmov %vm11445_vm10  ;;  %vm11452_vm11 = vcmask 1045504  }
 0xa34   : > { %v3504_v46 = vpop.permute.xlu0 %3503  ;;  %v3741_v63 = vsel %vm11448_vm5, %v3404_v18, %v3469_v30  ;;  %v3584_v18 = vsel %vm1439_vm4, %v6146_v25, %v6147_v42  ;;  %vm11456_vm5 = vcmask 72704  }
 0xa37   : > { %v3579_v52 = vpop.permute.xlu2 %3578 }
 0xa3a   : > { %v6150_v33 = vpop.permute.xlu1 %6149 }
 0xa3b   : > { %v6151_v11 = vunpack.i.l.bf16 %v6150_v33  ;;  %v6152_v60 = vunpack.i.h.bf16 %v6150_v33 }
 0xa3c   : > { %v9507_v50 = vpop.permute.xlu0 %6154 }
 0xa3d   : > { %v6156_v47 = vunpack.i.l.bf16 %v9507_v50  ;;  %v3624_v31 = vsel %vm1481_vm7, %v11438_v39, %v6151_v11  ;;  %v6157_v33 = vunpack.i.h.bf16 %v9507_v50  ;;  %v3625_v28 = vsel %vm1481_vm7, %v6151_v11, %v6152_v60 }
 0xa3e   : > { %v3767_v41 = vsel %vm11447_vm0, %v3760_v27, %v3624_v31  ;;  %vm11455_vm0 = vmmov %vm11449_vm12  ;;  %vm11457_vm12 = vcmask 1043456  }
 0xa3f   : > { %v3665_v48 = vsel %vm11446_vm15, %v6116_v7, %v6156_v47  ;;  %vm11454_vm15 = vcmask 1046528   ;;  %v3661_v39 = vpop.permute.xlu2 %3660 }
 0xa40   : > { %v3774_v7 = vsel %vm11452_vm11, %v3767_v41, %v3665_v48  ;;  %vm11460_vm11 = vcmask 1044480  }
 0xa42   : > { %v3725_v51 = vpop.permute.xlu1 %3724 }
 0xa43   : > { %v3733_v53 = vsel %vm11442_vm6, %v9429_v23, %v3725_v51  ;;  %v3510_v23 = vsel %vm1362_vm2, %v6137_v43, %v3504_v46  ;;  %vm11450_vm6 = vcmask 1041408  }
 0xa44   : > { %5520 = vmatpush.msk.msrb.mxu1 %vm11445_vm10, %v3733_v53  ;;  %v6160_v36 = vpop.permute.xlu0 %6159  ;;  %v3749_v55 = vsel %vm11450_vm6, %v3742_v58, %v3504_v46  ;;  %vm11453_vm10 = vmmov %vm11450_vm6  ;;  %v3551_v46 = vsel %vm1404_vm3, %v6142_v14, %v3545_v17  ;;  %v3585_v14 = vsel %vm1439_vm4, %v6147_v42, %v3579_v52 }
 0xa45   : > { %v6161_v24 = vunpack.i.l.bf16 %v6160_v36  ;;  %v3748_v57 = vsel %vm11453_vm10, %v3741_v63, %v3510_v23  ;;  %v6162_v44 = vunpack.i.h.bf16 %v6160_v36  ;;  %v3756_v50 = vsel %vm11455_vm0, %v3749_v55, %v3545_v17  ;;  %vm11458_vm6 = vmmov %vm11455_vm0  ;;  %v665_v23 = vld [vmem:[%s11036_s12] sm:$0x1] }
 0xa46   : > { %v3755_v31 = vsel %vm11458_vm6, %v3748_v57, %v3551_v46  ;;  %vm11461_vm10 = vcmask 580608   ;;  %vm11463_vm0 = vcmask 572416   ;;  %vm11466_vm6 = vcmask 1040384  }
 0xa47   : > { %v3699_v10 = vsel %vm11451_vm14, %v6131_v12, %v6161_v24  ;;  %v3761_v12 = vsel %vm11457_vm12, %v3754_v15, %v3584_v18  ;;  %vm11459_vm14 = vcmask 588800   ;;  %v3700_v3 = vsel %vm11461_vm10, %v6161_v24, %v6162_v44  ;;  %v3695_v36 = vpop.permute.xlu2 %3694 }
 0xa48   : > { %v3781_v43 = vsel %vm11454_vm15, %v3774_v7, %v3699_v10  ;;  %v3666_v11 = vsel %vm11459_vm14, %v6156_v47, %v6157_v33  ;;  %v3768_v22 = vsel %vm11460_vm11, %v3761_v12, %v3625_v28  ;;  %vm11462_vm15 = vmmov %vm11457_vm12  ;;  %vm11467_vm14 = vcmask 1045504  }
 0xa49   : > { %3874 = vmatpush.msrb.mxu1 %v3781_v43  ;;  %v3763_v17 = vsel %vm11462_vm15, %v3756_v50, %v3579_v52  ;;  %v3775_v47 = vsel %vm11467_vm14, %v3768_v22, %v3666_v11  ;;  %vm11469_vm10 = vcmask 72704   ;;  %vm11470_vm9 = vmmov %vm11467_vm14  ;;  %vm11471_vm15 = vcmask 588800  }
 0xa4a   : > { %v3620_v49 = vpop.permute.xlu1 %3619  ;;  %5521 = vmatmul.msk.f32.vlgmr.msrb.gmra.mxu1 %vm11456_vm5, %v9452_v16  ;;  %vm11464_vm5 = vmmov %vm11457_vm12  ;;  %v3782_v27 = vsel %vm11468_vm1, %v3775_v47, %v3700_v3 }
 0xa4b   : > { %v3626_v25 = vsel %vm1481_vm7, %v6152_v60, %v3620_v49  ;;  %v3762_v20 = vsel %vm11464_vm5, %v3755_v31, %v3585_v14  ;;  %vm11465_vm12 = vmmov %vm11460_vm11  ;;  %vm11473_vm5 = vcmask 572416   ;;  %v11480_v31 = vld [vmem:[#allocation41_spill] sm:$0xff] }
 0xa4c   : > { %v3727_v38 = vpop.permute.xlu0 %3726  ;;  %v3770_v9 = vsel %vm11465_vm12, %v3763_v17, %v3620_v49  ;;  %v3769_v53 = vsel %vm11460_vm11, %v3762_v20, %v3626_v25  ;;  %vm11474_vm12 = vmmov %vm11466_vm6 }
 0xa4d   : > { %v3734_v30 = vsel %vm11463_vm0, %v3725_v51, %v3727_v38  ;;  %v3777_v52 = vsel %vm11470_vm9, %v3770_v9, %v3661_v39  ;;  %v3667_v51 = vsel %vm11471_vm15, %v6157_v33, %v3661_v39  ;;  %vm11472_vm0 = vmmov %vm11470_vm9  ;;  %vm11481_vm15 = vcmask 236544  }
 0xa4e   : > { %5522 = vmatpush.msk.msra.mxu0 %vm11466_vm6, %v3734_v30  ;;  %v3776_v60 = vsel %vm11472_vm0, %v3769_v53, %v3667_v51  ;;  %vm11475_vm14 = vmmov %vm11468_vm1  ;;  %vm11476_vm1 = vcmask 580608  }
 0xa4f   : > { %v3784_v41 = vsel %vm11475_vm14, %v3777_v52, %v3695_v36  ;;  %v3701_v42 = vsel %vm11476_vm1, %v6162_v44, %v3695_v36  ;;  %vm11477_vm11 = vmmov %vm11475_vm14 }
 0xa50   : > { %3894 = vmatpush.msra.mxu0 %v3782_v27  ;;  %v3783_v63 = vsel %vm11477_vm11, %v3776_v60, %v3701_v42  ;;  %vm11478_vm9 = vmmov %vm11469_vm10  ;;  %vm11500_vm11 = vcmask 367616  }
 0xa51   : > { %5523 = vmatmul.msk.f32.vlgmr.msra.gmra.mxu0 %vm11469_vm10, %v9452_v16  ;;  %vm11479_vm10 = vmmov %vm11478_vm9 }
 0xa52   : > { %v3729_v58 = vpop.permute.xlu1 %3728  ;;  %vm11482_vm0 = vmmov %vm11481_vm15 }
 0xa53   : > { %v3735_v48 = vsel %vm11473_vm5, %v3727_v38, %v3729_v58  ;;  %5526 = vmatpush.msk.msrb.mxu3 %vm11474_vm12, %v3729_v58  ;;  %vm11483_vm5 = vmmov %vm11482_vm0 }
 0xa54   : > { %5524 = vmatpush.msk.msrb.mxu2 %vm11466_vm6, %v3735_v48  ;;  %vm11484_vm12 = vmmov %vm11482_vm0 }
 0xa55   : > { %3934 = vmatpush.msrb.mxu3 %v3784_v41  ;;  %vm11485_vm6 = vmmov %vm11482_vm0 }
 0xa56   : > { %3914 = vmatpush.msrb.mxu2 %v3783_v63  ;;  %5527 = vmatmul.msk.f32.vlgmr.msrb.gmra.mxu3 %vm11478_vm9, %v9452_v16  ;;  %vm11486_vm14 = vmmov %vm11482_vm0  ;;  %vm11506_vm9 = vcmask 572416  }
 0xa57   : > { %5525 = vmatmul.msk.f32.vlgmr.msrb.gmra.mxu2 %vm11479_vm10, %v9452_v16  ;;  %vm11499_vm1 = vmmov %vm11482_vm0  ;;  %vm11507_vm10 = vcmask 580608  }
 0xa81   : > { %v3111_v24 = vpop.f32.mrf.mxu1 }
 0xa82   : > { %v3114_v15 = vadd.f32 %v3111_v24, %v665_v23 }
 0xa83   : > { %v3146_v55 = vpop.f32.mrf.mxu0 }
 0xa84   : > { %v3149_v33 = vadd.f32 %v3146_v55, %v3114_v15 }
 0xa89   : > { %v3181_v10 = vpop.f32.mrf.mxu3  ;;  %v3216_v7 = vpop.f32.mrf.mxu1 }
 0xa8a   : > { %v3184_v57 = vadd.f32 %v3181_v10, %v3149_v33  ;;  %v3286_v18 = vpop.f32.mrf.mxu2 }
 0xa8b   : > { %v3251_v44 = vpop.f32.mrf.mxu0 }
 0xa8c   : > { %v3219_v28 = vadd.f32 %v3216_v7, %v3184_v57 }
 0xa8e   : > { %v3254_v43 = vadd.f32 %v3251_v44, %v3219_v28 }
 0xa90   : > { %v3289_v39 = vadd.f32 %v3286_v18, %v3254_v43 }
 0xa91   : > { %v3321_v46 = vpop.f32.mrf.mxu3  ;;  %v3356_v49 = vpop.f32.mrf.mxu1 }
 0xa92   : > { %v3324_v50 = vadd.f32 %v3321_v46, %v3289_v39 }
 0xa94   : > { %v9594_v16 = vadd.f32 %v3356_v49, %v3324_v50 }
 0xaa2   : > { %v3836_v12 = vpop.f32.mrf.mxu2 }
 0xaa3   : > { %v3837_v11 = vadd.f32 %v3836_v12, %v11480_v31 }
 0xaa5   : > { %v3940_v22 = vmax.f32 %v3837_v11, 0.0 }
 0xaa7   : > { %3955 = vrot.lane.b32.xlu0 %v3940_v22, %s11357_s27  ;;  %v3816_v25 = vpop.f32.mrf.mxu0 }
 0xaa8   : > { %v3817_v38 = vadd.f32 %v3816_v25, %v11480_v31 }
 0xaaa   : > { %v3939_v3 = vmax.f32 %v3817_v38, 0.0 }
 0xaad   : > { %v3856_v14 = vpop.f32.mrf.mxu3 }
 0xaae   : > { %v3857_v17 = vadd.f32 %v3856_v14, %v11480_v31 }
 0xaaf   : > { %3953 = vrot.lane.b32.xlu0 %v3939_v3, %s11357_s27 }
 0xab0   : > { %v3941_v30 = vmax.f32 %v3857_v17, 0.0 }
 0xab2   : > { %3957 = vrot.lane.b32.xlu1 %v3941_v30, %s11357_s27 }
 0xac7   : > { %v3876_v20 = vpop.f32.mrf.mxu1 }
 0xac8   : > { %v3877_v9 = vadd.f32 %v3876_v20, %v11480_v31  ;;  %v11487_v20 = vld [vmem:[#allocation21_spill] sm:$0xff] }
 0xaca   : > { %v3942_v47 = vmax.f32 %v3877_v9, 0.0 }
 0xacc   : > { %3959 = vrot.lane.b32.xlu2 %v3942_v47, %s11357_s27  ;;  %v11488_v47 = vld [vmem:[#allocation29_spill] sm:$0xff] }
 0xace   : > { %v3896_v53 = vpop.f32.mrf.mxu0 }
 0xacf   : > { %v3897_v27 = vadd.f32 %v3896_v53, %v11480_v31 }
 0xad1   : > { %v3943_v52 = vmax.f32 %v3897_v27, 0.0 }
 0xad3   : > { %3961 = vrot.lane.b32.xlu1 %v3943_v52, %s11357_s27 }
 0xad9   : > { %v3936_v51 = vpop.f32.mrf.mxu3 }
 0xada   : > { %v3937_v58 = vadd.f32 %v3936_v51, %v11480_v31  ;;  %v3916_v60 = vpop.f32.mrf.mxu2 }
 0xadb   : > { %v3917_v36 = vadd.f32 %v3916_v60, %v11480_v31 }
 0xadc   : > { %v3945_v48 = vmax.f32 %v3937_v58, 0.0  ;;  %v11492_v58 = vld [vmem:[#allocation23_spill] sm:$0xff] }
 0xadd   : > { %v3944_v41 = vmax.f32 %v3917_v36, 0.0 }
 0xade   : > { %3965 = vrot.lane.b32.xlu0 %v3945_v48, %s11357_s27 }
 0xadf   : > { %3963 = vrot.lane.b32.xlu2 %v3944_v41, %s11357_s27  ;;  %v11493_v41 = vld [vmem:[#allocation32_spill] sm:$0xff]  ;;  %s5560_s27 = sshll.u32 %s6847_s29, 1  ;;  %s5322_s29 = scalar_lea.sflag [#allocation3], %s429_s19 }
 0xae0   : > { %s5332_s17 = scalar_lea.hbm %s11037_s13, %s5560_s27 }
 0xb19   : > { %v3956_v42 = vpop.permute.xlu0 %3955 }
 0xb21   : > { %v3954_v63 = vpop.permute.xlu0 %3953 }
 0xb22   : > { %v9611_v23 = vsel %vm11481_vm15, %v3954_v63, %v3956_v42  ;;  %v9614_v24 = vsel %vm11482_vm0, 0.0, %v3954_v63  ;;  %v11494_v63 = vld [vmem:[#allocation33_spill] sm:$0xff]  ;;  %vm11508_vm15 = vcmask 588800   ;;  %vm11509_vm0 = vcmask 1039360  }
 0xb23   : > { %v6173_v15 = vpack.i.bf16 %v9611_v23, %v9614_v24  ;;  %v4017_v55 = vmul.f32 %v7175_v13, %v9614_v24  ;;  %v4018_v33 = vmul.f32 %v9611_v23, %v7200_v29  ;;  %v3989_v7 = vmul.f32 %v7105_v34, %v9614_v24 }
 0xb24   : > { %v3990_v57 = vmul.f32 %v9611_v23, %v7116_v32  ;;  %v3996_v28 = vmul.f32 %v7143_v56, %v9614_v24  ;;  %v3997_v13 = vmul.f32 %v9611_v23, %v7154_v62  ;;  %v3958_v18 = vpop.permute.xlu1 %3957  ;;  %v4010_v34 = vmul.f32 %v7190_v61, %v9614_v24 }
 0xb25   : > { %6174 = vrot.lane.b32.xlu1 %v6173_v15, %s11284_s20  ;;  %6164 = vrot.lane.b32.xlu2 %v6173_v15, %s11303_s0  ;;  %v6178_v10 = vpack.i.bf16 %v4018_v33, %v4017_v55  ;;  %v4011_v32 = vmul.f32 %v9611_v23, %v7221_v37  ;;  %v9644_v62 = vsel %vm11484_vm12, %v3956_v42, %v3958_v18  ;;  %v11495_v33 = vld [vmem:[#allocation31_spill] sm:$0xff]  ;;  %vm11512_vm12 = vmmov %vm11506_vm9 }
 0xb26   : > { %v6198_v29 = vpack.i.bf16 %v3990_v57, %v3989_v7  ;;  %v3960_v44 = vpop.permute.xlu2 %3959  ;;  %v6193_v43 = vpack.i.bf16 %v3997_v13, %v3996_v28  ;;  %v4003_v61 = vmul.f32 %v7159_v6, %v9614_v24  ;;  %v4004_v37 = vmul.f32 %v9611_v23, %v7172_v21  ;;  %v11496_v7 = vld [vmem:[#allocation28_spill] sm:$0xff] }
 0xb27   : > { %6179 = vrot.lane.b32.xlu0 %v6178_v10, %s11365_s23  ;;  %v9641_v56 = vsel %vm11483_vm5, %v3958_v18, %v3960_v44  ;;  %v6183_v39 = vpack.i.bf16 %v4011_v32, %v4010_v34  ;;  %v4019_v49 = vmul.f32 %v9644_v62, %v7261_v5  ;;  %v4012_v6 = vmul.f32 %v9644_v62, %v7286_v2  ;;  %vm11511_vm5 = vmmov %vm11508_vm15 }
 0xb28   : > { %v6208_v46 = vpack.i.bf16 %v9641_v56, %v9644_v62  ;;  %v4020_v50 = vmul.f32 %v9641_v56, %v7133_v45  ;;  %v6188_v12 = vpack.i.bf16 %v4004_v37, %v4003_v61  ;;  %v4013_v11 = vmul.f32 %v9641_v56, %v11294_v40  ;;  %v11502_v37 = vld [vmem:[#allocation37_spill] sm:$0xff] }
 0xb29   : > { %v3992_v40 = vmul.f32 %v9641_v56, %v11295_v4  ;;  %v4006_v2 = vmul.f32 %v9641_v56, %v11300_v8  ;;  %v3991_v3 = vmul.f32 %v9644_v62, %v11301_v26  ;;  %v4005_v14 = vmul.f32 %v9644_v62, %v11289_v0  ;;  %v11489_v8 = vld [vmem:[#allocation34_spill] sm:$0xff]  ;;  %v11490_v26 = vld [vmem:[#allocation35_spill] sm:$0xff] }
 0xb2a   : > { %v6218_v31 = vpack.i.bf16 %v4020_v50, %v4019_v49  ;;  %v6223_v22 = vpack.i.bf16 %v4013_v11, %v4012_v6  ;;  %v11491_v0 = vld [vmem:[#allocation22_spill] sm:$0xff]  ;;  %v3998_v60 = vmul.f32 %v9644_v62, %v11492_v58  ;;  %v11504_v11 = vld [vmem:[#allocation39_spill] sm:$0xff] }
 0xb2b   : > { %v6243_v17 = vpack.i.bf16 %v3992_v40, %v3991_v3  ;;  %v6228_v30 = vpack.i.bf16 %v4006_v2, %v4005_v14  ;;  %v3999_v51 = vmul.f32 %v9641_v56, %v11491_v0  ;;  %v11503_v49 = vld [vmem:[#allocation38_spill] sm:$0xff] }
 0xb2d   : > { %6169 = vrot.lane.b32.xlu2 %v6173_v15, %s11282_s16  ;;  %6199 = vrot.lane.b32.xlu1 %v6198_v29, %s11287_s22  ;;  %v6238_v48 = vpack.i.bf16 %v3999_v51, %v3998_v60  ;;  %v11497_v29 = vld [vmem:[#allocation27_spill] sm:$0xff] }
 0xb2f   : > { %6194 = vrot.lane.b32.xlu0 %v6193_v43, %s11286_s30  ;;  %v11498_v43 = vld [vmem:[#allocation30_spill] sm:$0xff] }
 0xb35   : > { %6184 = vrot.lane.b32.xlu2 %v6183_v39, %s11364_s2  ;;  %6209 = vrot.lane.b32.xlu1 %v6208_v46, %s11282_s16 }
 0xb37   : > { %6214 = vrot.lane.b32.xlu0 %v6208_v46, %s11284_s20 }
 0xb39   : > { %v3964_v21 = vpop.permute.xlu2 %3963 }
 0xb3d   : > { %6189 = vrot.lane.b32.xlu2 %v6188_v12, %s11341_s25  ;;  %6219 = vrot.lane.b32.xlu1 %v6218_v31, %s11365_s23 }
 0xb45   : > { %v3962_v25 = vpop.permute.xlu1 %3961  ;;  %6204 = vrot.lane.b32.xlu2 %v6208_v46, %s11303_s0  ;;  %6224 = vrot.lane.b32.xlu1 %v6223_v22, %s11364_s2  ;;  %v11501_v46 = vld [vmem:[#allocation40_spill] sm:$0xff] }
 0xb46   : > { %v9668_v45 = vsel %vm11485_vm6, %v3960_v44, %v3962_v25  ;;  %v9671_v5 = vsel %vm11486_vm14, %v3962_v25, %v3964_v21  ;;  %v11505_v22 = vld [vmem:[#allocation36_spill] sm:$0xff]  ;;  %vm11513_vm6 = vmmov %vm11506_vm9 }
 0xb47   : > { %v6233_v38 = vpack.i.bf16 %v9671_v5, %v9668_v45  ;;  %v4021_v9 = vmul.f32 %v9668_v45, %v11487_v20  ;;  %v4022_v53 = vmul.f32 %v9671_v5, %v11488_v47  ;;  %v4000_v27 = vmul.f32 %v9668_v45, %v11489_v8  ;;  %vm11514_vm14 = vmmov %vm11507_vm10 }
 0xb48   : > { %v4001_v52 = vmul.f32 %v9671_v5, %v11490_v26  ;;  %v4014_v42 = vmul.f32 %v9668_v45, %v11493_v41  ;;  %v4015_v15 = vmul.f32 %v9671_v5, %v11494_v63  ;;  %v3993_v10 = vmul.f32 %v9668_v45, %v11495_v33 }
 0xb49   : > { %6234 = vrot.lane.b32.xlu0 %v6233_v38, %s11303_s0  ;;  %v6253_v4 = vpack.i.bf16 %v4022_v53, %v4021_v9  ;;  %v3994_v57 = vmul.f32 %v9671_v5, %v11496_v7  ;;  %v4007_v44 = vmul.f32 %v9668_v45, %v11497_v29  ;;  %v4008_v18 = vmul.f32 %v9671_v5, %v11498_v43 }
 0xb4a   : > { %v6268_v36 = vpack.i.bf16 %v4001_v52, %v4000_v27  ;;  %v6258_v55 = vpack.i.bf16 %v4015_v15, %v4014_v42 }
 0xb4b   : > { %v6273_v13 = vpack.i.bf16 %v3994_v57, %v3993_v10  ;;  %v6263_v32 = vpack.i.bf16 %v4008_v18, %v4007_v44  ;;  %v11510_v44 = vld [vmem:[#allocation16_spill] sm:$0xff] }
 0xb4c   : > { %v3982_v43 = vmul.f32 %v11510_v44, %v9614_v24  ;;  %v9796_v18 = vld [vmem:[%s11027_s3] sm:$0xff] }
 0xb4d   : > { %6244 = vrot.lane.b32.xlu2 %v6243_v17, %s11287_s22  ;;  %6229 = vrot.lane.b32.xlu1 %v6228_v30, %s11341_s25 }
 0xb50   : > { %v3966_v28 = vpop.permute.xlu0 %3965 }
 0xb51   : > { %6254 = vrot.lane.b32.xlu0 %v6253_v4, %s11365_s23  ;;  %v3972_v34 = vsel %vm11499_vm1, %v3964_v21, %v3966_v28  ;;  %vm11515_vm1 = vmmov %vm11507_vm10 }
 0xb52   : > { %v9718_v39 = vsel %vm11500_vm11, %v3972_v34, 0.0  ;;  %vm11516_vm11 = vmmov %vm11511_vm5 }
 0xb53   : > { %v4023_v61 = vmul.f32 %v9718_v39, %v11501_v46  ;;  %v4016_v50 = vmul.f32 %v9718_v39, %v11502_v37  ;;  %v4009_v12 = vmul.f32 %v9718_v39, %v11503_v49  ;;  %v6278_v31 = vpack.i.bf16 %v9718_v39, %v9671_v5 }
 0xb54   : > { %v3995_v6 = vmul.f32 %v9718_v39, %v11504_v11  ;;  %v4002_v21 = vmul.f32 %v9718_v39, %v11505_v22 }
 0xb55   : > { %6269 = vrot.lane.b32.xlu2 %v6268_v36, %s11286_s30  ;;  %6239 = vrot.lane.b32.xlu1 %v6238_v48, %s11286_s30 }
 0xb59   : > { %6259 = vrot.lane.b32.xlu0 %v6258_v55, %s11364_s2 }
 0xb5d   : > { %6274 = vrot.lane.b32.xlu2 %v6273_v13, %s11287_s22  ;;  %6249 = vrot.lane.b32.xlu1 %v6233_v38, %s11282_s16 }
 0xb61   : > { %6264 = vrot.lane.b32.xlu0 %v6263_v32, %s11341_s25 }
 0xb65   : > { %4228 = vrot.lane.b32.xlu2 %v9718_v39, %s11303_s0  ;;  %4262 = vrot.lane.b32.xlu1 %v4023_v61, %s11365_s23  ;;  %s11556_s23 = smov 113   ;;  %s5400_s0 = sshll.u32 %s429_s19, 1 }
 0xb69   : > { %4201 = vrot.lane.b32.xlu0 %v4016_v50, %s11364_s2  ;;  %s11546_s2 = smov 15  }
 0xb6d   : > { %4133 = vrot.lane.b32.xlu2 %v9718_v39, %s11282_s16  ;;  %4034 = vrot.lane.b32.xlu1 %v9668_v45, %s11284_s20 }
 0xb71   : > { %4167 = vrot.lane.b32.xlu0 %v4009_v12, %s11341_s25 }
 0xb75   : > { %6279 = vrot.lane.b32.xlu2 %v6278_v31, %s11284_s20  ;;  %4072 = vrot.lane.b32.xlu1 %v3995_v6, %s11287_s22 }
 0xb79   : > { %4106 = vrot.lane.b32.xlu0 %v4002_v21, %s11286_s30 }
 0xb7f   : > { %v6165_v25 = vpop.permute.xlu2 %6164 }
 0xb80   : > { %v6167_v17 = vunpack.i.h.bf16 %v6165_v25  ;;  %v6166_v30 = vunpack.i.l.bf16 %v6165_v25 }
 0xb82   : > { %v4230_v26 = vsel %vm11507_vm10, %v6166_v30, %v6167_v17  ;;  %vm11518_vm10 = vmmov %vm11513_vm6 }
 0xb87   : > { %v9745_v38 = vpop.permute.xlu2 %6169 }
 0xb88   : > { %v6172_v51 = vunpack.i.h.bf16 %v9745_v38  ;;  %v6171_v58 = vunpack.i.l.bf16 %v9745_v38 }
 0xb8a   : > { %v4135_v55 = vsel %vm1439_vm4, %v6171_v58, %v6172_v51 }
 0xb8f   : > { %v9747_v40 = vpop.permute.xlu2 %6184 }
 0xb90   : > { %v6187_v47 = vunpack.i.h.bf16 %v9747_v40  ;;  %v6186_v53 = vunpack.i.l.bf16 %v9747_v40 }
 0xb92   : > { %v4203_v60 = vsel %vm11508_vm15, %v6186_v53, %v6187_v47  ;;  %vm11519_vm15 = vmmov %vm11513_vm6 }
 0xb97   : > { %v9749_v2 = vpop.permute.xlu1 %6174  ;;  %v9751_v3 = vpop.permute.xlu2 %6189 }
 0xb98   : > { %v6192_v8 = vunpack.i.h.bf16 %v9751_v3  ;;  %v6191_v27 = vunpack.i.l.bf16 %v9751_v3  ;;  %v6177_v33 = vunpack.i.h.bf16 %v9749_v2  ;;  %v6176_v10 = vunpack.i.l.bf16 %v9749_v2 }
 0xb99   : > { %v6180_v14 = vpop.permute.xlu0 %6179  ;;  %v3984_v2 = vmul.f32 %v11316_v59, %v9644_v62 }
 0xb9a   : > { %v6182_v20 = vunpack.i.h.bf16 %v6180_v14  ;;  %v6181_v9 = vunpack.i.l.bf16 %v6180_v14  ;;  %v4169_v42 = vsel %vm1481_vm7, %v6191_v27, %v6192_v8  ;;  %v4040_v29 = vsel %vm11509_vm0, %v6176_v10, %v6177_v33  ;;  %vm11520_vm0 = vmmov %vm11515_vm1 }
 0xb9c   : > { %v4264_v4 = vsel %vm11506_vm9, %v6181_v9, %v6182_v20  ;;  %vm11517_vm9 = vmmov %vm11511_vm5 }
 0xb9d   : > { %4284 = vmatpush.msra.mxu1 %v4264_v4 }
 0xb9f   : > { %v9759_v52 = vpop.permute.xlu2 %6204  ;;  %v9761_v0 = vpop.permute.xlu1 %6199  ;;  %4285 = vmatpush.msra.mxu1 %v4230_v26 }
 0xba0   : > { %v6202_v63 = vunpack.i.h.bf16 %v9761_v0  ;;  %v6201_v15 = vunpack.i.l.bf16 %v9761_v0  ;;  %v6207_v32 = vunpack.i.h.bf16 %v9759_v52  ;;  %v6206_v46 = vunpack.i.l.bf16 %v9759_v52 }
 0xba1   : > { %v9766_v36 = vpop.permute.xlu0 %6194  ;;  %4286 = vmatpush.msra.mxu1 %v4203_v60 }
 0xba2   : > { %v6197_v48 = vunpack.i.h.bf16 %v9766_v36  ;;  %v6196_v41 = vunpack.i.l.bf16 %v9766_v36  ;;  %v4074_v28 = vsel %vm1362_vm2, %v6201_v15, %v6202_v63  ;;  %v4231_v31 = vsel %vm11514_vm14, %v6167_v17, %v6206_v46  ;;  %vm11524_vm14 = vmmov %vm11517_vm9 }
 0xba3   : > { %4287 = vmatpush.msra.mxu1 %v4169_v42  ;;  %v4232_v11 = vsel %vm11515_vm1, %v6206_v46, %v6207_v32  ;;  %vm11525_vm1 = vmmov %vm11517_vm9 }
 0xba4   : > { %v4108_v7 = vsel %vm1404_vm3, %v6196_v41, %v6197_v48 }
 0xba5   : > { %4288 = vmatpush.msra.mxu1 %v4135_v55 }
 0xba7   : > { %v9781_v57 = vpop.permute.xlu1 %6209  ;;  %4289 = vmatpush.msra.mxu1 %v4108_v7  ;;  %v9786_v13 = vpop.permute.xlu2 %6244 }
 0xba8   : > { %v6212_v30 = vunpack.i.h.bf16 %v9781_v57  ;;  %v6211_v17 = vunpack.i.l.bf16 %v9781_v57  ;;  %v6246_v15 = vunpack.i.l.bf16 %v9786_v13 }
 0xba9   : > { %4290 = vmatpush.msra.mxu1 %v4074_v28  ;;  %v9804_v49 = vpop.permute.xlu0 %6214 }
 0xbaa   : > { %v4136_v26 = vsel %vm1439_vm4, %v6172_v51, %v6211_v17  ;;  %v4137_v52 = vsel %vm1439_vm4, %v6211_v17, %v6212_v30  ;;  %v6247_v51 = vunpack.i.h.bf16 %v9786_v13 }
 0xbab   : > { %4291 = vmatpush.msra.mxu1 %v4040_v29 }
 0xbad   : > { %4292 = vmatpush.msra.mxu1 %v3982_v43  ;;  %v6217_v43 = vunpack.i.h.bf16 %v9804_v49 }
 0xbae   : > { %5528 = vmatmul.msk.f32.vlgmr.msra.gmra.mxu1 %vm11511_vm5, %v9796_v18  ;;  %vm11521_vm5 = vmmov %vm11520_vm0 }
 0xbaf   : > { %v6220_v34 = vpop.permute.xlu1 %6219  ;;  %v9806_v12 = vpop.permute.xlu2 %6269 }
 0xbb0   : > { %v6222_v61 = vunpack.i.h.bf16 %v6220_v34  ;;  %v6221_v37 = vunpack.i.l.bf16 %v6220_v34  ;;  %v6216_v34 = vunpack.i.l.bf16 %v9804_v49  ;;  %v6272_v59 = vunpack.i.h.bf16 %v9806_v12 }
 0xbb1   : > { %v6271_v62 = vunpack.i.l.bf16 %v9806_v12  ;;  %v6398_v12 = vld [vmem:[%s11033_s9 + $0xb0] sm:$0xff] }
 0xbb2   : > { %v4265_v50 = vsel %vm11512_vm12, %v6182_v20, %v6221_v37  ;;  %v4266_v24 = vsel %vm11513_vm6, %v6221_v37, %v6222_v61  ;;  %vm11522_vm12 = vcmask 1039360  }
 0xbb3   : > { %4304 = vmatpush.msrb.mxu0 %v4265_v50  ;;  %4324 = vmatpush.msra.mxu2 %v4266_v24  ;;  %v4075_v24 = vsel %vm1362_vm2, %v6202_v63, %v6246_v15  ;;  %v4041_v36 = vsel %vm11522_vm12, %v6177_v33, %v6216_v34  ;;  %vm11523_vm6 = vmmov %vm11522_vm12  ;;  %v11526_v63 = vld [vmem:[#allocation17_spill] sm:$0xff] }
 0xbb5   : > { %4305 = vmatpush.msrb.mxu0 %v4231_v31  ;;  %4325 = vmatpush.msra.mxu2 %v4232_v11  ;;  %v4076_v31 = vsel %vm1362_vm2, %v6246_v15, %v6247_v51 }
 0xbb7   : > { %v6225_v6 = vpop.permute.xlu1 %6224  ;;  %v9814_v14 = vpop.permute.xlu2 %6274 }
 0xbb8   : > { %v6227_v22 = vunpack.i.h.bf16 %v6225_v6  ;;  %v6226_v21 = vunpack.i.l.bf16 %v6225_v6 }
 0xbba   : > { %v4205_v25 = vsel %vm11516_vm11, %v6226_v21, %v6227_v22  ;;  %v4204_v38 = vsel %vm11517_vm9, %v6187_v47, %v6226_v21  ;;  %v3983_v21 = vmul.f32 %v11526_v63, %v9611_v23  ;;  %vm11527_vm11 = vmmov %vm11525_vm1  ;;  %v6409_v63 = vld [vmem:[%s11033_s9 + $0x180] sm:$0xff] }
 0xbbb   : > { %4326 = vmatpush.msra.mxu2 %v4205_v25  ;;  %v9812_v40 = vpop.permute.xlu0 %6234  ;;  %4306 = vmatpush.msrb.mxu0 %v4204_v38  ;;  %vm11528_vm9 = vmmov %vm11525_vm1 }
 0xbbc   : > { %v6237_v58 = vunpack.i.h.bf16 %v9812_v40  ;;  %v6236_v60 = vunpack.i.l.bf16 %v9812_v40 }
 0xbbe   : > { %v4233_v29 = vsel %vm11520_vm0, %v6207_v32, %v6236_v60  ;;  %v4234_v44 = vsel %vm11521_vm5, %v6236_v60, %v6237_v58  ;;  %vm11531_vm5 = vmmov %vm11523_vm6 }
 0xbbf   : > { %v9818_v20 = vpop.permute.xlu1 %6229  ;;  %v9842_v55 = vpop.permute.xlu2 %4228  ;;  %vm11532_vm12 = vmmov %vm11531_vm5 }
 0xbc0   : > { %v6232_v9 = vunpack.i.h.bf16 %v9818_v20  ;;  %v6231_v53 = vunpack.i.l.bf16 %v9818_v20 }
 0xbc2   : > { %v4171_v47 = vsel %vm1481_vm7, %v6231_v53, %v6232_v9  ;;  %v4170_v4 = vsel %vm1481_vm7, %v6192_v8, %v6231_v53 }
 0xbc3   : > { %4327 = vmatpush.msra.mxu2 %v4171_v47  ;;  %v9828_v27 = vpop.permute.xlu0 %6254  ;;  %4307 = vmatpush.msrb.mxu0 %v4170_v4  ;;  %v6277_v4 = vunpack.i.h.bf16 %v9814_v14 }
 0xbc4   : > { %v6257_v41 = vunpack.i.h.bf16 %v9828_v27  ;;  %v6256_v3 = vunpack.i.l.bf16 %v9828_v27 }
 0xbc5   : > { %4308 = vmatpush.msrb.mxu0 %v4136_v26  ;;  %4328 = vmatpush.msra.mxu2 %v4137_v52  ;;  %v6276_v26 = vunpack.i.l.bf16 %v9814_v14  ;;  %v6400_v14 = vld [vmem:[%s11033_s9 + $0xa0] sm:$0xff] }
 0xbc6   : > { %v4267_v8 = vsel %vm11518_vm10, %v6222_v61, %v6256_v3  ;;  %v4268_v42 = vsel %vm11519_vm15, %v6256_v3, %v6257_v41  ;;  %v4112_v3 = vsel %vm1404_vm3, %v6271_v62, %v6272_v59  ;;  %vm11529_vm15 = vmmov %vm11520_vm0 }
 0xbc7   : > { %v6240_v10 = vpop.permute.xlu1 %6239  ;;  %4344 = vmatpush.msra.mxu3 %v4267_v8  ;;  %4364 = vmatpush.msrb.mxu1 %v4268_v42  ;;  %v4134_v33 = vpop.permute.xlu2 %4133  ;;  %v4235_v57 = vsel %vm11529_vm15, %v6237_v58, %v9842_v55  ;;  %v4078_v42 = vsel %vm1362_vm2, %v6276_v26, %v6277_v4  ;;  %vm11530_vm0 = vmmov %vm11525_vm1 }
 0xbc8   : > { %v6242_v7 = vunpack.i.h.bf16 %v6240_v10  ;;  %v6241_v28 = vunpack.i.l.bf16 %v6240_v10 }
 0xbc9   : > { %4345 = vmatpush.msra.mxu3 %v4233_v29  ;;  %4365 = vmatpush.msrb.mxu1 %v4234_v44  ;;  %v6394_v29 = vld [vmem:[%s11033_s9 + $0xd0] sm:$0xff] }
 0xbca   : > { %v4110_v46 = vsel %vm1404_vm3, %v6241_v28, %v6242_v7  ;;  %v4109_v61 = vsel %vm1404_vm3, %v6197_v48, %v6241_v28  ;;  %v4042_v48 = vsel %vm11523_vm6, %v6216_v34, %v6217_v43  ;;  %vm11533_vm6 = vmmov %vm11530_vm0  ;;  %v6395_v44 = vld [vmem:[%s11033_s9 + $0x1d0] sm:$0xff] }
 0xbcb   : > { %4329 = vmatpush.msra.mxu2 %v4110_v46  ;;  %v6260_v37 = vpop.permute.xlu0 %6259  ;;  %4309 = vmatpush.msrb.mxu0 %v4109_v61 }
 0xbcc   : > { %v6262_v32 = vunpack.i.h.bf16 %v6260_v37  ;;  %v6261_v50 = vunpack.i.l.bf16 %v6260_v37  ;;  %v6396_v37 = vld [vmem:[%s11033_s9 + $0xc0] sm:$0xff] }
 0xbcd   : > { %4310 = vmatpush.msrb.mxu0 %v4075_v24  ;;  %4330 = vmatpush.msra.mxu2 %v4076_v31  ;;  %v6399_v24 = vld [vmem:[%s11033_s9 + $0x1b0] sm:$0xff] }
 0xbce   : > { %v4206_v11 = vsel %vm11524_vm14, %v6227_v22, %v6261_v50  ;;  %v4207_v0 = vsel %vm11525_vm1, %v6261_v50, %v6262_v32  ;;  %vm11534_vm14 = vmmov %vm11530_vm0 }
 0xbcf   : > { %v9868_v6 = vpop.permute.xlu1 %6249  ;;  %4311 = vmatpush.msrb.mxu0 %v4041_v36  ;;  %4331 = vmatpush.msra.mxu2 %v4042_v48  ;;  %v9898_v8 = vpop.permute.xlu2 %6279  ;;  %vm11535_vm1 = vmmov %vm11531_vm5  ;;  %v3988_v36 = vmul.f32 %v7035_v54, %v9718_v39  ;;  %v3987_v48 = vmul.f32 %v7021_v1, %v9671_v5  ;;  %v6403_v1 = vld [vmem:[%s11033_s9 + $0x3f0] sm:$0xff]  ;;  %v6406_v39 = vld [vmem:[%s11033_s9 + $0x3e0] sm:$0xff] }
 0xbd0   : > { %4346 = vmatpush.msra.mxu3 %v4206_v11  ;;  %4366 = vmatpush.msrb.mxu1 %v4207_v0  ;;  %v6252_v25 = vunpack.i.h.bf16 %v9868_v6  ;;  %v6251_v38 = vunpack.i.l.bf16 %v9868_v6  ;;  %v6281_v10 = vunpack.i.l.bf16 %v9898_v8  ;;  %v6282_v46 = vunpack.i.h.bf16 %v9898_v8  ;;  %v6401_v11 = vld [vmem:[%s11033_s9 + $0x1a0] sm:$0xff]  ;;  %v6402_v0 = vld [vmem:[%s11033_s9 + $0x90] sm:$0xff]  ;;  %vm11540_vm15 = vmmov %vm11535_vm1 }
 0xbd1   : > { %4312 = vmatpush.msrb.mxu0 %v3983_v21  ;;  %4332 = vmatpush.msra.mxu2 %v3984_v2  ;;  %v6404_v54 = vld [vmem:[%s11033_s9 + $0x2f0] sm:$0xff]  ;;  %v6408_v6 = vld [vmem:[%s11033_s9 + $0x2e0] sm:$0xff] }
 0xbd2   : > { %5529 = vmatmul.msk.f32.vlgmr.msrb.gmra.mxu0 %vm11527_vm11, %v9796_v18  ;;  %5530 = vmatmul.msk.f32.vlgmr.msra.gmra.mxu2 %vm11528_vm9, %v9796_v18  ;;  %v4138_v60 = vsel %vm1439_vm4, %v6212_v30, %v6251_v38  ;;  %v4139_v20 = vsel %vm1439_vm4, %v6251_v38, %v6252_v25  ;;  %v4077_v30 = vsel %vm1362_vm2, %v6247_v51, %v6276_v26  ;;  %vm11536_vm11 = vmmov %vm11530_vm0  ;;  %v6405_v5 = vld [vmem:[%s11033_s9 + $0x190] sm:$0xff]  ;;  %v6415_v38 = vld [vmem:[%s11033_s9 + $0x60] sm:$0xff] }
 0xbd3   : > { %v6265_v22 = vpop.permute.xlu0 %6264  ;;  %v3985_v51 = vmul.f32 %v7011_v19, %v9641_v56  ;;  %v4140_v28 = vsel %vm1439_vm4, %v6252_v25, %v4134_v33  ;;  %v6390_v19 = vld [vmem:[%s11033_s9 + $0xf0] sm:$0xff]  ;;  %v6392_v56 = vld [vmem:[%s11033_s9 + $0xe0] sm:$0xff]  ;;  %v4045_v31 = vsel %vm11535_vm1, %v6281_v10, %v6282_v46  ;;  %vm11537_vm9 = vmmov %vm11530_vm0 }
 0xbd4   : > { %v6267_v23 = vunpack.i.h.bf16 %v6265_v22  ;;  %v6266_v17 = vunpack.i.l.bf16 %v6265_v22  ;;  %v6410_v21 = vld [vmem:[%s11033_s9 + $0x3d0] sm:$0xff]  ;;  %v6414_v25 = vld [vmem:[%s11033_s9 + $0x3c0] sm:$0xff] }
 0xbd5   : > { %v6411_v2 = vld [vmem:[%s11033_s9 + $0x70] sm:$0xff]  ;;  %v6424_v26 = vld [vmem:[%s11033_s9 + $0x2a0] sm:$0xff] }
 0xbd6   : > { %v4172_v53 = vsel %vm1481_vm7, %v6232_v9, %v6266_v17  ;;  %v4173_v47 = vsel %vm1481_vm7, %v6266_v17, %v6267_v23  ;;  %v4111_v9 = vsel %vm1404_vm3, %v6242_v7, %v6271_v62  ;;  %v6413_v22 = vld [vmem:[%s11033_s9 + $0x170] sm:$0xff]  ;;  %v6417_v17 = vld [vmem:[%s11033_s9 + $0x160] sm:$0xff] }
 0xbd7   : > { %v4263_v27 = vpop.permute.xlu1 %4262  ;;  %4347 = vmatpush.msra.mxu3 %v4172_v53  ;;  %4367 = vmatpush.msrb.mxu1 %v4173_v47  ;;  %v6419_v62 = vld [vmem:[%s11033_s9 + $0x50] sm:$0xff]  ;;  %v6430_v8 = vld [vmem:[%s11033_s9 + $0x380] sm:$0xff] }
 0xbd8   : > { %v4269_v52 = vsel %vm11518_vm10, %v6257_v41, %v4263_v27  ;;  %4404 = vmatpush.msrb.mxu2 %v4263_v27  ;;  %v6420_v53 = vld [vmem:[%s11033_s9 + $0x2b0] sm:$0xff]  ;;  %v6423_v27 = vld [vmem:[%s11033_s9 + $0x40] sm:$0xff]  ;;  %vm11539_vm10 = vmmov %vm11535_vm1 }
 0xbd9   : > { %4348 = vmatpush.msra.mxu3 %v4138_v60  ;;  %4368 = vmatpush.msrb.mxu1 %v4139_v20  ;;  %v6421_v47 = vld [vmem:[%s11033_s9 + $0x150] sm:$0xff] }
 0xbda   : > { %4384 = vmatpush.msra.mxu0 %v4269_v52  ;;  %4405 = vmatpush.msrb.mxu2 %v9842_v55  ;;  %v3986_v55 = vmul.f32 %v7024_v35, %v9668_v45  ;;  %v6391_v35 = vld [vmem:[%s11033_s9 + $0x1f0] sm:$0xff]  ;;  %v6393_v45 = vld [vmem:[%s11033_s9 + $0x1e0] sm:$0xff] }
 0xbdb   : > { %v4202_v41 = vpop.permute.xlu0 %4201  ;;  %4349 = vmatpush.msra.mxu3 %v4111_v9  ;;  %4369 = vmatpush.msrb.mxu1 %v4112_v3  ;;  %v6425_v52 = vld [vmem:[%s11033_s9 + $0x140] sm:$0xff]  ;;  %v6426_v60 = vld [vmem:[%s11033_s9 + $0x390] sm:$0xff] }
 0xbdc   : > { %4385 = vmatpush.msra.mxu0 %v4235_v57  ;;  %4406 = vmatpush.msrb.mxu2 %v4202_v41  ;;  %v4208_v15 = vsel %vm11530_vm0, %v6262_v32, %v4202_v41  ;;  %v6397_v32 = vld [vmem:[%s11033_s9 + $0x1c0] sm:$0xff]  ;;  %v6427_v20 = vld [vmem:[%s11033_s9 + $0x30] sm:$0xff]  ;;  %vm11541_vm0 = vmmov %vm11535_vm1  ;;  %vm11560_vm1 = vcmask 916480  }
 0xbdd   : > { %4350 = vmatpush.msra.mxu3 %v4077_v30  ;;  %4370 = vmatpush.msrb.mxu1 %v4078_v42  ;;  %v6428_v9 = vld [vmem:[%s11033_s9 + $0x290] sm:$0xff]  ;;  %v6431_v41 = vld [vmem:[%s11033_s9 + $0x20] sm:$0xff] }
 0xbde   : > { %4386 = vmatpush.msra.mxu0 %v4208_v15  ;;  %v6429_v3 = vld [vmem:[%s11033_s9 + $0x130] sm:$0xff]  ;;  %v6432_v57 = vld [vmem:[%s11033_s9 + $0x280] sm:$0xff] }
 0xbdf   : > { %v4035_v40 = vpop.permute.xlu1 %4034  ;;  %v6433_v30 = vld [vmem:[%s11033_s9 + $0x120] sm:$0xff]  ;;  %v6434_v42 = vld [vmem:[%s11033_s9 + $0x370] sm:$0xff] }
 0xbe0   : > { %v4043_v58 = vsel %vm11531_vm5, %v6217_v43, %v4035_v40  ;;  %v4044_v13 = vsel %vm11532_vm12, %v4035_v40, %v6281_v10  ;;  %v6435_v15 = vld [vmem:[%s11033_s9 + $0x10] sm:$0xff]  ;;  %vm11542_vm5 = vmmov %vm11541_vm0 }
 0xbe1   : > { %4351 = vmatpush.msra.mxu3 %v4043_v58  ;;  %4371 = vmatpush.msrb.mxu1 %v4044_v13  ;;  %v6436_v10 = vld [vmem:[%s11033_s9 + $0x270] sm:$0xff]  ;;  %v6438_v58 = vld [vmem:[%s11033_s9 + $0x360] sm:$0xff]  ;;  %vm11543_vm12 = vmmov %vm11541_vm0 }
 0xbe2   : > { %v6437_v40 = vld [vmem:[%s11033_s9 + $0x110] sm:$0xff]  ;;  %v6439_v13 = vld [vmem:[%s11033_s9] sm:$0xff] }
 0xbe3   : > { %v4168_v7 = vpop.permute.xlu0 %4167  ;;  %4352 = vmatpush.msra.mxu3 %v3985_v51  ;;  %4372 = vmatpush.msrb.mxu1 %v3986_v55  ;;  %v6440_v51 = vld [vmem:[%s11033_s9 + $0x260] sm:$0xff] }
 0xbe4   : > { %5531 = vmatmul.msk.f32.vlgmr.msra.gmra.mxu3 %vm11533_vm6, %v9796_v18  ;;  %5532 = vmatmul.msk.f32.vlgmr.msrb.gmra.mxu1 %vm11534_vm14, %v9796_v18  ;;  %v4174_v49 = vsel %vm1481_vm7, %v6267_v23, %v4168_v7  ;;  %v6416_v23 = vld [vmem:[%s11033_s9 + $0x2c0] sm:$0xff]  ;;  %vm11544_vm6 = vmmov %vm11541_vm0  ;;  %vm11545_vm14 = vcmask 949248  }
 0xbe5   : > { %4407 = vmatpush.msrb.mxu2 %v4168_v7  ;;  %4387 = vmatpush.msra.mxu0 %v4174_v49  ;;  %v6441_v55 = vld [vmem:[%s11033_s9 + $0x100] sm:$0xff]  ;;  %v6442_v7 = vld [vmem:[%s11033_s9 + $0x350] sm:$0xff] }
 0xbe6   : > { %4510 = vmatpush.msrb.mxu3 %v6390_v19  ;;  %4530 = vmatpush.msra.mxu1 %v6391_v35  ;;  %v6443_v49 = vld [vmem:[%s11033_s9 + $0x4f0] sm:$0xff]  ;;  %v6446_v35 = vld [vmem:[%s11033_s9 + $0x340] sm:$0xff] }
 0xbe7   : > { %4408 = vmatpush.msrb.mxu2 %v4134_v33  ;;  %4388 = vmatpush.msra.mxu0 %v4140_v28  ;;  %v4073_v43 = vpop.permute.xlu1 %4072  ;;  %v6412_v33 = vld [vmem:[%s11033_s9 + $0x2d0] sm:$0xff] }
 0xbe8   : > { %4511 = vmatpush.msrb.mxu3 %v6392_v56  ;;  %4531 = vmatpush.msra.mxu1 %v6393_v45  ;;  %v4079_v50 = vsel %vm1362_vm2, %v6277_v4, %v4073_v43  ;;  %v6422_v4 = vld [vmem:[%s11033_s9 + $0x3a0] sm:$0xff]  ;;  %v6444_v28 = vld [vmem:[%s11033_s9 + $0x250] sm:$0xff] }
 0xbe9   : > { %v6445_v19 = vld [vmem:[%s11033_s9 + $0x5f0] sm:$0xff]  ;;  %v6447_v56 = vld [vmem:[%s11033_s9 + $0x4e0] sm:$0xff] }
 0xbea   : > { %4512 = vmatpush.msrb.mxu3 %v6394_v29  ;;  %4532 = vmatpush.msra.mxu1 %v6395_v44  ;;  %v6448_v45 = vld [vmem:[%s11033_s9 + $0x240] sm:$0xff]  ;;  %v6450_v44 = vld [vmem:[%s11033_s9 + $0x330] sm:$0xff] }
 0xbeb   : > { %v4107_v34 = vpop.permute.xlu0 %4106  ;;  %v6449_v29 = vld [vmem:[%s11033_s9 + $0x5e0] sm:$0xff] }
 0xbec   : > { %4409 = vmatpush.msrb.mxu2 %v4107_v34  ;;  %v4113_v61 = vsel %vm1404_vm3, %v6272_v59, %v4107_v34  ;;  %4513 = vmatpush.msrb.mxu3 %v6396_v37  ;;  %v6418_v59 = vld [vmem:[%s11033_s9 + $0x3b0] sm:$0xff]  ;;  %v6455_v37 = vld [vmem:[%s11033_s9 + $0x4c0] sm:$0xff] }
 0xbed   : > { %4389 = vmatpush.msra.mxu0 %v4113_v61  ;;  %4533 = vmatpush.msra.mxu1 %v6397_v32  ;;  %v6452_v34 = vld [vmem:[%s11033_s9 + $0x230] sm:$0xff]  ;;  %v6454_v61 = vld [vmem:[%s11033_s9 + $0x320] sm:$0xff] }
 0xbee   : > { %4410 = vmatpush.msrb.mxu2 %v4073_v43  ;;  %4514 = vmatpush.msrb.mxu3 %v6398_v12  ;;  %v6451_v43 = vld [vmem:[%s11033_s9 + $0x4d0] sm:$0xff]  ;;  %v6456_v32 = vld [vmem:[%s11033_s9 + $0x220] sm:$0xff] }
 0xbef   : > { %4390 = vmatpush.msra.mxu0 %v4079_v50  ;;  %4534 = vmatpush.msra.mxu1 %v6399_v24  ;;  %v6457_v50 = vld [vmem:[%s11033_s9 + $0x5c0] sm:$0xff]  ;;  %v6458_v12 = vld [vmem:[%s11033_s9 + $0x310] sm:$0xff] }
 0xbf0   : > { %4411 = vmatpush.msrb.mxu2 %v6282_v46  ;;  %4515 = vmatpush.msrb.mxu3 %v6400_v14  ;;  %v6453_v46 = vld [vmem:[%s11033_s9 + $0x5d0] sm:$0xff]  ;;  %v6462_v14 = vld [vmem:[%s11033_s9 + $0x300] sm:$0xff] }
 0xbf1   : > { %4391 = vmatpush.msra.mxu0 %v4045_v31  ;;  %4535 = vmatpush.msra.mxu1 %v6401_v11  ;;  %v6459_v24 = vld [vmem:[%s11033_s9 + $0x4b0] sm:$0xff]  ;;  %v6464_v11 = vld [vmem:[%s11033_s9 + $0xf8] sm:$0xff] }
 0xbf2   : > { %4412 = vmatpush.msrb.mxu2 %v3988_v36  ;;  %4516 = vmatpush.msrb.mxu3 %v6402_v0  ;;  %v6460_v31 = vld [vmem:[%s11033_s9 + $0x210] sm:$0xff]  ;;  %v6465_v0 = vld [vmem:[%s11033_s9 + $0x200] sm:$0xff] }
 0xbf3   : > { %4392 = vmatpush.msra.mxu0 %v3987_v48  ;;  %5534 = vmatmul.msk.f32.vlgmr.msrb.gmra.mxu2 %vm11536_vm11, %v9796_v18  ;;  %v6461_v36 = vld [vmem:[%s11033_s9 + $0x5b0] sm:$0xff]  ;;  %v6463_v48 = vld [vmem:[%s11033_s9 + $0x4a0] sm:$0xff]  ;;  %vm11561_vm11 = vcmask 924672  }
 0xbf4   : > { %5533 = vmatmul.msk.f32.vlgmr.msra.gmra.mxu0 %vm11537_vm9, %v9796_v18  ;;  %4570 = vmatpush.msra.mxu2 %v6403_v1  ;;  %v6407_v18 = vld [vmem:[%s11033_s9 + $0x80] sm:$0xff]  ;;  %v6466_v1 = vld [vmem:[%s11033_s9 + $0x610] sm:$0xff]  ;;  %vm11562_vm9 = vcmask 932864  }
 0xbf5   : > { %4550 = vmatpush.msrb.mxu0 %v6404_v54  ;;  %4536 = vmatpush.msra.mxu1 %v6405_v5  ;;  %v6467_v54 = vld [vmem:[%s11033_s9 + $0x5a0] sm:$0xff]  ;;  %v6468_v5 = vld [vmem:[%s11033_s9 + $0xe8] sm:$0xff] }
 0xbf6   : > { %4571 = vmatpush.msra.mxu2 %v6406_v39  ;;  %4517 = vmatpush.msrb.mxu3 %v6407_v18  ;;  %v6469_v39 = vld [vmem:[%s11033_s9 + $0x490] sm:$0xff]  ;;  %v6470_v18 = vld [vmem:[%s11033_s9 + $0x600] sm:$0xff] }
 0xbf7   : > { %4551 = vmatpush.msrb.mxu0 %v6408_v6  ;;  %4537 = vmatpush.msra.mxu1 %v6409_v63  ;;  %v6471_v6 = vld [vmem:[%s11033_s9 + $0x590] sm:$0xff]  ;;  %v6472_v63 = vld [vmem:[%s11033_s9 + $0xd8] sm:$0xff] }
 0xbf8   : > { %4572 = vmatpush.msra.mxu2 %v6410_v21  ;;  %4518 = vmatpush.msrb.mxu3 %v6411_v2  ;;  %v6473_v21 = vld [vmem:[%s11033_s9 + $0x480] sm:$0xff] }
 0xbf9   : > { %4552 = vmatpush.msrb.mxu0 %v6412_v33  ;;  %4538 = vmatpush.msra.mxu1 %v6413_v22  ;;  %v6474_v2 = vld [vmem:[%s11033_s9 + $0x580] sm:$0xff]  ;;  %v6475_v33 = vld [vmem:[%s11033_s9 + $0xc8] sm:$0xff]  ;;  %v6476_v22 = vld [vmem:[%s11033_s9 + $0x470] sm:$0xff] }
 0xbfa   : > { %4573 = vmatpush.msra.mxu2 %v6414_v25  ;;  %4519 = vmatpush.msrb.mxu3 %v6415_v38  ;;  %v6477_v25 = vld [vmem:[%s11033_s9 + $0x570] sm:$0xff]  ;;  %v6478_v38 = vld [vmem:[%s11033_s9 + $0xb8] sm:$0xff] }
 0xbfb   : > { %4553 = vmatpush.msrb.mxu0 %v6416_v23  ;;  %4539 = vmatpush.msra.mxu1 %v6417_v17  ;;  %v6479_v23 = vld [vmem:[%s11033_s9 + $0x460] sm:$0xff] }
 0xbfc   : > { %4574 = vmatpush.msra.mxu2 %v6418_v59  ;;  %4520 = vmatpush.msrb.mxu3 %v6419_v62  ;;  %v6480_v17 = vld [vmem:[%s11033_s9 + $0x560] sm:$0xff]  ;;  %v6481_v59 = vld [vmem:[%s11033_s9 + $0xa8] sm:$0xff]  ;;  %v6482_v62 = vld [vmem:[%s11033_s9 + $0x450] sm:$0xff] }
 0xbfd   : > { %4554 = vmatpush.msrb.mxu0 %v6420_v53  ;;  %4540 = vmatpush.msra.mxu1 %v6421_v47  ;;  %v6483_v53 = vld [vmem:[%s11033_s9 + $0x550] sm:$0xff]  ;;  %v6484_v47 = vld [vmem:[%s11033_s9 + $0x98] sm:$0xff] }
 0xbfe   : > { %4575 = vmatpush.msra.mxu2 %v6422_v4  ;;  %4521 = vmatpush.msrb.mxu3 %v6423_v27  ;;  %v6485_v4 = vld [vmem:[%s11033_s9 + $0x440] sm:$0xff] }
 0xbff   : > { %4555 = vmatpush.msrb.mxu0 %v6424_v26  ;;  %4541 = vmatpush.msra.mxu1 %v6425_v52  ;;  %v6486_v27 = vld [vmem:[%s11033_s9 + $0x540] sm:$0xff]  ;;  %v6487_v26 = vld [vmem:[%s11033_s9 + $0x88] sm:$0xff]  ;;  %v6488_v52 = vld [vmem:[%s11033_s9 + $0x430] sm:$0xff] }
 0xc00   : > { %4576 = vmatpush.msra.mxu2 %v6426_v60  ;;  %4522 = vmatpush.msrb.mxu3 %v6427_v20  ;;  %v6489_v60 = vld [vmem:[%s11033_s9 + $0x530] sm:$0xff]  ;;  %v6490_v20 = vld [vmem:[%s11033_s9 + $0x78] sm:$0xff] }
 0xc01   : > { %4556 = vmatpush.msrb.mxu0 %v6428_v9  ;;  %4542 = vmatpush.msra.mxu1 %v6429_v3  ;;  %v6491_v9 = vld [vmem:[%s11033_s9 + $0x420] sm:$0xff] }
 0xc02   : > { %4577 = vmatpush.msra.mxu2 %v6430_v8  ;;  %4523 = vmatpush.msrb.mxu3 %v6431_v41  ;;  %v6492_v3 = vld [vmem:[%s11033_s9 + $0x520] sm:$0xff]  ;;  %v6493_v8 = vld [vmem:[%s11033_s9 + $0x68] sm:$0xff]  ;;  %v6494_v41 = vld [vmem:[%s11033_s9 + $0x410] sm:$0xff] }
 0xc03   : > { %4557 = vmatpush.msrb.mxu0 %v6432_v57  ;;  %4543 = vmatpush.msra.mxu1 %v6433_v30  ;;  %v6495_v57 = vld [vmem:[%s11033_s9 + $0x510] sm:$0xff]  ;;  %v6496_v30 = vld [vmem:[%s11033_s9 + $0x58] sm:$0xff] }
 0xc04   : > { %4578 = vmatpush.msra.mxu2 %v6434_v42  ;;  %4524 = vmatpush.msrb.mxu3 %v6435_v15  ;;  %v6497_v42 = vld [vmem:[%s11033_s9 + $0x400] sm:$0xff] }
 0xc05   : > { %4558 = vmatpush.msrb.mxu0 %v6436_v10  ;;  %4544 = vmatpush.msra.mxu1 %v6437_v40  ;;  %v6498_v15 = vld [vmem:[%s11033_s9 + $0x500] sm:$0xff]  ;;  %v6499_v10 = vld [vmem:[%s11033_s9 + $0x48] sm:$0xff]  ;;  %v6500_v40 = vld [vmem:[%s11033_s9 + $0x38] sm:$0xff] }
 0xc06   : > { %4579 = vmatpush.msra.mxu2 %v6438_v58  ;;  %4525 = vmatpush.msrb.mxu3 %v6439_v13  ;;  %v6501_v58 = vld [vmem:[%s11033_s9 + $0x28] sm:$0xff]  ;;  %v6502_v13 = vld [vmem:[%s11033_s9 + $0x18] sm:$0xff] }
 0xc07   : > { %4559 = vmatpush.msrb.mxu0 %v6440_v51  ;;  %4545 = vmatpush.msra.mxu1 %v6441_v55  ;;  %v6503_v51 = vld [vmem:[%s11033_s9 + $0x8] sm:$0xff] }
 0xc08   : > { %4580 = vmatpush.msra.mxu2 %v6442_v7  ;;  %4590 = vmatpush.msra.mxu3 %v6443_v49  ;;  %v11538_v7 = vld [vmem:[#allocation24_spill] sm:$0xff] }
 0xc09   : > { %4560 = vmatpush.msrb.mxu0 %v6444_v28  ;;  %4610 = vmatpush.msrb.mxu1 %v6445_v19 }
 0xc0a   : > { %4581 = vmatpush.msra.mxu2 %v6446_v35  ;;  %4591 = vmatpush.msra.mxu3 %v6447_v56 }
 0xc0b   : > { %4561 = vmatpush.msrb.mxu0 %v6448_v45  ;;  %4611 = vmatpush.msrb.mxu1 %v6449_v29 }
 0xc0c   : > { %4582 = vmatpush.msra.mxu2 %v6450_v44  ;;  %4592 = vmatpush.msra.mxu3 %v6451_v43 }
 0xc0d   : > { %4562 = vmatpush.msrb.mxu0 %v6452_v34  ;;  %4612 = vmatpush.msrb.mxu1 %v6453_v46 }
 0xc0e   : > { %4583 = vmatpush.msra.mxu2 %v6454_v61  ;;  %4593 = vmatpush.msra.mxu3 %v6455_v37 }
 0xc0f   : > { %4563 = vmatpush.msrb.mxu0 %v6456_v32  ;;  %4613 = vmatpush.msrb.mxu1 %v6457_v50 }
 0xc10   : > { %4584 = vmatpush.msra.mxu2 %v6458_v12  ;;  %4594 = vmatpush.msra.mxu3 %v6459_v24 }
 0xc11   : > { %4564 = vmatpush.msrb.mxu0 %v6460_v31  ;;  %4614 = vmatpush.msrb.mxu1 %v6461_v36 }
 0xc12   : > { %4585 = vmatpush.msra.mxu2 %v6462_v14  ;;  %4595 = vmatpush.msra.mxu3 %v6463_v48 }
 0xc13   : > { %4565 = vmatpush.msrb.mxu0 %v6465_v0  ;;  %4615 = vmatpush.msrb.mxu1 %v6467_v54 }
 0xc14   : > { %4650 = vmatpush.msrb.mxu2 %v6464_v11  ;;  %4596 = vmatpush.msra.mxu3 %v6469_v39 }
 0xc15   : > { %4644 = vmatpush.msra.mxu0 %v6466_v1  ;;  %4616 = vmatpush.msrb.mxu1 %v6471_v6 }
 0xc16   : > { %4651 = vmatpush.msrb.mxu2 %v6468_v5  ;;  %4597 = vmatpush.msra.mxu3 %v6473_v21 }
 0xc17   : > { %4645 = vmatpush.msra.mxu0 %v6470_v18  ;;  %4617 = vmatpush.msrb.mxu1 %v6474_v2 }
 0xc18   : > { %4652 = vmatpush.msrb.mxu2 %v6472_v63  ;;  %4598 = vmatpush.msra.mxu3 %v6476_v22 }
 0xc19   : > { %4618 = vmatpush.msrb.mxu1 %v6477_v25 }
 0xc1a   : > { %4653 = vmatpush.msrb.mxu2 %v6475_v33  ;;  %4599 = vmatpush.msra.mxu3 %v6479_v23 }
 0xc1b   : > { %4619 = vmatpush.msrb.mxu1 %v6480_v17 }
 0xc1c   : > { %4654 = vmatpush.msrb.mxu2 %v6478_v38  ;;  %4600 = vmatpush.msra.mxu3 %v6482_v62 }
 0xc1d   : > { %4620 = vmatpush.msrb.mxu1 %v6483_v53 }
 0xc1e   : > { %4655 = vmatpush.msrb.mxu2 %v6481_v59  ;;  %4601 = vmatpush.msra.mxu3 %v6485_v4 }
 0xc1f   : > { %4621 = vmatpush.msrb.mxu1 %v6486_v27 }
 0xc20   : > { %4656 = vmatpush.msrb.mxu2 %v6484_v47  ;;  %4602 = vmatpush.msra.mxu3 %v6488_v52 }
 0xc21   : > { %4622 = vmatpush.msrb.mxu1 %v6489_v60 }
 0xc22   : > { %4657 = vmatpush.msrb.mxu2 %v6487_v26  ;;  %4603 = vmatpush.msra.mxu3 %v6491_v9 }
 0xc23   : > { %4623 = vmatpush.msrb.mxu1 %v6492_v3 }
 0xc24   : > { %4658 = vmatpush.msrb.mxu2 %v6490_v20  ;;  %4604 = vmatpush.msra.mxu3 %v6494_v41 }
 0xc25   : > { %4624 = vmatpush.msrb.mxu1 %v6495_v57 }
 0xc26   : > { %4659 = vmatpush.msrb.mxu2 %v6493_v8  ;;  %4605 = vmatpush.msra.mxu3 %v6497_v42  ;;  %v6504_v42 = vld [vmem:[%s11033_s9 + $0x1f8] sm:$0xff] }
 0xc27   : > { %4625 = vmatpush.msrb.mxu1 %v6498_v15 }
 0xc28   : > { %4660 = vmatpush.msrb.mxu2 %v6496_v30 }
 0xc2a   : > { %4661 = vmatpush.msrb.mxu2 %v6499_v10  ;;  %v6505_v10 = vld [vmem:[%s11033_s9 + $0x1e8] sm:$0xff] }
 0xc2b   : > { %v4294_v55 = vpop.f32.mrf.mxu1 }
 0xc2c   : > { %4662 = vmatpush.msrb.mxu2 %v6500_v40  ;;  %v4295_v49 = vadd.f32 %v4294_v55, %v11538_v7  ;;  %v6507_v55 = vld [vmem:[%s11033_s9 + $0x1c8] sm:$0xff] }
 0xc2e   : > { %4663 = vmatpush.msrb.mxu2 %v6501_v58  ;;  %v4417_v35 = vmax.f32 %v4295_v49, 0.0  ;;  %v6509_v49 = vld [vmem:[%s11033_s9 + $0x1b8] sm:$0xff] }
 0xc30   : > { %4664 = vmatpush.msrb.mxu2 %v6502_v13  ;;  %v6506_v13 = vld [vmem:[%s11033_s9 + $0x1d8] sm:$0xff] }
 0xc32   : > { %4665 = vmatpush.msrb.mxu2 %v6503_v51 }
 0xc4f   : > { %v4314_v28 = vpop.f32.mrf.mxu0 }
 0xc50   : > { %v4315_v19 = vadd.f32 %v4314_v28, %v11538_v7  ;;  %v6510_v28 = vld [vmem:[%s11033_s9 + $0x4e8] sm:$0xff] }
 0xc52   : > { %v4418_v56 = vmax.f32 %v4315_v19, 0.0  ;;  %v6511_v19 = vld [vmem:[%s11033_s9 + $0x1a8] sm:$0xff] }
 0xc54   : > { %v6283_v45 = vpack.i.bf16 %v4418_v56, %v4417_v35 }
 0xc55   : > { %v4334_v29 = vpop.f32.mrf.mxu2 }
 0xc56   : > { %6284 = vrot.lane.b32.xlu0 %v6283_v45, %s11284_s20  ;;  %v4335_v44 = vadd.f32 %v4334_v29, %v11538_v7  ;;  %v6514_v45 = vld [vmem:[%s11033_s9 + $0x4c8] sm:$0xff] }
 0xc57   : > { %v6515_v29 = vld [vmem:[%s11033_s9 + $0x188] sm:$0xff] }
 0xc58   : > { %v4419_v46 = vmax.f32 %v4335_v44, 0.0  ;;  %v6516_v44 = vld [vmem:[%s11033_s9 + $0x4b8] sm:$0xff] }
 0xc61   : > { %v4374_v32 = vpop.f32.mrf.mxu1 }
 0xc62   : > { %v4375_v50 = vadd.f32 %v4374_v32, %v11538_v7 }
 0xc64   : > { %v4421_v31 = vmax.f32 %v4375_v50, 0.0 }
 0xc67   : > { %v4354_v43 = vpop.f32.mrf.mxu3 }
 0xc68   : > { %v4355_v34 = vadd.f32 %v4354_v43, %v11538_v7  ;;  %v6517_v43 = vld [vmem:[%s11033_s9 + $0x178] sm:$0xff] }
 0xc6a   : > { %v4420_v61 = vmax.f32 %v4355_v34, 0.0  ;;  %v6518_v34 = vld [vmem:[%s11033_s9 + $0x4a8] sm:$0xff] }
 0xc6c   : > { %v6288_v37 = vpack.i.bf16 %v4420_v61, %v4419_v46 }
 0xc6e   : > { %6289 = vrot.lane.b32.xlu1 %v6288_v37, %s11284_s20  ;;  %v6520_v37 = vld [vmem:[%s11033_s9 + $0x498] sm:$0xff] }
 0xc71   : > { %v4394_v12 = vpop.f32.mrf.mxu0 }
 0xc72   : > { %v4395_v24 = vadd.f32 %v4394_v12, %v11538_v7 }
 0xc74   : > { %v4422_v36 = vmax.f32 %v4395_v24, 0.0 }
 0xc76   : > { %v6293_v14 = vpack.i.bf16 %v4422_v36, %v4421_v31  ;;  %v4414_v48 = vpop.f32.mrf.mxu2 }
 0xc77   : > { %v4415_v11 = vadd.f32 %v4414_v48, %v11538_v7  ;;  %v6508_v7 = vld [vmem:[%s11033_s9 + $0x4f8] sm:$0xff] }
 0xc78   : > { %6294 = vrot.lane.b32.xlu2 %v6293_v14, %s11284_s20 }
 0xc79   : > { %v4423_v0 = vmax.f32 %v4415_v11, 0.0  ;;  %v6523_v11 = vld [vmem:[%s11033_s9 + $0x148] sm:$0xff] }
 0xc7b   : > { %4443 = vrot.lane.b32.xlu0 %v4423_v0, %s11284_s20 }
 0xcc8   : > { %v6285_v6 = vpop.permute.xlu0 %6284 }
 0xcc9   : > { %v6287_v63 = vunpack.i.h.bf16 %v6285_v6  ;;  %v6286_v21 = vunpack.i.l.bf16 %v6285_v6  ;;  %v6528_v6 = vld [vmem:[%s11033_s9 + $0x468] sm:$0xff] }
 0xccb   : > { %v4445_v33 = vsel %vm11540_vm15, %v6286_v21, %v6287_v63  ;;  %vm11566_vm15 = vcmask 588800  }
 0xccc   : > { %v10304_v59 = vmax.f32 %v4417_v35, %v4445_v33  ;;  %v6512_v35 = vld [vmem:[%s11033_s9 + $0x4d8] sm:$0xff]  ;;  %v6531_v33 = vld [vmem:[%s11033_s9 + $0x3e8] sm:$0xff] }
 0xcd2   : > { %v6295_v1 = vpop.permute.xlu2 %6294 }
 0xcd3   : > { %v6297_v54 = vunpack.i.h.bf16 %v6295_v1  ;;  %v6296_v5 = vunpack.i.l.bf16 %v6295_v1  ;;  %v6525_v1 = vld [vmem:[%s11033_s9 + $0x138] sm:$0xff] }
 0xcd5   : > { %v4449_v39 = vsel %vm11539_vm10, %v6296_v5, %v6297_v54  ;;  %vm11563_vm10 = vmmov %vm11541_vm0 }
 0xcd6   : > { %v10296_v18 = vmax.f32 %v4421_v31, %v4449_v39  ;;  %v6521_v31 = vld [vmem:[%s11033_s9 + $0x158] sm:$0xff] }
 0xcd8   : > { %4481 = vrot.lane.b32.xlu0 %v10296_v18, %s11286_s30 }
 0xce0   : > { %v6290_v2 = vpop.permute.xlu1 %6289 }
 0xce1   : > { %v6292_v22 = vunpack.i.h.bf16 %v6290_v2  ;;  %v6291_v25 = vunpack.i.l.bf16 %v6290_v2  ;;  %v6530_v2 = vld [vmem:[%s11033_s9 + $0x2e8] sm:$0xff] }
 0xce3   : > { %v4446_v38 = vsel %vm11541_vm0, %v6287_v63, %v6291_v25  ;;  %v4447_v23 = vsel %vm11542_vm5, %v6291_v25, %v6292_v22  ;;  %v4448_v17 = vsel %vm11543_vm12, %v6292_v22, %v6296_v5  ;;  %v6527_v5 = vld [vmem:[%s11033_s9 + $0x3f8] sm:$0xff]  ;;  %v6529_v63 = vld [vmem:[%s11033_s9 + $0x128] sm:$0xff]  ;;  %vm11567_vm0 = vmmov %vm11566_vm15  ;;  %vm11568_vm5 = vcmask 1043456  }
 0xce4   : > { %v10306_v62 = vmax.f32 %v4418_v56, %v4446_v38  ;;  %v4461_v53 = vmax.f32 %v4419_v46, %v4447_v23  ;;  %v4462_v47 = vmax.f32 %v4420_v61, %v4448_v17  ;;  %v6513_v56 = vld [vmem:[%s11033_s9 + $0x198] sm:$0xff]  ;;  %v6519_v61 = vld [vmem:[%s11033_s9 + $0x168] sm:$0xff]  ;;  %vm11569_vm12 = vcmask 1040384  }
 0xce5   : > { %v6532_v38 = vld [vmem:[%s11033_s9 + $0x458] sm:$0xff] }
 0xce6   : > { %v6303_v4 = vpack.i.bf16 %v4462_v47, %v4461_v53  ;;  %v6298_v27 = vpack.i.bf16 %v10306_v62, %v10304_v59  ;;  %v6533_v17 = vld [vmem:[%s11033_s9 + $0x118] sm:$0xff] }
 0xce8   : > { %6304 = vrot.lane.b32.xlu2 %v6303_v4, %s11286_s30  ;;  %6299 = vrot.lane.b32.xlu1 %v6298_v27, %s11286_s30  ;;  %v6536_v4 = vld [vmem:[%s11033_s9 + $0x448] sm:$0xff] }
 0xce9   : > { %v6538_v27 = vld [vmem:[%s11033_s9 + $0x2c8] sm:$0xff] }
 0xced   : > { %v4444_v26 = vpop.permute.xlu0 %4443 }
 0xcee   : > { %v4450_v52 = vsel %vm11544_vm6, %v6297_v54, %v4444_v26  ;;  %v4458_v60 = vsel %vm2346_vm8, %v4444_v26, 0.0  ;;  %v6526_v54 = vld [vmem:[%s11033_s9 + $0x2f8] sm:$0xff]  ;;  %v6539_v26 = vld [vmem:[%s11033_s9 + $0x3c8] sm:$0xff]  ;;  %vm11570_vm6 = vmmov %vm11569_vm12 }
 0xcef   : > { %v10314_v20 = vmax.f32 %v4422_v36, %v4450_v52  ;;  %v10316_v9 = vmax.f32 %v4423_v0, %v4458_v60  ;;  %v6522_v36 = vld [vmem:[%s11033_s9 + $0x488] sm:$0xff]  ;;  %v6524_v0 = vld [vmem:[%s11033_s9 + $0x478] sm:$0xff] }
 0xcf0   : > { %v6540_v52 = vld [vmem:[%s11033_s9 + $0x438] sm:$0xff] }
 0xcf1   : > { %4485 = vrot.lane.b32.xlu2 %v10316_v9, %s11286_s30  ;;  %4483 = vrot.lane.b32.xlu1 %v10314_v20, %s11286_s30  ;;  %v4506_v51 = vmax.f32 %v10316_v9, 0.0  ;;  %v6541_v60 = vld [vmem:[%s11033_s9 + $0x5f8] sm:$0xff] }
 0xd42   : > { %v6305_v3 = vpop.permute.xlu2 %6304 }
 0xd43   : > { %v6307_v8 = vunpack.i.h.bf16 %v6305_v3  ;;  %v6306_v41 = vunpack.i.l.bf16 %v6305_v3  ;;  %v6543_v3 = vld [vmem:[%s11033_s9 + $0x3b8] sm:$0xff] }
 0xd45   : > { %v4489_v57 = vsel %vm1404_vm3, %v6306_v41, %v6307_v8 }
 0xd46   : > { %v10323_v30 = vmax.f32 %v4461_v53, %v4489_v57  ;;  %v6535_v53 = vld [vmem:[%s11033_s9 + $0x3d8] sm:$0xff]  ;;  %v6546_v57 = vld [vmem:[%s11033_s9 + $0x2a8] sm:$0xff] }
 0xd48   : > { %4566 = vmatmul.f32.vlgmr.msrb.gmra.mxu0 %v10323_v30 }
 0xd49   : > { %4670 = vmatpush.msrb.mxu0 %v6504_v42  ;;  %v6547_v42 = vld [vmem:[%s11033_s9 + $0x3a8] sm:$0xff] }
 0xd4a   : > { %v10329_v15 = vpop.permute.xlu0 %4481 }
 0xd4b   : > { %4671 = vmatpush.msrb.mxu0 %v6505_v10  ;;  %v4490_v40 = vsel %vm1404_vm3, %v6307_v8, %v10329_v15  ;;  %v4486_v39 = vpop.permute.xlu2 %4485  ;;  %v6544_v8 = vld [vmem:[%s11033_s9 + $0x428] sm:$0xff]  ;;  %v6549_v10 = vld [vmem:[%s11033_s9 + $0x5d8] sm:$0xff] }
 0xd4c   : > { %v10336_v58 = vmax.f32 %v4462_v47, %v4490_v40  ;;  %v6550_v40 = vld [vmem:[%s11033_s9 + $0x298] sm:$0xff] }
 0xd4d   : > { %4672 = vmatpush.msrb.mxu0 %v6506_v13  ;;  %v6551_v13 = vld [vmem:[%s11033_s9 + $0x398] sm:$0xff] }
 0xd4e   : > { %4586 = vmatmul.f32.vlgmr.msra.gmra.mxu2 %v10336_v58 }
 0xd4f   : > { %4673 = vmatpush.msrb.mxu0 %v6507_v55  ;;  %4730 = vmatpush.msra.mxu2 %v6508_v7  ;;  %v6552_v55 = vld [vmem:[%s11033_s9 + $0x408] sm:$0xff] }
 0xd50   : > { %5535 = vmatmul.msk.f32.vlgmr.msra.gmra.mxu0 %vm2397_vm13, %v4506_v51  ;;  %v6553_v7 = vld [vmem:[%s11033_s9 + $0x5c8] sm:$0xff] }
 0xd51   : > { %4674 = vmatpush.msrb.mxu0 %v6509_v49  ;;  %4731 = vmatpush.msra.mxu2 %v6510_v28  ;;  %v6554_v49 = vld [vmem:[%s11033_s9 + $0x288] sm:$0xff] }
 0xd52   : > { %v6555_v28 = vld [vmem:[%s11033_s9 + $0x388] sm:$0xff] }
 0xd53   : > { %4675 = vmatpush.msrb.mxu0 %v6511_v19  ;;  %4732 = vmatpush.msra.mxu2 %v6512_v35  ;;  %v6556_v19 = vld [vmem:[%s11033_s9 + $0x5b8] sm:$0xff] }
 0xd54   : > { %v6557_v35 = vld [vmem:[%s11033_s9 + $0x278] sm:$0xff] }
 0xd55   : > { %4676 = vmatpush.msrb.mxu0 %v6513_v56  ;;  %4733 = vmatpush.msra.mxu2 %v6514_v45  ;;  %v6558_v56 = vld [vmem:[%s11033_s9 + $0x378] sm:$0xff]  ;;  %v6559_v45 = vld [vmem:[%s11033_s9 + $0x5a8] sm:$0xff] }
 0xd57   : > { %4677 = vmatpush.msrb.mxu0 %v6515_v29  ;;  %4734 = vmatpush.msra.mxu2 %v6516_v44  ;;  %v6560_v29 = vld [vmem:[%s11033_s9 + $0x268] sm:$0xff] }
 0xd58   : > { %v6561_v44 = vld [vmem:[%s11033_s9 + $0x368] sm:$0xff] }
 0xd59   : > { %4678 = vmatpush.msrb.mxu0 %v6517_v43  ;;  %4735 = vmatpush.msra.mxu2 %v6518_v34  ;;  %v6562_v43 = vld [vmem:[%s11033_s9 + $0x598] sm:$0xff] }
 0xd5a   : > { %v6300_v46 = vpop.permute.xlu1 %6299  ;;  %v6563_v34 = vld [vmem:[%s11033_s9 + $0x258] sm:$0xff] }
 0xd5b   : > { %4679 = vmatpush.msrb.mxu0 %v6519_v61  ;;  %4736 = vmatpush.msra.mxu2 %v6520_v37  ;;  %v6302_v32 = vunpack.i.h.bf16 %v6300_v46  ;;  %v6301_v50 = vunpack.i.l.bf16 %v6300_v46  ;;  %v6564_v46 = vld [vmem:[%s11033_s9 + $0x358] sm:$0xff]  ;;  %v6565_v61 = vld [vmem:[%s11033_s9 + $0x588] sm:$0xff] }
 0xd5c   : > { %v6566_v37 = vld [vmem:[%s11033_s9 + $0x248] sm:$0xff] }
 0xd5d   : > { %v4488_v12 = vsel %vm1404_vm3, %v6302_v32, %v6306_v41  ;;  %v4487_v24 = vsel %vm1404_vm3, %v6301_v50, %v6302_v32  ;;  %4680 = vmatpush.msrb.mxu0 %v6521_v31  ;;  %4737 = vmatpush.msra.mxu2 %v6522_v36  ;;  %v6545_v41 = vld [vmem:[%s11033_s9 + $0x5e8] sm:$0xff]  ;;  %v6568_v50 = vld [vmem:[%s11033_s9 + $0x578] sm:$0xff] }
 0xd5e   : > { %v4501_v14 = vmax.f32 %v10306_v62, %v4488_v12  ;;  %v4500_v48 = vmax.f32 %v10304_v59, %v4487_v24  ;;  %v6534_v62 = vld [vmem:[%s11033_s9 + $0x2d8] sm:$0xff]  ;;  %v6567_v32 = vld [vmem:[%s11033_s9 + $0x348] sm:$0xff] }
 0xd5f   : > { %4681 = vmatpush.msrb.mxu0 %v6523_v11  ;;  %4738 = vmatpush.msra.mxu2 %v6524_v0  ;;  %v6569_v12 = vld [vmem:[%s11033_s9 + $0x238] sm:$0xff]  ;;  %v6571_v31 = vld [vmem:[%s11033_s9 + $0x568] sm:$0xff] }
 0xd60   : > { %4526 = vmatmul.f32.vlgmr.msrb.gmra.mxu3 %v4500_v48  ;;  %4546 = vmatmul.f32.vlgmr.msra.gmra.mxu1 %v4501_v14  ;;  %v6570_v24 = vld [vmem:[%s11033_s9 + $0x338] sm:$0xff]  ;;  %v6572_v36 = vld [vmem:[%s11033_s9 + $0x228] sm:$0xff] }
 0xd61   : > { %4666 = vmatmul.f32.vlgmr.msrb.gmra.mxu2 %v4500_v48  ;;  %4682 = vmatpush.msrb.mxu0 %v6525_v1  ;;  %v6574_v48 = vld [vmem:[%s11033_s9 + $0x558] sm:$0xff]  ;;  %v6577_v1 = vld [vmem:[%s11033_s9 + $0x548] sm:$0xff] }
 0xd62   : > { %4690 = vmatpush.msrb.mxu3 %v6526_v54  ;;  %4710 = vmatpush.msra.mxu1 %v6527_v5  ;;  %v6575_v11 = vld [vmem:[%s11033_s9 + $0x218] sm:$0xff]  ;;  %v6578_v54 = vld [vmem:[%s11033_s9 + $0x208] sm:$0xff] }
 0xd63   : > { %4739 = vmatpush.msra.mxu2 %v6528_v6  ;;  %4683 = vmatpush.msrb.mxu0 %v6529_v63  ;;  %v4484_v21 = vpop.permute.xlu1 %4483  ;;  %v6576_v0 = vld [vmem:[%s11033_s9 + $0x318] sm:$0xff]  ;;  %v6579_v5 = vld [vmem:[%s11033_s9 + $0x308] sm:$0xff] }
 0xd64   : > { %4691 = vmatpush.msrb.mxu3 %v6530_v2  ;;  %4711 = vmatpush.msra.mxu1 %v6531_v33  ;;  %v4491_v22 = vsel %vm1404_vm3, %v10329_v15, %v4484_v21  ;;  %v4492_v25 = vsel %vm1404_vm3, %v4484_v21, %v4486_v39  ;;  %v6548_v15 = vld [vmem:[%s11033_s9 + $0x418] sm:$0xff]  ;;  %v6582_v63 = vld [vmem:[%s11033_s9 + $0x528] sm:$0xff] }
 0xd65   : > { %4740 = vmatpush.msra.mxu2 %v6532_v38  ;;  %v4499_v23 = vsel %vm11545_vm14, %v4492_v25, 0.0  ;;  %4684 = vmatpush.msrb.mxu0 %v6533_v17  ;;  %v4504_v59 = vmax.f32 %v10296_v18, %v4491_v22  ;;  %v6537_v18 = vld [vmem:[%s11033_s9 + $0x108] sm:$0xff]  ;;  %v6580_v39 = vld [vmem:[%s11033_s9 + $0x538] sm:$0xff] }
 0xd66   : > { %4692 = vmatpush.msrb.mxu3 %v6534_v62  ;;  %4712 = vmatpush.msra.mxu1 %v6535_v53  ;;  %v10443_v47 = vmax.f32 %v10314_v20, %v4499_v23  ;;  %v6542_v20 = vld [vmem:[%s11033_s9 + $0x2b8] sm:$0xff]  ;;  %v6585_v21 = vld [vmem:[%s11033_s9 + $0x508] sm:$0xff] }
 0xd67   : > { %4741 = vmatpush.msra.mxu2 %v6536_v4  ;;  %4685 = vmatpush.msrb.mxu0 %v6537_v18  ;;  %v6581_v6 = vld [vmem:[%s11033_s9 + $0x618] sm:$0xff] }
 0xd68   : > { %4693 = vmatpush.msrb.mxu3 %v6538_v27  ;;  %4713 = vmatpush.msra.mxu1 %v6539_v26 }
 0xd69   : > { %4742 = vmatpush.msra.mxu2 %v6540_v52  ;;  %4686 = vmatmul.f32.vlgmr.msrb.gmra.mxu0 %v4501_v14  ;;  %v6573_v14 = vld [vmem:[%s11033_s9 + $0x328] sm:$0xff] }
 0xd6a   : > { %4750 = vmatpush.msra.mxu0 %v6541_v60  ;;  %4606 = vmatmul.f32.vlgmr.msra.gmra.mxu3 %v4504_v59 }
 0xd6b   : > { %4626 = vmatmul.f32.vlgmr.msrb.gmra.mxu1 %v10443_v47  ;;  %4694 = vmatpush.msrb.mxu3 %v6542_v20 }
 0xd6c   : > { %4714 = vmatpush.msra.mxu1 %v6543_v3  ;;  %4743 = vmatpush.msra.mxu2 %v6544_v8 }
 0xd6d   : > { %4751 = vmatpush.msra.mxu0 %v6545_v41  ;;  %4695 = vmatpush.msrb.mxu3 %v6546_v57 }
 0xd6e   : > { %4715 = vmatpush.msra.mxu1 %v6547_v42  ;;  %4744 = vmatpush.msra.mxu2 %v6548_v15 }
 0xd6f   : > { %4752 = vmatpush.msra.mxu0 %v6549_v10  ;;  %4696 = vmatpush.msrb.mxu3 %v6550_v40 }
 0xd70   : > { %4716 = vmatpush.msra.mxu1 %v6551_v13  ;;  %4745 = vmatpush.msra.mxu2 %v6552_v55 }
 0xd71   : > { %4746 = vmatmul.f32.vlgmr.msra.gmra.mxu2 %v4504_v59  ;;  %4753 = vmatpush.msra.mxu0 %v6553_v7 }
 0xd72   : > { %4697 = vmatpush.msrb.mxu3 %v6554_v49  ;;  %4717 = vmatpush.msra.mxu1 %v6555_v28  ;;  %v11548_v49 = vld [vmem:[#allocation25_spill] sm:$0xff] }
 0xd73   : > { %4754 = vmatpush.msra.mxu0 %v6556_v19 }
 0xd74   : > { %4698 = vmatpush.msrb.mxu3 %v6557_v35  ;;  %4718 = vmatpush.msra.mxu1 %v6558_v56  ;;  %v11549_v35 = vld [vmem:[#allocation18_spill] sm:$0xff] }
 0xd75   : > { %4755 = vmatpush.msra.mxu0 %v6559_v45  ;;  %v11550_v45 = vld [vmem:[#allocation19_spill] sm:$0xff] }
 0xd76   : > { %4699 = vmatpush.msrb.mxu3 %v6560_v29  ;;  %4719 = vmatpush.msra.mxu1 %v6561_v44  ;;  %v11551_v44 = vld [vmem:[#allocation14_spill] sm:$0xff] }
 0xd77   : > { %4756 = vmatpush.msra.mxu0 %v6562_v43 }
 0xd78   : > { %4700 = vmatpush.msrb.mxu3 %v6563_v34  ;;  %4720 = vmatpush.msra.mxu1 %v6564_v46 }
 0xd79   : > { %4757 = vmatpush.msra.mxu0 %v6565_v61  ;;  %v11552_v61 = vld [vmem:[#allocation42_spill] sm:$0xff] }
 0xd7a   : > { %4701 = vmatpush.msrb.mxu3 %v6566_v37  ;;  %4721 = vmatpush.msra.mxu1 %v6567_v32  ;;  %v11553_v32 = vld [vmem:[#allocation12_spill] sm:$0xff] }
 0xd7b   : > { %4758 = vmatpush.msra.mxu0 %v6568_v50 }
 0xd7c   : > { %4702 = vmatpush.msrb.mxu3 %v6569_v12  ;;  %4722 = vmatpush.msra.mxu1 %v6570_v24  ;;  %v11554_v12 = vld [vmem:[#allocation13_spill] sm:$0xff] }
 0xd7d   : > { %4759 = vmatpush.msra.mxu0 %v6571_v31  ;;  %v11555_v31 = vld [vmem:[#allocation15_spill] sm:$0xff] }
 0xd7e   : > { %4703 = vmatpush.msrb.mxu3 %v6572_v36  ;;  %4723 = vmatpush.msra.mxu1 %v6573_v14 }
 0xd7f   : > { %4760 = vmatpush.msra.mxu0 %v6574_v48 }
 0xd80   : > { %4704 = vmatpush.msrb.mxu3 %v6575_v11  ;;  %4724 = vmatpush.msra.mxu1 %v6576_v0  ;;  %v11558_v11 = vld [vmem:[#allocation44_spill] sm:$0xff] }
 0xd81   : > { %4761 = vmatpush.msra.mxu0 %v6577_v1  ;;  %v11559_v1 = vld [vmem:[#allocation43_spill] sm:$0xff] }
 0xd82   : > { %4705 = vmatpush.msrb.mxu3 %v6578_v54  ;;  %4725 = vmatpush.msra.mxu1 %v6579_v5 }
 0xd83   : > { %4706 = vmatmul.f32.vlgmr.msrb.gmra.mxu3 %v10323_v30  ;;  %4726 = vmatmul.f32.vlgmr.msra.gmra.mxu1 %v10336_v58  ;;  %v6583_v30 = vld [vmem:[%s11033_s9 + $0x608] sm:$0xff]  ;;  %v6584_v58 = vld [vmem:[%s11033_s9 + $0x518] sm:$0xff] }
 0xd84   : > { %4762 = vmatpush.msra.mxu0 %v6580_v39  ;;  %4784 = vmatpush.msra.mxu3 %v6581_v6 }
 0xd86   : > { %4763 = vmatpush.msra.mxu0 %v6582_v63  ;;  %4785 = vmatpush.msra.mxu3 %v6583_v30 }
 0xd88   : > { %4764 = vmatpush.msra.mxu0 %v6584_v58 }
 0xd8a   : > { %4765 = vmatpush.msra.mxu0 %v6585_v21 }
 0xd8b   : > { %4766 = vmatmul.f32.vlgmr.msra.gmra.mxu0 %v10443_v47  ;;  %5536 = vmatmul.msk.f32.vlgmr.msra.gmra.mxu3 %vm2397_vm13, %v4506_v51  ;;  %vm11547_vm13 = vcmask 678912  }
 0xd8c   : > { %vm11572_vm14 = vmmov %vm11547_vm13 }
 0xdc5   : > { %v4567_v25 = vpop.f32.mrf.mxu0 }
 0xdcd   : > { %v4647_v18 = vpop.f32.mrf.mxu0 }
 0xdd1   : > { %v4587_v23 = vpop.f32.mrf.mxu2 }
 0xddd   : > { %v4547_v2 = vpop.f32.mrf.mxu1 }
 0xde3   : > { %v4527_v33 = vpop.f32.mrf.mxu3 }
 0xde4   : > { %v4548_v22 = vadd.f32 %v4547_v2, %v4527_v33  ;;  %v4667_v47 = vpop.f32.mrf.mxu2 }
 0xde6   : > { %v4568_v38 = vadd.f32 %v4567_v25, %v4548_v22  ;;  %v4687_v26 = vpop.f32.mrf.mxu0 }
 0xde7   : > { %v4688_v9 = vadd.f32 %v4687_v26, %v4667_v47 }
 0xde8   : > { %v4588_v17 = vadd.f32 %v4587_v23, %v4568_v38  ;;  %v4627_v53 = vpop.f32.mrf.mxu1 }
 0xded   : > { %v4607_v59 = vpop.f32.mrf.mxu3 }
 0xdee   : > { %v4608_v62 = vadd.f32 %v4607_v59, %v4588_v17 }
 0xdf0   : > { %v4628_v4 = vadd.f32 %v4627_v53, %v4608_v62 }
 0xdf2   : > { %v4648_v27 = vadd.f32 %v4647_v18, %v4628_v4 }
 0xdf4   : > { %4792 = vrot.lane.b32.xlu0 %v4648_v27, %s11546_s2  ;;  %v4747_v3 = vpop.f32.mrf.mxu2 }
 0xe00   : > { %v4727_v60 = vpop.f32.mrf.mxu1 }
 0xe06   : > { %v4707_v52 = vpop.f32.mrf.mxu3 }
 0xe07   : > { %v4708_v51 = vadd.f32 %v4707_v52, %v4688_v9 }
 0xe08   : > { %v4767_v41 = vpop.f32.mrf.mxu0 }
 0xe09   : > { %v4728_v20 = vadd.f32 %v4727_v60, %v4708_v51 }
 0xe0b   : > { %v4748_v8 = vadd.f32 %v4747_v3, %v4728_v20 }
 0xe0d   : > { %v4768_v57 = vadd.f32 %v4767_v41, %v4748_v8 }
 0xe0e   : > { %v4787_v42 = vpop.f32.mrf.mxu3 }
 0xe0f   : > { %v4788_v15 = vadd.f32 %v4787_v42, %v4768_v57 }
 0xe11   : > { %4794 = vrot.lane.b32.xlu1 %v4788_v15, %s11546_s2 }
 0xe66   : > { %v4793_v10 = vpop.permute.xlu0 %4792 }
 0xe67   : > { %v10605_v40 = vsel %vm2346_vm8, 0.0, %v4793_v10 }
 0xe68   : > { %v4811_v28 = vmul.f32 %v11548_v49, %v10605_v40  ;;  %v4809_v29 = vmul.f32 %v11550_v45, %v10605_v40  ;;  %v4807_v24 = vmul.f32 %v11554_v12, %v10605_v40  ;;  %v4805_v36 = vmul.f32 %v11555_v31, %v10605_v40 }
 0xe69   : > { %v4803_v54 = vmul.f32 %v11559_v1, %v10605_v40 }
 0xe83   : > { %v4795_v13 = vpop.permute.xlu1 %4794 }
 0xe84   : > { %v4796_v55 = vsel %vm2346_vm8, %v4793_v10, %v4795_v13  ;;  %v11564_v10 = vld [vmem:[#allocation20_spill] sm:$0xff] }
 0xe85   : > { %v10609_v7 = vsel %vm11547_vm13, %v4796_v55, 0.0  ;;  %v11565_v55 = vld [vmem:[#allocation26_spill] sm:$0xff]  ;;  %vm11577_vm13 = vmmov %vm11567_vm0 }
 0xe86   : > { %v6308_v19 = vpack.i.bf16 %v10609_v7, %v10605_v40  ;;  %v4812_v56 = vmul.f32 %v10609_v7, %v11549_v35  ;;  %v4810_v43 = vmul.f32 %v10609_v7, %v11551_v44  ;;  %v4808_v37 = vmul.f32 %v10609_v7, %v11552_v61 }
 0xe87   : > { %v4806_v50 = vmul.f32 %v10609_v7, %v11553_v32  ;;  %v4804_v0 = vmul.f32 %v10609_v7, %v11558_v11  ;;  %v4802_v13 = vmul.f32 %v11564_v10, %v10609_v7  ;;  %v6589_v7 = vld [vmem:[%s11034_s10 + $0xb8] sm:$0xff] }
 0xe88   : > { %6309 = vrot.lane.b32.xlu0 %v6308_v19, %s11282_s16  ;;  %v6318_v34 = vpack.i.bf16 %v4812_v56, %v4811_v28  ;;  %v6323_v46 = vpack.i.bf16 %v4810_v43, %v4809_v29  ;;  %v6328_v14 = vpack.i.bf16 %v4808_v37, %v4807_v24  ;;  %v4801_v28 = vmul.f32 %v11565_v55, %v10605_v40  ;;  %v6587_v56 = vld [vmem:[%s11034_s10 + $0xc0] sm:$0xf]  ;;  %v6588_v40 = vld [vmem:[%s11034_s10 + $0x78] sm:$0xff]  ;;  %v6590_v29 = vld [vmem:[%s11034_s10 + $0x70] sm:$0xff] }
 0xe89   : > { %v6333_v48 = vpack.i.bf16 %v4806_v50, %v4805_v36  ;;  %v6338_v5 = vpack.i.bf16 %v4804_v0, %v4803_v54  ;;  %v6591_v43 = vld [vmem:[%s11034_s10 + $0xb0] sm:$0xff]  ;;  %v6594_v37 = vld [vmem:[%s11034_s10 + $0x60] sm:$0xff]  ;;  %v6596_v24 = vld [vmem:[%s11034_s10 + $0x58] sm:$0xff] }
 0xe8a   : > { %6319 = vrot.lane.b32.xlu2 %v6318_v34, %s11341_s25  ;;  %6324 = vrot.lane.b32.xlu1 %v6323_v46, %s11286_s30  ;;  %v6592_v34 = vld [vmem:[%s11034_s10 + $0x68] sm:$0xff]  ;;  %v6595_v50 = vld [vmem:[%s11034_s10 + $0xa0] sm:$0xff] }
 0xe8b   : > { %v6593_v46 = vld [vmem:[%s11034_s10 + $0xa8] sm:$0xff]  ;;  %v6597_v36 = vld [vmem:[%s11034_s10 + $0x98] sm:$0xff] }
 0xe8c   : > { %v6600_v0 = vld [vmem:[%s11034_s10 + $0x48] sm:$0xff] }
 0xe8d   : > { %v6601_v54 = vld [vmem:[%s11034_s10 + $0x88] sm:$0xff] }
 0xe90   : > { %6314 = vrot.lane.b32.xlu0 %v6308_v19, %s11556_s23 }
 0xe92   : > { %6329 = vrot.lane.b32.xlu2 %v6328_v14, %s11557_s18  ;;  %6334 = vrot.lane.b32.xlu1 %v6333_v48, %s11360_s15  ;;  %v6598_v14 = vld [vmem:[%s11034_s10 + $0x50] sm:$0xff] }
 0xe93   : > { %v6599_v48 = vld [vmem:[%s11034_s10 + $0x90] sm:$0xff] }
 0xe98   : > { %6344 = vrot.lane.b32.xlu0 %v6308_v19, %s11284_s20  ;;  %v6586_v19 = vld [vmem:[%s11029_s5] sm:$0xff] }
 0xe9a   : > { %6339 = vrot.lane.b32.xlu2 %v6338_v5, %s11287_s22  ;;  %v6602_v5 = vld [vmem:[%s11034_s10 + $0x40] sm:$0xff] }
 0xee4   : > { %v6320_v39 = vpop.permute.xlu2 %6319 }
 0xee5   : > { %v6322_v6 = vunpack.i.h.bf16 %v6320_v39  ;;  %v6321_v63 = vunpack.i.l.bf16 %v6320_v39  ;;  %v6603_v39 = vld [vmem:[%s11034_s10 + $0x80] sm:$0xff] }
 0xee7   : > { %4908 = vmatpush.msrb.mxu1 %v6322_v6  ;;  %v4878_v30 = vsel %vm1481_vm7, %v6321_v63, %v6322_v6  ;;  %v6604_v6 = vld [vmem:[%s11034_s10 + $0x38] sm:$0xff] }
 0xee8   : > { %4888 = vmatpush.msrb.mxu3 %v4878_v30  ;;  %v6605_v63 = vld [vmem:[%s11035_s11 + $0xd8] sm:$0x1]  ;;  %v6606_v30 = vld [vmem:[%s11034_s10 + $0x30] sm:$0xff] }
 0xeec   : > { %v6330_v58 = vpop.permute.xlu2 %6329 }
 0xeed   : > { %v6332_v22 = vunpack.i.h.bf16 %v6330_v58  ;;  %v6331_v38 = vunpack.i.l.bf16 %v6330_v58  ;;  %v6607_v58 = vld [vmem:[%s11035_s11 + $0xd0] sm:$0xff] }
 0xeef   : > { %v4853_v4 = vsel %vm11560_vm1, %v6331_v38, %v6332_v22  ;;  %v6613_v38 = vld [vmem:[%s11035_s11 + $0xb8] sm:$0xff] }
 0xef4   : > { %v6340_v53 = vpop.permute.xlu2 %6339 }
 0xef5   : > { %v6342_v26 = vunpack.i.h.bf16 %v6340_v53  ;;  %v6341_v52 = vunpack.i.l.bf16 %v6340_v53  ;;  %v6618_v53 = vld [vmem:[%s11034_s10] sm:$0xff] }
 0xef7   : > { %v4828_v8 = vsel %vm1362_vm2, %v6341_v52, %v6342_v26  ;;  %v6625_v52 = vld [vmem:[%s11035_s11 + $0x118] sm:$0xff] }
 0xefa   : > { %v6310_v21 = vpop.permute.xlu0 %6309 }
 0xefb   : > { %v6312_v2 = vunpack.i.h.bf16 %v6310_v21  ;;  %v6311_v33 = vunpack.i.l.bf16 %v6310_v21  ;;  %v6608_v21 = vld [vmem:[%s11034_s10 + $0x28] sm:$0xff] }
 0xefc   : > { %v6325_v25 = vpop.permute.xlu1 %6324 }
 0xefd   : > { %v6327_v23 = vunpack.i.h.bf16 %v6325_v25  ;;  %v6326_v17 = vunpack.i.l.bf16 %v6325_v25  ;;  %4909 = vmatpush.msrb.mxu1 %v6312_v2  ;;  %v4869_v59 = vsel %vm1439_vm4, %v6311_v33, %v6312_v2  ;;  %v6609_v2 = vld [vmem:[%s11035_s11 + $0xc8] sm:$0xff]  ;;  %v6610_v33 = vld [vmem:[%s11034_s10 + $0x20] sm:$0xff]  ;;  %v6612_v25 = vld [vmem:[%s11034_s10 + $0x18] sm:$0xff] }
 0xefe   : > { %4889 = vmatpush.msrb.mxu3 %v4869_v59  ;;  %v6616_v59 = vld [vmem:[%s11034_s10 + $0x8] sm:$0xff] }
 0xeff   : > { %4910 = vmatpush.msrb.mxu1 %v6327_v23  ;;  %v4862_v62 = vsel %vm1404_vm3, %v6326_v17, %v6327_v23  ;;  %v6614_v23 = vld [vmem:[%s11034_s10 + $0x10] sm:$0xff] }
 0xf00   : > { %4890 = vmatpush.msrb.mxu3 %v4862_v62  ;;  %v6615_v17 = vld [vmem:[%s11035_s11 + $0xb0] sm:$0xff]  ;;  %v6617_v62 = vld [vmem:[%s11035_s11 + $0xa8] sm:$0xff] }
 0xf01   : > { %4911 = vmatpush.msrb.mxu1 %v6332_v22  ;;  %v6611_v22 = vld [vmem:[%s11035_s11 + $0xc0] sm:$0xff] }
 0xf02   : > { %v6315_v18 = vpop.permute.xlu0 %6314  ;;  %4891 = vmatpush.msrb.mxu3 %v4853_v4  ;;  %v6619_v4 = vld [vmem:[%s11035_s11 + $0x148] sm:$0x1] }
 0xf03   : > { %v6317_v27 = vunpack.i.h.bf16 %v6315_v18  ;;  %v6316_v47 = vunpack.i.l.bf16 %v6315_v18  ;;  %v6620_v18 = vld [vmem:[%s11035_s11 + $0x140] sm:$0xff] }
 0xf04   : > { %v6335_v9 = vpop.permute.xlu1 %6334 }
 0xf05   : > { %v6337_v51 = vunpack.i.h.bf16 %v6335_v9  ;;  %v6336_v60 = vunpack.i.l.bf16 %v6335_v9  ;;  %4912 = vmatpush.msrb.mxu1 %v6317_v27  ;;  %v4844_v20 = vsel %vm11561_vm11, %v6316_v47, %v6317_v27  ;;  %v6621_v27 = vld [vmem:[%s11035_s11 + $0x138] sm:$0xff]  ;;  %v6622_v47 = vld [vmem:[%s11035_s11 + $0x130] sm:$0xff]  ;;  %v6624_v9 = vld [vmem:[%s11035_s11 + $0x120] sm:$0xff] }
 0xf06   : > { %4892 = vmatpush.msrb.mxu3 %v4844_v20 }
 0xf07   : > { %4913 = vmatpush.msrb.mxu1 %v6337_v51  ;;  %v4837_v3 = vsel %vm11562_vm9, %v6336_v60, %v6337_v51  ;;  %v11571_v60 = vld [vmem:[#allocation45_spill] sm:$0xff] }
 0xf08   : > { %4893 = vmatpush.msrb.mxu3 %v4837_v3 }
 0xf09   : > { %4914 = vmatpush.msrb.mxu1 %v6342_v26  ;;  %v6623_v26 = vld [vmem:[%s11035_s11 + $0x128] sm:$0xff] }
 0xf0a   : > { %v6345_v41 = vpop.permute.xlu0 %6344  ;;  %4894 = vmatpush.msrb.mxu3 %v4828_v8 }
 0xf0b   : > { %v6347_v57 = vunpack.i.h.bf16 %v6345_v41  ;;  %v6346_v42 = vunpack.i.l.bf16 %v6345_v41 }
 0xf0d   : > { %4915 = vmatpush.msrb.mxu1 %v6347_v57  ;;  %v4819_v15 = vsel %vm11563_vm10, %v6346_v42, %v6347_v57 }
 0xf0e   : > { %4895 = vmatpush.msrb.mxu3 %v4819_v15 }
 0xf0f   : > { %4916 = vmatpush.msrb.mxu1 %v4802_v13 }
 0xf10   : > { %4896 = vmatpush.msrb.mxu3 %v4801_v28  ;;  %5538 = vmatmul.msk.f32.vlgmr.msrb.gmra.mxu1 %vm11566_vm15, %v6586_v19 }
 0xf11   : > { %5537 = vmatmul.msk.f32.vlgmr.msrb.gmra.mxu3 %vm11567_vm0, %v6586_v19  ;;  %5541 = vmatpush.msk.msra.mxu1 %vm11568_vm5, %v6587_v56  ;;  %vm11586_vm5 = vcmask 441344  }
 0xf12   : > { %5083 = vmatpush.msra.mxu3 %v6588_v40 }
 0xf13   : > { %5111 = vmatpush.msra.mxu1 %v6589_v7 }
 0xf14   : > { %5084 = vmatpush.msra.mxu3 %v6590_v29 }
 0xf15   : > { %5112 = vmatpush.msra.mxu1 %v6591_v43 }
 0xf16   : > { %5085 = vmatpush.msra.mxu3 %v6592_v34 }
 0xf17   : > { %5113 = vmatpush.msra.mxu1 %v6593_v46 }
 0xf18   : > { %5086 = vmatpush.msra.mxu3 %v6594_v37 }
 0xf19   : > { %5114 = vmatpush.msra.mxu1 %v6595_v50 }
 0xf1a   : > { %5087 = vmatpush.msra.mxu3 %v6596_v24 }
 0xf1b   : > { %5115 = vmatpush.msra.mxu1 %v6597_v36 }
 0xf1c   : > { %5088 = vmatpush.msra.mxu3 %v6598_v14 }
 0xf1d   : > { %5116 = vmatpush.msra.mxu1 %v6599_v48 }
 0xf1e   : > { %5089 = vmatpush.msra.mxu3 %v6600_v0 }
 0xf1f   : > { %5117 = vmatpush.msra.mxu1 %v6601_v54 }
 0xf20   : > { %5090 = vmatpush.msra.mxu3 %v6602_v5 }
 0xf21   : > { %5118 = vmatpush.msra.mxu1 %v6603_v39 }
 0xf22   : > { %5091 = vmatpush.msra.mxu3 %v6604_v6 }
 0xf23   : > { %5549 = vmatpush.msk.msrb.mxu1 %vm11569_vm12, %v6605_v63  ;;  %vm11587_vm12 = vcmask 556032  }
 0xf24   : > { %5092 = vmatpush.msra.mxu3 %v6606_v30 }
 0xf25   : > { %5208 = vmatpush.msrb.mxu1 %v6607_v58 }
 0xf26   : > { %5093 = vmatpush.msra.mxu3 %v6608_v21 }
 0xf27   : > { %5209 = vmatpush.msrb.mxu1 %v6609_v2 }
 0xf28   : > { %5094 = vmatpush.msra.mxu3 %v6610_v33 }
 0xf29   : > { %5210 = vmatpush.msrb.mxu1 %v6611_v22 }
 0xf2a   : > { %5095 = vmatpush.msra.mxu3 %v6612_v25 }
 0xf2b   : > { %5211 = vmatpush.msrb.mxu1 %v6613_v38 }
 0xf2c   : > { %5096 = vmatpush.msra.mxu3 %v6614_v23 }
 0xf2d   : > { %5212 = vmatpush.msrb.mxu1 %v6615_v17 }
 0xf2e   : > { %5097 = vmatpush.msra.mxu3 %v6616_v59 }
 0xf2f   : > { %5213 = vmatpush.msrb.mxu1 %v6617_v62 }
 0xf30   : > { %5098 = vmatpush.msra.mxu3 %v6618_v53 }
 0xf32   : > { %5553 = vmatpush.msk.msrb.mxu3 %vm11570_vm6, %v6619_v4 }
 0xf34   : > { %5256 = vmatpush.msrb.mxu3 %v6620_v18 }
 0xf36   : > { %5257 = vmatpush.msrb.mxu3 %v6621_v27 }
 0xf38   : > { %5258 = vmatpush.msrb.mxu3 %v6622_v47 }
 0xf3a   : > { %5259 = vmatpush.msrb.mxu3 %v6623_v26 }
 0xf3c   : > { %5260 = vmatpush.msrb.mxu3 %v6624_v9 }
 0xf3e   : > { %5261 = vmatpush.msrb.mxu3 %v6625_v52 }
 0xf8d   : > { %v4918_v51 = vpop.f32.mrf.mxu1 }
 0xf8e   : > { %v4919_v20 = vadd.f32 %v4918_v51, %v11571_v60 }
 0xf90   : > { %v4922_v3 = vmax.f32 %v4919_v20, 0.0  ;;  %v6627_v20 = vld [vmem:[%s11035_s11 + $0x68] sm:$0x1] }
 0xf92   : > { %4927 = vrot.lane.b32.xlu2 %v4922_v3, %s11546_s2  ;;  %v6630_v3 = vld [vmem:[%s11035_s11 + $0x28] sm:$0xff] }
 0xf94   : > { %v4898_v8 = vpop.f32.mrf.mxu3 }
 0xf95   : > { %v4899_v41 = vadd.f32 %v4898_v8, %v11571_v60  ;;  %v6626_v60 = vld [vmem:[%s11031_s7] sm:$0xff]  ;;  %v6631_v8 = vld [vmem:[%s11035_s11 + $0x58] sm:$0xff] }
 0xf97   : > { %v4921_v57 = vmax.f32 %v4899_v41, 0.0  ;;  %v6632_v41 = vld [vmem:[%s11035_s11 + $0x20] sm:$0xff] }
 0xf99   : > { %4925 = vrot.lane.b32.xlu1 %v4921_v57, %s11546_s2  ;;  %v6633_v57 = vld [vmem:[%s11035_s11 + $0x50] sm:$0xff] }
 0xfec   : > { %v4928_v42 = vpop.permute.xlu2 %4927 }
0x100b   : > { %v4926_v15 = vpop.permute.xlu1 %4925 }
0x100c   : > { %v4929_v13 = vsel %vm2346_vm8, %v4926_v15, %v4928_v42  ;;  %v10784_v28 = vsel %vm2346_vm8, 0.0, %v4926_v15  ;;  %vm11576_vm8 = vmmov %vm11563_vm10  ;;  %v6634_v42 = vld [vmem:[%s11035_s11 + $0x18] sm:$0xff]  ;;  %v6635_v15 = vld [vmem:[%s11035_s11 + $0x48] sm:$0xff] }
0x100d   : > { %v10787_v19 = vsel %vm11572_vm14, %v4929_v13, 0.0  ;;  %v4944_v56 = vmul.f32 %v11548_v49, %v10784_v28  ;;  %v4942_v40 = vmul.f32 %v11550_v45, %v10784_v28  ;;  %v4940_v49 = vmul.f32 %v11554_v12, %v10784_v28  ;;  %v6636_v13 = vld [vmem:[%s11035_s11 + $0x10] sm:$0xff]  ;;  %vm11584_vm15 = vmmov %vm11576_vm8 }
0x100e   : > { %v6348_v7 = vpack.i.bf16 %v10787_v19, %v10784_v28  ;;  %v4945_v29 = vmul.f32 %v10787_v19, %v11549_v35  ;;  %v4943_v43 = vmul.f32 %v10787_v19, %v11551_v44  ;;  %v4941_v45 = vmul.f32 %v10787_v19, %v11552_v61 }
0x100f   : > { %v4938_v35 = vmul.f32 %v11555_v31, %v10784_v28  ;;  %v4939_v44 = vmul.f32 %v10787_v19, %v11553_v32  ;;  %v4936_v12 = vmul.f32 %v11559_v1, %v10784_v28  ;;  %v4937_v61 = vmul.f32 %v10787_v19, %v11558_v11 }
0x1010   : > { %6349 = vrot.lane.b32.xlu1 %v6348_v7, %s11282_s16  ;;  %v6358_v34 = vpack.i.bf16 %v4945_v29, %v4944_v56  ;;  %v6363_v46 = vpack.i.bf16 %v4943_v43, %v4942_v40  ;;  %v6368_v37 = vpack.i.bf16 %v4941_v45, %v4940_v49  ;;  %v4935_v52 = vmul.f32 %v11564_v10, %v10787_v19  ;;  %v6628_v10 = vld [vmem:[%s11035_s11 + $0x30] sm:$0x1]  ;;  %v6638_v19 = vld [vmem:[%s11035_s11 + $0x8] sm:$0xff]  ;;  %v6639_v56 = vld [vmem:[%s11035_s11 + $0x38] sm:$0xff] }
0x1011   : > { %v6373_v50 = vpack.i.bf16 %v4939_v44, %v4938_v35  ;;  %v6378_v31 = vpack.i.bf16 %v4937_v61, %v4936_v12  ;;  %v4934_v51 = vmul.f32 %v11565_v55, %v10784_v28  ;;  %v6629_v55 = vld [vmem:[%s11035_s11 + $0x60] sm:$0xff]  ;;  %v6643_v43 = vld [vmem:[%s11035_s11 + $0x108] sm:$0xff]  ;;  %v6646_v49 = vld [vmem:[%s11035_s11 + $0x90] sm:$0xff] }
0x1012   : > { %6359 = vrot.lane.b32.xlu0 %v6358_v34, %s11341_s25  ;;  %6364 = vrot.lane.b32.xlu2 %v6363_v46, %s11286_s30  ;;  %v6637_v28 = vld [vmem:[%s11035_s11 + $0x40] sm:$0xff]  ;;  %v6644_v34 = vld [vmem:[%s11035_s11 + $0x98] sm:$0xff]  ;;  %s5336_s25 = sshll.u32 %s5332_s17, 4  ;;  %s5337_s25 = int_to_ptr.hbm [resolvable:$true] %s5336_s25 }
0x1013   : > { %v6640_v40 = vld [vmem:[%s11035_s11] sm:$0xff]  ;;  %v6647_v45 = vld [vmem:[%s11035_s11 + $0xf8] sm:$0xff]  ;;  %v6648_v35 = vld [vmem:[%s11035_s11 + $0x88] sm:$0xff]  ;;  %s6684_s2 = sshra.s32 %s5337_s25, 4  ;;  %s6685_s2 = int_to_ptr.hbm [resolvable:$true] %s6684_s2 }
0x1014   : > { %v6642_v29 = vld [vmem:[%s11035_s11 + $0xa0] sm:$0x1]  ;;  %v6649_v44 = vld [vmem:[%s11035_s11 + $0xf0] sm:$0xff]  ;;  %v6652_v12 = vld [vmem:[%s11035_s11 + $0x78] sm:$0xff]  ;;  %p6691_p0 = scmp.lt.s32.totalorder %s6685_s2, %s11037_s13 }
0x1015   : > { %v6645_v46 = vld [vmem:[%s11035_s11 + $0x100] sm:$0xff] }
0x1016   : > { %v6653_v61 = vld [vmem:[%s11035_s11 + $0xe0] sm:$0xff] }
0x1018   : > { %6354 = vrot.lane.b32.xlu1 %v6348_v7, %s11556_s23 }
0x101a   : > { %6369 = vrot.lane.b32.xlu0 %v6368_v37, %s11557_s18  ;;  %6374 = vrot.lane.b32.xlu2 %v6373_v50, %s11360_s15  ;;  %v6650_v37 = vld [vmem:[%s11035_s11 + $0x80] sm:$0xff]  ;;  %v6651_v50 = vld [vmem:[%s11035_s11 + $0xe8] sm:$0xff] }
0x1020   : > { %6384 = vrot.lane.b32.xlu1 %v6348_v7, %s11284_s20  ;;  %v6641_v7 = vld [vmem:[%s11035_s11 + $0x110] sm:$0x1] }
0x1022   : > { %6379 = vrot.lane.b32.xlu0 %v6378_v31, %s11287_s22  ;;  %v6654_v31 = vld [vmem:[%s11035_s11 + $0x70] sm:$0xff]  ;;  %s431_s22 = scalar_lea.vmem [#allocation2], %s5400_s0 }
0x1023   : > { %s5334_s16 = sshll.u32 %s431_s22, 4  ;;  %s5335_s16 = int_to_ptr.vmem [resolvable:$true] %s5334_s16 }
0x106c   : > { %v6365_v32 = vpop.permute.xlu2 %6364 }
0x106d   : > { %v6367_v5 = vunpack.i.h.bf16 %v6365_v32  ;;  %v6366_v39 = vunpack.i.l.bf16 %v6365_v32 }
0x106f   : > { %v4995_v63 = vsel %vm1404_vm3, %v6366_v39, %v6367_v5  ;;  %vm11575_vm3 = vmmov %vm11562_vm9 }
0x1070   : > { %vm11589_vm14 = vmmov %vm11575_vm3 }
0x1074   : > { %v6375_v30 = vpop.permute.xlu2 %6374 }
0x1075   : > { %v6377_v25 = vunpack.i.h.bf16 %v6375_v30  ;;  %v6376_v38 = vunpack.i.l.bf16 %v6375_v30 }
0x1077   : > { %v4970_v62 = vsel %vm11575_vm3, %v6376_v38, %v6377_v25  ;;  %v6659_v38 = vld [vmem:[%s11035_s11 + $0x198] sm:$0xff] }
0x1082   : > { %v6350_v24 = vpop.permute.xlu1 %6349 }
0x1083   : > { %v6352_v14 = vunpack.i.h.bf16 %v6350_v24  ;;  %v6351_v48 = vunpack.i.l.bf16 %v6350_v24  ;;  %v11583_v24 = vld [vmem:[#allocation46_spill] sm:$0xff] }
0x1084   : > { %v6360_v36 = vpop.permute.xlu0 %6359 }
0x1085   : > { %v6362_v0 = vunpack.i.h.bf16 %v6360_v36  ;;  %v6361_v54 = vunpack.i.l.bf16 %v6360_v36  ;;  %v5002_v11 = vsel %vm1439_vm4, %v6351_v48, %v6352_v14  ;;  %vm11574_vm4 = vmmov %vm11561_vm11 }
0x1087   : > { %5041 = vmatpush.msrb.mxu0 %v6362_v0  ;;  %v5011_v1 = vsel %vm1481_vm7, %v6361_v54, %v6362_v0  ;;  %vm11573_vm7 = vmmov %vm11560_vm1 }
0x1088   : > { %5021 = vmatpush.msrb.mxu2 %v5011_v1  ;;  %vm11579_vm1 = vmmov %vm11570_vm6 }
0x1089   : > { %5042 = vmatpush.msrb.mxu0 %v6352_v14  ;;  %vm11580_vm11 = vmmov %vm11579_vm1 }
0x108a   : > { %v6355_v6 = vpop.permute.xlu1 %6354  ;;  %5022 = vmatpush.msrb.mxu2 %v5002_v11  ;;  %vm11581_vm9 = vmmov %vm11579_vm1 }
0x108b   : > { %5043 = vmatpush.msrb.mxu0 %v6367_v5  ;;  %v6357_v21 = vunpack.i.h.bf16 %v6355_v6  ;;  %v6356_v2 = vunpack.i.l.bf16 %v6355_v6  ;;  %vm11582_vm10 = vmmov %vm11579_vm1 }
0x108c   : > { %5023 = vmatpush.msrb.mxu2 %v4995_v63  ;;  %v6370_v58 = vpop.permute.xlu0 %6369  ;;  %vm11588_vm6 = vmmov %vm11579_vm1 }
0x108d   : > { %v6372_v33 = vunpack.i.h.bf16 %v6370_v58  ;;  %v6371_v22 = vunpack.i.l.bf16 %v6370_v58  ;;  %v4977_v17 = vsel %vm11574_vm4, %v6356_v2, %v6357_v21  ;;  %v6655_v2 = vld [vmem:[%s11035_s11 + $0x1b8] sm:$0x1]  ;;  %vm11591_vm4 = vmmov %vm11579_vm1 }
0x108f   : > { %5044 = vmatpush.msrb.mxu0 %v6372_v33  ;;  %v4986_v23 = vsel %vm11573_vm7, %v6371_v22, %v6372_v33  ;;  %v6656_v33 = vld [vmem:[%s11035_s11 + $0x1b0] sm:$0xff]  ;;  %v6657_v22 = vld [vmem:[%s11035_s11 + $0x1a8] sm:$0xff]  ;;  %vm11590_vm7 = vcmask 400384  }
0x1090   : > { %5024 = vmatpush.msrb.mxu2 %v4986_v23  ;;  %v6660_v23 = vld [vmem:[%s11035_s11 + $0x190] sm:$0xff]  ;;  %vm11592_vm3 = vmmov %vm11590_vm7 }
0x1091   : > { %5045 = vmatpush.msrb.mxu0 %v6357_v21 }
0x1092   : > { %v6385_v59 = vpop.permute.xlu1 %6384  ;;  %5025 = vmatpush.msrb.mxu2 %v4977_v17  ;;  %v6661_v17 = vld [vmem:[%s11035_s11 + $0x188] sm:$0xff] }
0x1093   : > { %5046 = vmatpush.msrb.mxu0 %v6377_v25  ;;  %v6387_v4 = vunpack.i.h.bf16 %v6385_v59  ;;  %v6386_v18 = vunpack.i.l.bf16 %v6385_v59  ;;  %v6658_v25 = vld [vmem:[%s11035_s11 + $0x1a0] sm:$0xff] }
0x1094   : > { %5026 = vmatpush.msrb.mxu2 %v4970_v62  ;;  %v6380_v53 = vpop.permute.xlu0 %6379 }
0x1095   : > { %v6382_v27 = vunpack.i.h.bf16 %v6380_v53  ;;  %v6381_v47 = vunpack.i.l.bf16 %v6380_v53  ;;  %v4952_v9 = vsel %vm11576_vm8, %v6386_v18, %v6387_v4  ;;  %vm11593_vm8 = vmmov %vm11592_vm3 }
0x1097   : > { %5047 = vmatpush.msrb.mxu0 %v6382_v27  ;;  %v4961_v26 = vsel %vm1362_vm2, %v6381_v47, %v6382_v27  ;;  %vm11578_vm2 = vmmov %vm11567_vm0  ;;  %vm11585_vm0 = vcmask 547840  }
0x1098   : > { %5027 = vmatpush.msrb.mxu2 %v4961_v26 }
0x1099   : > { %5048 = vmatpush.msrb.mxu0 %v6387_v4 }
0x109a   : > { %5028 = vmatpush.msrb.mxu2 %v4952_v9 }
0x109b   : > { %5049 = vmatpush.msrb.mxu0 %v4935_v52  ;;  %v6662_v52 = vld [vmem:[%s11035_s11 + $0x180] sm:$0x1] }
0x109c   : > { %5029 = vmatpush.msrb.mxu2 %v4934_v51  ;;  %5540 = vmatmul.msk.f32.vlgmr.msrb.gmra.mxu0 %vm11577_vm13, %v6626_v60  ;;  %vm11594_vm13 = vmmov %vm11592_vm3  ;;  %v6663_v51 = vld [vmem:[%s11035_s11 + $0x178] sm:$0xff] }
0x109d   : > { %5539 = vmatmul.msk.f32.vlgmr.msrb.gmra.mxu2 %vm11578_vm2, %v6626_v60  ;;  %5545 = vmatpush.msk.msra.mxu0 %vm11579_vm1, %v6627_v20  ;;  %v6664_v60 = vld [vmem:[%s11035_s11 + $0x170] sm:$0xff]  ;;  %vm11595_vm2 = vmmov %vm11592_vm3 }
0x109e   : > { %5543 = vmatpush.msk.msra.mxu2 %vm11580_vm11, %v6628_v10  ;;  %v6665_v10 = vld [vmem:[%s11035_s11 + $0x168] sm:$0xff]  ;;  %vm11596_vm1 = vmmov %vm11595_vm2 }
0x109f   : > { %5160 = vmatpush.msra.mxu0 %v6629_v55  ;;  %vm11597_vm11 = vmmov %vm11596_vm1 }
0x10a0   : > { %5136 = vmatpush.msra.mxu2 %v6630_v3 }
0x10a1   : > { %5161 = vmatpush.msra.mxu0 %v6631_v8  ;;  %v6666_v8 = vld [vmem:[%s11035_s11 + $0x160] sm:$0xff] }
0x10a2   : > { %5137 = vmatpush.msra.mxu2 %v6632_v41  ;;  %v6667_v41 = vld [vmem:[%s11035_s11 + $0x158] sm:$0xff] }
0x10a3   : > { %5162 = vmatpush.msra.mxu0 %v6633_v57  ;;  %v6668_v57 = vld [vmem:[%s11035_s11 + $0x150] sm:$0xff] }
0x10a4   : > { %5138 = vmatpush.msra.mxu2 %v6634_v42 }
0x10a5   : > { %5163 = vmatpush.msra.mxu0 %v6635_v15 }
0x10a6   : > { %5139 = vmatpush.msra.mxu2 %v6636_v13 }
0x10a7   : > { %5164 = vmatpush.msra.mxu0 %v6637_v28  ;;  %v6669_v28 = vld [vmem:[%s11036_s12] sm:$0x1] }
0x10a8   : > { %5140 = vmatpush.msra.mxu2 %v6638_v19 }
0x10a9   : > { %5165 = vmatpush.msra.mxu0 %v6639_v56 }
0x10aa   : > { %5141 = vmatpush.msra.mxu2 %v6640_v40 }
0x10ab   : > { %5551 = vmatpush.msk.msrb.mxu0 %vm11581_vm9, %v6641_v7  ;;  %vm11598_vm9 = vmmov %vm11596_vm1 }
0x10ac   : > { %5547 = vmatpush.msk.msrb.mxu2 %vm11582_vm10, %v6642_v29  ;;  %vm5319_vm10 = vcmask 74752  }
0x10ad   : > { %5232 = vmatpush.msrb.mxu0 %v6643_v43 }
0x10ae   : > { %5184 = vmatpush.msrb.mxu2 %v6644_v34 }
0x10af   : > { %5233 = vmatpush.msrb.mxu0 %v6645_v46 }
0x10b0   : > { %5185 = vmatpush.msrb.mxu2 %v6646_v49 }
0x10b1   : > { %5234 = vmatpush.msrb.mxu0 %v6647_v45 }
0x10b2   : > { %5186 = vmatpush.msrb.mxu2 %v6648_v35 }
0x10b3   : > { %5235 = vmatpush.msrb.mxu0 %v6649_v44 }
0x10b4   : > { %5187 = vmatpush.msrb.mxu2 %v6650_v37 }
0x10b5   : > { %5236 = vmatpush.msrb.mxu0 %v6651_v50 }
0x10b6   : > { %5188 = vmatpush.msrb.mxu2 %v6652_v12 }
0x10b7   : > { %5237 = vmatpush.msrb.mxu0 %v6653_v61 }
0x10b8   : > { %5189 = vmatpush.msrb.mxu2 %v6654_v31 }
0x1119   : > { %v5051_v32 = vpop.f32.mrf.mxu0 }
0x111a   : > { %v5052_v36 = vadd.f32 %v5051_v32, %v11583_v24 }
0x111c   : > { %v5055_v14 = vmax.f32 %v5052_v36, 0.0 }
0x111e   : > { %5060 = vrot.lane.b32.xlu0 %v5055_v14, %s11284_s20 }
0x1120   : > { %v5031_v48 = vpop.f32.mrf.mxu2 }
0x1121   : > { %v5032_v0 = vadd.f32 %v5031_v48, %v11583_v24 }
0x1123   : > { %v5054_v54 = vmax.f32 %v5032_v0, 0.0 }
0x1125   : > { %5058 = vrot.lane.b32.xlu2 %v5054_v54, %s11284_s20  ;;  %s6686_s20 = scalar_lea.hbm %s6685_s2, 2 }
0x1126   : > { %p6687_p11 = scmp.ne.s32.totalorder %s6685_s2, %s6686_s20  ;;  %p6692_p1 = scmp.lt.s32.totalorder %s6690_s21, %s6686_s20 }
0x1128   : > { %p6688_p12 = pnand %p6687_p11, %p6864_p5  ;;  %p6693_p2 = por %p6692_p1, %p6691_p0 }
0x112a   : > { %p6689_p13 = pneg %p6688_p12 }
0x112c   : > { %p6694_p3 = pnand %p6693_p2, %p6689_p13 }
0x117f   : > { %v5059_v5 = vpop.permute.xlu2 %5058 }
0x1190   : > { %v5061_v39 = vpop.permute.xlu0 %5060 }
0x1191   : > { %v5062_v1 = vsel %vm11584_vm15, %v5059_v5, %v5061_v39  ;;  %v5065_v11 = vsel %vm11585_vm0, %v5061_v39, 0.0  ;;  %vm11600_vm15 = vmmov %vm11591_vm4 }
0x1192   : > { %v5066_v6 = vmax.f32 %v5054_v54, %v5062_v1  ;;  %v5067_v63 = vmax.f32 %v5055_v14, %v5065_v11 }
0x1194   : > { %5072 = vrot.lane.b32.xlu2 %v5067_v63, %s11360_s15  ;;  %5070 = vrot.lane.b32.xlu1 %v5066_v6, %s11360_s15 }
0x11ee   : > { %v5073_v30 = vpop.permute.xlu2 %5072 }
0x11ef   : > { %v5077_v58 = vsel %vm11586_vm5, %v5073_v30, 0.0 }
0x11f0   : > { %v5079_v21 = vmax.f32 %v5067_v63, %v5077_v58 }
0x11f2   : > { %5542 = vmatmul.msk.f32.vlgmr.msra.gmra.mxu1 %vm11587_vm12, %v5079_v21 }
0x11f3   : > { %5557 = vmatpush.msk.msra.mxu1 %vm11588_vm6, %v6655_v2 }
0x11f5   : > { %5304 = vmatpush.msra.mxu1 %v6656_v33 }
0x11f7   : > { %5305 = vmatpush.msra.mxu1 %v6657_v22 }
0x11f9   : > { %5306 = vmatpush.msra.mxu1 %v6658_v25 }
0x11fb   : > { %5307 = vmatpush.msra.mxu1 %v6659_v38 }
0x11fd   : > { %5308 = vmatpush.msra.mxu1 %v6660_v23 }
0x11ff   : > { %5309 = vmatpush.msra.mxu1 %v6661_v17 }
0x1206   : > { %v5071_v59 = vpop.permute.xlu1 %5070 }
0x1207   : > { %v5074_v62 = vsel %vm11589_vm14, %v5071_v59, %v5073_v30 }
0x1208   : > { %v5078_v53 = vmax.f32 %v5066_v6, %v5074_v62 }
0x120a   : > { %5099 = vmatmul.f32.vlgmr.msra.gmra.mxu3 %v5078_v53 }
0x126f   : > { %v5120_v4 = vpop.f32.mrf.mxu1 }
0x128d   : > { %v5100_v18 = vpop.f32.mrf.mxu3 }
0x128e   : > { %v5121_v27 = vadd.f32 %v5120_v4, %v5100_v18 }
0x1290   : > { %5544 = vmatmul.msk.f32.vlgmr.msra.gmra.mxu2 %vm11590_vm7, %v5121_v27  ;;  %v5147_v47 = vrot.slane %v5121_v27, 1  ;;  %v5195_v26 = vrot.slane %v5121_v27, 3  ;;  %v5243_v9 = vrot.slane %v5121_v27, 5  ;;  %v5171_v20 = vrot.slane %v5121_v27, 2 }
0x1291   : > { %5555 = vmatpush.msk.msra.mxu2 %vm11591_vm4, %v6662_v52  ;;  %v5219_v55 = vrot.slane %v5121_v27, 4  ;;  %v5291_v3 = vrot.slane %v5121_v27, 7  ;;  %v5267_v42 = vrot.slane %v5121_v27, 6 }
0x1292   : > { %5546 = vmatmul.msk.f32.vlgmr.msra.gmra.mxu0 %vm11592_vm3, %v5147_v47  ;;  %5550 = vmatmul.msk.f32.vlgmr.msrb.gmra.mxu1 %vm11593_vm8, %v5195_v26 }
0x1293   : > { %5554 = vmatmul.msk.f32.vlgmr.msrb.gmra.mxu3 %vm11594_vm13, %v5243_v9  ;;  %5280 = vmatpush.msra.mxu2 %v6663_v51 }
0x1295   : > { %5281 = vmatpush.msra.mxu2 %v6664_v60 }
0x1297   : > { %5282 = vmatpush.msra.mxu2 %v6665_v10 }
0x1298   : > { %5548 = vmatmul.msk.f32.vlgmr.msrb.gmra.mxu2 %vm11595_vm2, %v5171_v20 }
0x1299   : > { %5283 = vmatpush.msra.mxu2 %v6666_v8 }
0x129a   : > { %5552 = vmatmul.msk.f32.vlgmr.msrb.gmra.mxu0 %vm11596_vm1, %v5219_v55  ;;  %5558 = vmatmul.msk.f32.vlgmr.msra.gmra.mxu1 %vm11597_vm11, %v5291_v3 }
0x129b   : > { %5284 = vmatpush.msra.mxu2 %v6667_v41 }
0x129d   : > { %5285 = vmatpush.msra.mxu2 %v6668_v57 }
0x12a0   : > { %5556 = vmatmul.msk.f32.vlgmr.msra.gmra.mxu2 %vm11598_vm9, %v5267_v42 }
0x130f   : > { %v5167_v13 = vpop.f32.mrf.mxu0  ;;  %v5215_v40 = vpop.f32.mrf.mxu1 }
0x1313   : > { %v5143_v15 = vpop.f32.mrf.mxu2 }
0x1314   : > { %v5146_v19 = vadd.f32 %v6669_v28, %v5143_v15 }
0x1316   : > { %v5170_v56 = vadd.f32 %v5167_v13, %v5146_v19  ;;  %v5263_v49 = vpop.f32.mrf.mxu3 }
0x1317   : > { %v5239_v34 = vpop.f32.mrf.mxu0  ;;  %v5311_v37 = vpop.f32.mrf.mxu1 }
0x131b   : > { %v5191_v7 = vpop.f32.mrf.mxu2 }
0x131c   : > { %v5194_v29 = vadd.f32 %v5191_v7, %v5170_v56 }
0x131e   : > { %v5218_v43 = vadd.f32 %v5215_v40, %v5194_v29 }
0x1320   : > { %v5242_v46 = vadd.f32 %v5239_v34, %v5218_v43 }
0x1322   : > { %v5266_v45 = vadd.f32 %v5263_v49, %v5242_v46 }
0x1323   : > { %v5287_v35 = vpop.f32.mrf.mxu2 }
0x1324   : > { %v5290_v44 = vadd.f32 %v5287_v35, %v5266_v45 }
0x1326   : > { %v5314_v50 = vadd.f32 %v5311_v37, %v5290_v44 }
0x1328   : > { %v5316_v12 = vperm.slane %v5314_v50, 0 }
0x132a   : > { %v5318_v61 = vsel %vm11600_vm15, %v9594_v16, %v5316_v12 }
0x132b   : > { %5320 = vst.msk [vmem:[%s431_s22] sm:$0x3] %vm5319_vm10, %v5318_v61 }
0x132c   : > { %6697 = shalt.err (!%p6694_p3)
}
0x132d   : > { %5564 = dma.vmem_to_hbm [thread:$0]  (%p6864_p5), %s5335_s16, 32, %s5337_s25, %s5322_s29  }
0x132e PF: > { %s11601_s28 = sld [smem:[#allocation7_spill]] }
0x132f   : > { %s11602_s8 = sld [smem:[#allocation5_spill]] }
0x1334   : > { %p5570_p4 = scmp.ge.s32.totalorder %s11601_s28, 2 }
0x1335   : > { %s5348_s19 = sand.u32 1, %s11602_s8  }
0x1336   : > { %p5567_p7 = pnand %p5570_p4, %p6868_p6  ;;  %s5349_s0 = scalar_lea.sflag [#allocation3], %s5348_s19 }
0x1338   : > { %p5568_p8 = pneg %p5567_p7 }
0x133a   : > { %6715 = dma.done.wait (%p5568_p8), %s5349_s0, 32  }
0x133b   : > { %6717 = vsyncadd (%p5568_p8), %s5349_s0, 4294967264  ;;  %s11604_s28 = sld [smem:[#allocation8_spill]]  ;;  %s11607_s25 = smov %s6724_s26 }
0x133c   : > { %s11605_s27 = sld [smem:[#allocation6_spill]] }
0x133d   : > { %s11606_s24 = sld [smem:[#allocation9_spill]] }
0x1341   : > { %p23_p9 = scmp.ge.s32.totalorder %s11604_s28, 4  }
0x1342   : > { %s11608_s26 = smov %s11605_s27 }
0x1343   : > { %s11609_s27 = smov %s11606_s24  ;;  %25 = sbr.rel (!%p23_p9) target bundleno = 9 (0x9), region = 115 }
0x1348   :  { %5355 = vsyncpa [#allocation3], 1 }
0x1349   :  { %5357 = vsyncpa [#allocation3 + $0x1], 1 }

</bundles_post_ra>
